<compile_context>
chip_gen: v5e
topology: v5e:2x2
jax: 0.10.0
libtpu: 0.0.40
codegen_flags: <defaults>
</compile_context>

<pallas_src>
import functools
import numpy as np

import jax
import jax.numpy as jnp
from jax.experimental import pallas as pl
from jax.experimental.pallas import tpu as pltpu


POOL_SCALES = (1, 2, 3, 6)
BN_EPS = 1e-5
CONV_OUT = 512        # conv6 ConvBnRelu output channels (fixed by the module)
CK = 512              # reduction (channel) tile, multiple of 128; sweep 256..1024 per chip
ROW_ALIGN = 16        # bf16 sublane packing granularity -> aligned in-kernel row slices


def _round_up(x, m):
    return ((x + m - 1) // m) * m


# -----------------------------------------------------------------------------
# Pallas kernel: fused 3x3 conv (stride 1, pad 1) + folded BatchNorm + ReLU
# Grid = (batch [parallel], channel-tiles [arbitrary, innermost reduction]).
# One grid step processes one image slab against one CK-wide channel chunk.
# -----------------------------------------------------------------------------
def _conv3x3_bn_relu_kernel(a_ref, w_ref, shift_ref, o_ref, *, wp, n_rows):
    """
    a_ref     : ((H+2)*wp, CK)      bf16  width-unrolled, height-haloed activations
    w_ref     : (3, CK, CONV_OUT)   bf16  per-row-tap weights (BN scale folded in)
    shift_ref : (1, CONV_OUT)       f32   folded BN shift
    o_ref     : (n_rows, CONV_OUT)  f32   resident accumulator / output (n_rows = H*wp)
    """
    k = pl.program_id(1)

    @pl.when(k == 0)
    def _():
        o_ref[...] = jnp.zeros_like(o_ref)

    acc = jnp.zeros(o_ref.shape, jnp.float32)
    for ky in range(3):
        # Row tap ky = a static, 16-row-aligned window into the haloed slab.
        a_tap = a_ref[pl.ds(ky * wp, n_rows), :]
        acc = acc + jnp.dot(a_tap, w_ref[ky], preferred_element_type=jnp.float32)
    o_ref[...] += acc

    @pl.when(k == pl.num_programs(1) - 1)
    def _():
        # f32 epilogue, lane-dense (CONV_OUT = 512) stores.
        o_ref[...] = jnp.maximum(o_ref[...] + shift_ref[...], 0.0)


def conv3x3_bn_relu(x_nhwc, w, scale, shift, *, ck=CK):
    """3x3 conv (stride 1, pad 1, no bias) + folded BN + ReLU.

    x_nhwc: (N, H, W, Cin);  w: (3, 3, Cin, CONV_OUT);  scale/shift: (CONV_OUT,)
    Returns (N, H, W, CONV_OUT) float32.
    """
    N, H, W, cin = x_nhwc.shape
    assert w.shape == (3, 3, cin, CONV_OUT)

    wp = _round_up(W, ROW_ALIGN)          # aligned row pitch (junk cols cropped later)
    n_rows = H * wp                       # flattened output rows per image
    a_rows = (H + 2) * wp                 # flattened input rows per image (height halo)
    k_pad = _round_up(3 * cin, ck)        # reduction size after width-tap unroll
    kt = k_pad // ck

    # ---- activations: bf16, width-tap unroll (3x), height halo, aligned pitch, K pad
    xb = x_nhwc.astype(jnp.bfloat16)
    xw = jnp.pad(xb, ((0, 0), (0, 0), (1, 1), (0, 0)))                              # width pad 1
    a3 = jnp.concatenate([xw[:, :, kx:kx + W, :] for kx in range(3)], axis=-1)      # (N,H,W,3*cin)
    a3 = jnp.pad(a3, ((0, 0), (1, 1), (0, wp - W), (0, k_pad - 3 * cin)))           # halo/pitch/K
    a = a3.reshape(N, a_rows, k_pad)
    # TODO(synk): for very large H*W a single per-image slab should itself be row-tiled
    # with halo margins (manual DMA); per-image blocks are ~8-20 MiB at PSPNet scales.

    # ---- weights: fold BN scale, match (kx, cin) channel order, zero-pad K, bf16
    wf = (w * scale[None, None, None, :]).reshape(3, 3 * cin, CONV_OUT)
    wf = jnp.pad(wf, ((0, 0), (0, k_pad - 3 * cin), (0, 0))).astype(jnp.bfloat16)
    shift2 = shift.reshape(1, CONV_OUT).astype(jnp.float32)

    kern = functools.partial(_conv3x3_bn_relu_kernel, wp=wp, n_rows=n_rows)
    flops = 2 * 3 * N * n_rows * k_pad * CONV_OUT
    bytes_accessed = int(a.size) * 2 + N * int(wf.size) * 2 + N * n_rows * CONV_OUT * 4

    y = pl.pallas_call(
        kern,
        out_shape=jax.ShapeDtypeStruct((N, n_rows, CONV_OUT), jnp.float32),
        grid_spec=pltpu.PrefetchScalarGridSpec(
            num_scalar_prefetch=0,
            grid=(N, kt),
            in_specs=[
                pl.BlockSpec((None, a_rows, ck), lambda n, k: (n, 0, k)),
                pl.BlockSpec((3, ck, CONV_OUT), lambda n, k: (0, k, 0)),
                pl.BlockSpec((1, CONV_OUT), lambda n, k: (0, 0)),
            ],
            out_specs=pl.BlockSpec((None, n_rows, CONV_OUT), lambda n, k: (n, 0, 0)),
        ),
        compiler_params=pltpu.CompilerParams(
            dimension_semantics=("parallel", "arbitrary"),
            vmem_limit_bytes=48 * 1024 * 1024,
        ),
        cost_estimate=pl.CostEstimate(
            flops=flops, transcendentals=0, bytes_accessed=bytes_accessed),
    )(a, wf, shift2)

    return y.reshape(N, H, wp, CONV_OUT)[:, :, :W, :]


# -----------------------------------------------------------------------------
# Small glue: exact PyTorch adaptive-avg-pool / bilinear(align_corners=True)
# as separable matrices, tiny 1x1 convs left to XLA (per perf review).
# -----------------------------------------------------------------------------
def adaptive_pool_matrix(in_size, out_size):
    P = np.zeros((out_size, in_size), np.float32)
    for i in range(out_size):
        start = (i * in_size) // out_size
        end = -((-(i + 1) * in_size) // out_size)  # ceil((i+1)*in/out)
        P[i, start:end] = 1.0 / (end - start)
    return jnp.asarray(P)


def bilinear_matrix(out_size, in_size):
    U = np.zeros((out_size, in_size), np.float32)
    if in_size == 1:
        U[:, 0] = 1.0
    else:
        for i in range(out_size):
            src = (i * (in_size - 1) / (out_size - 1)) if out_size > 1 else 0.0
            i0 = min(int(np.floor(src)), in_size - 2)
            f = src - i0
            U[i, i0] += 1.0 - f
            U[i, i0 + 1] += f
    return jnp.asarray(U)


def fold_bn(gamma, beta, mean, var, eps=BN_EPS):
    scale = gamma / jnp.sqrt(var + eps)
    shift = beta - mean * scale
    return scale, shift


def _conv1x1_bn_relu(x2d, w, scale, shift):
    # Tiny matmuls (M <= N*36 rows): plain XLA; BN scale folded into the weight.
    return jnp.maximum(x2d @ (w * scale[None, :]) + shift[None, :], 0.0)


# -----------------------------------------------------------------------------
# Parameters (deterministic, synthetic, inference-mode BN folded)
# -----------------------------------------------------------------------------
def init_params(key, fc_dim, out_planes):
    cnt = [0]

    def nk():
        cnt[0] += 1
        return jax.random.fold_in(key, cnt[0])

    def nrm(shape, std=0.02):
        return std * jax.random.normal(nk(), shape, jnp.float32)

    ppm = []
    for _ in POOL_SCALES:
        w = nrm((fc_dim, CONV_OUT))                   # 1x1 conv weight (Cin, Cout)
        gamma = 1.0 + nrm((CONV_OUT,), 0.1)
        beta = nrm((CONV_OUT,), 0.1)
        mean = nrm((CONV_OUT,), 0.1)
        var = jnp.abs(nrm((CONV_OUT,), 0.1)) + 1.0
        s, sh = fold_bn(gamma, beta, mean, var)
        ppm.append({"w": w, "scale": s, "shift": sh})

    cin6 = fc_dim + len(POOL_SCALES) * CONV_OUT
    w6 = nrm((3, 3, cin6, CONV_OUT))                  # 3x3 conv weight (kh, kw, Cin, Cout)
    gamma = 1.0 + nrm((CONV_OUT,), 0.1)
    beta = nrm((CONV_OUT,), 0.1)
    mean = nrm((CONV_OUT,), 0.1)
    var = jnp.abs(nrm((CONV_OUT,), 0.1)) + 1.0
    s6, sh6 = fold_bn(gamma, beta, mean, var)

    wf = nrm((CONV_OUT, out_planes))                  # final 1x1 conv (Cin, Cout)
    bf = nrm((out_planes,), 0.1)                      # final conv bias

    return {"ppm": ppm,
            "conv6": {"w": w6, "scale": s6, "shift": sh6},
            "final": {"w": wf, "b": bf}}


# -----------------------------------------------------------------------------
# Forward pass (matches PyramidPooling.forward in inference mode)
# -----------------------------------------------------------------------------
def pyramid_pooling_forward(x_nchw, params):
    N, C, H, W = x_nchw.shape
    x = jnp.transpose(x_nchw, (0, 2, 3, 1))                            # NCHW -> NHWC

    feats = [x]
    for s, p in zip(POOL_SCALES, params["ppm"]):
        Ph = adaptive_pool_matrix(H, s)
        Pw = adaptive_pool_matrix(W, s)
        pooled = jnp.einsum("sh,nhwc,tw->nstc", Ph, x, Pw)             # AdaptiveAvgPool2d
        y = _conv1x1_bn_relu(pooled.reshape(N * s * s, C),
                             p["w"], p["scale"], p["shift"]).reshape(N, s, s, CONV_OUT)
        Uh = bilinear_matrix(H, s)
        Uw = bilinear_matrix(W, s)
        feats.append(jnp.einsum("hs,nstc,wt->nhwc", Uh, y, Uw))        # bilinear, align_corners

    cat = jnp.concatenate(feats, axis=-1)                              # (N, H, W, C + 4*512)

    # conv6[0]: 3x3 ConvBnRelu -- the hot path, fused Pallas kernel.
    y = conv3x3_bn_relu(cat, params["conv6"]["w"],
                        params["conv6"]["scale"], params["conv6"]["shift"])

    # TODO(synk): conv6[1] Dropout2d(0.1) is the identity in inference mode;
    # training-mode channel dropout not implemented.

    # conv6[2]: final 1x1 conv with bias -- out_planes is lane-sparse (e.g. 8),
    # so this stays in XLA (a Pallas matmul would hit masked vst.msk stores).
    out_planes = params["final"]["w"].shape[1]
    out = y.reshape(N * H * W, CONV_OUT) @ params["final"]["w"] + params["final"]["b"]
    return out.reshape(N, H, W, out_planes).transpose(0, 3, 1, 2)      # back to NCHW


if __name__ == "__main__":
    key = jax.random.PRNGKey(0)

    # ---- unit check of the fused conv kernel against XLA f32 conv (bf16 tolerance)
    kc = jax.random.fold_in(key, 123)
    kw = jax.random.fold_in(key, 456)
    ks = jax.random.fold_in(key, 789)
    xt = jax.random.normal(kc, (2, 10, 7, 192), jnp.float32)
    wt = 0.02 * jax.random.normal(kw, (3, 3, 192, CONV_OUT), jnp.float32)
    sc = jnp.full((CONV_OUT,), 1.1, jnp.float32)
    sh = 0.05 * jax.random.normal(ks, (CONV_OUT,), jnp.float32)
    got = jax.block_until_ready(jax.jit(conv3x3_bn_relu)(xt, wt, sc, sh))
    ref = jnp.maximum(
        jax.lax.conv_general_dilated(
            xt, wt, (1, 1), "SAME",
            dimension_numbers=("NHWC", "HWIO", "NHWC")) * sc + sh, 0.0)
    assert got.shape == ref.shape, (got.shape, ref.shape)
    max_err = float(jnp.max(jnp.abs(got - ref)))
    assert max_err < 0.1, max_err

    # ---- full PyramidPooling forward at small, module-consistent shapes
    fc_dim = 128
    out_planes = 8
    N, H, W = 2, 12, 12                       # spatial divisible by pool scales 1,2,3,6

    kx_, kp = jax.random.split(key)
    x = jax.random.normal(kx_, (N, fc_dim, H, W), jnp.float32)
    params = init_params(kp, fc_dim, out_planes)

    fwd = jax.jit(pyramid_pooling_forward)
    out = jax.block_until_ready(fwd(x, params))

    assert out.shape == (N, out_planes, H, W), out.shape
    assert bool(jnp.all(jnp.isfinite(out)))
    print("KERNEL_OK")
</pallas_src>

<mosaic_0001>
module attributes {stable_mosaic.version = 11 : i64} {
  func.func @_conv3x3_bn_relu_kernel(%arg0: i32, %arg1: i32, %arg2: memref<1x192x512xbf16, #tpu.memory_space<vmem>>, %arg3: memref<3x512x512xbf16, #tpu.memory_space<vmem>>, %arg4: memref<1x512xf32, #tpu.memory_space<vmem>>, %arg5: memref<1x160x512xf32, #tpu.memory_space<vmem>>) attributes {dimension_semantics = [#tpu.dimension_semantics<parallel>, #tpu.dimension_semantics<arbitrary>], iteration_bounds = array<i64: 2, 2>, scalar_prefetch = 0 : i64, scratch_operands = 0 : i64, tpu.core_type = #tpu.core_type<tc>, window_params = [{transform_indices = @transform_0, window_bounds = array<i64: 1, 192, 512>}, {transform_indices = @transform_1, window_bounds = array<i64: 3, 512, 512>}, {pipeline_mode = #tpu.pipeline_mode<synchronous>, transform_indices = @transform_2, window_bounds = array<i64: 1, 512>}, {transform_indices = @transform_3, window_bounds = array<i64: 1, 160, 512>}]} {
    %c0_i32 = arith.constant 0 : i32
    %0 = arith.cmpi eq, %arg1, %c0_i32 : i32
    %1 = arith.extui %0 : i1 to i32
    %c0_i32_0 = arith.constant 0 : i32
    %2 = arith.cmpi ne, %1, %c0_i32_0 : i32
    scf.if %2 {
      %cst_24 = arith.constant 0.000000e+00 : f32
      %31 = vector.broadcast %cst_24 : f32 to vector<160x512xf32>
      %c0_25 = arith.constant 0 : index
      %c0_26 = arith.constant 0 : index
      %c0_27 = arith.constant 0 : index
      %32 = vector.load %arg5[%c0_25, %c0_26, %c0_27] : memref<1x160x512xf32, #tpu.memory_space<vmem>>, vector<1x160x512xf32>
      %33 = vector.shape_cast %32 : vector<1x160x512xf32> to vector<160x512xf32>
      %34 = vector.shape_cast %31 : vector<160x512xf32> to vector<1x160x512xf32>
      tpu.vector_store %arg5[%c0_25, %c0_26, %c0_27], %34 {strides = array<i32>} : memref<1x160x512xf32, #tpu.memory_space<vmem>>, vector<1x160x512xf32>,
    } else {
    }
    %cst = arith.constant 0.000000e+00 : f32
    %3 = vector.broadcast %cst : f32 to vector<160x512xf32>
    %c0 = arith.constant 0 : index
    %c0_1 = arith.constant 0 : index
    %c0_2 = arith.constant 0 : index
    %4 = vector.load %arg2[%c0, %c0_1, %c0_2] : memref<1x192x512xbf16, #tpu.memory_space<vmem>>, vector<1x160x512xbf16>
    %5 = vector.shape_cast %4 : vector<1x160x512xbf16> to vector<160x512xbf16>
    %c0_3 = arith.constant 0 : index
    %c0_4 = arith.constant 0 : index
    %c0_5 = arith.constant 0 : index
    %6 = vector.load %arg3[%c0_3, %c0_4, %c0_5] : memref<3x512x512xbf16, #tpu.memory_space<vmem>>, vector<1x512x512xbf16>
    %7 = vector.shape_cast %6 : vector<1x512x512xbf16> to vector<512x512xbf16>
    %cst_6 = arith.constant dense<0.000000e+00> : vector<160x512xf32>
    %8 = tpu.matmul %5, %7, %cst_6 {dimension_numbers = #tpu.dot_dimension_numbers<[1], [0], [0], [1], [0, 0, 1, 1], [], []>} : vector<160x512xbf16>, vector<512x512xbf16>, vector<160x512xf32> -> vector<160x512xf32>
    %9 = arith.addf %3, %8 : vector<160x512xf32>
    %c0_7 = arith.constant 0 : index
    %c16 = arith.constant 16 : index
    %c0_8 = arith.constant 0 : index
    %10 = vector.load %arg2[%c0_7, %c16, %c0_8] : memref<1x192x512xbf16, #tpu.memory_space<vmem>>, vector<1x160x512xbf16>
    %11 = vector.shape_cast %10 : vector<1x160x512xbf16> to vector<160x512xbf16>
    %c1 = arith.constant 1 : index
    %c0_9 = arith.constant 0 : index
    %c0_10 = arith.constant 0 : index
    %12 = vector.load %arg3[%c1, %c0_9, %c0_10] : memref<3x512x512xbf16, #tpu.memory_space<vmem>>, vector<1x512x512xbf16>
    %13 = vector.shape_cast %12 : vector<1x512x512xbf16> to vector<512x512xbf16>
    %cst_11 = arith.constant dense<0.000000e+00> : vector<160x512xf32>
    %14 = tpu.matmul %11, %13, %cst_11 {dimension_numbers = #tpu.dot_dimension_numbers<[1], [0], [0], [1], [0, 0, 1, 1], [], []>} : vector<160x512xbf16>, vector<512x512xbf16>, vector<160x512xf32> -> vector<160x512xf32>
    %15 = arith.addf %9, %14 : vector<160x512xf32>
    %c0_12 = arith.constant 0 : index
    %c32 = arith.constant 32 : index
    %c0_13 = arith.constant 0 : index
    %16 = vector.load %arg2[%c0_12, %c32, %c0_13] : memref<1x192x512xbf16, #tpu.memory_space<vmem>>, vector<1x160x512xbf16>
    %17 = vector.shape_cast %16 : vector<1x160x512xbf16> to vector<160x512xbf16>
    %c2 = arith.constant 2 : index
    %c0_14 = arith.constant 0 : index
    %c0_15 = arith.constant 0 : index
    %18 = vector.load %arg3[%c2, %c0_14, %c0_15] : memref<3x512x512xbf16, #tpu.memory_space<vmem>>, vector<1x512x512xbf16>
    %19 = vector.shape_cast %18 : vector<1x512x512xbf16> to vector<512x512xbf16>
    %cst_16 = arith.constant dense<0.000000e+00> : vector<160x512xf32>
    %20 = tpu.matmul %17, %19, %cst_16 {dimension_numbers = #tpu.dot_dimension_numbers<[1], [0], [0], [1], [0, 0, 1, 1], [], []>} : vector<160x512xbf16>, vector<512x512xbf16>, vector<160x512xf32> -> vector<160x512xf32>
    %21 = arith.addf %15, %20 : vector<160x512xf32>
    %c0_17 = arith.constant 0 : index
    %c0_18 = arith.constant 0 : index
    %c0_19 = arith.constant 0 : index
    %22 = vector.load %arg5[%c0_17, %c0_18, %c0_19] : memref<1x160x512xf32, #tpu.memory_space<vmem>>, vector<1x160x512xf32>
    %23 = vector.shape_cast %22 : vector<1x160x512xf32> to vector<160x512xf32>
    %24 = arith.addf %23, %21 : vector<160x512xf32>
    %c0_20 = arith.constant 0 : index
    %c0_21 = arith.constant 0 : index
    %c0_22 = arith.constant 0 : index
    %25 = vector.load %arg5[%c0_20, %c0_21, %c0_22] : memref<1x160x512xf32, #tpu.memory_space<vmem>>, vector<1x160x512xf32>
    %26 = vector.shape_cast %25 : vector<1x160x512xf32> to vector<160x512xf32>
    %27 = vector.shape_cast %24 : vector<160x512xf32> to vector<1x160x512xf32>
    tpu.vector_store %arg5[%c0_20, %c0_21, %c0_22], %27 {strides = array<i32>} : memref<1x160x512xf32, #tpu.memory_space<vmem>>, vector<1x160x512xf32>,
    %c1_i32 = arith.constant 1 : i32
    %28 = arith.cmpi eq, %arg1, %c1_i32 : i32
    %29 = arith.extui %28 : i1 to i32
    %c0_i32_23 = arith.constant 0 : i32
    %30 = arith.cmpi ne, %29, %c0_i32_23 : i32
    scf.if %30 {
      %c0_24 = arith.constant 0 : index
      %c0_25 = arith.constant 0 : index
      %c0_26 = arith.constant 0 : index
      %31 = vector.load %arg5[%c0_24, %c0_25, %c0_26] : memref<1x160x512xf32, #tpu.memory_space<vmem>>, vector<1x160x512xf32>
      %32 = vector.shape_cast %31 : vector<1x160x512xf32> to vector<160x512xf32>
      %c0_27 = arith.constant 0 : index
      %c0_28 = arith.constant 0 : index
      %33 = vector.load %arg4[%c0_27, %c0_28] : memref<1x512xf32, #tpu.memory_space<vmem>>, vector<1x512xf32>
      %34 = vector.broadcast %33 : vector<1x512xf32> to vector<160x512xf32>
      %35 = arith.addf %32, %34 : vector<160x512xf32>
      %cst_29 = arith.constant 0.000000e+00 : f32
      %36 = vector.broadcast %cst_29 : f32 to vector<160x512xf32>
      %37 = arith.maximumf %35, %36 : vector<160x512xf32>
      %c0_30 = arith.constant 0 : index
      %c0_31 = arith.constant 0 : index
      %c0_32 = arith.constant 0 : index
      %38 = vector.load %arg5[%c0_30, %c0_31, %c0_32] : memref<1x160x512xf32, #tpu.memory_space<vmem>>, vector<1x160x512xf32>
      %39 = vector.shape_cast %38 : vector<1x160x512xf32> to vector<160x512xf32>
      %40 = vector.shape_cast %37 : vector<160x512xf32> to vector<1x160x512xf32>
      tpu.vector_store %arg5[%c0_30, %c0_31, %c0_32], %40 {strides = array<i32>} : memref<1x160x512xf32, #tpu.memory_space<vmem>>, vector<1x160x512xf32>,
    } else {
    }
    return
  }
  func.func @transform_0(%arg0: i32, %arg1: i32) -> (i32, i32, i32) {
    %c0_i32 = arith.constant 0 : i32
    %c0_i32_0 = arith.constant 0 : i32
    return %arg0, %c0_i32, %arg1 : i32, i32, i32
  }
  func.func @transform_1(%arg0: i32, %arg1: i32) -> (i32, i32, i32) {
    %c0_i32 = arith.constant 0 : i32
    %c0_i32_0 = arith.constant 0 : i32
    %c0_i32_1 = arith.constant 0 : i32
    return %c0_i32, %arg1, %c0_i32_0 : i32, i32, i32
  }
  func.func @transform_2(%arg0: i32, %arg1: i32) -> (i32, i32) {
    %c0_i32 = arith.constant 0 : i32
    %c0_i32_0 = arith.constant 0 : i32
    %c0_i32_1 = arith.constant 0 : i32
    return %c0_i32, %c0_i32_0 : i32, i32
  }
  func.func @transform_3(%arg0: i32, %arg1: i32) -> (i32, i32, i32) {
    %c0_i32 = arith.constant 0 : i32
    %c0_i32_0 = arith.constant 0 : i32
    %c0_i32_1 = arith.constant 0 : i32
    return %arg0, %c0_i32, %c0_i32_0 : i32, i32, i32
  }
}

</mosaic_0001>

<bundles_post_ra>
// kernel: conv3x3_bn_relu.1
= control target key start
LH: loop header
LB: loop body
LE: loop exit
PB: predicated region body
PF: predicated region fallthrough
CT: control target
= control target key end

     0   :  { %s10368_s12 = smov 0   ;;  %s10370_s13 = smov 0   ;;  %s14012_s0 = inlined_call_operand.vmem [shape: bf16[2,192,1024], index: 0, kind: input, shape index: {}]   ;;  %s14013_s1 = inlined_call_operand.vmem [shape: bf16[3,1024,512], index: 1, kind: input, shape index: {}]   ;;  %s14014_s2 = inlined_call_operand.vmem [shape: f32[1,512], index: 2, kind: input, shape index: {}]   ;;  %s14015_s3 = inlined_call_operand.vmem [shape: f32[2,160,512], index: 3, kind: output, shape index: {}]  }
   0x1   :  { %s10372_s14 = smov 0   ;;  %s10374_s15 = smov 0  }
   0x2   :  { %s10376_s16 = smov 0   ;;  %s10378_s17 = smov 0  }
   0x3   :  { %s10380_s18 = smov 0   ;;  %s10382_s19 = smov 0  }
   0x4   :  { %s10384_s20 = smov 0  }
   0x5 LB: > { %s22_s21 = sadd.s32 1, %s10337_s18  ;;  %s25_s22 = sadd.s32 1, %s10341_s19  ;;  %s10345_s20 = sphi %s10384_s20, %s13_s20   ;;  %s10341_s19 = sphi %s10382_s19, %s14327_s19   ;;  %s10337_s18 = sphi %s10380_s18, %s14326_s18   ;;  %s10333_s17 = sphi %s10378_s17, %s14325_s17   ;;  %s10329_s16 = sphi %s10376_s16, %s14324_s16   ;;  %s10325_s15 = sphi %s10374_s15, %s14323_s15   ;;  %s10321_s14 = sphi %s10372_s14, %s14322_s14   ;;  %s10317_s13 = sphi %s10370_s13, %s14321_s13   ;;  %s10313_s12 = sphi %s10368_s12, %s14320_s12  }
   0x6   : > { %p23_p0 = scmp.ge.s32.totalorder %s22_s21, 2  ;;  %p41_p1 = scmp.ne.s32.totalorder %s10325_s15, %s10321_s14 }
   0x7   : > { %p42_p2 = scmp.eq.s32.totalorder %s10345_s20, 0  ;;  %s60_s25 = sadd.s32 1, %s10317_s13 }
   0x8   : > { %s14329_s21 = smov (%p23_p0, %s22_s21), 0  ;;  %s14331_s22 = smov (!%p23_p0, %s25_s22), %s10341_s19 }
   0x9   : > { %s30_s23 = ssub.s32 %s10337_s18, %s14329_s21  ;;  %p10423_p3 = por %p42_p2, %p41_p1 }
   0xa   : > { %p27_p4 = scmp.ge.s32.totalorder %s14331_s22, 2  ;;  %p58_p5 = scmp.eq.s32.totalorder %s30_s23, 0 }
   0xb   : > { %p67_p6 = scmp.ne.s32.totalorder %s10317_s13, %s10313_s12  ;;  %s34_s30 = sadd.s32 1, %s10325_s15 }
   0xc   : > { %s14333_s22 = smov (%p27_p4, %s14331_s22), 0  ;;  %p7586_p9 = scmp.ge.s32.totalorder %s10345_s20, 4 }
   0xd   : > { %s10433_s26 = scalar_select %p58_p5, %s10317_s13, %s60_s25  }
   0xe   : > { %s29_s27 = ssub.s32 %s10341_s19, %s14333_s22  ;;  %p10437_p7 = por %p67_p6, %p42_p2 }
   0xf   : > { %s31_s29 = sor.u32 %s30_s23, %s29_s27  ;;  %143 = sbr.rel (%p7586_p9) target bundleno = 464 (0x1d0), region = 20 }
  0x10   : > { %p32_p8 = scmp.eq.s32.totalorder %s31_s29, 0 }
  0x12   : > { %s10443_s4 = scalar_select %p32_p8, %s10325_s15, %s34_s30  }
  0x14   : > { %146 = sbr.rel (!%p10423_p3) target bundleno = 76 (0x4c), region = 24  ;;  %s148_s5 = sand.u32 (%p10423_p3), 1, %s10325_s15  }
  0x15   : > { %s10196_s6 = smul.u32 (%p10423_p3), 384, %s148_s5  ;;  %s7587_s7 = sshll.u32 (%p10423_p3), %s10337_s18, 2 }
  0x16   : > { %s10197_s8 = smul.u32 (%p10423_p3), 192, %s10341_s19 }
  0x17   : > { %s10459_s24 = scalar_lea.vmem (%p10423_p3), [#allocation2], %s10196_s6 }
  0x18   : > { %s153_s9 = sadd.s32 (%p10423_p3), %s10197_s8, %s7587_s7 }
  0x19   : > { %s7588_s10 = sshll.u32 %s153_s9, 2 }
  0x1a   : > { %s10454_s25 = scalar_lea.vmem %s14012_s0, %s7588_s10 }
  0x1b   : > { %v168_v0 = vld [vmem:[%s10454_s25] sm:$0xff]  ;;  %v170_v1 = vld [vmem:[%s10454_s25 + $0x8] sm:$0xff] }
  0x1c   : > { %v172_v2 = vld [vmem:[%s10454_s25 + $0x20] sm:$0xff]  ;;  %169 = vst [vmem:[%s10459_s24] sm:$0xff] %v168_v0  ;;  %v174_v3 = vld [vmem:[%s10454_s25 + $0x28] sm:$0xff] }
  0x1d   : > { %171 = vst [vmem:[%s10459_s24 + $0x8] sm:$0xff] %v170_v1  ;;  %v176_v4 = vld [vmem:[%s10454_s25 + $0x40] sm:$0xff]  ;;  %v178_v5 = vld [vmem:[%s10454_s25 + $0x48] sm:$0xff] }
  0x1e   : > { %173 = vst [vmem:[%s10459_s24 + $0x10] sm:$0xff] %v172_v2  ;;  %v180_v6 = vld [vmem:[%s10454_s25 + $0x60] sm:$0xff]  ;;  %v182_v7 = vld [vmem:[%s10454_s25 + $0x68] sm:$0xff] }
  0x1f   : > { %175 = vst [vmem:[%s10459_s24 + $0x18] sm:$0xff] %v174_v3  ;;  %v184_v8 = vld [vmem:[%s10454_s25 + $0x80] sm:$0xff]  ;;  %v186_v9 = vld [vmem:[%s10454_s25 + $0x88] sm:$0xff] }
  0x20   : > { %177 = vst [vmem:[%s10459_s24 + $0x20] sm:$0xff] %v176_v4  ;;  %v188_v10 = vld [vmem:[%s10454_s25 + $0xa0] sm:$0xff]  ;;  %v190_v11 = vld [vmem:[%s10454_s25 + $0xa8] sm:$0xff] }
  0x21   : > { %179 = vst [vmem:[%s10459_s24 + $0x28] sm:$0xff] %v178_v5  ;;  %v192_v12 = vld [vmem:[%s10454_s25 + $0xc0] sm:$0xff]  ;;  %v194_v13 = vld [vmem:[%s10454_s25 + $0xc8] sm:$0xff] }
  0x22   : > { %181 = vst [vmem:[%s10459_s24 + $0x30] sm:$0xff] %v180_v6  ;;  %v196_v14 = vld [vmem:[%s10454_s25 + $0xe0] sm:$0xff]  ;;  %v198_v15 = vld [vmem:[%s10454_s25 + $0xe8] sm:$0xff] }
  0x23   : > { %183 = vst [vmem:[%s10459_s24 + $0x38] sm:$0xff] %v182_v7  ;;  %v200_v16 = vld [vmem:[%s10454_s25 + $0x100] sm:$0xff]  ;;  %v202_v17 = vld [vmem:[%s10454_s25 + $0x108] sm:$0xff] }
  0x24   : > { %185 = vst [vmem:[%s10459_s24 + $0x40] sm:$0xff] %v184_v8  ;;  %v204_v18 = vld [vmem:[%s10454_s25 + $0x120] sm:$0xff]  ;;  %v206_v19 = vld [vmem:[%s10454_s25 + $0x128] sm:$0xff] }
  0x25   : > { %187 = vst [vmem:[%s10459_s24 + $0x48] sm:$0xff] %v186_v9  ;;  %v208_v20 = vld [vmem:[%s10454_s25 + $0x140] sm:$0xff]  ;;  %v210_v21 = vld [vmem:[%s10454_s25 + $0x148] sm:$0xff] }
  0x26   : > { %189 = vst [vmem:[%s10459_s24 + $0x50] sm:$0xff] %v188_v10  ;;  %v212_v22 = vld [vmem:[%s10454_s25 + $0x160] sm:$0xff]  ;;  %v214_v23 = vld [vmem:[%s10454_s25 + $0x168] sm:$0xff] }
  0x27   : > { %191 = vst [vmem:[%s10459_s24 + $0x58] sm:$0xff] %v190_v11  ;;  %v216_v24 = vld [vmem:[%s10454_s25 + $0x180] sm:$0xff]  ;;  %v218_v25 = vld [vmem:[%s10454_s25 + $0x188] sm:$0xff] }
  0x28   : > { %193 = vst [vmem:[%s10459_s24 + $0x60] sm:$0xff] %v192_v12  ;;  %v220_v26 = vld [vmem:[%s10454_s25 + $0x1a0] sm:$0xff]  ;;  %v222_v27 = vld [vmem:[%s10454_s25 + $0x1a8] sm:$0xff] }
  0x29   : > { %195 = vst [vmem:[%s10459_s24 + $0x68] sm:$0xff] %v194_v13  ;;  %v224_v28 = vld [vmem:[%s10454_s25 + $0x1c0] sm:$0xff]  ;;  %v226_v29 = vld [vmem:[%s10454_s25 + $0x1c8] sm:$0xff] }
  0x2a   : > { %197 = vst [vmem:[%s10459_s24 + $0x70] sm:$0xff] %v196_v14  ;;  %v228_v30 = vld [vmem:[%s10454_s25 + $0x1e0] sm:$0xff]  ;;  %v230_v31 = vld [vmem:[%s10454_s25 + $0x1e8] sm:$0xff] }
  0x2b   : > { %199 = vst [vmem:[%s10459_s24 + $0x78] sm:$0xff] %v198_v15  ;;  %v232_v32 = vld [vmem:[%s10454_s25 + $0x200] sm:$0xff]  ;;  %v234_v33 = vld [vmem:[%s10454_s25 + $0x208] sm:$0xff] }
  0x2c   : > { %201 = vst [vmem:[%s10459_s24 + $0x80] sm:$0xff] %v200_v16  ;;  %v236_v34 = vld [vmem:[%s10454_s25 + $0x220] sm:$0xff]  ;;  %v238_v35 = vld [vmem:[%s10454_s25 + $0x228] sm:$0xff] }
  0x2d   : > { %203 = vst [vmem:[%s10459_s24 + $0x88] sm:$0xff] %v202_v17  ;;  %v240_v36 = vld [vmem:[%s10454_s25 + $0x240] sm:$0xff]  ;;  %v242_v37 = vld [vmem:[%s10454_s25 + $0x248] sm:$0xff] }
  0x2e   : > { %205 = vst [vmem:[%s10459_s24 + $0x90] sm:$0xff] %v204_v18  ;;  %v244_v38 = vld [vmem:[%s10454_s25 + $0x260] sm:$0xff]  ;;  %v246_v39 = vld [vmem:[%s10454_s25 + $0x268] sm:$0xff] }
  0x2f   : > { %207 = vst [vmem:[%s10459_s24 + $0x98] sm:$0xff] %v206_v19  ;;  %v248_v40 = vld [vmem:[%s10454_s25 + $0x280] sm:$0xff]  ;;  %v250_v41 = vld [vmem:[%s10454_s25 + $0x288] sm:$0xff] }
  0x30   : > { %209 = vst [vmem:[%s10459_s24 + $0xa0] sm:$0xff] %v208_v20  ;;  %v252_v42 = vld [vmem:[%s10454_s25 + $0x2a0] sm:$0xff]  ;;  %v254_v43 = vld [vmem:[%s10454_s25 + $0x2a8] sm:$0xff] }
  0x31   : > { %211 = vst [vmem:[%s10459_s24 + $0xa8] sm:$0xff] %v210_v21  ;;  %v256_v44 = vld [vmem:[%s10454_s25 + $0x2c0] sm:$0xff]  ;;  %v258_v45 = vld [vmem:[%s10454_s25 + $0x2c8] sm:$0xff] }
  0x32   : > { %213 = vst [vmem:[%s10459_s24 + $0xb0] sm:$0xff] %v212_v22  ;;  %v260_v46 = vld [vmem:[%s10454_s25 + $0x2e0] sm:$0xff]  ;;  %v262_v47 = vld [vmem:[%s10454_s25 + $0x2e8] sm:$0xff] }
  0x33   : > { %215 = vst [vmem:[%s10459_s24 + $0xb8] sm:$0xff] %v214_v23 }
  0x34   : > { %217 = vst [vmem:[%s10459_s24 + $0xc0] sm:$0xff] %v216_v24 }
  0x35   : > { %219 = vst [vmem:[%s10459_s24 + $0xc8] sm:$0xff] %v218_v25 }
  0x36   : > { %221 = vst [vmem:[%s10459_s24 + $0xd0] sm:$0xff] %v220_v26 }
  0x37   : > { %223 = vst [vmem:[%s10459_s24 + $0xd8] sm:$0xff] %v222_v27 }
  0x38   : > { %225 = vst [vmem:[%s10459_s24 + $0xe0] sm:$0xff] %v224_v28 }
  0x39   : > { %227 = vst [vmem:[%s10459_s24 + $0xe8] sm:$0xff] %v226_v29 }
  0x3a   : > { %229 = vst [vmem:[%s10459_s24 + $0xf0] sm:$0xff] %v228_v30 }
  0x3b   : > { %231 = vst [vmem:[%s10459_s24 + $0xf8] sm:$0xff] %v230_v31 }
  0x3c   : > { %233 = vst [vmem:[%s10459_s24 + $0x100] sm:$0xff] %v232_v32 }
  0x3d   : > { %235 = vst [vmem:[%s10459_s24 + $0x108] sm:$0xff] %v234_v33 }
  0x3e   : > { %237 = vst [vmem:[%s10459_s24 + $0x110] sm:$0xff] %v236_v34 }
  0x3f   : > { %239 = vst [vmem:[%s10459_s24 + $0x118] sm:$0xff] %v238_v35 }
  0x40   : > { %241 = vst [vmem:[%s10459_s24 + $0x120] sm:$0xff] %v240_v36 }
  0x41   : > { %243 = vst [vmem:[%s10459_s24 + $0x128] sm:$0xff] %v242_v37 }
  0x42   : > { %245 = vst [vmem:[%s10459_s24 + $0x130] sm:$0xff] %v244_v38 }
  0x43   : > { %247 = vst [vmem:[%s10459_s24 + $0x138] sm:$0xff] %v246_v39 }
  0x44   : > { %249 = vst [vmem:[%s10459_s24 + $0x140] sm:$0xff] %v248_v40 }
  0x45   : > { %251 = vst [vmem:[%s10459_s24 + $0x148] sm:$0xff] %v250_v41 }
  0x46   : > { %253 = vst [vmem:[%s10459_s24 + $0x150] sm:$0xff] %v252_v42 }
  0x47   : > { %255 = vst [vmem:[%s10459_s24 + $0x158] sm:$0xff] %v254_v43 }
  0x48   : > { %257 = vst [vmem:[%s10459_s24 + $0x160] sm:$0xff] %v256_v44 }
  0x49   : > { %259 = vst [vmem:[%s10459_s24 + $0x168] sm:$0xff] %v258_v45 }
  0x4a   : > { %261 = vst [vmem:[%s10459_s24 + $0x170] sm:$0xff] %v260_v46 }
  0x4b   : > { %263 = vst [vmem:[%s10459_s24 + $0x178] sm:$0xff] %v262_v47 }
  0x4c PF: > { %269 = sbr.rel (!%p10437_p7) target bundleno = 464 (0x1d0), region = 47  ;;  %s271_s27 = sand.u32 (%p10437_p7), 1, %s10317_s13  }
  0x4d   : > { %s9727_s29 = sshll.u32 (%p10437_p7), %s10337_s18, 10  ;;  %s10198_s30 = smul.u32 (%p10437_p7), 3072, %s271_s27 }
  0x4e   : > { %s10561_s7 = scalar_lea.vmem (%p10437_p7), %s14013_s1, %s9727_s29 }
  0x4f   : > { %v290_v48 = vld [vmem:[%s10561_s7] sm:$0xff] (%p10437_p7)  ;;  %v292_v49 = vld [vmem:[%s10561_s7 + $0x8] sm:$0xff] (%p10437_p7)  ;;  %v294_v50 = vld [vmem:[%s10561_s7 + $0x10] sm:$0xff] (%p10437_p7)  ;;  %s10566_s28 = scalar_lea.vmem (%p10437_p7), [#allocation3], %s10198_s30 }
  0x50   : > { %291 = vst [vmem:[%s10566_s28] sm:$0xff] (%p10437_p7), %v290_v48  ;;  %v296_v51 = vld [vmem:[%s10561_s7 + $0x18] sm:$0xff] (%p10437_p7)  ;;  %v298_v52 = vld [vmem:[%s10561_s7 + $0x20] sm:$0xff] (%p10437_p7)  ;;  %v300_v53 = vld [vmem:[%s10561_s7 + $0x28] sm:$0xff] (%p10437_p7) }
  0x51   : > { %293 = vst [vmem:[%s10566_s28 + $0x8] sm:$0xff] %v292_v49  ;;  %v302_v54 = vld [vmem:[%s10561_s7 + $0x30] sm:$0xff]  ;;  %v304_v55 = vld [vmem:[%s10561_s7 + $0x38] sm:$0xff]  ;;  %v306_v56 = vld [vmem:[%s10561_s7 + $0x40] sm:$0xff] }
  0x52   : > { %295 = vst [vmem:[%s10566_s28 + $0x10] sm:$0xff] %v294_v50  ;;  %v308_v57 = vld [vmem:[%s10561_s7 + $0x48] sm:$0xff]  ;;  %v310_v58 = vld [vmem:[%s10561_s7 + $0x50] sm:$0xff]  ;;  %v312_v59 = vld [vmem:[%s10561_s7 + $0x58] sm:$0xff] }
  0x53   : > { %297 = vst [vmem:[%s10566_s28 + $0x18] sm:$0xff] %v296_v51  ;;  %v314_v60 = vld [vmem:[%s10561_s7 + $0x60] sm:$0xff]  ;;  %v316_v61 = vld [vmem:[%s10561_s7 + $0x68] sm:$0xff]  ;;  %v318_v62 = vld [vmem:[%s10561_s7 + $0x70] sm:$0xff] }
  0x54   : > { %299 = vst [vmem:[%s10566_s28 + $0x20] sm:$0xff] %v298_v52  ;;  %v320_v63 = vld [vmem:[%s10561_s7 + $0x78] sm:$0xff]  ;;  %v322_v0 = vld [vmem:[%s10561_s7 + $0x80] sm:$0xff]  ;;  %v324_v1 = vld [vmem:[%s10561_s7 + $0x88] sm:$0xff] }
  0x55   : > { %301 = vst [vmem:[%s10566_s28 + $0x28] sm:$0xff] %v300_v53  ;;  %v326_v2 = vld [vmem:[%s10561_s7 + $0x90] sm:$0xff]  ;;  %v328_v3 = vld [vmem:[%s10561_s7 + $0x98] sm:$0xff]  ;;  %v330_v4 = vld [vmem:[%s10561_s7 + $0xa0] sm:$0xff] }
  0x56   : > { %303 = vst [vmem:[%s10566_s28 + $0x30] sm:$0xff] %v302_v54  ;;  %v332_v5 = vld [vmem:[%s10561_s7 + $0xa8] sm:$0xff]  ;;  %v334_v6 = vld [vmem:[%s10561_s7 + $0xb0] sm:$0xff]  ;;  %v336_v7 = vld [vmem:[%s10561_s7 + $0xb8] sm:$0xff] }
  0x57   : > { %305 = vst [vmem:[%s10566_s28 + $0x38] sm:$0xff] %v304_v55  ;;  %v338_v8 = vld [vmem:[%s10561_s7 + $0xc0] sm:$0xff]  ;;  %v340_v9 = vld [vmem:[%s10561_s7 + $0xc8] sm:$0xff]  ;;  %v342_v10 = vld [vmem:[%s10561_s7 + $0xd0] sm:$0xff] }
  0x58   : > { %307 = vst [vmem:[%s10566_s28 + $0x40] sm:$0xff] %v306_v56  ;;  %v344_v11 = vld [vmem:[%s10561_s7 + $0xd8] sm:$0xff]  ;;  %v346_v12 = vld [vmem:[%s10561_s7 + $0xe0] sm:$0xff]  ;;  %v348_v13 = vld [vmem:[%s10561_s7 + $0xe8] sm:$0xff] }
  0x59   : > { %309 = vst [vmem:[%s10566_s28 + $0x48] sm:$0xff] %v308_v57  ;;  %v350_v14 = vld [vmem:[%s10561_s7 + $0xf0] sm:$0xff]  ;;  %v352_v15 = vld [vmem:[%s10561_s7 + $0xf8] sm:$0xff]  ;;  %v354_v16 = vld [vmem:[%s10561_s7 + $0x100] sm:$0xff] }
  0x5a   : > { %311 = vst [vmem:[%s10566_s28 + $0x50] sm:$0xff] %v310_v58  ;;  %v356_v17 = vld [vmem:[%s10561_s7 + $0x108] sm:$0xff]  ;;  %v358_v18 = vld [vmem:[%s10561_s7 + $0x110] sm:$0xff]  ;;  %v360_v19 = vld [vmem:[%s10561_s7 + $0x118] sm:$0xff] }
  0x5b   : > { %313 = vst [vmem:[%s10566_s28 + $0x58] sm:$0xff] %v312_v59  ;;  %v362_v20 = vld [vmem:[%s10561_s7 + $0x120] sm:$0xff]  ;;  %v364_v21 = vld [vmem:[%s10561_s7 + $0x128] sm:$0xff]  ;;  %v366_v22 = vld [vmem:[%s10561_s7 + $0x130] sm:$0xff] }
  0x5c   : > { %315 = vst [vmem:[%s10566_s28 + $0x60] sm:$0xff] %v314_v60  ;;  %v368_v23 = vld [vmem:[%s10561_s7 + $0x138] sm:$0xff]  ;;  %v370_v24 = vld [vmem:[%s10561_s7 + $0x140] sm:$0xff]  ;;  %v372_v25 = vld [vmem:[%s10561_s7 + $0x148] sm:$0xff] }
  0x5d   : > { %317 = vst [vmem:[%s10566_s28 + $0x68] sm:$0xff] %v316_v61  ;;  %v374_v26 = vld [vmem:[%s10561_s7 + $0x150] sm:$0xff]  ;;  %v376_v27 = vld [vmem:[%s10561_s7 + $0x158] sm:$0xff]  ;;  %v378_v28 = vld [vmem:[%s10561_s7 + $0x160] sm:$0xff] }
  0x5e   : > { %319 = vst [vmem:[%s10566_s28 + $0x70] sm:$0xff] %v318_v62  ;;  %v380_v29 = vld [vmem:[%s10561_s7 + $0x168] sm:$0xff]  ;;  %v382_v30 = vld [vmem:[%s10561_s7 + $0x170] sm:$0xff]  ;;  %v384_v31 = vld [vmem:[%s10561_s7 + $0x178] sm:$0xff] }
  0x5f   : > { %321 = vst [vmem:[%s10566_s28 + $0x78] sm:$0xff] %v320_v63  ;;  %v386_v32 = vld [vmem:[%s10561_s7 + $0x180] sm:$0xff]  ;;  %v388_v33 = vld [vmem:[%s10561_s7 + $0x188] sm:$0xff]  ;;  %v390_v34 = vld [vmem:[%s10561_s7 + $0x190] sm:$0xff] }
  0x60   : > { %323 = vst [vmem:[%s10566_s28 + $0x80] sm:$0xff] %v322_v0  ;;  %v392_v35 = vld [vmem:[%s10561_s7 + $0x198] sm:$0xff]  ;;  %v394_v36 = vld [vmem:[%s10561_s7 + $0x1a0] sm:$0xff]  ;;  %v396_v37 = vld [vmem:[%s10561_s7 + $0x1a8] sm:$0xff] }
  0x61   : > { %325 = vst [vmem:[%s10566_s28 + $0x88] sm:$0xff] %v324_v1  ;;  %v398_v38 = vld [vmem:[%s10561_s7 + $0x1b0] sm:$0xff]  ;;  %v400_v39 = vld [vmem:[%s10561_s7 + $0x1b8] sm:$0xff]  ;;  %v402_v40 = vld [vmem:[%s10561_s7 + $0x1c0] sm:$0xff] }
  0x62   : > { %327 = vst [vmem:[%s10566_s28 + $0x90] sm:$0xff] %v326_v2  ;;  %v404_v41 = vld [vmem:[%s10561_s7 + $0x1c8] sm:$0xff]  ;;  %v406_v42 = vld [vmem:[%s10561_s7 + $0x1d0] sm:$0xff]  ;;  %v408_v43 = vld [vmem:[%s10561_s7 + $0x1d8] sm:$0xff] }
  0x63   : > { %329 = vst [vmem:[%s10566_s28 + $0x98] sm:$0xff] %v328_v3  ;;  %v410_v44 = vld [vmem:[%s10561_s7 + $0x1e0] sm:$0xff]  ;;  %v412_v45 = vld [vmem:[%s10561_s7 + $0x1e8] sm:$0xff]  ;;  %v414_v46 = vld [vmem:[%s10561_s7 + $0x1f0] sm:$0xff] }
  0x64   : > { %331 = vst [vmem:[%s10566_s28 + $0xa0] sm:$0xff] %v330_v4  ;;  %v416_v47 = vld [vmem:[%s10561_s7 + $0x1f8] sm:$0xff]  ;;  %v418_v48 = vld [vmem:[%s10561_s7 + $0x200] sm:$0xff]  ;;  %v420_v49 = vld [vmem:[%s10561_s7 + $0x208] sm:$0xff] }
  0x65   : > { %333 = vst [vmem:[%s10566_s28 + $0xa8] sm:$0xff] %v332_v5  ;;  %v422_v50 = vld [vmem:[%s10561_s7 + $0x210] sm:$0xff]  ;;  %v424_v51 = vld [vmem:[%s10561_s7 + $0x218] sm:$0xff]  ;;  %v426_v52 = vld [vmem:[%s10561_s7 + $0x220] sm:$0xff] }
  0x66   : > { %335 = vst [vmem:[%s10566_s28 + $0xb0] sm:$0xff] %v334_v6  ;;  %v428_v53 = vld [vmem:[%s10561_s7 + $0x228] sm:$0xff]  ;;  %v430_v54 = vld [vmem:[%s10561_s7 + $0x230] sm:$0xff]  ;;  %v432_v55 = vld [vmem:[%s10561_s7 + $0x238] sm:$0xff] }
  0x67   : > { %337 = vst [vmem:[%s10566_s28 + $0xb8] sm:$0xff] %v336_v7  ;;  %v434_v56 = vld [vmem:[%s10561_s7 + $0x240] sm:$0xff]  ;;  %v436_v57 = vld [vmem:[%s10561_s7 + $0x248] sm:$0xff]  ;;  %v438_v58 = vld [vmem:[%s10561_s7 + $0x250] sm:$0xff] }
  0x68   : > { %339 = vst [vmem:[%s10566_s28 + $0xc0] sm:$0xff] %v338_v8  ;;  %v440_v59 = vld [vmem:[%s10561_s7 + $0x258] sm:$0xff]  ;;  %v442_v60 = vld [vmem:[%s10561_s7 + $0x260] sm:$0xff]  ;;  %v444_v61 = vld [vmem:[%s10561_s7 + $0x268] sm:$0xff] }
  0x69   : > { %341 = vst [vmem:[%s10566_s28 + $0xc8] sm:$0xff] %v340_v9  ;;  %v446_v62 = vld [vmem:[%s10561_s7 + $0x270] sm:$0xff]  ;;  %v448_v63 = vld [vmem:[%s10561_s7 + $0x278] sm:$0xff]  ;;  %v450_v0 = vld [vmem:[%s10561_s7 + $0x280] sm:$0xff] }
  0x6a   : > { %343 = vst [vmem:[%s10566_s28 + $0xd0] sm:$0xff] %v342_v10  ;;  %v452_v1 = vld [vmem:[%s10561_s7 + $0x288] sm:$0xff]  ;;  %v454_v2 = vld [vmem:[%s10561_s7 + $0x290] sm:$0xff]  ;;  %v456_v3 = vld [vmem:[%s10561_s7 + $0x298] sm:$0xff] }
  0x6b   : > { %345 = vst [vmem:[%s10566_s28 + $0xd8] sm:$0xff] %v344_v11  ;;  %v458_v4 = vld [vmem:[%s10561_s7 + $0x2a0] sm:$0xff]  ;;  %v460_v5 = vld [vmem:[%s10561_s7 + $0x2a8] sm:$0xff]  ;;  %v462_v6 = vld [vmem:[%s10561_s7 + $0x2b0] sm:$0xff] }
  0x6c   : > { %347 = vst [vmem:[%s10566_s28 + $0xe0] sm:$0xff] %v346_v12  ;;  %v464_v7 = vld [vmem:[%s10561_s7 + $0x2b8] sm:$0xff]  ;;  %v466_v8 = vld [vmem:[%s10561_s7 + $0x2c0] sm:$0xff]  ;;  %v468_v9 = vld [vmem:[%s10561_s7 + $0x2c8] sm:$0xff] }
  0x6d   : > { %349 = vst [vmem:[%s10566_s28 + $0xe8] sm:$0xff] %v348_v13  ;;  %v470_v10 = vld [vmem:[%s10561_s7 + $0x2d0] sm:$0xff]  ;;  %v472_v11 = vld [vmem:[%s10561_s7 + $0x2d8] sm:$0xff]  ;;  %v474_v12 = vld [vmem:[%s10561_s7 + $0x2e0] sm:$0xff] }
  0x6e   : > { %351 = vst [vmem:[%s10566_s28 + $0xf0] sm:$0xff] %v350_v14  ;;  %v476_v13 = vld [vmem:[%s10561_s7 + $0x2e8] sm:$0xff]  ;;  %v478_v14 = vld [vmem:[%s10561_s7 + $0x2f0] sm:$0xff] }
  0x6f   : > { %353 = vst [vmem:[%s10566_s28 + $0xf8] sm:$0xff] %v352_v15  ;;  %v480_v15 = vld [vmem:[%s10561_s7 + $0x2f8] sm:$0xff] }
  0x70   : > { %355 = vst [vmem:[%s10566_s28 + $0x100] sm:$0xff] %v354_v16  ;;  %v482_v16 = vld [vmem:[%s10561_s7 + $0x300] sm:$0xff] }
  0x71   : > { %357 = vst [vmem:[%s10566_s28 + $0x108] sm:$0xff] %v356_v17  ;;  %v484_v17 = vld [vmem:[%s10561_s7 + $0x308] sm:$0xff] }
  0x72   : > { %359 = vst [vmem:[%s10566_s28 + $0x110] sm:$0xff] %v358_v18  ;;  %v486_v18 = vld [vmem:[%s10561_s7 + $0x310] sm:$0xff] }
  0x73   : > { %361 = vst [vmem:[%s10566_s28 + $0x118] sm:$0xff] %v360_v19  ;;  %v488_v19 = vld [vmem:[%s10561_s7 + $0x318] sm:$0xff] }
  0x74   : > { %363 = vst [vmem:[%s10566_s28 + $0x120] sm:$0xff] %v362_v20  ;;  %v490_v20 = vld [vmem:[%s10561_s7 + $0x320] sm:$0xff] }
  0x75   : > { %365 = vst [vmem:[%s10566_s28 + $0x128] sm:$0xff] %v364_v21  ;;  %v492_v21 = vld [vmem:[%s10561_s7 + $0x328] sm:$0xff] }
  0x76   : > { %367 = vst [vmem:[%s10566_s28 + $0x130] sm:$0xff] %v366_v22  ;;  %v494_v22 = vld [vmem:[%s10561_s7 + $0x330] sm:$0xff] }
  0x77   : > { %369 = vst [vmem:[%s10566_s28 + $0x138] sm:$0xff] %v368_v23  ;;  %v496_v23 = vld [vmem:[%s10561_s7 + $0x338] sm:$0xff] }
  0x78   : > { %371 = vst [vmem:[%s10566_s28 + $0x140] sm:$0xff] %v370_v24  ;;  %v498_v24 = vld [vmem:[%s10561_s7 + $0x340] sm:$0xff] }
  0x79   : > { %373 = vst [vmem:[%s10566_s28 + $0x148] sm:$0xff] %v372_v25  ;;  %v500_v25 = vld [vmem:[%s10561_s7 + $0x348] sm:$0xff] }
  0x7a   : > { %375 = vst [vmem:[%s10566_s28 + $0x150] sm:$0xff] %v374_v26  ;;  %v502_v26 = vld [vmem:[%s10561_s7 + $0x350] sm:$0xff] }
  0x7b   : > { %377 = vst [vmem:[%s10566_s28 + $0x158] sm:$0xff] %v376_v27  ;;  %v504_v27 = vld [vmem:[%s10561_s7 + $0x358] sm:$0xff] }
  0x7c   : > { %379 = vst [vmem:[%s10566_s28 + $0x160] sm:$0xff] %v378_v28  ;;  %v506_v28 = vld [vmem:[%s10561_s7 + $0x360] sm:$0xff] }
  0x7d   : > { %381 = vst [vmem:[%s10566_s28 + $0x168] sm:$0xff] %v380_v29  ;;  %v508_v29 = vld [vmem:[%s10561_s7 + $0x368] sm:$0xff] }
  0x7e   : > { %383 = vst [vmem:[%s10566_s28 + $0x170] sm:$0xff] %v382_v30  ;;  %v510_v30 = vld [vmem:[%s10561_s7 + $0x370] sm:$0xff] }
  0x7f   : > { %385 = vst [vmem:[%s10566_s28 + $0x178] sm:$0xff] %v384_v31  ;;  %v512_v31 = vld [vmem:[%s10561_s7 + $0x378] sm:$0xff] }
  0x80   : > { %387 = vst [vmem:[%s10566_s28 + $0x180] sm:$0xff] %v386_v32  ;;  %v514_v32 = vld [vmem:[%s10561_s7 + $0x380] sm:$0xff] }
  0x81   : > { %389 = vst [vmem:[%s10566_s28 + $0x188] sm:$0xff] %v388_v33  ;;  %v516_v33 = vld [vmem:[%s10561_s7 + $0x388] sm:$0xff] }
  0x82   : > { %391 = vst [vmem:[%s10566_s28 + $0x190] sm:$0xff] %v390_v34  ;;  %v518_v34 = vld [vmem:[%s10561_s7 + $0x390] sm:$0xff] }
  0x83   : > { %393 = vst [vmem:[%s10566_s28 + $0x198] sm:$0xff] %v392_v35  ;;  %v520_v35 = vld [vmem:[%s10561_s7 + $0x398] sm:$0xff] }
  0x84   : > { %395 = vst [vmem:[%s10566_s28 + $0x1a0] sm:$0xff] %v394_v36  ;;  %v522_v36 = vld [vmem:[%s10561_s7 + $0x3a0] sm:$0xff] }
  0x85   : > { %397 = vst [vmem:[%s10566_s28 + $0x1a8] sm:$0xff] %v396_v37  ;;  %v524_v37 = vld [vmem:[%s10561_s7 + $0x3a8] sm:$0xff] }
  0x86   : > { %399 = vst [vmem:[%s10566_s28 + $0x1b0] sm:$0xff] %v398_v38  ;;  %v526_v38 = vld [vmem:[%s10561_s7 + $0x3b0] sm:$0xff] }
  0x87   : > { %401 = vst [vmem:[%s10566_s28 + $0x1b8] sm:$0xff] %v400_v39  ;;  %v528_v39 = vld [vmem:[%s10561_s7 + $0x3b8] sm:$0xff] }
  0x88   : > { %403 = vst [vmem:[%s10566_s28 + $0x1c0] sm:$0xff] %v402_v40  ;;  %v530_v40 = vld [vmem:[%s10561_s7 + $0x3c0] sm:$0xff] }
  0x89   : > { %405 = vst [vmem:[%s10566_s28 + $0x1c8] sm:$0xff] %v404_v41  ;;  %v532_v41 = vld [vmem:[%s10561_s7 + $0x3c8] sm:$0xff] }
  0x8a   : > { %407 = vst [vmem:[%s10566_s28 + $0x1d0] sm:$0xff] %v406_v42  ;;  %v534_v42 = vld [vmem:[%s10561_s7 + $0x3d0] sm:$0xff] }
  0x8b   : > { %409 = vst [vmem:[%s10566_s28 + $0x1d8] sm:$0xff] %v408_v43  ;;  %v536_v43 = vld [vmem:[%s10561_s7 + $0x3d8] sm:$0xff] }
  0x8c   : > { %411 = vst [vmem:[%s10566_s28 + $0x1e0] sm:$0xff] %v410_v44  ;;  %v538_v44 = vld [vmem:[%s10561_s7 + $0x3e0] sm:$0xff] }
  0x8d   : > { %413 = vst [vmem:[%s10566_s28 + $0x1e8] sm:$0xff] %v412_v45  ;;  %v540_v45 = vld [vmem:[%s10561_s7 + $0x3e8] sm:$0xff] }
  0x8e   : > { %415 = vst [vmem:[%s10566_s28 + $0x1f0] sm:$0xff] %v414_v46  ;;  %v542_v46 = vld [vmem:[%s10561_s7 + $0x3f0] sm:$0xff] }
  0x8f   : > { %417 = vst [vmem:[%s10566_s28 + $0x1f8] sm:$0xff] %v416_v47  ;;  %v544_v47 = vld [vmem:[%s10561_s7 + $0x3f8] sm:$0xff] }
  0x90   : > { %419 = vst [vmem:[%s10566_s28 + $0x200] sm:$0xff] %v418_v48  ;;  %v546_v48 = vld [vmem:[%s10561_s7 + $0x800] sm:$0xff] }
  0x91   : > { %421 = vst [vmem:[%s10566_s28 + $0x208] sm:$0xff] %v420_v49  ;;  %v548_v49 = vld [vmem:[%s10561_s7 + $0x808] sm:$0xff] }
  0x92   : > { %423 = vst [vmem:[%s10566_s28 + $0x210] sm:$0xff] %v422_v50  ;;  %v550_v50 = vld [vmem:[%s10561_s7 + $0x810] sm:$0xff] }
  0x93   : > { %425 = vst [vmem:[%s10566_s28 + $0x218] sm:$0xff] %v424_v51  ;;  %v552_v51 = vld [vmem:[%s10561_s7 + $0x818] sm:$0xff] }
  0x94   : > { %427 = vst [vmem:[%s10566_s28 + $0x220] sm:$0xff] %v426_v52  ;;  %v554_v52 = vld [vmem:[%s10561_s7 + $0x820] sm:$0xff] }
  0x95   : > { %429 = vst [vmem:[%s10566_s28 + $0x228] sm:$0xff] %v428_v53  ;;  %v556_v53 = vld [vmem:[%s10561_s7 + $0x828] sm:$0xff] }
  0x96   : > { %431 = vst [vmem:[%s10566_s28 + $0x230] sm:$0xff] %v430_v54  ;;  %v558_v54 = vld [vmem:[%s10561_s7 + $0x830] sm:$0xff] }
  0x97   : > { %433 = vst [vmem:[%s10566_s28 + $0x238] sm:$0xff] %v432_v55  ;;  %v560_v55 = vld [vmem:[%s10561_s7 + $0x838] sm:$0xff] }
  0x98   : > { %435 = vst [vmem:[%s10566_s28 + $0x240] sm:$0xff] %v434_v56  ;;  %v562_v56 = vld [vmem:[%s10561_s7 + $0x840] sm:$0xff] }
  0x99   : > { %437 = vst [vmem:[%s10566_s28 + $0x248] sm:$0xff] %v436_v57  ;;  %v564_v57 = vld [vmem:[%s10561_s7 + $0x848] sm:$0xff] }
  0x9a   : > { %439 = vst [vmem:[%s10566_s28 + $0x250] sm:$0xff] %v438_v58  ;;  %v566_v58 = vld [vmem:[%s10561_s7 + $0x850] sm:$0xff] }
  0x9b   : > { %441 = vst [vmem:[%s10566_s28 + $0x258] sm:$0xff] %v440_v59  ;;  %v568_v59 = vld [vmem:[%s10561_s7 + $0x858] sm:$0xff] }
  0x9c   : > { %443 = vst [vmem:[%s10566_s28 + $0x260] sm:$0xff] %v442_v60  ;;  %v570_v60 = vld [vmem:[%s10561_s7 + $0x860] sm:$0xff] }
  0x9d   : > { %445 = vst [vmem:[%s10566_s28 + $0x268] sm:$0xff] %v444_v61  ;;  %v572_v61 = vld [vmem:[%s10561_s7 + $0x868] sm:$0xff] }
  0x9e   : > { %447 = vst [vmem:[%s10566_s28 + $0x270] sm:$0xff] %v446_v62  ;;  %v574_v62 = vld [vmem:[%s10561_s7 + $0x870] sm:$0xff] }
  0x9f   : > { %449 = vst [vmem:[%s10566_s28 + $0x278] sm:$0xff] %v448_v63  ;;  %v576_v63 = vld [vmem:[%s10561_s7 + $0x878] sm:$0xff] }
  0xa0   : > { %451 = vst [vmem:[%s10566_s28 + $0x280] sm:$0xff] %v450_v0  ;;  %v578_v0 = vld [vmem:[%s10561_s7 + $0x880] sm:$0xff] }
  0xa1   : > { %453 = vst [vmem:[%s10566_s28 + $0x288] sm:$0xff] %v452_v1  ;;  %v580_v1 = vld [vmem:[%s10561_s7 + $0x888] sm:$0xff] }
  0xa2   : > { %455 = vst [vmem:[%s10566_s28 + $0x290] sm:$0xff] %v454_v2  ;;  %v582_v2 = vld [vmem:[%s10561_s7 + $0x890] sm:$0xff] }
  0xa3   : > { %457 = vst [vmem:[%s10566_s28 + $0x298] sm:$0xff] %v456_v3  ;;  %v584_v3 = vld [vmem:[%s10561_s7 + $0x898] sm:$0xff] }
  0xa4   : > { %459 = vst [vmem:[%s10566_s28 + $0x2a0] sm:$0xff] %v458_v4  ;;  %v586_v4 = vld [vmem:[%s10561_s7 + $0x8a0] sm:$0xff] }
  0xa5   : > { %461 = vst [vmem:[%s10566_s28 + $0x2a8] sm:$0xff] %v460_v5  ;;  %v588_v5 = vld [vmem:[%s10561_s7 + $0x8a8] sm:$0xff] }
  0xa6   : > { %463 = vst [vmem:[%s10566_s28 + $0x2b0] sm:$0xff] %v462_v6  ;;  %v590_v6 = vld [vmem:[%s10561_s7 + $0x8b0] sm:$0xff] }
  0xa7   : > { %465 = vst [vmem:[%s10566_s28 + $0x2b8] sm:$0xff] %v464_v7  ;;  %v592_v7 = vld [vmem:[%s10561_s7 + $0x8b8] sm:$0xff] }
  0xa8   : > { %467 = vst [vmem:[%s10566_s28 + $0x2c0] sm:$0xff] %v466_v8  ;;  %v594_v8 = vld [vmem:[%s10561_s7 + $0x8c0] sm:$0xff] }
  0xa9   : > { %469 = vst [vmem:[%s10566_s28 + $0x2c8] sm:$0xff] %v468_v9  ;;  %v596_v9 = vld [vmem:[%s10561_s7 + $0x8c8] sm:$0xff] }
  0xaa   : > { %471 = vst [vmem:[%s10566_s28 + $0x2d0] sm:$0xff] %v470_v10  ;;  %v598_v10 = vld [vmem:[%s10561_s7 + $0x8d0] sm:$0xff] }
  0xab   : > { %473 = vst [vmem:[%s10566_s28 + $0x2d8] sm:$0xff] %v472_v11  ;;  %v600_v11 = vld [vmem:[%s10561_s7 + $0x8d8] sm:$0xff] }
  0xac   : > { %475 = vst [vmem:[%s10566_s28 + $0x2e0] sm:$0xff] %v474_v12  ;;  %v602_v12 = vld [vmem:[%s10561_s7 + $0x8e0] sm:$0xff] }
  0xad   : > { %477 = vst [vmem:[%s10566_s28 + $0x2e8] sm:$0xff] %v476_v13  ;;  %v604_v13 = vld [vmem:[%s10561_s7 + $0x8e8] sm:$0xff] }
  0xae   : > { %479 = vst [vmem:[%s10566_s28 + $0x2f0] sm:$0xff] %v478_v14  ;;  %v606_v14 = vld [vmem:[%s10561_s7 + $0x8f0] sm:$0xff] }
  0xaf   : > { %481 = vst [vmem:[%s10566_s28 + $0x2f8] sm:$0xff] %v480_v15  ;;  %v608_v15 = vld [vmem:[%s10561_s7 + $0x8f8] sm:$0xff] }
  0xb0   : > { %483 = vst [vmem:[%s10566_s28 + $0x300] sm:$0xff] %v482_v16  ;;  %v610_v16 = vld [vmem:[%s10561_s7 + $0x900] sm:$0xff] }
  0xb1   : > { %485 = vst [vmem:[%s10566_s28 + $0x308] sm:$0xff] %v484_v17  ;;  %v612_v17 = vld [vmem:[%s10561_s7 + $0x908] sm:$0xff] }
  0xb2   : > { %487 = vst [vmem:[%s10566_s28 + $0x310] sm:$0xff] %v486_v18  ;;  %v614_v18 = vld [vmem:[%s10561_s7 + $0x910] sm:$0xff] }
  0xb3   : > { %489 = vst [vmem:[%s10566_s28 + $0x318] sm:$0xff] %v488_v19  ;;  %v616_v19 = vld [vmem:[%s10561_s7 + $0x918] sm:$0xff] }
  0xb4   : > { %491 = vst [vmem:[%s10566_s28 + $0x320] sm:$0xff] %v490_v20  ;;  %v618_v20 = vld [vmem:[%s10561_s7 + $0x920] sm:$0xff] }
  0xb5   : > { %493 = vst [vmem:[%s10566_s28 + $0x328] sm:$0xff] %v492_v21  ;;  %v620_v21 = vld [vmem:[%s10561_s7 + $0x928] sm:$0xff] }
  0xb6   : > { %495 = vst [vmem:[%s10566_s28 + $0x330] sm:$0xff] %v494_v22  ;;  %v622_v22 = vld [vmem:[%s10561_s7 + $0x930] sm:$0xff] }
  0xb7   : > { %497 = vst [vmem:[%s10566_s28 + $0x338] sm:$0xff] %v496_v23  ;;  %v624_v23 = vld [vmem:[%s10561_s7 + $0x938] sm:$0xff] }
  0xb8   : > { %499 = vst [vmem:[%s10566_s28 + $0x340] sm:$0xff] %v498_v24  ;;  %v626_v24 = vld [vmem:[%s10561_s7 + $0x940] sm:$0xff] }
  0xb9   : > { %501 = vst [vmem:[%s10566_s28 + $0x348] sm:$0xff] %v500_v25  ;;  %v628_v25 = vld [vmem:[%s10561_s7 + $0x948] sm:$0xff] }
  0xba   : > { %503 = vst [vmem:[%s10566_s28 + $0x350] sm:$0xff] %v502_v26  ;;  %v630_v26 = vld [vmem:[%s10561_s7 + $0x950] sm:$0xff] }
  0xbb   : > { %505 = vst [vmem:[%s10566_s28 + $0x358] sm:$0xff] %v504_v27  ;;  %v632_v27 = vld [vmem:[%s10561_s7 + $0x958] sm:$0xff] }
  0xbc   : > { %507 = vst [vmem:[%s10566_s28 + $0x360] sm:$0xff] %v506_v28  ;;  %v634_v28 = vld [vmem:[%s10561_s7 + $0x960] sm:$0xff] }
  0xbd   : > { %509 = vst [vmem:[%s10566_s28 + $0x368] sm:$0xff] %v508_v29  ;;  %v636_v29 = vld [vmem:[%s10561_s7 + $0x968] sm:$0xff] }
  0xbe   : > { %511 = vst [vmem:[%s10566_s28 + $0x370] sm:$0xff] %v510_v30  ;;  %v638_v30 = vld [vmem:[%s10561_s7 + $0x970] sm:$0xff] }
  0xbf   : > { %513 = vst [vmem:[%s10566_s28 + $0x378] sm:$0xff] %v512_v31  ;;  %v640_v31 = vld [vmem:[%s10561_s7 + $0x978] sm:$0xff] }
  0xc0   : > { %515 = vst [vmem:[%s10566_s28 + $0x380] sm:$0xff] %v514_v32  ;;  %v642_v32 = vld [vmem:[%s10561_s7 + $0x980] sm:$0xff] }
  0xc1   : > { %517 = vst [vmem:[%s10566_s28 + $0x388] sm:$0xff] %v516_v33  ;;  %v644_v33 = vld [vmem:[%s10561_s7 + $0x988] sm:$0xff] }
  0xc2   : > { %519 = vst [vmem:[%s10566_s28 + $0x390] sm:$0xff] %v518_v34  ;;  %v646_v34 = vld [vmem:[%s10561_s7 + $0x990] sm:$0xff] }
  0xc3   : > { %521 = vst [vmem:[%s10566_s28 + $0x398] sm:$0xff] %v520_v35  ;;  %v648_v35 = vld [vmem:[%s10561_s7 + $0x998] sm:$0xff] }
  0xc4   : > { %523 = vst [vmem:[%s10566_s28 + $0x3a0] sm:$0xff] %v522_v36  ;;  %v650_v36 = vld [vmem:[%s10561_s7 + $0x9a0] sm:$0xff] }
  0xc5   : > { %525 = vst [vmem:[%s10566_s28 + $0x3a8] sm:$0xff] %v524_v37  ;;  %v652_v37 = vld [vmem:[%s10561_s7 + $0x9a8] sm:$0xff] }
  0xc6   : > { %527 = vst [vmem:[%s10566_s28 + $0x3b0] sm:$0xff] %v526_v38  ;;  %v654_v38 = vld [vmem:[%s10561_s7 + $0x9b0] sm:$0xff] }
  0xc7   : > { %529 = vst [vmem:[%s10566_s28 + $0x3b8] sm:$0xff] %v528_v39  ;;  %v656_v39 = vld [vmem:[%s10561_s7 + $0x9b8] sm:$0xff] }
  0xc8   : > { %531 = vst [vmem:[%s10566_s28 + $0x3c0] sm:$0xff] %v530_v40  ;;  %v658_v40 = vld [vmem:[%s10561_s7 + $0x9c0] sm:$0xff] }
  0xc9   : > { %533 = vst [vmem:[%s10566_s28 + $0x3c8] sm:$0xff] %v532_v41  ;;  %v660_v41 = vld [vmem:[%s10561_s7 + $0x9c8] sm:$0xff] }
  0xca   : > { %535 = vst [vmem:[%s10566_s28 + $0x3d0] sm:$0xff] %v534_v42  ;;  %v662_v42 = vld [vmem:[%s10561_s7 + $0x9d0] sm:$0xff] }
  0xcb   : > { %537 = vst [vmem:[%s10566_s28 + $0x3d8] sm:$0xff] %v536_v43  ;;  %v664_v43 = vld [vmem:[%s10561_s7 + $0x9d8] sm:$0xff] }
  0xcc   : > { %539 = vst [vmem:[%s10566_s28 + $0x3e0] sm:$0xff] %v538_v44  ;;  %v666_v44 = vld [vmem:[%s10561_s7 + $0x9e0] sm:$0xff] }
  0xcd   : > { %541 = vst [vmem:[%s10566_s28 + $0x3e8] sm:$0xff] %v540_v45  ;;  %v668_v45 = vld [vmem:[%s10561_s7 + $0x9e8] sm:$0xff] }
  0xce   : > { %543 = vst [vmem:[%s10566_s28 + $0x3f0] sm:$0xff] %v542_v46  ;;  %v670_v46 = vld [vmem:[%s10561_s7 + $0x9f0] sm:$0xff] }
  0xcf   : > { %545 = vst [vmem:[%s10566_s28 + $0x3f8] sm:$0xff] %v544_v47  ;;  %v672_v47 = vld [vmem:[%s10561_s7 + $0x9f8] sm:$0xff] }
  0xd0   : > { %547 = vst [vmem:[%s10566_s28 + $0x400] sm:$0xff] %v546_v48  ;;  %v674_v48 = vld [vmem:[%s10561_s7 + $0xa00] sm:$0xff] }
  0xd1   : > { %549 = vst [vmem:[%s10566_s28 + $0x408] sm:$0xff] %v548_v49  ;;  %v676_v49 = vld [vmem:[%s10561_s7 + $0xa08] sm:$0xff] }
  0xd2   : > { %551 = vst [vmem:[%s10566_s28 + $0x410] sm:$0xff] %v550_v50  ;;  %v678_v50 = vld [vmem:[%s10561_s7 + $0xa10] sm:$0xff] }
  0xd3   : > { %553 = vst [vmem:[%s10566_s28 + $0x418] sm:$0xff] %v552_v51  ;;  %v680_v51 = vld [vmem:[%s10561_s7 + $0xa18] sm:$0xff] }
  0xd4   : > { %555 = vst [vmem:[%s10566_s28 + $0x420] sm:$0xff] %v554_v52  ;;  %v682_v52 = vld [vmem:[%s10561_s7 + $0xa20] sm:$0xff] }
  0xd5   : > { %557 = vst [vmem:[%s10566_s28 + $0x428] sm:$0xff] %v556_v53  ;;  %v684_v53 = vld [vmem:[%s10561_s7 + $0xa28] sm:$0xff] }
  0xd6   : > { %559 = vst [vmem:[%s10566_s28 + $0x430] sm:$0xff] %v558_v54  ;;  %v686_v54 = vld [vmem:[%s10561_s7 + $0xa30] sm:$0xff] }
  0xd7   : > { %561 = vst [vmem:[%s10566_s28 + $0x438] sm:$0xff] %v560_v55  ;;  %v688_v55 = vld [vmem:[%s10561_s7 + $0xa38] sm:$0xff] }
  0xd8   : > { %563 = vst [vmem:[%s10566_s28 + $0x440] sm:$0xff] %v562_v56  ;;  %v690_v56 = vld [vmem:[%s10561_s7 + $0xa40] sm:$0xff] }
  0xd9   : > { %565 = vst [vmem:[%s10566_s28 + $0x448] sm:$0xff] %v564_v57  ;;  %v692_v57 = vld [vmem:[%s10561_s7 + $0xa48] sm:$0xff] }
  0xda   : > { %567 = vst [vmem:[%s10566_s28 + $0x450] sm:$0xff] %v566_v58  ;;  %v694_v58 = vld [vmem:[%s10561_s7 + $0xa50] sm:$0xff] }
  0xdb   : > { %569 = vst [vmem:[%s10566_s28 + $0x458] sm:$0xff] %v568_v59  ;;  %v696_v59 = vld [vmem:[%s10561_s7 + $0xa58] sm:$0xff] }
  0xdc   : > { %571 = vst [vmem:[%s10566_s28 + $0x460] sm:$0xff] %v570_v60  ;;  %v698_v60 = vld [vmem:[%s10561_s7 + $0xa60] sm:$0xff] }
  0xdd   : > { %573 = vst [vmem:[%s10566_s28 + $0x468] sm:$0xff] %v572_v61  ;;  %v700_v61 = vld [vmem:[%s10561_s7 + $0xa68] sm:$0xff] }
  0xde   : > { %575 = vst [vmem:[%s10566_s28 + $0x470] sm:$0xff] %v574_v62  ;;  %v702_v62 = vld [vmem:[%s10561_s7 + $0xa70] sm:$0xff] }
  0xdf   : > { %577 = vst [vmem:[%s10566_s28 + $0x478] sm:$0xff] %v576_v63  ;;  %v704_v63 = vld [vmem:[%s10561_s7 + $0xa78] sm:$0xff] }
  0xe0   : > { %579 = vst [vmem:[%s10566_s28 + $0x480] sm:$0xff] %v578_v0  ;;  %v706_v0 = vld [vmem:[%s10561_s7 + $0xa80] sm:$0xff] }
  0xe1   : > { %581 = vst [vmem:[%s10566_s28 + $0x488] sm:$0xff] %v580_v1  ;;  %v708_v1 = vld [vmem:[%s10561_s7 + $0xa88] sm:$0xff] }
  0xe2   : > { %583 = vst [vmem:[%s10566_s28 + $0x490] sm:$0xff] %v582_v2  ;;  %v710_v2 = vld [vmem:[%s10561_s7 + $0xa90] sm:$0xff] }
  0xe3   : > { %585 = vst [vmem:[%s10566_s28 + $0x498] sm:$0xff] %v584_v3  ;;  %v712_v3 = vld [vmem:[%s10561_s7 + $0xa98] sm:$0xff] }
  0xe4   : > { %587 = vst [vmem:[%s10566_s28 + $0x4a0] sm:$0xff] %v586_v4  ;;  %v714_v4 = vld [vmem:[%s10561_s7 + $0xaa0] sm:$0xff] }
  0xe5   : > { %589 = vst [vmem:[%s10566_s28 + $0x4a8] sm:$0xff] %v588_v5  ;;  %v716_v5 = vld [vmem:[%s10561_s7 + $0xaa8] sm:$0xff] }
  0xe6   : > { %591 = vst [vmem:[%s10566_s28 + $0x4b0] sm:$0xff] %v590_v6  ;;  %v718_v6 = vld [vmem:[%s10561_s7 + $0xab0] sm:$0xff] }
  0xe7   : > { %593 = vst [vmem:[%s10566_s28 + $0x4b8] sm:$0xff] %v592_v7  ;;  %v720_v7 = vld [vmem:[%s10561_s7 + $0xab8] sm:$0xff] }
  0xe8   : > { %595 = vst [vmem:[%s10566_s28 + $0x4c0] sm:$0xff] %v594_v8  ;;  %v722_v8 = vld [vmem:[%s10561_s7 + $0xac0] sm:$0xff] }
  0xe9   : > { %597 = vst [vmem:[%s10566_s28 + $0x4c8] sm:$0xff] %v596_v9  ;;  %v724_v9 = vld [vmem:[%s10561_s7 + $0xac8] sm:$0xff] }
  0xea   : > { %599 = vst [vmem:[%s10566_s28 + $0x4d0] sm:$0xff] %v598_v10  ;;  %v726_v10 = vld [vmem:[%s10561_s7 + $0xad0] sm:$0xff] }
  0xeb   : > { %601 = vst [vmem:[%s10566_s28 + $0x4d8] sm:$0xff] %v600_v11  ;;  %v728_v11 = vld [vmem:[%s10561_s7 + $0xad8] sm:$0xff] }
  0xec   : > { %603 = vst [vmem:[%s10566_s28 + $0x4e0] sm:$0xff] %v602_v12  ;;  %v730_v12 = vld [vmem:[%s10561_s7 + $0xae0] sm:$0xff] }
  0xed   : > { %605 = vst [vmem:[%s10566_s28 + $0x4e8] sm:$0xff] %v604_v13  ;;  %v732_v13 = vld [vmem:[%s10561_s7 + $0xae8] sm:$0xff] }
  0xee   : > { %607 = vst [vmem:[%s10566_s28 + $0x4f0] sm:$0xff] %v606_v14  ;;  %v734_v14 = vld [vmem:[%s10561_s7 + $0xaf0] sm:$0xff] }
  0xef   : > { %609 = vst [vmem:[%s10566_s28 + $0x4f8] sm:$0xff] %v608_v15  ;;  %v736_v15 = vld [vmem:[%s10561_s7 + $0xaf8] sm:$0xff] }
  0xf0   : > { %611 = vst [vmem:[%s10566_s28 + $0x500] sm:$0xff] %v610_v16  ;;  %v738_v16 = vld [vmem:[%s10561_s7 + $0xb00] sm:$0xff] }
  0xf1   : > { %613 = vst [vmem:[%s10566_s28 + $0x508] sm:$0xff] %v612_v17  ;;  %v740_v17 = vld [vmem:[%s10561_s7 + $0xb08] sm:$0xff] }
  0xf2   : > { %615 = vst [vmem:[%s10566_s28 + $0x510] sm:$0xff] %v614_v18  ;;  %v742_v18 = vld [vmem:[%s10561_s7 + $0xb10] sm:$0xff] }
  0xf3   : > { %617 = vst [vmem:[%s10566_s28 + $0x518] sm:$0xff] %v616_v19  ;;  %v744_v19 = vld [vmem:[%s10561_s7 + $0xb18] sm:$0xff] }
  0xf4   : > { %619 = vst [vmem:[%s10566_s28 + $0x520] sm:$0xff] %v618_v20  ;;  %v746_v20 = vld [vmem:[%s10561_s7 + $0xb20] sm:$0xff] }
  0xf5   : > { %621 = vst [vmem:[%s10566_s28 + $0x528] sm:$0xff] %v620_v21  ;;  %v748_v21 = vld [vmem:[%s10561_s7 + $0xb28] sm:$0xff] }
  0xf6   : > { %623 = vst [vmem:[%s10566_s28 + $0x530] sm:$0xff] %v622_v22  ;;  %v750_v22 = vld [vmem:[%s10561_s7 + $0xb30] sm:$0xff] }
  0xf7   : > { %625 = vst [vmem:[%s10566_s28 + $0x538] sm:$0xff] %v624_v23  ;;  %v752_v23 = vld [vmem:[%s10561_s7 + $0xb38] sm:$0xff] }
  0xf8   : > { %627 = vst [vmem:[%s10566_s28 + $0x540] sm:$0xff] %v626_v24  ;;  %v754_v24 = vld [vmem:[%s10561_s7 + $0xb40] sm:$0xff] }
  0xf9   : > { %629 = vst [vmem:[%s10566_s28 + $0x548] sm:$0xff] %v628_v25  ;;  %v756_v25 = vld [vmem:[%s10561_s7 + $0xb48] sm:$0xff] }
  0xfa   : > { %631 = vst [vmem:[%s10566_s28 + $0x550] sm:$0xff] %v630_v26  ;;  %v758_v26 = vld [vmem:[%s10561_s7 + $0xb50] sm:$0xff] }
  0xfb   : > { %633 = vst [vmem:[%s10566_s28 + $0x558] sm:$0xff] %v632_v27  ;;  %v760_v27 = vld [vmem:[%s10561_s7 + $0xb58] sm:$0xff] }
  0xfc   : > { %635 = vst [vmem:[%s10566_s28 + $0x560] sm:$0xff] %v634_v28  ;;  %v762_v28 = vld [vmem:[%s10561_s7 + $0xb60] sm:$0xff] }
  0xfd   : > { %637 = vst [vmem:[%s10566_s28 + $0x568] sm:$0xff] %v636_v29  ;;  %v764_v29 = vld [vmem:[%s10561_s7 + $0xb68] sm:$0xff] }
  0xfe   : > { %639 = vst [vmem:[%s10566_s28 + $0x570] sm:$0xff] %v638_v30  ;;  %v766_v30 = vld [vmem:[%s10561_s7 + $0xb70] sm:$0xff] }
  0xff   : > { %641 = vst [vmem:[%s10566_s28 + $0x578] sm:$0xff] %v640_v31  ;;  %v768_v31 = vld [vmem:[%s10561_s7 + $0xb78] sm:$0xff] }
 0x100   : > { %643 = vst [vmem:[%s10566_s28 + $0x580] sm:$0xff] %v642_v32  ;;  %v770_v32 = vld [vmem:[%s10561_s7 + $0xb80] sm:$0xff] }
 0x101   : > { %645 = vst [vmem:[%s10566_s28 + $0x588] sm:$0xff] %v644_v33  ;;  %v772_v33 = vld [vmem:[%s10561_s7 + $0xb88] sm:$0xff] }
 0x102   : > { %647 = vst [vmem:[%s10566_s28 + $0x590] sm:$0xff] %v646_v34  ;;  %v774_v34 = vld [vmem:[%s10561_s7 + $0xb90] sm:$0xff] }
 0x103   : > { %649 = vst [vmem:[%s10566_s28 + $0x598] sm:$0xff] %v648_v35  ;;  %v776_v35 = vld [vmem:[%s10561_s7 + $0xb98] sm:$0xff] }
 0x104   : > { %651 = vst [vmem:[%s10566_s28 + $0x5a0] sm:$0xff] %v650_v36  ;;  %v778_v36 = vld [vmem:[%s10561_s7 + $0xba0] sm:$0xff] }
 0x105   : > { %653 = vst [vmem:[%s10566_s28 + $0x5a8] sm:$0xff] %v652_v37  ;;  %v780_v37 = vld [vmem:[%s10561_s7 + $0xba8] sm:$0xff] }
 0x106   : > { %655 = vst [vmem:[%s10566_s28 + $0x5b0] sm:$0xff] %v654_v38  ;;  %v782_v38 = vld [vmem:[%s10561_s7 + $0xbb0] sm:$0xff] }
 0x107   : > { %657 = vst [vmem:[%s10566_s28 + $0x5b8] sm:$0xff] %v656_v39  ;;  %v784_v39 = vld [vmem:[%s10561_s7 + $0xbb8] sm:$0xff] }
 0x108   : > { %659 = vst [vmem:[%s10566_s28 + $0x5c0] sm:$0xff] %v658_v40  ;;  %v786_v40 = vld [vmem:[%s10561_s7 + $0xbc0] sm:$0xff] }
 0x109   : > { %661 = vst [vmem:[%s10566_s28 + $0x5c8] sm:$0xff] %v660_v41  ;;  %v788_v41 = vld [vmem:[%s10561_s7 + $0xbc8] sm:$0xff] }
 0x10a   : > { %663 = vst [vmem:[%s10566_s28 + $0x5d0] sm:$0xff] %v662_v42  ;;  %v790_v42 = vld [vmem:[%s10561_s7 + $0xbd0] sm:$0xff] }
 0x10b   : > { %665 = vst [vmem:[%s10566_s28 + $0x5d8] sm:$0xff] %v664_v43  ;;  %v792_v43 = vld [vmem:[%s10561_s7 + $0xbd8] sm:$0xff] }
 0x10c   : > { %667 = vst [vmem:[%s10566_s28 + $0x5e0] sm:$0xff] %v666_v44  ;;  %v794_v44 = vld [vmem:[%s10561_s7 + $0xbe0] sm:$0xff] }
 0x10d   : > { %669 = vst [vmem:[%s10566_s28 + $0x5e8] sm:$0xff] %v668_v45  ;;  %v796_v45 = vld [vmem:[%s10561_s7 + $0xbe8] sm:$0xff] }
 0x10e   : > { %671 = vst [vmem:[%s10566_s28 + $0x5f0] sm:$0xff] %v670_v46  ;;  %v798_v46 = vld [vmem:[%s10561_s7 + $0xbf0] sm:$0xff] }
 0x10f   : > { %673 = vst [vmem:[%s10566_s28 + $0x5f8] sm:$0xff] %v672_v47  ;;  %v800_v47 = vld [vmem:[%s10561_s7 + $0xbf8] sm:$0xff] }
 0x110   : > { %675 = vst [vmem:[%s10566_s28 + $0x600] sm:$0xff] %v674_v48  ;;  %v802_v48 = vld [vmem:[%s10561_s7 + $0x1000] sm:$0xff] }
 0x111   : > { %677 = vst [vmem:[%s10566_s28 + $0x608] sm:$0xff] %v676_v49  ;;  %v804_v49 = vld [vmem:[%s10561_s7 + $0x1008] sm:$0xff] }
 0x112   : > { %679 = vst [vmem:[%s10566_s28 + $0x610] sm:$0xff] %v678_v50  ;;  %v806_v50 = vld [vmem:[%s10561_s7 + $0x1010] sm:$0xff] }
 0x113   : > { %681 = vst [vmem:[%s10566_s28 + $0x618] sm:$0xff] %v680_v51  ;;  %v808_v51 = vld [vmem:[%s10561_s7 + $0x1018] sm:$0xff] }
 0x114   : > { %683 = vst [vmem:[%s10566_s28 + $0x620] sm:$0xff] %v682_v52  ;;  %v810_v52 = vld [vmem:[%s10561_s7 + $0x1020] sm:$0xff] }
 0x115   : > { %685 = vst [vmem:[%s10566_s28 + $0x628] sm:$0xff] %v684_v53  ;;  %v812_v53 = vld [vmem:[%s10561_s7 + $0x1028] sm:$0xff] }
 0x116   : > { %687 = vst [vmem:[%s10566_s28 + $0x630] sm:$0xff] %v686_v54  ;;  %v814_v54 = vld [vmem:[%s10561_s7 + $0x1030] sm:$0xff] }
 0x117   : > { %689 = vst [vmem:[%s10566_s28 + $0x638] sm:$0xff] %v688_v55  ;;  %v816_v55 = vld [vmem:[%s10561_s7 + $0x1038] sm:$0xff] }
 0x118   : > { %691 = vst [vmem:[%s10566_s28 + $0x640] sm:$0xff] %v690_v56  ;;  %v818_v56 = vld [vmem:[%s10561_s7 + $0x1040] sm:$0xff] }
 0x119   : > { %693 = vst [vmem:[%s10566_s28 + $0x648] sm:$0xff] %v692_v57  ;;  %v820_v57 = vld [vmem:[%s10561_s7 + $0x1048] sm:$0xff] }
 0x11a   : > { %695 = vst [vmem:[%s10566_s28 + $0x650] sm:$0xff] %v694_v58  ;;  %v822_v58 = vld [vmem:[%s10561_s7 + $0x1050] sm:$0xff] }
 0x11b   : > { %697 = vst [vmem:[%s10566_s28 + $0x658] sm:$0xff] %v696_v59  ;;  %v824_v59 = vld [vmem:[%s10561_s7 + $0x1058] sm:$0xff] }
 0x11c   : > { %699 = vst [vmem:[%s10566_s28 + $0x660] sm:$0xff] %v698_v60  ;;  %v826_v60 = vld [vmem:[%s10561_s7 + $0x1060] sm:$0xff] }
 0x11d   : > { %701 = vst [vmem:[%s10566_s28 + $0x668] sm:$0xff] %v700_v61  ;;  %v828_v61 = vld [vmem:[%s10561_s7 + $0x1068] sm:$0xff] }
 0x11e   : > { %703 = vst [vmem:[%s10566_s28 + $0x670] sm:$0xff] %v702_v62  ;;  %v830_v62 = vld [vmem:[%s10561_s7 + $0x1070] sm:$0xff] }
 0x11f   : > { %705 = vst [vmem:[%s10566_s28 + $0x678] sm:$0xff] %v704_v63  ;;  %v832_v63 = vld [vmem:[%s10561_s7 + $0x1078] sm:$0xff] }
 0x120   : > { %707 = vst [vmem:[%s10566_s28 + $0x680] sm:$0xff] %v706_v0  ;;  %v834_v0 = vld [vmem:[%s10561_s7 + $0x1080] sm:$0xff] }
 0x121   : > { %709 = vst [vmem:[%s10566_s28 + $0x688] sm:$0xff] %v708_v1  ;;  %v836_v1 = vld [vmem:[%s10561_s7 + $0x1088] sm:$0xff] }
 0x122   : > { %711 = vst [vmem:[%s10566_s28 + $0x690] sm:$0xff] %v710_v2  ;;  %v838_v2 = vld [vmem:[%s10561_s7 + $0x1090] sm:$0xff] }
 0x123   : > { %713 = vst [vmem:[%s10566_s28 + $0x698] sm:$0xff] %v712_v3  ;;  %v840_v3 = vld [vmem:[%s10561_s7 + $0x1098] sm:$0xff] }
 0x124   : > { %715 = vst [vmem:[%s10566_s28 + $0x6a0] sm:$0xff] %v714_v4  ;;  %v842_v4 = vld [vmem:[%s10561_s7 + $0x10a0] sm:$0xff] }
 0x125   : > { %717 = vst [vmem:[%s10566_s28 + $0x6a8] sm:$0xff] %v716_v5  ;;  %v844_v5 = vld [vmem:[%s10561_s7 + $0x10a8] sm:$0xff] }
 0x126   : > { %719 = vst [vmem:[%s10566_s28 + $0x6b0] sm:$0xff] %v718_v6  ;;  %v846_v6 = vld [vmem:[%s10561_s7 + $0x10b0] sm:$0xff] }
 0x127   : > { %721 = vst [vmem:[%s10566_s28 + $0x6b8] sm:$0xff] %v720_v7  ;;  %v848_v7 = vld [vmem:[%s10561_s7 + $0x10b8] sm:$0xff] }
 0x128   : > { %723 = vst [vmem:[%s10566_s28 + $0x6c0] sm:$0xff] %v722_v8  ;;  %v850_v8 = vld [vmem:[%s10561_s7 + $0x10c0] sm:$0xff] }
 0x129   : > { %725 = vst [vmem:[%s10566_s28 + $0x6c8] sm:$0xff] %v724_v9  ;;  %v852_v9 = vld [vmem:[%s10561_s7 + $0x10c8] sm:$0xff] }
 0x12a   : > { %727 = vst [vmem:[%s10566_s28 + $0x6d0] sm:$0xff] %v726_v10  ;;  %v854_v10 = vld [vmem:[%s10561_s7 + $0x10d0] sm:$0xff] }
 0x12b   : > { %729 = vst [vmem:[%s10566_s28 + $0x6d8] sm:$0xff] %v728_v11  ;;  %v856_v11 = vld [vmem:[%s10561_s7 + $0x10d8] sm:$0xff] }
 0x12c   : > { %731 = vst [vmem:[%s10566_s28 + $0x6e0] sm:$0xff] %v730_v12  ;;  %v858_v12 = vld [vmem:[%s10561_s7 + $0x10e0] sm:$0xff] }
 0x12d   : > { %733 = vst [vmem:[%s10566_s28 + $0x6e8] sm:$0xff] %v732_v13  ;;  %v860_v13 = vld [vmem:[%s10561_s7 + $0x10e8] sm:$0xff] }
 0x12e   : > { %735 = vst [vmem:[%s10566_s28 + $0x6f0] sm:$0xff] %v734_v14  ;;  %v862_v14 = vld [vmem:[%s10561_s7 + $0x10f0] sm:$0xff] }
 0x12f   : > { %737 = vst [vmem:[%s10566_s28 + $0x6f8] sm:$0xff] %v736_v15  ;;  %v864_v15 = vld [vmem:[%s10561_s7 + $0x10f8] sm:$0xff] }
 0x130   : > { %739 = vst [vmem:[%s10566_s28 + $0x700] sm:$0xff] %v738_v16  ;;  %v866_v16 = vld [vmem:[%s10561_s7 + $0x1100] sm:$0xff] }
 0x131   : > { %741 = vst [vmem:[%s10566_s28 + $0x708] sm:$0xff] %v740_v17  ;;  %v868_v17 = vld [vmem:[%s10561_s7 + $0x1108] sm:$0xff] }
 0x132   : > { %743 = vst [vmem:[%s10566_s28 + $0x710] sm:$0xff] %v742_v18  ;;  %v870_v18 = vld [vmem:[%s10561_s7 + $0x1110] sm:$0xff] }
 0x133   : > { %745 = vst [vmem:[%s10566_s28 + $0x718] sm:$0xff] %v744_v19  ;;  %v872_v19 = vld [vmem:[%s10561_s7 + $0x1118] sm:$0xff] }
 0x134   : > { %747 = vst [vmem:[%s10566_s28 + $0x720] sm:$0xff] %v746_v20  ;;  %v874_v20 = vld [vmem:[%s10561_s7 + $0x1120] sm:$0xff] }
 0x135   : > { %749 = vst [vmem:[%s10566_s28 + $0x728] sm:$0xff] %v748_v21  ;;  %v876_v21 = vld [vmem:[%s10561_s7 + $0x1128] sm:$0xff] }
 0x136   : > { %751 = vst [vmem:[%s10566_s28 + $0x730] sm:$0xff] %v750_v22  ;;  %v878_v22 = vld [vmem:[%s10561_s7 + $0x1130] sm:$0xff] }
 0x137   : > { %753 = vst [vmem:[%s10566_s28 + $0x738] sm:$0xff] %v752_v23  ;;  %v880_v23 = vld [vmem:[%s10561_s7 + $0x1138] sm:$0xff] }
 0x138   : > { %755 = vst [vmem:[%s10566_s28 + $0x740] sm:$0xff] %v754_v24  ;;  %v882_v24 = vld [vmem:[%s10561_s7 + $0x1140] sm:$0xff] }
 0x139   : > { %757 = vst [vmem:[%s10566_s28 + $0x748] sm:$0xff] %v756_v25  ;;  %v884_v25 = vld [vmem:[%s10561_s7 + $0x1148] sm:$0xff] }
 0x13a   : > { %759 = vst [vmem:[%s10566_s28 + $0x750] sm:$0xff] %v758_v26  ;;  %v886_v26 = vld [vmem:[%s10561_s7 + $0x1150] sm:$0xff] }
 0x13b   : > { %761 = vst [vmem:[%s10566_s28 + $0x758] sm:$0xff] %v760_v27  ;;  %v888_v27 = vld [vmem:[%s10561_s7 + $0x1158] sm:$0xff] }
 0x13c   : > { %763 = vst [vmem:[%s10566_s28 + $0x760] sm:$0xff] %v762_v28  ;;  %v890_v28 = vld [vmem:[%s10561_s7 + $0x1160] sm:$0xff] }
 0x13d   : > { %765 = vst [vmem:[%s10566_s28 + $0x768] sm:$0xff] %v764_v29  ;;  %v892_v29 = vld [vmem:[%s10561_s7 + $0x1168] sm:$0xff] }
 0x13e   : > { %767 = vst [vmem:[%s10566_s28 + $0x770] sm:$0xff] %v766_v30  ;;  %v894_v30 = vld [vmem:[%s10561_s7 + $0x1170] sm:$0xff] }
 0x13f   : > { %769 = vst [vmem:[%s10566_s28 + $0x778] sm:$0xff] %v768_v31  ;;  %v896_v31 = vld [vmem:[%s10561_s7 + $0x1178] sm:$0xff] }
 0x140   : > { %771 = vst [vmem:[%s10566_s28 + $0x780] sm:$0xff] %v770_v32  ;;  %v898_v32 = vld [vmem:[%s10561_s7 + $0x1180] sm:$0xff] }
 0x141   : > { %773 = vst [vmem:[%s10566_s28 + $0x788] sm:$0xff] %v772_v33  ;;  %v900_v33 = vld [vmem:[%s10561_s7 + $0x1188] sm:$0xff] }
 0x142   : > { %775 = vst [vmem:[%s10566_s28 + $0x790] sm:$0xff] %v774_v34  ;;  %v902_v34 = vld [vmem:[%s10561_s7 + $0x1190] sm:$0xff] }
 0x143   : > { %777 = vst [vmem:[%s10566_s28 + $0x798] sm:$0xff] %v776_v35  ;;  %v904_v35 = vld [vmem:[%s10561_s7 + $0x1198] sm:$0xff] }
 0x144   : > { %779 = vst [vmem:[%s10566_s28 + $0x7a0] sm:$0xff] %v778_v36  ;;  %v906_v36 = vld [vmem:[%s10561_s7 + $0x11a0] sm:$0xff] }
 0x145   : > { %781 = vst [vmem:[%s10566_s28 + $0x7a8] sm:$0xff] %v780_v37  ;;  %v908_v37 = vld [vmem:[%s10561_s7 + $0x11a8] sm:$0xff] }
 0x146   : > { %783 = vst [vmem:[%s10566_s28 + $0x7b0] sm:$0xff] %v782_v38  ;;  %v910_v38 = vld [vmem:[%s10561_s7 + $0x11b0] sm:$0xff] }
 0x147   : > { %785 = vst [vmem:[%s10566_s28 + $0x7b8] sm:$0xff] %v784_v39  ;;  %v912_v39 = vld [vmem:[%s10561_s7 + $0x11b8] sm:$0xff] }
 0x148   : > { %787 = vst [vmem:[%s10566_s28 + $0x7c0] sm:$0xff] %v786_v40  ;;  %v914_v40 = vld [vmem:[%s10561_s7 + $0x11c0] sm:$0xff] }
 0x149   : > { %789 = vst [vmem:[%s10566_s28 + $0x7c8] sm:$0xff] %v788_v41  ;;  %v916_v41 = vld [vmem:[%s10561_s7 + $0x11c8] sm:$0xff] }
 0x14a   : > { %791 = vst [vmem:[%s10566_s28 + $0x7d0] sm:$0xff] %v790_v42  ;;  %v918_v42 = vld [vmem:[%s10561_s7 + $0x11d0] sm:$0xff] }
 0x14b   : > { %793 = vst [vmem:[%s10566_s28 + $0x7d8] sm:$0xff] %v792_v43  ;;  %v920_v43 = vld [vmem:[%s10561_s7 + $0x11d8] sm:$0xff] }
 0x14c   : > { %795 = vst [vmem:[%s10566_s28 + $0x7e0] sm:$0xff] %v794_v44  ;;  %v922_v44 = vld [vmem:[%s10561_s7 + $0x11e0] sm:$0xff] }
 0x14d   : > { %797 = vst [vmem:[%s10566_s28 + $0x7e8] sm:$0xff] %v796_v45  ;;  %v924_v45 = vld [vmem:[%s10561_s7 + $0x11e8] sm:$0xff] }
 0x14e   : > { %799 = vst [vmem:[%s10566_s28 + $0x7f0] sm:$0xff] %v798_v46  ;;  %v926_v46 = vld [vmem:[%s10561_s7 + $0x11f0] sm:$0xff] }
 0x14f   : > { %801 = vst [vmem:[%s10566_s28 + $0x7f8] sm:$0xff] %v800_v47  ;;  %v928_v47 = vld [vmem:[%s10561_s7 + $0x11f8] sm:$0xff] }
 0x150   : > { %803 = vst [vmem:[%s10566_s28 + $0x800] sm:$0xff] %v802_v48  ;;  %v930_v48 = vld [vmem:[%s10561_s7 + $0x1200] sm:$0xff] }
 0x151   : > { %805 = vst [vmem:[%s10566_s28 + $0x808] sm:$0xff] %v804_v49  ;;  %v932_v49 = vld [vmem:[%s10561_s7 + $0x1208] sm:$0xff] }
 0x152   : > { %807 = vst [vmem:[%s10566_s28 + $0x810] sm:$0xff] %v806_v50  ;;  %v934_v50 = vld [vmem:[%s10561_s7 + $0x1210] sm:$0xff] }
 0x153   : > { %809 = vst [vmem:[%s10566_s28 + $0x818] sm:$0xff] %v808_v51  ;;  %v936_v51 = vld [vmem:[%s10561_s7 + $0x1218] sm:$0xff] }
 0x154   : > { %811 = vst [vmem:[%s10566_s28 + $0x820] sm:$0xff] %v810_v52  ;;  %v938_v52 = vld [vmem:[%s10561_s7 + $0x1220] sm:$0xff] }
 0x155   : > { %813 = vst [vmem:[%s10566_s28 + $0x828] sm:$0xff] %v812_v53  ;;  %v940_v53 = vld [vmem:[%s10561_s7 + $0x1228] sm:$0xff] }
 0x156   : > { %815 = vst [vmem:[%s10566_s28 + $0x830] sm:$0xff] %v814_v54  ;;  %v942_v54 = vld [vmem:[%s10561_s7 + $0x1230] sm:$0xff] }
 0x157   : > { %817 = vst [vmem:[%s10566_s28 + $0x838] sm:$0xff] %v816_v55  ;;  %v944_v55 = vld [vmem:[%s10561_s7 + $0x1238] sm:$0xff] }
 0x158   : > { %819 = vst [vmem:[%s10566_s28 + $0x840] sm:$0xff] %v818_v56  ;;  %v946_v56 = vld [vmem:[%s10561_s7 + $0x1240] sm:$0xff] }
 0x159   : > { %821 = vst [vmem:[%s10566_s28 + $0x848] sm:$0xff] %v820_v57  ;;  %v948_v57 = vld [vmem:[%s10561_s7 + $0x1248] sm:$0xff] }
 0x15a   : > { %823 = vst [vmem:[%s10566_s28 + $0x850] sm:$0xff] %v822_v58  ;;  %v950_v58 = vld [vmem:[%s10561_s7 + $0x1250] sm:$0xff] }
 0x15b   : > { %825 = vst [vmem:[%s10566_s28 + $0x858] sm:$0xff] %v824_v59  ;;  %v952_v59 = vld [vmem:[%s10561_s7 + $0x1258] sm:$0xff] }
 0x15c   : > { %827 = vst [vmem:[%s10566_s28 + $0x860] sm:$0xff] %v826_v60  ;;  %v954_v60 = vld [vmem:[%s10561_s7 + $0x1260] sm:$0xff] }
 0x15d   : > { %829 = vst [vmem:[%s10566_s28 + $0x868] sm:$0xff] %v828_v61  ;;  %v956_v61 = vld [vmem:[%s10561_s7 + $0x1268] sm:$0xff] }
 0x15e   : > { %831 = vst [vmem:[%s10566_s28 + $0x870] sm:$0xff] %v830_v62  ;;  %v958_v62 = vld [vmem:[%s10561_s7 + $0x1270] sm:$0xff] }
 0x15f   : > { %833 = vst [vmem:[%s10566_s28 + $0x878] sm:$0xff] %v832_v63  ;;  %v960_v63 = vld [vmem:[%s10561_s7 + $0x1278] sm:$0xff] }
 0x160   : > { %835 = vst [vmem:[%s10566_s28 + $0x880] sm:$0xff] %v834_v0  ;;  %v962_v0 = vld [vmem:[%s10561_s7 + $0x1280] sm:$0xff] }
 0x161   : > { %837 = vst [vmem:[%s10566_s28 + $0x888] sm:$0xff] %v836_v1  ;;  %v964_v1 = vld [vmem:[%s10561_s7 + $0x1288] sm:$0xff] }
 0x162   : > { %839 = vst [vmem:[%s10566_s28 + $0x890] sm:$0xff] %v838_v2  ;;  %v966_v2 = vld [vmem:[%s10561_s7 + $0x1290] sm:$0xff] }
 0x163   : > { %841 = vst [vmem:[%s10566_s28 + $0x898] sm:$0xff] %v840_v3  ;;  %v968_v3 = vld [vmem:[%s10561_s7 + $0x1298] sm:$0xff] }
 0x164   : > { %843 = vst [vmem:[%s10566_s28 + $0x8a0] sm:$0xff] %v842_v4  ;;  %v970_v4 = vld [vmem:[%s10561_s7 + $0x12a0] sm:$0xff] }
 0x165   : > { %845 = vst [vmem:[%s10566_s28 + $0x8a8] sm:$0xff] %v844_v5  ;;  %v972_v5 = vld [vmem:[%s10561_s7 + $0x12a8] sm:$0xff] }
 0x166   : > { %847 = vst [vmem:[%s10566_s28 + $0x8b0] sm:$0xff] %v846_v6  ;;  %v974_v6 = vld [vmem:[%s10561_s7 + $0x12b0] sm:$0xff] }
 0x167   : > { %849 = vst [vmem:[%s10566_s28 + $0x8b8] sm:$0xff] %v848_v7  ;;  %v976_v7 = vld [vmem:[%s10561_s7 + $0x12b8] sm:$0xff] }
 0x168   : > { %851 = vst [vmem:[%s10566_s28 + $0x8c0] sm:$0xff] %v850_v8  ;;  %v978_v8 = vld [vmem:[%s10561_s7 + $0x12c0] sm:$0xff] }
 0x169   : > { %853 = vst [vmem:[%s10566_s28 + $0x8c8] sm:$0xff] %v852_v9  ;;  %v980_v9 = vld [vmem:[%s10561_s7 + $0x12c8] sm:$0xff] }
 0x16a   : > { %855 = vst [vmem:[%s10566_s28 + $0x8d0] sm:$0xff] %v854_v10  ;;  %v982_v10 = vld [vmem:[%s10561_s7 + $0x12d0] sm:$0xff] }
 0x16b   : > { %857 = vst [vmem:[%s10566_s28 + $0x8d8] sm:$0xff] %v856_v11  ;;  %v984_v11 = vld [vmem:[%s10561_s7 + $0x12d8] sm:$0xff] }
 0x16c   : > { %859 = vst [vmem:[%s10566_s28 + $0x8e0] sm:$0xff] %v858_v12  ;;  %v986_v12 = vld [vmem:[%s10561_s7 + $0x12e0] sm:$0xff] }
 0x16d   : > { %861 = vst [vmem:[%s10566_s28 + $0x8e8] sm:$0xff] %v860_v13  ;;  %v988_v13 = vld [vmem:[%s10561_s7 + $0x12e8] sm:$0xff] }
 0x16e   : > { %863 = vst [vmem:[%s10566_s28 + $0x8f0] sm:$0xff] %v862_v14  ;;  %v990_v14 = vld [vmem:[%s10561_s7 + $0x12f0] sm:$0xff] }
 0x16f   : > { %865 = vst [vmem:[%s10566_s28 + $0x8f8] sm:$0xff] %v864_v15  ;;  %v992_v15 = vld [vmem:[%s10561_s7 + $0x12f8] sm:$0xff] }
 0x170   : > { %867 = vst [vmem:[%s10566_s28 + $0x900] sm:$0xff] %v866_v16  ;;  %v994_v16 = vld [vmem:[%s10561_s7 + $0x1300] sm:$0xff] }
 0x171   : > { %869 = vst [vmem:[%s10566_s28 + $0x908] sm:$0xff] %v868_v17  ;;  %v996_v17 = vld [vmem:[%s10561_s7 + $0x1308] sm:$0xff] }
 0x172   : > { %871 = vst [vmem:[%s10566_s28 + $0x910] sm:$0xff] %v870_v18  ;;  %v998_v18 = vld [vmem:[%s10561_s7 + $0x1310] sm:$0xff] }
 0x173   : > { %873 = vst [vmem:[%s10566_s28 + $0x918] sm:$0xff] %v872_v19  ;;  %v1000_v19 = vld [vmem:[%s10561_s7 + $0x1318] sm:$0xff] }
 0x174   : > { %875 = vst [vmem:[%s10566_s28 + $0x920] sm:$0xff] %v874_v20  ;;  %v1002_v20 = vld [vmem:[%s10561_s7 + $0x1320] sm:$0xff] }
 0x175   : > { %877 = vst [vmem:[%s10566_s28 + $0x928] sm:$0xff] %v876_v21  ;;  %v1004_v21 = vld [vmem:[%s10561_s7 + $0x1328] sm:$0xff] }
 0x176   : > { %879 = vst [vmem:[%s10566_s28 + $0x930] sm:$0xff] %v878_v22  ;;  %v1006_v22 = vld [vmem:[%s10561_s7 + $0x1330] sm:$0xff] }
 0x177   : > { %881 = vst [vmem:[%s10566_s28 + $0x938] sm:$0xff] %v880_v23  ;;  %v1008_v23 = vld [vmem:[%s10561_s7 + $0x1338] sm:$0xff] }
 0x178   : > { %883 = vst [vmem:[%s10566_s28 + $0x940] sm:$0xff] %v882_v24  ;;  %v1010_v24 = vld [vmem:[%s10561_s7 + $0x1340] sm:$0xff] }
 0x179   : > { %885 = vst [vmem:[%s10566_s28 + $0x948] sm:$0xff] %v884_v25  ;;  %v1012_v25 = vld [vmem:[%s10561_s7 + $0x1348] sm:$0xff] }
 0x17a   : > { %887 = vst [vmem:[%s10566_s28 + $0x950] sm:$0xff] %v886_v26  ;;  %v1014_v26 = vld [vmem:[%s10561_s7 + $0x1350] sm:$0xff] }
 0x17b   : > { %889 = vst [vmem:[%s10566_s28 + $0x958] sm:$0xff] %v888_v27  ;;  %v1016_v27 = vld [vmem:[%s10561_s7 + $0x1358] sm:$0xff] }
 0x17c   : > { %891 = vst [vmem:[%s10566_s28 + $0x960] sm:$0xff] %v890_v28  ;;  %v1018_v28 = vld [vmem:[%s10561_s7 + $0x1360] sm:$0xff] }
 0x17d   : > { %893 = vst [vmem:[%s10566_s28 + $0x968] sm:$0xff] %v892_v29  ;;  %v1020_v29 = vld [vmem:[%s10561_s7 + $0x1368] sm:$0xff] }
 0x17e   : > { %895 = vst [vmem:[%s10566_s28 + $0x970] sm:$0xff] %v894_v30  ;;  %v1022_v30 = vld [vmem:[%s10561_s7 + $0x1370] sm:$0xff] }
 0x17f   : > { %897 = vst [vmem:[%s10566_s28 + $0x978] sm:$0xff] %v896_v31  ;;  %v1024_v31 = vld [vmem:[%s10561_s7 + $0x1378] sm:$0xff] }
 0x180   : > { %899 = vst [vmem:[%s10566_s28 + $0x980] sm:$0xff] %v898_v32  ;;  %v1026_v32 = vld [vmem:[%s10561_s7 + $0x1380] sm:$0xff] }
 0x181   : > { %901 = vst [vmem:[%s10566_s28 + $0x988] sm:$0xff] %v900_v33  ;;  %v1028_v33 = vld [vmem:[%s10561_s7 + $0x1388] sm:$0xff] }
 0x182   : > { %903 = vst [vmem:[%s10566_s28 + $0x990] sm:$0xff] %v902_v34  ;;  %v1030_v34 = vld [vmem:[%s10561_s7 + $0x1390] sm:$0xff] }
 0x183   : > { %905 = vst [vmem:[%s10566_s28 + $0x998] sm:$0xff] %v904_v35  ;;  %v1032_v35 = vld [vmem:[%s10561_s7 + $0x1398] sm:$0xff] }
 0x184   : > { %907 = vst [vmem:[%s10566_s28 + $0x9a0] sm:$0xff] %v906_v36  ;;  %v1034_v36 = vld [vmem:[%s10561_s7 + $0x13a0] sm:$0xff] }
 0x185   : > { %909 = vst [vmem:[%s10566_s28 + $0x9a8] sm:$0xff] %v908_v37  ;;  %v1036_v37 = vld [vmem:[%s10561_s7 + $0x13a8] sm:$0xff] }
 0x186   : > { %911 = vst [vmem:[%s10566_s28 + $0x9b0] sm:$0xff] %v910_v38  ;;  %v1038_v38 = vld [vmem:[%s10561_s7 + $0x13b0] sm:$0xff] }
 0x187   : > { %913 = vst [vmem:[%s10566_s28 + $0x9b8] sm:$0xff] %v912_v39  ;;  %v1040_v39 = vld [vmem:[%s10561_s7 + $0x13b8] sm:$0xff] }
 0x188   : > { %915 = vst [vmem:[%s10566_s28 + $0x9c0] sm:$0xff] %v914_v40  ;;  %v1042_v40 = vld [vmem:[%s10561_s7 + $0x13c0] sm:$0xff] }
 0x189   : > { %917 = vst [vmem:[%s10566_s28 + $0x9c8] sm:$0xff] %v916_v41  ;;  %v1044_v41 = vld [vmem:[%s10561_s7 + $0x13c8] sm:$0xff] }
 0x18a   : > { %919 = vst [vmem:[%s10566_s28 + $0x9d0] sm:$0xff] %v918_v42  ;;  %v1046_v42 = vld [vmem:[%s10561_s7 + $0x13d0] sm:$0xff] }
 0x18b   : > { %921 = vst [vmem:[%s10566_s28 + $0x9d8] sm:$0xff] %v920_v43  ;;  %v1048_v43 = vld [vmem:[%s10561_s7 + $0x13d8] sm:$0xff] }
 0x18c   : > { %923 = vst [vmem:[%s10566_s28 + $0x9e0] sm:$0xff] %v922_v44  ;;  %v1050_v44 = vld [vmem:[%s10561_s7 + $0x13e0] sm:$0xff] }
 0x18d   : > { %925 = vst [vmem:[%s10566_s28 + $0x9e8] sm:$0xff] %v924_v45  ;;  %v1052_v45 = vld [vmem:[%s10561_s7 + $0x13e8] sm:$0xff] }
 0x18e   : > { %927 = vst [vmem:[%s10566_s28 + $0x9f0] sm:$0xff] %v926_v46  ;;  %v1054_v46 = vld [vmem:[%s10561_s7 + $0x13f0] sm:$0xff] }
 0x18f   : > { %929 = vst [vmem:[%s10566_s28 + $0x9f8] sm:$0xff] %v928_v47  ;;  %v1056_v47 = vld [vmem:[%s10561_s7 + $0x13f8] sm:$0xff] }
 0x190   : > { %931 = vst [vmem:[%s10566_s28 + $0xa00] sm:$0xff] %v930_v48 }
 0x191   : > { %933 = vst [vmem:[%s10566_s28 + $0xa08] sm:$0xff] %v932_v49 }
 0x192   : > { %935 = vst [vmem:[%s10566_s28 + $0xa10] sm:$0xff] %v934_v50 }
 0x193   : > { %937 = vst [vmem:[%s10566_s28 + $0xa18] sm:$0xff] %v936_v51 }
 0x194   : > { %939 = vst [vmem:[%s10566_s28 + $0xa20] sm:$0xff] %v938_v52 }
 0x195   : > { %941 = vst [vmem:[%s10566_s28 + $0xa28] sm:$0xff] %v940_v53 }
 0x196   : > { %943 = vst [vmem:[%s10566_s28 + $0xa30] sm:$0xff] %v942_v54 }
 0x197   : > { %945 = vst [vmem:[%s10566_s28 + $0xa38] sm:$0xff] %v944_v55 }
 0x198   : > { %947 = vst [vmem:[%s10566_s28 + $0xa40] sm:$0xff] %v946_v56 }
 0x199   : > { %949 = vst [vmem:[%s10566_s28 + $0xa48] sm:$0xff] %v948_v57 }
 0x19a   : > { %951 = vst [vmem:[%s10566_s28 + $0xa50] sm:$0xff] %v950_v58 }
 0x19b   : > { %953 = vst [vmem:[%s10566_s28 + $0xa58] sm:$0xff] %v952_v59 }
 0x19c   : > { %955 = vst [vmem:[%s10566_s28 + $0xa60] sm:$0xff] %v954_v60 }
 0x19d   : > { %957 = vst [vmem:[%s10566_s28 + $0xa68] sm:$0xff] %v956_v61 }
 0x19e   : > { %959 = vst [vmem:[%s10566_s28 + $0xa70] sm:$0xff] %v958_v62 }
 0x19f   : > { %961 = vst [vmem:[%s10566_s28 + $0xa78] sm:$0xff] %v960_v63 }
 0x1a0   : > { %963 = vst [vmem:[%s10566_s28 + $0xa80] sm:$0xff] %v962_v0 }
 0x1a1   : > { %965 = vst [vmem:[%s10566_s28 + $0xa88] sm:$0xff] %v964_v1 }
 0x1a2   : > { %967 = vst [vmem:[%s10566_s28 + $0xa90] sm:$0xff] %v966_v2 }
 0x1a3   : > { %969 = vst [vmem:[%s10566_s28 + $0xa98] sm:$0xff] %v968_v3 }
 0x1a4   : > { %971 = vst [vmem:[%s10566_s28 + $0xaa0] sm:$0xff] %v970_v4 }
 0x1a5   : > { %973 = vst [vmem:[%s10566_s28 + $0xaa8] sm:$0xff] %v972_v5 }
 0x1a6   : > { %975 = vst [vmem:[%s10566_s28 + $0xab0] sm:$0xff] %v974_v6 }
 0x1a7   : > { %977 = vst [vmem:[%s10566_s28 + $0xab8] sm:$0xff] %v976_v7 }
 0x1a8   : > { %979 = vst [vmem:[%s10566_s28 + $0xac0] sm:$0xff] %v978_v8 }
 0x1a9   : > { %981 = vst [vmem:[%s10566_s28 + $0xac8] sm:$0xff] %v980_v9 }
 0x1aa   : > { %983 = vst [vmem:[%s10566_s28 + $0xad0] sm:$0xff] %v982_v10 }
 0x1ab   : > { %985 = vst [vmem:[%s10566_s28 + $0xad8] sm:$0xff] %v984_v11 }
 0x1ac   : > { %987 = vst [vmem:[%s10566_s28 + $0xae0] sm:$0xff] %v986_v12 }
 0x1ad   : > { %989 = vst [vmem:[%s10566_s28 + $0xae8] sm:$0xff] %v988_v13 }
 0x1ae   : > { %991 = vst [vmem:[%s10566_s28 + $0xaf0] sm:$0xff] %v990_v14 }
 0x1af   : > { %993 = vst [vmem:[%s10566_s28 + $0xaf8] sm:$0xff] %v992_v15 }
 0x1b0   : > { %995 = vst [vmem:[%s10566_s28 + $0xb00] sm:$0xff] %v994_v16 }
 0x1b1   : > { %997 = vst [vmem:[%s10566_s28 + $0xb08] sm:$0xff] %v996_v17 }
 0x1b2   : > { %999 = vst [vmem:[%s10566_s28 + $0xb10] sm:$0xff] %v998_v18 }
 0x1b3   : > { %1001 = vst [vmem:[%s10566_s28 + $0xb18] sm:$0xff] %v1000_v19 }
 0x1b4   : > { %1003 = vst [vmem:[%s10566_s28 + $0xb20] sm:$0xff] %v1002_v20 }
 0x1b5   : > { %1005 = vst [vmem:[%s10566_s28 + $0xb28] sm:$0xff] %v1004_v21 }
 0x1b6   : > { %1007 = vst [vmem:[%s10566_s28 + $0xb30] sm:$0xff] %v1006_v22 }
 0x1b7   : > { %1009 = vst [vmem:[%s10566_s28 + $0xb38] sm:$0xff] %v1008_v23 }
 0x1b8   : > { %1011 = vst [vmem:[%s10566_s28 + $0xb40] sm:$0xff] %v1010_v24 }
 0x1b9   : > { %1013 = vst [vmem:[%s10566_s28 + $0xb48] sm:$0xff] %v1012_v25 }
 0x1ba   : > { %1015 = vst [vmem:[%s10566_s28 + $0xb50] sm:$0xff] %v1014_v26 }
 0x1bb   : > { %1017 = vst [vmem:[%s10566_s28 + $0xb58] sm:$0xff] %v1016_v27 }
 0x1bc   : > { %1019 = vst [vmem:[%s10566_s28 + $0xb60] sm:$0xff] %v1018_v28 }
 0x1bd   : > { %1021 = vst [vmem:[%s10566_s28 + $0xb68] sm:$0xff] %v1020_v29 }
 0x1be   : > { %1023 = vst [vmem:[%s10566_s28 + $0xb70] sm:$0xff] %v1022_v30 }
 0x1bf   : > { %1025 = vst [vmem:[%s10566_s28 + $0xb78] sm:$0xff] %v1024_v31 }
 0x1c0   : > { %1027 = vst [vmem:[%s10566_s28 + $0xb80] sm:$0xff] %v1026_v32 }
 0x1c1   : > { %1029 = vst [vmem:[%s10566_s28 + $0xb88] sm:$0xff] %v1028_v33 }
 0x1c2   : > { %1031 = vst [vmem:[%s10566_s28 + $0xb90] sm:$0xff] %v1030_v34 }
 0x1c3   : > { %1033 = vst [vmem:[%s10566_s28 + $0xb98] sm:$0xff] %v1032_v35 }
 0x1c4   : > { %1035 = vst [vmem:[%s10566_s28 + $0xba0] sm:$0xff] %v1034_v36 }
 0x1c5   : > { %1037 = vst [vmem:[%s10566_s28 + $0xba8] sm:$0xff] %v1036_v37 }
 0x1c6   : > { %1039 = vst [vmem:[%s10566_s28 + $0xbb0] sm:$0xff] %v1038_v38 }
 0x1c7   : > { %1041 = vst [vmem:[%s10566_s28 + $0xbb8] sm:$0xff] %v1040_v39 }
 0x1c8   : > { %1043 = vst [vmem:[%s10566_s28 + $0xbc0] sm:$0xff] %v1042_v40 }
 0x1c9   : > { %1045 = vst [vmem:[%s10566_s28 + $0xbc8] sm:$0xff] %v1044_v41 }
 0x1ca   : > { %1047 = vst [vmem:[%s10566_s28 + $0xbd0] sm:$0xff] %v1046_v42 }
 0x1cb   : > { %1049 = vst [vmem:[%s10566_s28 + $0xbd8] sm:$0xff] %v1048_v43 }
 0x1cc   : > { %1051 = vst [vmem:[%s10566_s28 + $0xbe0] sm:$0xff] %v1050_v44 }
 0x1cd   : > { %1053 = vst [vmem:[%s10566_s28 + $0xbe8] sm:$0xff] %v1052_v45 }
 0x1ce   : > { %1055 = vst [vmem:[%s10566_s28 + $0xbf0] sm:$0xff] %v1054_v46 }
 0x1cf   : > { %1057 = vst [vmem:[%s10566_s28 + $0xbf8] sm:$0xff] %v1056_v47 }
 0x1d0 PF: > { %p7592_p10 = scmp.ge.s32.totalorder %s10345_s20, 1  ;;  %p1062_p11 = scmp.lt.s32.totalorder %s10345_s20, 5 }
 0x1d2   : > { %p1063_p12 = pnand %p7592_p10, %p1062_p11 }
 0x1d4   : > { %1066 = sbr.rel (%p1063_p12) target bundleno = 2741 (0xab5), region = 70 }
 0x1d9   : > { %s1069_s8 = sand.u32 1, %s10321_s14   ;;  %s1076_s9 = sand.u32 1, %s10313_s12  }
 0x1da   : > { %s10199_s10 = smul.u32 384, %s1069_s8  ;;  %p1105_p13 = scmp.lt.s32.totalorder %s10333_s17, 1 }
 0x1db   : > { %s10200_s11 = smul.u32 3072, %s1076_s9  ;;  %p7594_p0 = scmp.ne.s32.totalorder %s10329_s16, 0 }
 0x1dc   : > { %s14335_s17 = smov (!%p1105_p13, %s10333_s17), 1  ;;  %s11344_s29 = scalar_lea.vmem [#allocation2], %s10199_s10 }
 0x1dd   : > { %s10201_s23 = smul.u32 640, %s14335_s17  ;;  %s11346_s30 = scalar_lea.vmem [#allocation3], %s10200_s11 }
 0x1de   : > { %1113 = sbr.rel (%p7594_p0) target bundleno = 564 (0x234), region = 82 }
 0x1df   : > { %s11342_s27 = scalar_lea.vmem %s14015_s3, %s10201_s23 }
 0x1e3   : > { %v10347_v48 = vmov 0.0  }
 0x1e4   : > { %1114 = vst [vmem:[%s11342_s27] sm:$0xff] %v10347_v48 }
 0x1e5   : > { %1115 = vst [vmem:[%s11342_s27 + $0x8] sm:$0xff] %v10347_v48 }
 0x1e6   : > { %1116 = vst [vmem:[%s11342_s27 + $0x10] sm:$0xff] %v10347_v48 }
 0x1e7   : > { %1117 = vst [vmem:[%s11342_s27 + $0x18] sm:$0xff] %v10347_v48 }
 0x1e8   : > { %1118 = vst [vmem:[%s11342_s27 + $0x20] sm:$0xff] %v10347_v48 }
 0x1e9   : > { %1119 = vst [vmem:[%s11342_s27 + $0x28] sm:$0xff] %v10347_v48 }
 0x1ea   : > { %1120 = vst [vmem:[%s11342_s27 + $0x30] sm:$0xff] %v10347_v48 }
 0x1eb   : > { %1121 = vst [vmem:[%s11342_s27 + $0x38] sm:$0xff] %v10347_v48 }
 0x1ec   : > { %1122 = vst [vmem:[%s11342_s27 + $0x40] sm:$0xff] %v10347_v48 }
 0x1ed   : > { %1123 = vst [vmem:[%s11342_s27 + $0x48] sm:$0xff] %v10347_v48 }
 0x1ee   : > { %1124 = vst [vmem:[%s11342_s27 + $0x50] sm:$0xff] %v10347_v48 }
 0x1ef   : > { %1125 = vst [vmem:[%s11342_s27 + $0x58] sm:$0xff] %v10347_v48 }
 0x1f0   : > { %1126 = vst [vmem:[%s11342_s27 + $0x60] sm:$0xff] %v10347_v48 }
 0x1f1   : > { %1127 = vst [vmem:[%s11342_s27 + $0x68] sm:$0xff] %v10347_v48 }
 0x1f2   : > { %1128 = vst [vmem:[%s11342_s27 + $0x70] sm:$0xff] %v10347_v48 }
 0x1f3   : > { %1129 = vst [vmem:[%s11342_s27 + $0x78] sm:$0xff] %v10347_v48 }
 0x1f4   : > { %1130 = vst [vmem:[%s11342_s27 + $0x80] sm:$0xff] %v10347_v48 }
 0x1f5   : > { %1131 = vst [vmem:[%s11342_s27 + $0x88] sm:$0xff] %v10347_v48 }
 0x1f6   : > { %1132 = vst [vmem:[%s11342_s27 + $0x90] sm:$0xff] %v10347_v48 }
 0x1f7   : > { %1133 = vst [vmem:[%s11342_s27 + $0x98] sm:$0xff] %v10347_v48 }
 0x1f8   : > { %1134 = vst [vmem:[%s11342_s27 + $0xa0] sm:$0xff] %v10347_v48 }
 0x1f9   : > { %1135 = vst [vmem:[%s11342_s27 + $0xa8] sm:$0xff] %v10347_v48 }
 0x1fa   : > { %1136 = vst [vmem:[%s11342_s27 + $0xb0] sm:$0xff] %v10347_v48 }
 0x1fb   : > { %1137 = vst [vmem:[%s11342_s27 + $0xb8] sm:$0xff] %v10347_v48 }
 0x1fc   : > { %1138 = vst [vmem:[%s11342_s27 + $0xc0] sm:$0xff] %v10347_v48 }
 0x1fd   : > { %1139 = vst [vmem:[%s11342_s27 + $0xc8] sm:$0xff] %v10347_v48 }
 0x1fe   : > { %1140 = vst [vmem:[%s11342_s27 + $0xd0] sm:$0xff] %v10347_v48 }
 0x1ff   : > { %1141 = vst [vmem:[%s11342_s27 + $0xd8] sm:$0xff] %v10347_v48 }
 0x200   : > { %1142 = vst [vmem:[%s11342_s27 + $0xe0] sm:$0xff] %v10347_v48 }
 0x201   : > { %1143 = vst [vmem:[%s11342_s27 + $0xe8] sm:$0xff] %v10347_v48 }
 0x202   : > { %1144 = vst [vmem:[%s11342_s27 + $0xf0] sm:$0xff] %v10347_v48 }
 0x203   : > { %1145 = vst [vmem:[%s11342_s27 + $0xf8] sm:$0xff] %v10347_v48 }
 0x204   : > { %1146 = vst [vmem:[%s11342_s27 + $0x100] sm:$0xff] %v10347_v48 }
 0x205   : > { %1147 = vst [vmem:[%s11342_s27 + $0x108] sm:$0xff] %v10347_v48 }
 0x206   : > { %1148 = vst [vmem:[%s11342_s27 + $0x110] sm:$0xff] %v10347_v48 }
 0x207   : > { %1149 = vst [vmem:[%s11342_s27 + $0x118] sm:$0xff] %v10347_v48 }
 0x208   : > { %1150 = vst [vmem:[%s11342_s27 + $0x120] sm:$0xff] %v10347_v48 }
 0x209   : > { %1151 = vst [vmem:[%s11342_s27 + $0x128] sm:$0xff] %v10347_v48 }
 0x20a   : > { %1152 = vst [vmem:[%s11342_s27 + $0x130] sm:$0xff] %v10347_v48 }
 0x20b   : > { %1153 = vst [vmem:[%s11342_s27 + $0x138] sm:$0xff] %v10347_v48 }
 0x20c   : > { %1154 = vst [vmem:[%s11342_s27 + $0x140] sm:$0xff] %v10347_v48 }
 0x20d   : > { %1155 = vst [vmem:[%s11342_s27 + $0x148] sm:$0xff] %v10347_v48 }
 0x20e   : > { %1156 = vst [vmem:[%s11342_s27 + $0x150] sm:$0xff] %v10347_v48 }
 0x20f   : > { %1157 = vst [vmem:[%s11342_s27 + $0x158] sm:$0xff] %v10347_v48 }
 0x210   : > { %1158 = vst [vmem:[%s11342_s27 + $0x160] sm:$0xff] %v10347_v48 }
 0x211   : > { %1159 = vst [vmem:[%s11342_s27 + $0x168] sm:$0xff] %v10347_v48 }
 0x212   : > { %1160 = vst [vmem:[%s11342_s27 + $0x170] sm:$0xff] %v10347_v48 }
 0x213   : > { %1161 = vst [vmem:[%s11342_s27 + $0x178] sm:$0xff] %v10347_v48 }
 0x214   : > { %1162 = vst [vmem:[%s11342_s27 + $0x180] sm:$0xff] %v10347_v48 }
 0x215   : > { %1163 = vst [vmem:[%s11342_s27 + $0x188] sm:$0xff] %v10347_v48 }
 0x216   : > { %1164 = vst [vmem:[%s11342_s27 + $0x190] sm:$0xff] %v10347_v48 }
 0x217   : > { %1165 = vst [vmem:[%s11342_s27 + $0x198] sm:$0xff] %v10347_v48 }
 0x218   : > { %1166 = vst [vmem:[%s11342_s27 + $0x1a0] sm:$0xff] %v10347_v48 }
 0x219   : > { %1167 = vst [vmem:[%s11342_s27 + $0x1a8] sm:$0xff] %v10347_v48 }
 0x21a   : > { %1168 = vst [vmem:[%s11342_s27 + $0x1b0] sm:$0xff] %v10347_v48 }
 0x21b   : > { %1169 = vst [vmem:[%s11342_s27 + $0x1b8] sm:$0xff] %v10347_v48 }
 0x21c   : > { %1170 = vst [vmem:[%s11342_s27 + $0x1c0] sm:$0xff] %v10347_v48 }
 0x21d   : > { %1171 = vst [vmem:[%s11342_s27 + $0x1c8] sm:$0xff] %v10347_v48 }
 0x21e   : > { %1172 = vst [vmem:[%s11342_s27 + $0x1d0] sm:$0xff] %v10347_v48 }
 0x21f   : > { %1173 = vst [vmem:[%s11342_s27 + $0x1d8] sm:$0xff] %v10347_v48 }
 0x220   : > { %1174 = vst [vmem:[%s11342_s27 + $0x1e0] sm:$0xff] %v10347_v48 }
 0x221   : > { %1175 = vst [vmem:[%s11342_s27 + $0x1e8] sm:$0xff] %v10347_v48 }
 0x222   : > { %1176 = vst [vmem:[%s11342_s27 + $0x1f0] sm:$0xff] %v10347_v48 }
 0x223   : > { %1177 = vst [vmem:[%s11342_s27 + $0x1f8] sm:$0xff] %v10347_v48 }
 0x224   : > { %1178 = vst [vmem:[%s11342_s27 + $0x200] sm:$0xff] %v10347_v48 }
 0x225   : > { %1179 = vst [vmem:[%s11342_s27 + $0x208] sm:$0xff] %v10347_v48 }
 0x226   : > { %1180 = vst [vmem:[%s11342_s27 + $0x210] sm:$0xff] %v10347_v48 }
 0x227   : > { %1181 = vst [vmem:[%s11342_s27 + $0x218] sm:$0xff] %v10347_v48 }
 0x228   : > { %1182 = vst [vmem:[%s11342_s27 + $0x220] sm:$0xff] %v10347_v48 }
 0x229   : > { %1183 = vst [vmem:[%s11342_s27 + $0x228] sm:$0xff] %v10347_v48 }
 0x22a   : > { %1184 = vst [vmem:[%s11342_s27 + $0x230] sm:$0xff] %v10347_v48 }
 0x22b   : > { %1185 = vst [vmem:[%s11342_s27 + $0x238] sm:$0xff] %v10347_v48 }
 0x22c   : > { %1186 = vst [vmem:[%s11342_s27 + $0x240] sm:$0xff] %v10347_v48 }
 0x22d   : > { %1187 = vst [vmem:[%s11342_s27 + $0x248] sm:$0xff] %v10347_v48 }
 0x22e   : > { %1188 = vst [vmem:[%s11342_s27 + $0x250] sm:$0xff] %v10347_v48 }
 0x22f   : > { %1189 = vst [vmem:[%s11342_s27 + $0x258] sm:$0xff] %v10347_v48 }
 0x230   : > { %1190 = vst [vmem:[%s11342_s27 + $0x260] sm:$0xff] %v10347_v48 }
 0x231   : > { %1191 = vst [vmem:[%s11342_s27 + $0x268] sm:$0xff] %v10347_v48 }
 0x232   : > { %1192 = vst [vmem:[%s11342_s27 + $0x270] sm:$0xff] %v10347_v48 }
 0x233   : > { %1193 = vst [vmem:[%s11342_s27 + $0x278] sm:$0xff] %v10347_v48 }
 0x234 PF: > { %v7997_v49 = vld [vmem:[%s11346_s30 + $0x4e0] sm:$0xf]  ;;  %v9930_v50 = vld [vmem:[%s11346_s30 + $0x4ec] sm:$0xf0]  ;;  %p9723_p1 = scmp.ne.s32.totalorder %s10329_s16, 1 }
 0x235   : > { %v8125_v51 = vld [vmem:[%s11346_s30 + $0x5e0] sm:$0xf]  ;;  %v7998_v52 = vor.u32 %v9930_v50, %v7997_v49  ;;  %v9962_v53 = vld [vmem:[%s11346_s30 + $0x5ec] sm:$0xf0] }
 0x236   : > { %v8253_v54 = vld [vmem:[%s11346_s30 + $0x6e0] sm:$0xf]  ;;  %v9994_v55 = vld [vmem:[%s11346_s30 + $0x6ec] sm:$0xf0]  ;;  %v8126_v56 = vor.u32 %v9962_v53, %v8125_v51 }
 0x237   : > { %v8254_v57 = vor.u32 %v9994_v55, %v8253_v54  ;;  %v8381_v58 = vld [vmem:[%s11346_s30 + $0x7e0] sm:$0xf]  ;;  %v10026_v59 = vld [vmem:[%s11346_s30 + $0x7ec] sm:$0xf0]  ;;  %2335 = vmatpush.bf16.msra.mxu0 %v7998_v52 }
 0x238   : > { %v7981_v60 = vld [vmem:[%s11346_s30 + $0x4c0] sm:$0xf]  ;;  %v8382_v61 = vor.u32 %v10026_v59, %v8381_v58  ;;  %v9926_v62 = vld [vmem:[%s11346_s30 + $0x4cc] sm:$0xf0]  ;;  %2394 = vmatpush.bf16.msra.mxu1 %v8126_v56 }
 0x239   : > { %v8109_v63 = vld [vmem:[%s11346_s30 + $0x5c0] sm:$0xf]  ;;  %v9958_v0 = vld [vmem:[%s11346_s30 + $0x5cc] sm:$0xf0]  ;;  %2453 = vmatpush.bf16.msra.mxu2 %v8254_v57  ;;  %v7982_v1 = vor.u32 %v9926_v62, %v7981_v60 }
 0x23a   : > { %v8110_v2 = vor.u32 %v9958_v0, %v8109_v63  ;;  %v8237_v3 = vld [vmem:[%s11346_s30 + $0x6c0] sm:$0xf]  ;;  %v9990_v4 = vld [vmem:[%s11346_s30 + $0x6cc] sm:$0xf0]  ;;  %2512 = vmatpush.bf16.msra.mxu3 %v8382_v61 }
 0x23b   : > { %v8365_v5 = vld [vmem:[%s11346_s30 + $0x7c0] sm:$0xf]  ;;  %v8238_v6 = vor.u32 %v9990_v4, %v8237_v3  ;;  %v10022_v7 = vld [vmem:[%s11346_s30 + $0x7cc] sm:$0xf0]  ;;  %2336 = vmatpush.bf16.msra.mxu0 %v7982_v1 }
 0x23c   : > { %v7965_v8 = vld [vmem:[%s11346_s30 + $0x4a0] sm:$0xf]  ;;  %v9922_v9 = vld [vmem:[%s11346_s30 + $0x4ac] sm:$0xf0]  ;;  %v8366_v10 = vor.u32 %v10022_v7, %v8365_v5  ;;  %2395 = vmatpush.bf16.msra.mxu1 %v8110_v2 }
 0x23d   : > { %v8093_v11 = vld [vmem:[%s11346_s30 + $0x5a0] sm:$0xf]  ;;  %v9954_v12 = vld [vmem:[%s11346_s30 + $0x5ac] sm:$0xf0]  ;;  %v7966_v14 = vor.u32 %v9922_v9, %v7965_v8  ;;  %2454 = vmatpush.bf16.msra.mxu2 %v8238_v6 }
 0x23e   : > { %v8221_v13 = vld [vmem:[%s11346_s30 + $0x6a0] sm:$0xf]  ;;  %v9986_v15 = vld [vmem:[%s11346_s30 + $0x6ac] sm:$0xf0]  ;;  %v8094_v18 = vor.u32 %v9954_v12, %v8093_v11  ;;  %2513 = vmatpush.bf16.msra.mxu3 %v8366_v10 }
 0x23f   : > { %v8349_v16 = vld [vmem:[%s11346_s30 + $0x7a0] sm:$0xf]  ;;  %v10018_v17 = vld [vmem:[%s11346_s30 + $0x7ac] sm:$0xf0]  ;;  %v8222_v19 = vor.u32 %v9986_v15, %v8221_v13  ;;  %2337 = vmatpush.bf16.msra.mxu0 %v7966_v14  ;;  %v9732_v15 = vld [vmem:[%s11344_s29 + $0x24] sm:$0xf] }
 0x240   : > { %v7949_v20 = vld [vmem:[%s11346_s30 + $0x480] sm:$0xf]  ;;  %v9918_v21 = vld [vmem:[%s11346_s30 + $0x48c] sm:$0xf0]  ;;  %v8350_v23 = vor.u32 %v10018_v17, %v8349_v16  ;;  %2396 = vmatpush.bf16.msra.mxu1 %v8094_v18  ;;  %v7727_v16 = vld [vmem:[%s11344_s29 + $0x30] sm:$0xf0] }
 0x241   : > { %v8077_v22 = vld [vmem:[%s11346_s30 + $0x580] sm:$0xf]  ;;  %v9950_v24 = vld [vmem:[%s11346_s30 + $0x58c] sm:$0xf0]  ;;  %v7950_v29 = vor.u32 %v9918_v21, %v7949_v20  ;;  %2455 = vmatpush.bf16.msra.mxu2 %v8222_v19  ;;  %v9992_v17 = vld [vmem:[%s11346_s30 + $0x6e4] sm:$0xf] }
 0x242   : > { %v8205_v25 = vld [vmem:[%s11346_s30 + $0x680] sm:$0xf]  ;;  %v9982_v26 = vld [vmem:[%s11346_s30 + $0x68c] sm:$0xf0]  ;;  %v8078_v30 = vor.u32 %v9950_v24, %v8077_v22  ;;  %2514 = vmatpush.bf16.msra.mxu3 %v8350_v23  ;;  %v8255_v18 = vld [vmem:[%s11346_s30 + $0x6f0] sm:$0xf0] }
 0x243   : > { %v8333_v27 = vld [vmem:[%s11346_s30 + $0x780] sm:$0xf]  ;;  %v10014_v28 = vld [vmem:[%s11346_s30 + $0x78c] sm:$0xf0]  ;;  %v8206_v31 = vor.u32 %v9982_v26, %v8205_v25  ;;  %2338 = vmatpush.bf16.msra.mxu0 %v7950_v29  ;;  %v7733_v20 = vld [vmem:[%s11344_s29 + $0x28] sm:$0xf]  ;;  %v8258_v29 = vor.u32 %v9992_v17, %v8255_v18 }
 0x244   : > { %v7933_v32 = vld [vmem:[%s11346_s30 + $0x460] sm:$0xf]  ;;  %v9914_v33 = vld [vmem:[%s11346_s30 + $0x46c] sm:$0xf0]  ;;  %v8334_v35 = vor.u32 %v10014_v28, %v8333_v27  ;;  %2397 = vmatpush.bf16.msra.mxu1 %v8078_v30  ;;  %v10024_v21 = vld [vmem:[%s11346_s30 + $0x7e4] sm:$0xf] }
 0x245   : > { %v8061_v34 = vld [vmem:[%s11346_s30 + $0x560] sm:$0xf]  ;;  %v9946_v36 = vld [vmem:[%s11346_s30 + $0x56c] sm:$0xf0]  ;;  %v7934_v41 = vor.u32 %v9914_v33, %v7933_v32  ;;  %2456 = vmatpush.bf16.msra.mxu2 %v8206_v31  ;;  %v8383_v22 = vld [vmem:[%s11346_s30 + $0x7f0] sm:$0xf0] }
 0x246   : > { %v8189_v37 = vld [vmem:[%s11346_s30 + $0x660] sm:$0xf]  ;;  %v9978_v38 = vld [vmem:[%s11346_s30 + $0x66c] sm:$0xf0]  ;;  %v8062_v42 = vor.u32 %v9946_v36, %v8061_v34  ;;  %2515 = vmatpush.bf16.msra.mxu3 %v8334_v35  ;;  %v9735_v25 = vld [vmem:[%s11344_s29 + $0x34] sm:$0xf0]  ;;  %v8386_v34 = vor.u32 %v10024_v21, %v8383_v22 }
 0x247   : > { %v8317_v39 = vld [vmem:[%s11346_s30 + $0x760] sm:$0xf]  ;;  %v10010_v40 = vld [vmem:[%s11346_s30 + $0x76c] sm:$0xf0]  ;;  %v8190_v43 = vor.u32 %v9978_v38, %v8189_v37  ;;  %2339 = vmatpush.bf16.msra.mxu0 %v7934_v41  ;;  %v9733_v26 = vld [vmem:[%s11344_s29 + $0x2c] sm:$0xf]  ;;  %v11593_v38 = vor.u32 %v9732_v15, %v7727_v16 }
 0x248   : > { %v7917_v44 = vld [vmem:[%s11346_s30 + $0x440] sm:$0xf]  ;;  %v9910_v45 = vld [vmem:[%s11346_s30 + $0x44c] sm:$0xf0]  ;;  %v8318_v47 = vor.u32 %v10010_v40, %v8317_v39  ;;  %2398 = vmatpush.bf16.msra.mxu1 %v8062_v42  ;;  %v7735_v27 = vld [vmem:[%s11344_s29 + $0x38] sm:$0xf0]  ;;  %v11595_v39 = vor.u32 %v9735_v25, %v7733_v20 }
 0x249   : > { %v8045_v46 = vld [vmem:[%s11346_s30 + $0x540] sm:$0xf]  ;;  %v9942_v48 = vld [vmem:[%s11346_s30 + $0x54c] sm:$0xf0]  ;;  %v7918_v53 = vor.u32 %v9910_v45, %v7917_v44  ;;  %2457 = vmatpush.bf16.msra.mxu2 %v8190_v43  ;;  %v9928_v30 = vld [vmem:[%s11346_s30 + $0x4e4] sm:$0xf]  ;;  %v11599_v42 = vor.u32 %v9733_v26, %v7735_v27 }
 0x24a   : > { %v8173_v49 = vld [vmem:[%s11346_s30 + $0x640] sm:$0xf]  ;;  %v9974_v50 = vld [vmem:[%s11346_s30 + $0x64c] sm:$0xf0]  ;;  %v8046_v54 = vor.u32 %v9942_v48, %v8045_v46  ;;  %2516 = vmatpush.bf16.msra.mxu3 %v8318_v47  ;;  %v7999_v31 = vld [vmem:[%s11346_s30 + $0x4f0] sm:$0xf0] }
 0x24b   : > { %v8301_v51 = vld [vmem:[%s11346_s30 + $0x740] sm:$0xf]  ;;  %v10006_v52 = vld [vmem:[%s11346_s30 + $0x74c] sm:$0xf0]  ;;  %v8174_v55 = vor.u32 %v9974_v50, %v8173_v49  ;;  %2340 = vmatpush.bf16.msra.mxu0 %v7918_v53  ;;  %v9960_v32 = vld [vmem:[%s11346_s30 + $0x5e4] sm:$0xf]  ;;  %v8002_v43 = vor.u32 %v9928_v30, %v7999_v31 }
 0x24c   : > { %v7901_v56 = vld [vmem:[%s11346_s30 + $0x420] sm:$0xf]  ;;  %v9906_v57 = vld [vmem:[%s11346_s30 + $0x42c] sm:$0xf0]  ;;  %v8302_v59 = vor.u32 %v10006_v52, %v8301_v51  ;;  %2399 = vmatpush.bf16.msra.mxu1 %v8046_v54  ;;  %v8127_v35 = vld [vmem:[%s11346_s30 + $0x5f0] sm:$0xf0] }
 0x24d   : > { %v8029_v58 = vld [vmem:[%s11346_s30 + $0x520] sm:$0xf]  ;;  %v9938_v60 = vld [vmem:[%s11346_s30 + $0x52c] sm:$0xf0]  ;;  %v7902_v2 = vor.u32 %v9906_v57, %v7901_v56  ;;  %2458 = vmatpush.bf16.msra.mxu2 %v8174_v55  ;;  %v9988_v36 = vld [vmem:[%s11346_s30 + $0x6c4] sm:$0xf]  ;;  %v8130_v44 = vor.u32 %v9960_v32, %v8127_v35 }
 0x24e   : > { %v8157_v61 = vld [vmem:[%s11346_s30 + $0x620] sm:$0xf]  ;;  %v9970_v62 = vld [vmem:[%s11346_s30 + $0x62c] sm:$0xf0]  ;;  %v8030_v6 = vor.u32 %v9938_v60, %v8029_v58  ;;  %2517 = vmatpush.bf16.msra.mxu3 %v8302_v59  ;;  %v8239_v37 = vld [vmem:[%s11346_s30 + $0x6d0] sm:$0xf0] }
 0x24f   : > { %v8285_v63 = vld [vmem:[%s11346_s30 + $0x720] sm:$0xf]  ;;  %v10002_v0 = vld [vmem:[%s11346_s30 + $0x72c] sm:$0xf0]  ;;  %v8158_v7 = vor.u32 %v9970_v62, %v8157_v61  ;;  %2341 = vmatpush.bf16.msra.mxu0 %v7902_v2  ;;  %v10020_v40 = vld [vmem:[%s11346_s30 + $0x7c4] sm:$0xf]  ;;  %v8242_v45 = vor.u32 %v9988_v36, %v8239_v37 }
 0x250   : > { %v7885_v1 = vld [vmem:[%s11346_s30 + $0x400] sm:$0xf]  ;;  %v9902_v3 = vld [vmem:[%s11346_s30 + $0x40c] sm:$0xf0]  ;;  %v8286_v11 = vor.u32 %v10002_v0, %v8285_v63  ;;  %2400 = vmatpush.bf16.msra.mxu1 %v8030_v6  ;;  %v8367_v41 = vld [vmem:[%s11346_s30 + $0x7d0] sm:$0xf0] }
 0x251   : > { %v8013_v4 = vld [vmem:[%s11346_s30 + $0x500] sm:$0xf]  ;;  %v9934_v5 = vld [vmem:[%s11346_s30 + $0x50c] sm:$0xf0]  ;;  %v7886_v19 = vor.u32 %v9902_v3, %v7885_v1  ;;  %2459 = vmatpush.bf16.msra.mxu2 %v8158_v7  ;;  %v9924_v46 = vld [vmem:[%s11346_s30 + $0x4c4] sm:$0xf]  ;;  %v8370_v48 = vor.u32 %v10020_v40, %v8367_v41 }
 0x252   : > { %v8141_v8 = vld [vmem:[%s11346_s30 + $0x600] sm:$0xf]  ;;  %v9966_v9 = vld [vmem:[%s11346_s30 + $0x60c] sm:$0xf0]  ;;  %v8014_v23 = vor.u32 %v9934_v5, %v8013_v4  ;;  %2518 = vmatpush.bf16.msra.mxu3 %v8286_v11  ;;  %v7983_v47 = vld [vmem:[%s11346_s30 + $0x4d0] sm:$0xf0] }
 0x253   : > { %v8269_v10 = vld [vmem:[%s11346_s30 + $0x700] sm:$0xf]  ;;  %v9998_v12 = vld [vmem:[%s11346_s30 + $0x70c] sm:$0xf0]  ;;  %v8142_v24 = vor.u32 %v9966_v9, %v8141_v8  ;;  %2342 = vmatpush.bf16.msra.mxu0 %v7886_v19  ;;  %v9956_v49 = vld [vmem:[%s11346_s30 + $0x5c4] sm:$0xf]  ;;  %v7986_v51 = vor.u32 %v9924_v46, %v7983_v47 }
 0x254   : > { %v7725_v13 = vld [vmem:[%s11344_s29 + $0x20] sm:$0xf]  ;;  %v9734_v14 = vld [vmem:[%s11344_s29 + $0x2c] sm:$0xf0]  ;;  %v8270_v28 = vor.u32 %v9998_v12, %v8269_v10  ;;  %2401 = vmatpush.bf16.msra.mxu1 %v8014_v23  ;;  %v8111_v50 = vld [vmem:[%s11346_s30 + $0x5d0] sm:$0xf0] }
 0x255   : > { %v11588_v33 = vor.u32 %v9734_v14, %v7725_v13  ;;  %2460 = vmatpush.bf16.msra.mxu2 %v8142_v24  ;;  %v9984_v52 = vld [vmem:[%s11346_s30 + $0x6a4] sm:$0xf]  ;;  %v8223_v53 = vld [vmem:[%s11346_s30 + $0x6b0] sm:$0xf0]  ;;  %v8114_v55 = vor.u32 %v9956_v49, %v8111_v50  ;;  %v7741_v1 = vld [vmem:[%s11344_s29 + $0x40] sm:$0xf] }
 0x256   : > { %2519 = vmatpush.bf16.msra.mxu3 %v8270_v28  ;;  %v10016_v54 = vld [vmem:[%s11346_s30 + $0x7a4] sm:$0xf]  ;;  %v8226_v56 = vor.u32 %v9984_v52, %v8223_v53  ;;  %v8351_v57 = vld [vmem:[%s11346_s30 + $0x7b0] sm:$0xf0]  ;;  %v9738_v2 = vld [vmem:[%s11344_s29 + $0x4c] sm:$0xf0] }
 0x257   : > { %2343 = vmatmul.bf16.vlgmr.msra.gmra.mxu0 %v11588_v33  ;;  %2402 = vmatmul.bf16.vlgmr.msra.gmra.mxu1 %v11593_v38  ;;  %v9920_v58 = vld [vmem:[%s11346_s30 + $0x4a4] sm:$0xf]  ;;  %v7967_v59 = vld [vmem:[%s11346_s30 + $0x4b0] sm:$0xf0]  ;;  %v8354_v60 = vor.u32 %v10016_v54, %v8351_v57  ;;  %v7749_v5 = vld [vmem:[%s11344_s29 + $0x48] sm:$0xf]  ;;  %v11625_v9 = vor.u32 %v9738_v2, %v7741_v1 }
 0x258   : > { %2461 = vmatmul.bf16.vlgmr.msra.gmra.mxu2 %v11595_v39  ;;  %2571 = vmatpush.bf16.msrb.mxu0 %v8002_v43  ;;  %v9952_v61 = vld [vmem:[%s11346_s30 + $0x5a4] sm:$0xf]  ;;  %v8095_v62 = vld [vmem:[%s11346_s30 + $0x5b0] sm:$0xf0]  ;;  %v7970_v63 = vor.u32 %v9920_v58, %v7967_v59  ;;  %v9739_v6 = vld [vmem:[%s11344_s29 + $0x54] sm:$0xf0] }
 0x259   : > { %2689 = vmatpush.bf16.msrb.mxu2 %v8258_v29  ;;  %2520 = vmatmul.bf16.vlgmr.msra.gmra.mxu3 %v11599_v42  ;;  %v8098_v0 = vor.u32 %v9952_v61, %v8095_v62  ;;  %v9736_v3 = vld [vmem:[%s11344_s29 + $0x44] sm:$0xf]  ;;  %v7743_v4 = vld [vmem:[%s11344_s29 + $0x50] sm:$0xf0]  ;;  %v9737_v7 = vld [vmem:[%s11344_s29 + $0x4c] sm:$0xf]  ;;  %v11629_v11 = vor.u32 %v9739_v6, %v7749_v5 }
 0x25a   : > { %2748 = vmatpush.bf16.msrb.mxu3 %v8386_v34  ;;  %2630 = vmatpush.bf16.msrb.mxu1 %v8130_v44  ;;  %v7751_v8 = vld [vmem:[%s11344_s29 + $0x58] sm:$0xf0]  ;;  %v11627_v10 = vor.u32 %v9736_v3, %v7743_v4  ;;  %v9980_v13 = vld [vmem:[%s11346_s30 + $0x684] sm:$0xf]  ;;  %v8207_v14 = vld [vmem:[%s11346_s30 + $0x690] sm:$0xf0] }
 0x25b   : > { %v11631_v12 = vor.u32 %v9737_v7, %v7751_v8  ;;  %v10012_v15 = vld [vmem:[%s11346_s30 + $0x784] sm:$0xf]  ;;  %v8210_v16 = vor.u32 %v9980_v13, %v8207_v14  ;;  %v8335_v17 = vld [vmem:[%s11346_s30 + $0x790] sm:$0xf0]  ;;  %v7757_v19 = vld [vmem:[%s11344_s29 + $0x60] sm:$0xf] }
 0x25c   : > { %2572 = vmatpush.bf16.msrb.mxu0 %v7986_v51  ;;  %v8338_v18 = vor.u32 %v10012_v15, %v8335_v17  ;;  %v9742_v20 = vld [vmem:[%s11344_s29 + $0x6c] sm:$0xf0]  ;;  %v9740_v21 = vld [vmem:[%s11344_s29 + $0x64] sm:$0xf]  ;;  %v7759_v22 = vld [vmem:[%s11344_s29 + $0x70] sm:$0xf0] }
 0x25d   : > { %2690 = vmatpush.bf16.msrb.mxu2 %v8242_v45  ;;  %v7765_v23 = vld [vmem:[%s11344_s29 + $0x68] sm:$0xf]  ;;  %v9743_v24 = vld [vmem:[%s11344_s29 + $0x74] sm:$0xf0]  ;;  %v9741_v25 = vld [vmem:[%s11344_s29 + $0x6c] sm:$0xf]  ;;  %v11649_v27 = vor.u32 %v9742_v20, %v7757_v19  ;;  %v11651_v28 = vor.u32 %v9740_v21, %v7759_v22 }
 0x25e   : > { %2749 = vmatpush.bf16.msrb.mxu3 %v8370_v48  ;;  %2631 = vmatpush.bf16.msrb.mxu1 %v8114_v55  ;;  %v7767_v26 = vld [vmem:[%s11344_s29 + $0x78] sm:$0xf0]  ;;  %v11653_v29 = vor.u32 %v9743_v24, %v7765_v23  ;;  %v9916_v31 = vld [vmem:[%s11346_s30 + $0x484] sm:$0xf]  ;;  %v7951_v32 = vld [vmem:[%s11346_s30 + $0x490] sm:$0xf0] }
 0x25f   : > { %v11655_v30 = vor.u32 %v9741_v25, %v7767_v26  ;;  %v9948_v34 = vld [vmem:[%s11346_s30 + $0x584] sm:$0xf]  ;;  %v7954_v35 = vor.u32 %v9916_v31, %v7951_v32  ;;  %v8079_v36 = vld [vmem:[%s11346_s30 + $0x590] sm:$0xf0]  ;;  %v7773_v40 = vld [vmem:[%s11344_s29 + $0x80] sm:$0xf] }
 0x260   : > { %2573 = vmatpush.bf16.msrb.mxu0 %v7970_v63  ;;  %v8082_v37 = vor.u32 %v9948_v34, %v8079_v36  ;;  %v9746_v41 = vld [vmem:[%s11344_s29 + $0x8c] sm:$0xf0]  ;;  %v9744_v43 = vld [vmem:[%s11344_s29 + $0x84] sm:$0xf]  ;;  %v7775_v44 = vld [vmem:[%s11344_s29 + $0x90] sm:$0xf0] }
 0x261   : > { %2691 = vmatpush.bf16.msrb.mxu2 %v8226_v56  ;;  %v7781_v45 = vld [vmem:[%s11344_s29 + $0x88] sm:$0xf]  ;;  %v9747_v46 = vld [vmem:[%s11344_s29 + $0x94] sm:$0xf0]  ;;  %v9745_v47 = vld [vmem:[%s11344_s29 + $0x8c] sm:$0xf]  ;;  %v11673_v49 = vor.u32 %v9746_v41, %v7773_v40  ;;  %v11675_v50 = vor.u32 %v9744_v43, %v7775_v44 }
 0x262   : > { %2750 = vmatpush.bf16.msrb.mxu3 %v8354_v60  ;;  %2632 = vmatpush.bf16.msrb.mxu1 %v8098_v0  ;;  %v7783_v48 = vld [vmem:[%s11344_s29 + $0x98] sm:$0xf0]  ;;  %v11677_v51 = vor.u32 %v9747_v46, %v7781_v45  ;;  %v9976_v53 = vld [vmem:[%s11346_s30 + $0x664] sm:$0xf]  ;;  %v8191_v54 = vld [vmem:[%s11346_s30 + $0x670] sm:$0xf0] }
 0x263   : > { %v11679_v52 = vor.u32 %v9745_v47, %v7783_v48  ;;  %v10008_v55 = vld [vmem:[%s11346_s30 + $0x764] sm:$0xf]  ;;  %v8194_v56 = vor.u32 %v9976_v53, %v8191_v54  ;;  %v8319_v57 = vld [vmem:[%s11346_s30 + $0x770] sm:$0xf0]  ;;  %v7789_v1 = vld [vmem:[%s11344_s29 + $0xa0] sm:$0xf] }
 0x264   : > { %2574 = vmatpush.bf16.msrb.mxu0 %v7954_v35  ;;  %v9912_v58 = vld [vmem:[%s11346_s30 + $0x464] sm:$0xf]  ;;  %v7935_v59 = vld [vmem:[%s11346_s30 + $0x470] sm:$0xf0]  ;;  %v8322_v60 = vor.u32 %v10008_v55, %v8319_v57  ;;  %v9750_v2 = vld [vmem:[%s11344_s29 + $0xac] sm:$0xf0] }
 0x265   : > { %2692 = vmatpush.bf16.msrb.mxu2 %v8210_v16  ;;  %v7938_v61 = vor.u32 %v9912_v58, %v7935_v59  ;;  %v9944_v62 = vld [vmem:[%s11346_s30 + $0x564] sm:$0xf]  ;;  %v8063_v63 = vld [vmem:[%s11346_s30 + $0x570] sm:$0xf0]  ;;  %v7797_v5 = vld [vmem:[%s11344_s29 + $0xa8] sm:$0xf]  ;;  %v11701_v13 = vor.u32 %v9750_v2, %v7789_v1 }
 0x266   : > { %2751 = vmatpush.bf16.msrb.mxu3 %v8338_v18  ;;  %2633 = vmatpush.bf16.msrb.mxu1 %v8082_v37  ;;  %v8066_v0 = vor.u32 %v9944_v62, %v8063_v63  ;;  %v9748_v3 = vld [vmem:[%s11344_s29 + $0xa4] sm:$0xf]  ;;  %v7791_v4 = vld [vmem:[%s11344_s29 + $0xb0] sm:$0xf0]  ;;  %v9751_v6 = vld [vmem:[%s11344_s29 + $0xb4] sm:$0xf0] }
 0x267   : > { %2348 = vmatmul.bf16.gmra.mxu0 %v11625_v9  ;;  %2407 = vmatmul.bf16.gmra.mxu1 %v11627_v10  ;;  %v9749_v7 = vld [vmem:[%s11344_s29 + $0xac] sm:$0xf]  ;;  %v7799_v8 = vld [vmem:[%s11344_s29 + $0xb8] sm:$0xf0]  ;;  %v11703_v14 = vor.u32 %v9748_v3, %v7791_v4  ;;  %v11705_v15 = vor.u32 %v9751_v6, %v7797_v5  ;;  %v9972_v17 = vld [vmem:[%s11346_s30 + $0x644] sm:$0xf] }
 0x268   : > { %2466 = vmatmul.bf16.gmra.mxu2 %v11629_v11  ;;  %2575 = vmatpush.bf16.msrb.mxu0 %v7938_v61  ;;  %v11707_v16 = vor.u32 %v9749_v7, %v7799_v8  ;;  %v8175_v18 = vld [vmem:[%s11346_s30 + $0x650] sm:$0xf0]  ;;  %v10004_v19 = vld [vmem:[%s11346_s30 + $0x744] sm:$0xf]  ;;  %v7805_v34 = vld [vmem:[%s11344_s29 + $0xc0] sm:$0xf] }
 0x269   : > { %2525 = vmatmul.bf16.gmra.mxu3 %v11631_v12  ;;  %2693 = vmatpush.bf16.msrb.mxu2 %v8194_v56  ;;  %v8178_v20 = vor.u32 %v9972_v17, %v8175_v18  ;;  %v8303_v21 = vld [vmem:[%s11346_s30 + $0x750] sm:$0xf0]  ;;  %v9908_v22 = vld [vmem:[%s11346_s30 + $0x444] sm:$0xf]  ;;  %v9754_v35 = vld [vmem:[%s11344_s29 + $0xcc] sm:$0xf0] }
 0x26a   : > { %2752 = vmatpush.bf16.msrb.mxu3 %v8322_v60  ;;  %2634 = vmatpush.bf16.msrb.mxu1 %v8066_v0  ;;  %v7919_v23 = vld [vmem:[%s11346_s30 + $0x450] sm:$0xf0]  ;;  %v8306_v24 = vor.u32 %v10004_v19, %v8303_v21  ;;  %v9940_v26 = vld [vmem:[%s11346_s30 + $0x544] sm:$0xf]  ;;  %v7813_v40 = vld [vmem:[%s11344_s29 + $0xc8] sm:$0xf]  ;;  %v11729_v45 = vor.u32 %v9754_v35, %v7805_v34 }
 0x26b   : > { %v7922_v25 = vor.u32 %v9908_v22, %v7919_v23  ;;  %v8047_v31 = vld [vmem:[%s11346_s30 + $0x550] sm:$0xf0]  ;;  %v9752_v36 = vld [vmem:[%s11344_s29 + $0xc4] sm:$0xf]  ;;  %v9755_v41 = vld [vmem:[%s11344_s29 + $0xd4] sm:$0xf0] }
 0x26c   : > { %v8050_v32 = vor.u32 %v9940_v26, %v8047_v31  ;;  %v7807_v37 = vld [vmem:[%s11344_s29 + $0xd0] sm:$0xf0]  ;;  %v9753_v43 = vld [vmem:[%s11344_s29 + $0xcc] sm:$0xf]  ;;  %v7815_v44 = vld [vmem:[%s11344_s29 + $0xd8] sm:$0xf0]  ;;  %v11733_v47 = vor.u32 %v9755_v41, %v7813_v40 }
 0x26d   : > { %2694 = vmatpush.bf16.msrb.mxu2 %v8178_v20  ;;  %2576 = vmatpush.bf16.msrb.mxu0 %v7922_v25  ;;  %v11731_v46 = vor.u32 %v9752_v36, %v7807_v37  ;;  %v11735_v48 = vor.u32 %v9753_v43, %v7815_v44  ;;  %v9968_v53 = vld [vmem:[%s11346_s30 + $0x624] sm:$0xf]  ;;  %v8159_v54 = vld [vmem:[%s11346_s30 + $0x630] sm:$0xf0]  ;;  %v7821_v1 = vld [vmem:[%s11344_s29 + $0xe0] sm:$0xf] }
 0x26e   : > { %2753 = vmatpush.bf16.msrb.mxu3 %v8306_v24  ;;  %2635 = vmatpush.bf16.msrb.mxu1 %v8050_v32  ;;  %v10000_v55 = vld [vmem:[%s11346_s30 + $0x724] sm:$0xf]  ;;  %v8162_v56 = vor.u32 %v9968_v53, %v8159_v54  ;;  %v8287_v57 = vld [vmem:[%s11346_s30 + $0x730] sm:$0xf0]  ;;  %v9758_v2 = vld [vmem:[%s11344_s29 + $0xec] sm:$0xf0] }
 0x26f   : > { %v9904_v58 = vld [vmem:[%s11346_s30 + $0x424] sm:$0xf]  ;;  %v7903_v59 = vld [vmem:[%s11346_s30 + $0x430] sm:$0xf0]  ;;  %v8290_v60 = vor.u32 %v10000_v55, %v8287_v57  ;;  %v7829_v5 = vld [vmem:[%s11344_s29 + $0xe8] sm:$0xf]  ;;  %v11757_v17 = vor.u32 %v9758_v2, %v7821_v1 }
 0x270   : > { %v7906_v61 = vor.u32 %v9904_v58, %v7903_v59  ;;  %v9936_v62 = vld [vmem:[%s11346_s30 + $0x524] sm:$0xf]  ;;  %v8031_v63 = vld [vmem:[%s11346_s30 + $0x530] sm:$0xf0]  ;;  %v9759_v6 = vld [vmem:[%s11344_s29 + $0xf4] sm:$0xf0] }
 0x271   : > { %2695 = vmatpush.bf16.msrb.mxu2 %v8162_v56  ;;  %v8034_v0 = vor.u32 %v9936_v62, %v8031_v63  ;;  %v9756_v3 = vld [vmem:[%s11344_s29 + $0xe4] sm:$0xf]  ;;  %v7823_v4 = vld [vmem:[%s11344_s29 + $0xf0] sm:$0xf0]  ;;  %v9757_v7 = vld [vmem:[%s11344_s29 + $0xec] sm:$0xf]  ;;  %v11761_v19 = vor.u32 %v9759_v6, %v7829_v5 }
 0x272   : > { %2754 = vmatpush.bf16.msrb.mxu3 %v8290_v60  ;;  %2577 = vmatpush.bf16.msrb.mxu0 %v7906_v61  ;;  %v7831_v8 = vld [vmem:[%s11344_s29 + $0xf8] sm:$0xf0]  ;;  %v11759_v18 = vor.u32 %v9756_v3, %v7823_v4  ;;  %v7837_v21 = vld [vmem:[%s11344_s29 + $0x100] sm:$0xf]  ;;  %v9762_v22 = vld [vmem:[%s11344_s29 + $0x10c] sm:$0xf0] }
 0x273   : > { %2636 = vmatpush.bf16.msrb.mxu1 %v8034_v0  ;;  %v11763_v20 = vor.u32 %v9757_v7, %v7831_v8  ;;  %v9760_v23 = vld [vmem:[%s11344_s29 + $0x104] sm:$0xf]  ;;  %v7839_v24 = vld [vmem:[%s11344_s29 + $0x110] sm:$0xf0]  ;;  %v7845_v25 = vld [vmem:[%s11344_s29 + $0x108] sm:$0xf]  ;;  %v11777_v34 = vor.u32 %v9762_v22, %v7837_v21 }
 0x274   : > { %v9763_v26 = vld [vmem:[%s11344_s29 + $0x114] sm:$0xf0]  ;;  %v9761_v31 = vld [vmem:[%s11344_s29 + $0x10c] sm:$0xf]  ;;  %v7847_v32 = vld [vmem:[%s11344_s29 + $0x118] sm:$0xf0]  ;;  %v11779_v35 = vor.u32 %v9760_v23, %v7839_v24 }
 0x275   : > { %v11781_v36 = vor.u32 %v9763_v26, %v7845_v25  ;;  %v11783_v37 = vor.u32 %v9761_v31, %v7847_v32  ;;  %v9964_v40 = vld [vmem:[%s11346_s30 + $0x604] sm:$0xf]  ;;  %v8143_v41 = vld [vmem:[%s11346_s30 + $0x610] sm:$0xf0]  ;;  %v7853_v61 = vld [vmem:[%s11344_s29 + $0x120] sm:$0xf] }
 0x276   : > { %v9996_v43 = vld [vmem:[%s11346_s30 + $0x704] sm:$0xf]  ;;  %v8146_v44 = vor.u32 %v9964_v40, %v8143_v41  ;;  %v8271_v53 = vld [vmem:[%s11346_s30 + $0x710] sm:$0xf0]  ;;  %v9766_v62 = vld [vmem:[%s11344_s29 + $0x12c] sm:$0xf0] }
 0x277   : > { %2353 = vmatmul.bf16.gmra.mxu0 %v11649_v27  ;;  %2412 = vmatmul.bf16.gmra.mxu1 %v11651_v28  ;;  %v8274_v54 = vor.u32 %v9996_v43, %v8271_v53  ;;  %v9900_v55 = vld [vmem:[%s11346_s30 + $0x404] sm:$0xf]  ;;  %v7887_v56 = vld [vmem:[%s11346_s30 + $0x410] sm:$0xf0]  ;;  %v7861_v1 = vld [vmem:[%s11344_s29 + $0x128] sm:$0xf]  ;;  %v11805_v5 = vor.u32 %v9766_v62, %v7853_v61 }
 0x278   : > { %2471 = vmatmul.bf16.gmra.mxu2 %v11653_v29  ;;  %v9932_v57 = vld [vmem:[%s11346_s30 + $0x504] sm:$0xf]  ;;  %v7890_v58 = vor.u32 %v9900_v55, %v7887_v56  ;;  %v8015_v59 = vld [vmem:[%s11346_s30 + $0x510] sm:$0xf0]  ;;  %v9767_v2 = vld [vmem:[%s11344_s29 + $0x134] sm:$0xf0] }
 0x279   : > { %2530 = vmatmul.bf16.gmra.mxu3 %v11655_v30  ;;  %2696 = vmatpush.bf16.msrb.mxu2 %v8146_v44  ;;  %v8018_v60 = vor.u32 %v9932_v57, %v8015_v59  ;;  %v9764_v63 = vld [vmem:[%s11344_s29 + $0x124] sm:$0xf]  ;;  %v7855_v0 = vld [vmem:[%s11344_s29 + $0x130] sm:$0xf0]  ;;  %v9765_v3 = vld [vmem:[%s11344_s29 + $0x12c] sm:$0xf]  ;;  %v11809_v8 = vor.u32 %v9767_v2, %v7861_v1 }
 0x27a   : > { %2755 = vmatpush.bf16.msrb.mxu3 %v8274_v54  ;;  %2578 = vmatpush.bf16.msrb.mxu0 %v7890_v58  ;;  %v7863_v4 = vld [vmem:[%s11344_s29 + $0x138] sm:$0xf0]  ;;  %v11807_v7 = vor.u32 %v9764_v63, %v7855_v0  ;;  %v8261_v24 = vld [vmem:[%s11346_s30 + $0x6e8] sm:$0xf]  ;;  %v9995_v25 = vld [vmem:[%s11346_s30 + $0x6f4] sm:$0xf0] }
 0x27b   : > { %2637 = vmatpush.bf16.msrb.mxu1 %v8018_v60  ;;  %v11811_v22 = vor.u32 %v9765_v3, %v7863_v4  ;;  %v8389_v26 = vld [vmem:[%s11346_s30 + $0x7e8] sm:$0xf]  ;;  %v8262_v31 = vor.u32 %v9995_v25, %v8261_v24  ;;  %v10027_v32 = vld [vmem:[%s11346_s30 + $0x7f4] sm:$0xf0]  ;;  %v7869_v62 = vld [vmem:[%s11344_s29 + $0x140] sm:$0xf] }
 0x27c   : > { %v8390_v41 = vor.u32 %v10027_v32, %v8389_v26  ;;  %v8005_v57 = vld [vmem:[%s11346_s30 + $0x4e8] sm:$0xf]  ;;  %v9931_v58 = vld [vmem:[%s11346_s30 + $0x4f4] sm:$0xf0]  ;;  %v9898_v63 = vld [vmem:[%s11344_s29 + $0x14c] sm:$0xf0] }
 0x27d   : > { %2925 = vmatpush.bf16.msra.mxu2 %v8262_v31  ;;  %v8133_v59 = vld [vmem:[%s11346_s30 + $0x5e8] sm:$0xf]  ;;  %v8006_v60 = vor.u32 %v9931_v58, %v8005_v57  ;;  %v9963_v61 = vld [vmem:[%s11346_s30 + $0x5f4] sm:$0xf0]  ;;  %v9896_v0 = vld [vmem:[%s11344_s29 + $0x144] sm:$0xf]  ;;  %v11835_v24 = vor.u32 %v9898_v63, %v7869_v62 }
 0x27e   : > { %2984 = vmatpush.bf16.msra.mxu3 %v8390_v41  ;;  %v8134_v1 = vor.u32 %v9963_v61, %v8133_v59  ;;  %v7871_v2 = vld [vmem:[%s11344_s29 + $0x150] sm:$0xf0]  ;;  %v7877_v3 = vld [vmem:[%s11344_s29 + $0x148] sm:$0xf]  ;;  %v9899_v4 = vld [vmem:[%s11344_s29 + $0x154] sm:$0xf0] }
 0x27f   : > { %2807 = vmatpush.bf16.msra.mxu0 %v8006_v60  ;;  %v11837_v32 = vor.u32 %v9896_v0, %v7871_v2  ;;  %v8245_v62 = vld [vmem:[%s11346_s30 + $0x6c8] sm:$0xf]  ;;  %v9991_v63 = vld [vmem:[%s11346_s30 + $0x6d4] sm:$0xf0] }
 0x280   : > { %2866 = vmatpush.bf16.msra.mxu1 %v8134_v1  ;;  %v8373_v0 = vld [vmem:[%s11346_s30 + $0x7c8] sm:$0xf]  ;;  %v8246_v1 = vor.u32 %v9991_v63, %v8245_v62  ;;  %v10023_v2 = vld [vmem:[%s11346_s30 + $0x7d4] sm:$0xf0] }
 0x282   : > { %2926 = vmatpush.bf16.msra.mxu2 %v8246_v1 }
 0x287   : > { %2358 = vmatmul.bf16.gmra.mxu0 %v11673_v49  ;;  %2417 = vmatmul.bf16.gmra.mxu1 %v11675_v50 }
 0x288   : > { %2476 = vmatmul.bf16.gmra.mxu2 %v11677_v51 }
 0x289   : > { %2535 = vmatmul.bf16.gmra.mxu3 %v11679_v52 }
 0x297   : > { %2363 = vmatmul.bf16.gmra.mxu0 %v11701_v13  ;;  %2422 = vmatmul.bf16.gmra.mxu1 %v11703_v14 }
 0x298   : > { %2481 = vmatmul.bf16.gmra.mxu2 %v11705_v15 }
 0x299   : > { %2540 = vmatmul.bf16.gmra.mxu3 %v11707_v16 }
 0x2a7   : > { %2368 = vmatmul.bf16.gmra.mxu0 %v11729_v45  ;;  %2427 = vmatmul.bf16.gmra.mxu1 %v11731_v46 }
 0x2a8   : > { %2486 = vmatmul.bf16.gmra.mxu2 %v11733_v47 }
 0x2a9   : > { %2545 = vmatmul.bf16.gmra.mxu3 %v11735_v48 }
 0x2b7   : > { %2373 = vmatmul.bf16.gmra.mxu0 %v11757_v17  ;;  %2432 = vmatmul.bf16.gmra.mxu1 %v11759_v18 }
 0x2b8   : > { %2491 = vmatmul.bf16.gmra.mxu2 %v11761_v19 }
 0x2b9   : > { %2550 = vmatmul.bf16.gmra.mxu3 %v11763_v20 }
 0x2c7   : > { %2378 = vmatmul.bf16.gmra.mxu0 %v11777_v34  ;;  %2437 = vmatmul.bf16.gmra.mxu1 %v11779_v35 }
 0x2c8   : > { %2496 = vmatmul.bf16.gmra.mxu2 %v11781_v36 }
 0x2c9   : > { %2555 = vmatmul.bf16.gmra.mxu3 %v11783_v37 }
 0x2d4   : > { %v2344_v6 = vpop.f32.mrf.mxu0  ;;  %v2403_v21 = vpop.f32.mrf.mxu1 }
 0x2d5   : > { %v2404_v23 = vadd.f32 %v2403_v21, %v2344_v6  ;;  %v9897_v6 = vld [vmem:[%s11344_s29 + $0x14c] sm:$0xf]  ;;  %v7879_v21 = vld [vmem:[%s11344_s29 + $0x158] sm:$0xf0] }
 0x2d7   : > { %2383 = vmatmul.bf16.gmra.mxu0 %v11805_v5  ;;  %2442 = vmatmul.bf16.gmra.mxu1 %v11807_v7 }
 0x2d8   : > { %2501 = vmatmul.bf16.gmra.mxu2 %v11809_v8 }
 0x2d9   : > { %2560 = vmatmul.bf16.gmra.mxu3 %v11811_v22 }
 0x2db   : > { %v2462_v40 = vpop.f32.mrf.mxu2 }
 0x2dc   : > { %v2463_v43 = vadd.f32 %v2462_v40, %v2404_v23  ;;  %v2521_v44 = vpop.f32.mrf.mxu3  ;;  %v2346_v53 = vpop.f32.mrf.mxu0  ;;  %v11839_v40 = vor.u32 %v9899_v4, %v7877_v3  ;;  %v7989_v3 = vld [vmem:[%s11346_s30 + $0x4c8] sm:$0xf]  ;;  %v9927_v4 = vld [vmem:[%s11346_s30 + $0x4d4] sm:$0xf0] }
 0x2dd   : > { %v2405_v54 = vpop.f32.mrf.mxu1 }
 0x2de   : > { %v11821_v55 = vadd.f32 %v2521_v44, %v2463_v43  ;;  %v2406_v56 = vadd.f32 %v2405_v54, %v2346_v53  ;;  %v11841_v43 = vor.u32 %v9897_v6, %v7879_v21  ;;  %v8374_v6 = vor.u32 %v10023_v2, %v8373_v0 }
 0x2df   : > { %v7990_v21 = vor.u32 %v9927_v4, %v7989_v3  ;;  %v8229_v3 = vld [vmem:[%s11346_s30 + $0x6a8] sm:$0xf]  ;;  %v9987_v4 = vld [vmem:[%s11346_s30 + $0x6b4] sm:$0xf0] }
 0x2e0   : > { %2985 = vmatpush.bf16.msra.mxu3 %v8374_v6  ;;  %v8357_v6 = vld [vmem:[%s11346_s30 + $0x7a8] sm:$0xf] }
 0x2e1   : > { %2808 = vmatpush.bf16.msra.mxu0 %v7990_v21  ;;  %v8230_v21 = vor.u32 %v9987_v4, %v8229_v3 }
 0x2e3   : > { %v2464_v23 = vpop.f32.mrf.mxu2  ;;  %2927 = vmatpush.bf16.msra.mxu2 %v8230_v21 }
 0x2e4   : > { %v2465_v25 = vadd.f32 %v2464_v23, %v2406_v56  ;;  %v2523_v26 = vpop.f32.mrf.mxu3  ;;  %v2349_v31 = vpop.f32.mrf.mxu0  ;;  %v8117_v23 = vld [vmem:[%s11346_s30 + $0x5c8] sm:$0xf] }
 0x2e5   : > { %v2408_v41 = vpop.f32.mrf.mxu1 }
 0x2e6   : > { %v11843_v44 = vadd.f32 %v2523_v26, %v2465_v25  ;;  %v2409_v53 = vadd.f32 %v2408_v41, %v2349_v31  ;;  %v9959_v25 = vld [vmem:[%s11346_s30 + $0x5d4] sm:$0xf0] }
 0x2e7   : > { %2388 = vmatmul.bf16.gmra.mxu0 %v11835_v24  ;;  %2447 = vmatmul.bf16.gmra.mxu1 %v11837_v32  ;;  %v8118_v26 = vor.u32 %v9959_v25, %v8117_v23  ;;  %v10019_v23 = vld [vmem:[%s11346_s30 + $0x7b4] sm:$0xf0] }
 0x2e8   : > { %2506 = vmatmul.bf16.gmra.mxu2 %v11839_v40  ;;  %v8358_v25 = vor.u32 %v10019_v23, %v8357_v6 }
 0x2e9   : > { %2565 = vmatmul.bf16.gmra.mxu3 %v11841_v43  ;;  %2867 = vmatpush.bf16.msra.mxu1 %v8118_v26 }
 0x2ea   : > { %2986 = vmatpush.bf16.msra.mxu3 %v8358_v25 }
 0x2eb   : > { %v2467_v54 = vpop.f32.mrf.mxu2 }
 0x2ec   : > { %v2468_v56 = vadd.f32 %v2467_v54, %v2409_v53  ;;  %v2526_v57 = vpop.f32.mrf.mxu3  ;;  %v2351_v58 = vpop.f32.mrf.mxu0 }
 0x2ed   : > { %v2410_v59 = vpop.f32.mrf.mxu1 }
 0x2ee   : > { %v11849_v60 = vadd.f32 %v2526_v57, %v2468_v56  ;;  %v2411_v61 = vadd.f32 %v2410_v59, %v2351_v58 }
 0x2f3   : > { %v2469_v31 = vpop.f32.mrf.mxu2 }
 0x2f4   : > { %v2470_v41 = vadd.f32 %v2469_v31, %v2411_v61  ;;  %v2528_v53 = vpop.f32.mrf.mxu3  ;;  %v2354_v54 = vpop.f32.mrf.mxu0 }
 0x2f5   : > { %v2413_v56 = vpop.f32.mrf.mxu1 }
 0x2f6   : > { %v11859_v57 = vadd.f32 %v2528_v53, %v2470_v41  ;;  %v2414_v58 = vadd.f32 %v2413_v56, %v2354_v54 }
 0x2f7   : > { %2579 = vmatmul.bf16.vlgmr.msrb.gmra.mxu0 %v11588_v33  ;;  %2638 = vmatmul.bf16.vlgmr.msrb.gmra.mxu1 %v11593_v38 }
 0x2f8   : > { %2697 = vmatmul.bf16.vlgmr.msrb.gmra.mxu2 %v11595_v39 }
 0x2f9   : > { %2756 = vmatmul.bf16.vlgmr.msrb.gmra.mxu3 %v11599_v42 }
 0x2fb   : > { %v2472_v59 = vpop.f32.mrf.mxu2 }
 0x2fc   : > { %v2473_v61 = vadd.f32 %v2472_v59, %v2414_v58  ;;  %v2531_v62 = vpop.f32.mrf.mxu3  ;;  %v2356_v63 = vpop.f32.mrf.mxu0  ;;  %v7973_v59 = vld [vmem:[%s11346_s30 + $0x4a8] sm:$0xf] }
 0x2fd   : > { %v2415_v0 = vpop.f32.mrf.mxu1 }
 0x2fe   : > { %v11865_v1 = vadd.f32 %v2531_v62, %v2473_v61  ;;  %v2416_v2 = vadd.f32 %v2415_v0, %v2356_v63  ;;  %v9923_v61 = vld [vmem:[%s11346_s30 + $0x4b4] sm:$0xf0]  ;;  %v8101_v62 = vld [vmem:[%s11346_s30 + $0x5a8] sm:$0xf] }
 0x2ff   : > { %v7974_v63 = vor.u32 %v9923_v61, %v7973_v59  ;;  %v9955_v0 = vld [vmem:[%s11346_s30 + $0x5b4] sm:$0xf0] }
 0x300   : > { %14018 = vst [vmem:[#allocation4_spill] sm:$0xff] %v11865_v1  ;;  %v8102_v3 = vor.u32 %v9955_v0, %v8101_v62  ;;  %v8341_v0 = vld [vmem:[%s11346_s30 + $0x788] sm:$0xf] }
 0x301   : > { %2809 = vmatpush.bf16.msra.mxu0 %v7974_v63  ;;  %v8213_v63 = vld [vmem:[%s11346_s30 + $0x688] sm:$0xf] }
 0x302   : > { %2868 = vmatpush.bf16.msra.mxu1 %v8102_v3 }
 0x303   : > { %v2474_v26 = vpop.f32.mrf.mxu2 }
 0x304   : > { %v2475_v31 = vadd.f32 %v2474_v26, %v2416_v2  ;;  %v2533_v41 = vpop.f32.mrf.mxu3  ;;  %v2359_v53 = vpop.f32.mrf.mxu0 }
 0x305   : > { %v2418_v54 = vpop.f32.mrf.mxu1 }
 0x306   : > { %v11871_v56 = vadd.f32 %v2533_v41, %v2475_v31  ;;  %v2419_v58 = vadd.f32 %v2418_v54, %v2359_v53 }
 0x307   : > { %2584 = vmatmul.bf16.gmra.mxu0 %v11625_v9  ;;  %2643 = vmatmul.bf16.gmra.mxu1 %v11627_v10 }
 0x308   : > { %14019 = vst [vmem:[#allocation5_spill] sm:$0xff] %v11871_v56  ;;  %2702 = vmatmul.bf16.gmra.mxu2 %v11629_v11  ;;  %v9947_v56 = vld [vmem:[%s11346_s30 + $0x574] sm:$0xf0] }
 0x309   : > { %2761 = vmatmul.bf16.gmra.mxu3 %v11631_v12 }
 0x30b   : > { %v2477_v2 = vpop.f32.mrf.mxu2 }
 0x30c   : > { %v2478_v4 = vadd.f32 %v2477_v2, %v2419_v58  ;;  %v2536_v6 = vpop.f32.mrf.mxu3  ;;  %v2361_v21 = vpop.f32.mrf.mxu0  ;;  %v9983_v58 = vld [vmem:[%s11346_s30 + $0x694] sm:$0xf0] }
 0x30d   : > { %v2420_v23 = vpop.f32.mrf.mxu1  ;;  %v8214_v3 = vor.u32 %v9983_v58, %v8213_v63  ;;  %v10015_v2 = vld [vmem:[%s11346_s30 + $0x794] sm:$0xf0] }
 0x30e   : > { %v11881_v25 = vadd.f32 %v2536_v6, %v2478_v4  ;;  %v2421_v26 = vadd.f32 %v2420_v23, %v2361_v21  ;;  %v8342_v4 = vor.u32 %v10015_v2, %v8341_v0  ;;  %v7957_v6 = vld [vmem:[%s11346_s30 + $0x488] sm:$0xf]  ;;  %v9919_v21 = vld [vmem:[%s11346_s30 + $0x494] sm:$0xf0] }
 0x30f   : > { %2928 = vmatpush.bf16.msra.mxu2 %v8214_v3  ;;  %v8085_v23 = vld [vmem:[%s11346_s30 + $0x588] sm:$0xf] }
 0x310   : > { %14020 = vst [vmem:[#allocation6_spill] sm:$0xff] %v11881_v25  ;;  %2987 = vmatpush.bf16.msra.mxu3 %v8342_v4 }
 0x313   : > { %v2479_v31 = vpop.f32.mrf.mxu2 }
 0x314   : > { %v2480_v41 = vadd.f32 %v2479_v31, %v2421_v26  ;;  %v2538_v53 = vpop.f32.mrf.mxu3  ;;  %v2364_v54 = vpop.f32.mrf.mxu0  ;;  %v7958_v26 = vor.u32 %v9919_v21, %v7957_v6  ;;  %v9951_v31 = vld [vmem:[%s11346_s30 + $0x594] sm:$0xf0] }
 0x315   : > { %v2423_v59 = vpop.f32.mrf.mxu1 }
 0x316   : > { %v11883_v61 = vadd.f32 %v2538_v53, %v2480_v41  ;;  %v2424_v62 = vadd.f32 %v2423_v59, %v2364_v54  ;;  %v8086_v53 = vor.u32 %v9951_v31, %v8085_v23  ;;  %2810 = vmatpush.bf16.msra.mxu0 %v7958_v26  ;;  %v8197_v23 = vld [vmem:[%s11346_s30 + $0x668] sm:$0xf]  ;;  %v9979_v26 = vld [vmem:[%s11346_s30 + $0x674] sm:$0xf0] }
 0x317   : > { %2589 = vmatmul.bf16.gmra.mxu0 %v11649_v27  ;;  %2648 = vmatmul.bf16.gmra.mxu1 %v11651_v28  ;;  %v8325_v31 = vld [vmem:[%s11346_s30 + $0x768] sm:$0xf] }
 0x318   : > { %14021 = vst [vmem:[#allocation7_spill] sm:$0xff] %v11883_v61  ;;  %2707 = vmatmul.bf16.gmra.mxu2 %v11653_v29  ;;  %2869 = vmatpush.bf16.msra.mxu1 %v8086_v53  ;;  %v10011_v53 = vld [vmem:[%s11346_s30 + $0x774] sm:$0xf0] }
 0x319   : > { %2766 = vmatmul.bf16.gmra.mxu3 %v11655_v30 }
 0x31b   : > { %v2482_v41 = vpop.f32.mrf.mxu2 }
 0x31c   : > { %v2483_v54 = vadd.f32 %v2482_v41, %v2424_v62  ;;  %v2541_v59 = vpop.f32.mrf.mxu3  ;;  %v2366_v63 = vpop.f32.mrf.mxu0  ;;  %v8198_v41 = vor.u32 %v9979_v26, %v8197_v23 }
 0x31d   : > { %v2425_v58 = vpop.f32.mrf.mxu1 }
 0x31e   : > { %v11897_v0 = vadd.f32 %v2541_v59, %v2483_v54  ;;  %v2426_v3 = vadd.f32 %v2425_v58, %v2366_v63  ;;  %v8326_v54 = vor.u32 %v10011_v53, %v8325_v31  ;;  %2929 = vmatpush.bf16.msra.mxu2 %v8198_v41 }
 0x320   : > { %14022 = vst [vmem:[#allocation8_spill] sm:$0xff] %v11897_v0  ;;  %2988 = vmatpush.bf16.msra.mxu3 %v8326_v54 }
 0x323   : > { %v2484_v2 = vpop.f32.mrf.mxu2 }
 0x324   : > { %v2485_v61 = vadd.f32 %v2484_v2, %v2426_v3  ;;  %v2543_v4 = vpop.f32.mrf.mxu3  ;;  %v2369_v6 = vpop.f32.mrf.mxu0 }
 0x325   : > { %v2428_v21 = vpop.f32.mrf.mxu1 }
 0x326   : > { %v11899_v25 = vadd.f32 %v2543_v4, %v2485_v61  ;;  %v2429_v62 = vadd.f32 %v2428_v21, %v2369_v6  ;;  %v7941_v6 = vld [vmem:[%s11346_s30 + $0x468] sm:$0xf]  ;;  %v9915_v21 = vld [vmem:[%s11346_s30 + $0x474] sm:$0xf0] }
 0x327   : > { %2594 = vmatmul.bf16.gmra.mxu0 %v11673_v49  ;;  %2653 = vmatmul.bf16.gmra.mxu1 %v11675_v50  ;;  %v7942_v0 = vor.u32 %v9915_v21, %v7941_v6  ;;  %v10007_v21 = vld [vmem:[%s11346_s30 + $0x754] sm:$0xf0] }
 0x328   : > { %14023 = vst [vmem:[#allocation9_spill] sm:$0xff] %v11899_v25  ;;  %2712 = vmatmul.bf16.gmra.mxu2 %v11677_v51  ;;  %v8069_v25 = vld [vmem:[%s11346_s30 + $0x568] sm:$0xf] }
 0x329   : > { %2771 = vmatmul.bf16.gmra.mxu3 %v11679_v52  ;;  %v8070_v1 = vor.u32 %v9947_v56, %v8069_v25  ;;  %2811 = vmatpush.bf16.msra.mxu0 %v7942_v0 }
 0x32b   : > { %v2487_v61 = vpop.f32.mrf.mxu2  ;;  %2870 = vmatpush.bf16.msra.mxu1 %v8070_v1 }
 0x32c   : > { %v2488_v59 = vadd.f32 %v2487_v61, %v2429_v62  ;;  %v2546_v63 = vpop.f32.mrf.mxu3  ;;  %v2371_v58 = vpop.f32.mrf.mxu0 }
 0x32d   : > { %v2430_v3 = vpop.f32.mrf.mxu1 }
 0x32e   : > { %v11909_v2 = vadd.f32 %v2546_v63, %v2488_v59  ;;  %v2431_v4 = vadd.f32 %v2430_v3, %v2371_v58  ;;  %v8181_v58 = vld [vmem:[%s11346_s30 + $0x648] sm:$0xf]  ;;  %v9975_v3 = vld [vmem:[%s11346_s30 + $0x654] sm:$0xf0] }
 0x32f   : > { %v8182_v6 = vor.u32 %v9975_v3, %v8181_v58 }
 0x330   : > { %14024 = vst [vmem:[#allocation10_spill] sm:$0xff] %v11909_v2 }
 0x331   : > { %2930 = vmatpush.bf16.msra.mxu2 %v8182_v6 }
 0x333   : > { %v2489_v23 = vpop.f32.mrf.mxu2 }
 0x334   : > { %v2490_v26 = vadd.f32 %v2489_v23, %v2431_v4  ;;  %v2548_v31 = vpop.f32.mrf.mxu3  ;;  %v2374_v62 = vpop.f32.mrf.mxu0  ;;  %v8309_v4 = vld [vmem:[%s11346_s30 + $0x748] sm:$0xf] }
 0x335   : > { %v2433_v41 = vpop.f32.mrf.mxu1  ;;  %v7925_v23 = vld [vmem:[%s11346_s30 + $0x448] sm:$0xf] }
 0x336   : > { %v11915_v53 = vadd.f32 %v2548_v31, %v2490_v26  ;;  %v2434_v61 = vadd.f32 %v2433_v41, %v2374_v62  ;;  %v9911_v26 = vld [vmem:[%s11346_s30 + $0x454] sm:$0xf0]  ;;  %v8310_v31 = vor.u32 %v10007_v21, %v8309_v4  ;;  %v8053_v41 = vld [vmem:[%s11346_s30 + $0x548] sm:$0xf] }
 0x337   : > { %2599 = vmatmul.bf16.gmra.mxu0 %v11701_v13  ;;  %2658 = vmatmul.bf16.gmra.mxu1 %v11703_v14  ;;  %v7926_v62 = vor.u32 %v9911_v26, %v7925_v23 }
 0x338   : > { %14025 = vst [vmem:[#allocation11_spill] sm:$0xff] %v11915_v53  ;;  %2717 = vmatmul.bf16.gmra.mxu2 %v11705_v15  ;;  %v9943_v53 = vld [vmem:[%s11346_s30 + $0x554] sm:$0xf0]  ;;  %2989 = vmatpush.bf16.msra.mxu3 %v8310_v31  ;;  %v8165_v31 = vld [vmem:[%s11346_s30 + $0x628] sm:$0xf] }
 0x339   : > { %2776 = vmatmul.bf16.gmra.mxu3 %v11707_v16  ;;  %2812 = vmatpush.bf16.msra.mxu0 %v7926_v62  ;;  %v9971_v62 = vld [vmem:[%s11346_s30 + $0x634] sm:$0xf0] }
 0x33b   : > { %v2492_v1 = vpop.f32.mrf.mxu2 }
 0x33c   : > { %v2493_v56 = vadd.f32 %v2492_v1, %v2434_v61  ;;  %v2551_v25 = vpop.f32.mrf.mxu3  ;;  %v2376_v0 = vpop.f32.mrf.mxu0  ;;  %v8054_v61 = vor.u32 %v9943_v53, %v8053_v41  ;;  %v8293_v41 = vld [vmem:[%s11346_s30 + $0x728] sm:$0xf] }
 0x33d   : > { %v2435_v54 = vpop.f32.mrf.mxu1 }
 0x33e   : > { %v11921_v59 = vadd.f32 %v2551_v25, %v2493_v56  ;;  %v2436_v63 = vadd.f32 %v2435_v54, %v2376_v0  ;;  %2871 = vmatpush.bf16.msra.mxu1 %v8054_v61  ;;  %v8166_v61 = vor.u32 %v9971_v62, %v8165_v31  ;;  %v9939_v31 = vld [vmem:[%s11346_s30 + $0x534] sm:$0xf0] }
 0x340   : > { %14026 = vst [vmem:[#allocation12_spill] sm:$0xff] %v11921_v59  ;;  %2931 = vmatpush.bf16.msra.mxu2 %v8166_v61  ;;  %v8135_v59 = vld [vmem:[%s11346_s30 + $0x5f8] sm:$0xf0] }
 0x343   : > { %v2494_v1 = vpop.f32.mrf.mxu2 }
 0x344   : > { %v2495_v56 = vadd.f32 %v2494_v1, %v2436_v63  ;;  %v2553_v25 = vpop.f32.mrf.mxu3  ;;  %v2379_v0 = vpop.f32.mrf.mxu0  ;;  %v10003_v1 = vld [vmem:[%s11346_s30 + $0x734] sm:$0xf0] }
 0x345   : > { %v2438_v54 = vpop.f32.mrf.mxu1 }
 0x346   : > { %v11931_v58 = vadd.f32 %v2553_v25, %v2495_v56  ;;  %v2439_v3 = vadd.f32 %v2438_v54, %v2379_v0  ;;  %v8294_v56 = vor.u32 %v10003_v1, %v8293_v41 }
 0x347   : > { %2604 = vmatmul.bf16.gmra.mxu0 %v11729_v45  ;;  %2663 = vmatmul.bf16.gmra.mxu1 %v11731_v46 }
 0x348   : > { %14027 = vst [vmem:[#allocation13_spill] sm:$0xff] %v11931_v58  ;;  %2722 = vmatmul.bf16.gmra.mxu2 %v11733_v47  ;;  %2990 = vmatpush.bf16.msra.mxu3 %v8294_v56 }
 0x349   : > { %2781 = vmatmul.bf16.gmra.mxu3 %v11735_v48 }
 0x34b   : > { %v2497_v53 = vpop.f32.mrf.mxu2 }
 0x34c   : > { %v2498_v63 = vadd.f32 %v2497_v53, %v2439_v3  ;;  %v2556_v4 = vpop.f32.mrf.mxu3  ;;  %v2381_v6 = vpop.f32.mrf.mxu0 }
 0x34d   : > { %v2440_v21 = vpop.f32.mrf.mxu1 }
 0x34e   : > { %v11937_v23 = vadd.f32 %v2556_v4, %v2498_v63  ;;  %v2441_v26 = vadd.f32 %v2440_v21, %v2381_v6  ;;  %v7909_v6 = vld [vmem:[%s11346_s30 + $0x428] sm:$0xf]  ;;  %v9907_v21 = vld [vmem:[%s11346_s30 + $0x434] sm:$0xf0] }
 0x34f   : > { %v7910_v58 = vor.u32 %v9907_v21, %v7909_v6 }
 0x350   : > { %14028 = vst [vmem:[#allocation14_spill] sm:$0xff] %v11937_v23  ;;  %v8037_v23 = vld [vmem:[%s11346_s30 + $0x528] sm:$0xf] }
 0x351   : > { %v8038_v62 = vor.u32 %v9939_v31, %v8037_v23  ;;  %2813 = vmatpush.bf16.msra.mxu0 %v7910_v58  ;;  %v8149_v31 = vld [vmem:[%s11346_s30 + $0x608] sm:$0xf] }
 0x353   : > { %v2499_v25 = vpop.f32.mrf.mxu2  ;;  %2872 = vmatpush.bf16.msra.mxu1 %v8038_v62  ;;  %v8277_v62 = vld [vmem:[%s11346_s30 + $0x708] sm:$0xf] }
 0x354   : > { %v2500_v0 = vadd.f32 %v2499_v25, %v2441_v26  ;;  %v2558_v54 = vpop.f32.mrf.mxu3  ;;  %v2384_v3 = vpop.f32.mrf.mxu0 }
 0x355   : > { %v2443_v53 = vpop.f32.mrf.mxu1 }
 0x356   : > { %v11943_v63 = vadd.f32 %v2558_v54, %v2500_v0  ;;  %v2444_v4 = vadd.f32 %v2443_v53, %v2384_v3 }
 0x357   : > { %2609 = vmatmul.bf16.gmra.mxu0 %v11757_v17  ;;  %2668 = vmatmul.bf16.gmra.mxu1 %v11759_v18 }
 0x358   : > { %14029 = vst [vmem:[#allocation15_spill] sm:$0xff] %v11943_v63  ;;  %2727 = vmatmul.bf16.gmra.mxu2 %v11761_v19 }
 0x359   : > { %2786 = vmatmul.bf16.gmra.mxu3 %v11763_v20 }
 0x35b   : > { %v2502_v26 = vpop.f32.mrf.mxu2 }
 0x35c   : > { %v2503_v41 = vadd.f32 %v2502_v26, %v2444_v4  ;;  %v2561_v61 = vpop.f32.mrf.mxu3  ;;  %v2386_v1 = vpop.f32.mrf.mxu0  ;;  %v9967_v4 = vld [vmem:[%s11346_s30 + $0x614] sm:$0xf0] }
 0x35d   : > { %v2445_v56 = vpop.f32.mrf.mxu1  ;;  %v8150_v26 = vor.u32 %v9967_v4, %v8149_v31 }
 0x35e   : > { %v11953_v25 = vadd.f32 %v2561_v61, %v2503_v41  ;;  %v2446_v0 = vadd.f32 %v2445_v56, %v2386_v1  ;;  %v9999_v41 = vld [vmem:[%s11346_s30 + $0x714] sm:$0xf0]  ;;  %v7893_v1 = vld [vmem:[%s11346_s30 + $0x408] sm:$0xf] }
 0x35f   : > { %v8278_v61 = vor.u32 %v9999_v41, %v8277_v62  ;;  %2932 = vmatpush.bf16.msra.mxu2 %v8150_v26  ;;  %v9903_v56 = vld [vmem:[%s11346_s30 + $0x414] sm:$0xf0] }
 0x360   : > { %14030 = vst [vmem:[#allocation16_spill] sm:$0xff] %v11953_v25 }
 0x361   : > { %2991 = vmatpush.bf16.msra.mxu3 %v8278_v61 }
 0x363   : > { %v2504_v54 = vpop.f32.mrf.mxu2 }
 0x364   : > { %v2505_v3 = vadd.f32 %v2504_v54, %v2446_v0  ;;  %v2563_v53 = vpop.f32.mrf.mxu3  ;;  %v2389_v23 = vpop.f32.mrf.mxu0  ;;  %v8021_v0 = vld [vmem:[%s11346_s30 + $0x508] sm:$0xf]  ;;  %v7894_v54 = vor.u32 %v9903_v56, %v7893_v1 }
 0x365   : > { %v2448_v58 = vpop.f32.mrf.mxu1 }
 0x366   : > { %v11955_v6 = vadd.f32 %v2563_v53, %v2505_v3  ;;  %v2449_v21 = vadd.f32 %v2448_v58, %v2389_v23  ;;  %v9935_v3 = vld [vmem:[%s11346_s30 + $0x514] sm:$0xf0]  ;;  %2814 = vmatpush.bf16.msra.mxu0 %v7894_v54  ;;  %v10025_v54 = vld [vmem:[%s11346_s30 + $0x7ec] sm:$0xf] }
 0x367   : > { %2614 = vmatmul.bf16.gmra.mxu0 %v11777_v34  ;;  %2673 = vmatmul.bf16.gmra.mxu1 %v11779_v35  ;;  %v8022_v23 = vor.u32 %v9935_v3, %v8021_v0  ;;  %v8263_v0 = vld [vmem:[%s11346_s30 + $0x6f8] sm:$0xf0] }
 0x368   : > { %14031 = vst [vmem:[#allocation17_spill] sm:$0xff] %v11955_v6  ;;  %2732 = vmatmul.bf16.gmra.mxu2 %v11781_v36 }
 0x369   : > { %2791 = vmatmul.bf16.gmra.mxu3 %v11783_v37  ;;  %2873 = vmatpush.bf16.msra.mxu1 %v8022_v23 }
 0x36b   : > { %v2507_v53 = vpop.f32.mrf.mxu2 }
 0x36c   : > { %v2508_v58 = vadd.f32 %v2507_v53, %v2449_v21  ;;  %v2566_v6 = vpop.f32.mrf.mxu3  ;;  %v2391_v31 = vpop.f32.mrf.mxu0  ;;  %v8391_v53 = vld [vmem:[%s11346_s30 + $0x7f8] sm:$0xf0] }
 0x36d   : > { %v2450_v4 = vpop.f32.mrf.mxu1  ;;  %v8394_v23 = vor.u32 %v10025_v54, %v8391_v53 }
 0x36e   : > { %v11969_v62 = vadd.f32 %v2566_v6, %v2508_v58  ;;  %v2451_v26 = vadd.f32 %v2450_v4, %v2391_v31  ;;  %v9993_v6 = vld [vmem:[%s11346_s30 + $0x6ec] sm:$0xf] }
 0x36f   : > { %v8266_v3 = vor.u32 %v9993_v6, %v8263_v0  ;;  %3220 = vmatpush.bf16.msrb.mxu3 %v8394_v23 }
 0x370   : > { %14032 = vst [vmem:[#allocation18_spill] sm:$0xff] %v11969_v62 }
 0x371   : > { %3161 = vmatpush.bf16.msrb.mxu2 %v8266_v3 }
 0x373   : > { %v2509_v41 = vpop.f32.mrf.mxu2 }
 0x374   : > { %v2510_v25 = vadd.f32 %v2509_v41, %v2451_v26  ;;  %v2568_v61 = vpop.f32.mrf.mxu3  ;;  %v2580_v1 = vpop.f32.mrf.mxu0 }
 0x375   : > { %v2639_v56 = vpop.f32.mrf.mxu1 }
 0x376   : > { %v11971_v63 = vadd.f32 %v2568_v61, %v2510_v25  ;;  %v2640_v21 = vadd.f32 %v2639_v56, %v2580_v1  ;;  %v9929_v1 = vld [vmem:[%s11346_s30 + $0x4ec] sm:$0xf]  ;;  %v8007_v56 = vld [vmem:[%s11346_s30 + $0x4f8] sm:$0xf0] }
 0x377   : > { %2619 = vmatmul.bf16.gmra.mxu0 %v11805_v5  ;;  %2678 = vmatmul.bf16.gmra.mxu1 %v11807_v7  ;;  %v8010_v62 = vor.u32 %v9929_v1, %v8007_v56  ;;  %v8375_v56 = vld [vmem:[%s11346_s30 + $0x7d8] sm:$0xf0] }
 0x378   : > { %14033 = vst [vmem:[#allocation19_spill] sm:$0xff] %v11971_v63  ;;  %2737 = vmatmul.bf16.gmra.mxu2 %v11809_v8  ;;  %v9961_v63 = vld [vmem:[%s11346_s30 + $0x5ec] sm:$0xf] }
 0x379   : > { %2796 = vmatmul.bf16.gmra.mxu3 %v11811_v22  ;;  %v8138_v2 = vor.u32 %v9961_v63, %v8135_v59  ;;  %3043 = vmatpush.bf16.msrb.mxu0 %v8010_v62 }
 0x37b   : > { %v2698_v25 = vpop.f32.mrf.mxu2  ;;  %3102 = vmatpush.bf16.msrb.mxu1 %v8138_v2 }
 0x37c   : > { %v2699_v58 = vadd.f32 %v2698_v25, %v2640_v21  ;;  %v2757_v31 = vpop.f32.mrf.mxu3  ;;  %v2582_v4 = vpop.f32.mrf.mxu0 }
 0x37d   : > { %v2641_v26 = vpop.f32.mrf.mxu1 }
 0x37e   : > { %v11981_v41 = vadd.f32 %v2757_v31, %v2699_v58  ;;  %v2642_v61 = vadd.f32 %v2641_v26, %v2582_v4  ;;  %v9989_v4 = vld [vmem:[%s11346_s30 + $0x6cc] sm:$0xf]  ;;  %v8247_v26 = vld [vmem:[%s11346_s30 + $0x6d8] sm:$0xf0] }
 0x37f   : > { %v8250_v1 = vor.u32 %v9989_v4, %v8247_v26 }
 0x380   : > { %14034 = vst [vmem:[#allocation20_spill] sm:$0xff] %v11981_v41 }
 0x381   : > { %3162 = vmatpush.bf16.msrb.mxu2 %v8250_v1 }
 0x383   : > { %v2700_v6 = vpop.f32.mrf.mxu2 }
 0x384   : > { %v2701_v0 = vadd.f32 %v2700_v6, %v2642_v61  ;;  %v2759_v54 = vpop.f32.mrf.mxu3  ;;  %v2585_v21 = vpop.f32.mrf.mxu0  ;;  %v10021_v61 = vld [vmem:[%s11346_s30 + $0x7cc] sm:$0xf] }
 0x385   : > { %v2644_v3 = vpop.f32.mrf.mxu1  ;;  %v9925_v6 = vld [vmem:[%s11346_s30 + $0x4cc] sm:$0xf] }
 0x386   : > { %v11987_v53 = vadd.f32 %v2759_v54, %v2701_v0  ;;  %v2645_v25 = vadd.f32 %v2644_v3, %v2585_v21  ;;  %v7991_v0 = vld [vmem:[%s11346_s30 + $0x4d8] sm:$0xf0]  ;;  %v8378_v54 = vor.u32 %v10021_v61, %v8375_v56  ;;  %v9957_v3 = vld [vmem:[%s11346_s30 + $0x5cc] sm:$0xf] }
 0x387   : > { %2624 = vmatmul.bf16.gmra.mxu0 %v11835_v24  ;;  %2683 = vmatmul.bf16.gmra.mxu1 %v11837_v32  ;;  %v7994_v21 = vor.u32 %v9925_v6, %v7991_v0 }
 0x388   : > { %14035 = vst [vmem:[#allocation21_spill] sm:$0xff] %v11987_v53  ;;  %2742 = vmatmul.bf16.gmra.mxu2 %v11839_v40  ;;  %v8119_v53 = vld [vmem:[%s11346_s30 + $0x5d8] sm:$0xf0]  ;;  %3221 = vmatpush.bf16.msrb.mxu3 %v8378_v54  ;;  %v9985_v54 = vld [vmem:[%s11346_s30 + $0x6ac] sm:$0xf] }
 0x389   : > { %2801 = vmatmul.bf16.gmra.mxu3 %v11841_v43  ;;  %3044 = vmatpush.bf16.msrb.mxu0 %v7994_v21  ;;  %v8231_v21 = vld [vmem:[%s11346_s30 + $0x6b8] sm:$0xf0] }
 0x38b   : > { %v2703_v2 = vpop.f32.mrf.mxu2 }
 0x38c   : > { %v2704_v59 = vadd.f32 %v2703_v2, %v2645_v25  ;;  %v2762_v63 = vpop.f32.mrf.mxu3  ;;  %v2587_v62 = vpop.f32.mrf.mxu0  ;;  %v8122_v25 = vor.u32 %v9957_v3, %v8119_v53  ;;  %v10017_v3 = vld [vmem:[%s11346_s30 + $0x7ac] sm:$0xf] }
 0x38d   : > { %v2646_v23 = vpop.f32.mrf.mxu1 }
 0x38e   : > { %v11993_v58 = vadd.f32 %v2762_v63, %v2704_v59  ;;  %v2647_v31 = vadd.f32 %v2646_v23, %v2587_v62  ;;  %3103 = vmatpush.bf16.msrb.mxu1 %v8122_v25  ;;  %v8234_v25 = vor.u32 %v9985_v54, %v8231_v21  ;;  %v8103_v54 = vld [vmem:[%s11346_s30 + $0x5b8] sm:$0xf0] }
 0x390   : > { %14036 = vst [vmem:[#allocation22_spill] sm:$0xff] %v11993_v58  ;;  %3163 = vmatpush.bf16.msrb.mxu2 %v8234_v25  ;;  %v8071_v58 = vld [vmem:[%s11346_s30 + $0x578] sm:$0xf0] }
 0x393   : > { %v2705_v2 = vpop.f32.mrf.mxu2 }
 0x394   : > { %v2706_v59 = vadd.f32 %v2705_v2, %v2647_v31  ;;  %v2764_v63 = vpop.f32.mrf.mxu3  ;;  %v2590_v62 = vpop.f32.mrf.mxu0  ;;  %v8359_v2 = vld [vmem:[%s11346_s30 + $0x7b8] sm:$0xf0] }
 0x395   : > { %v2649_v23 = vpop.f32.mrf.mxu1 }
 0x396   : > { %v12003_v4 = vadd.f32 %v2764_v63, %v2706_v59  ;;  %v2650_v26 = vadd.f32 %v2649_v23, %v2590_v62  ;;  %v8362_v59 = vor.u32 %v10017_v3, %v8359_v2 }
 0x397   : > { %2815 = vmatmul.bf16.vlgmr.msra.gmra.mxu0 %v11588_v33  ;;  %2874 = vmatmul.bf16.vlgmr.msra.gmra.mxu1 %v11593_v38 }
 0x398   : > { %14037 = vst [vmem:[#allocation23_spill] sm:$0xff] %v12003_v4  ;;  %2933 = vmatmul.bf16.vlgmr.msra.gmra.mxu2 %v11595_v39  ;;  %3222 = vmatpush.bf16.msrb.mxu3 %v8362_v59 }
 0x399   : > { %2992 = vmatmul.bf16.vlgmr.msra.gmra.mxu3 %v11599_v42 }
 0x39b   : > { %v2708_v53 = vpop.f32.mrf.mxu2 }
 0x39c   : > { %v2709_v31 = vadd.f32 %v2708_v53, %v2650_v26  ;;  %v2767_v61 = vpop.f32.mrf.mxu3  ;;  %v2592_v1 = vpop.f32.mrf.mxu0 }
 0x39d   : > { %v2651_v56 = vpop.f32.mrf.mxu1 }
 0x39e   : > { %v12009_v6 = vadd.f32 %v2767_v61, %v2709_v31  ;;  %v2652_v0 = vadd.f32 %v2651_v56, %v2592_v1  ;;  %v9921_v1 = vld [vmem:[%s11346_s30 + $0x4ac] sm:$0xf]  ;;  %v7975_v56 = vld [vmem:[%s11346_s30 + $0x4b8] sm:$0xf0] }
 0x39f   : > { %v7978_v4 = vor.u32 %v9921_v1, %v7975_v56 }
 0x3a0   : > { %14038 = vst [vmem:[#allocation24_spill] sm:$0xff] %v12009_v6  ;;  %v9953_v6 = vld [vmem:[%s11346_s30 + $0x5ac] sm:$0xf] }
 0x3a1   : > { %v8106_v21 = vor.u32 %v9953_v6, %v8103_v54  ;;  %3045 = vmatpush.bf16.msrb.mxu0 %v7978_v4  ;;  %v9981_v54 = vld [vmem:[%s11346_s30 + $0x68c] sm:$0xf] }
 0x3a3   : > { %v2710_v63 = vpop.f32.mrf.mxu2  ;;  %3104 = vmatpush.bf16.msrb.mxu1 %v8106_v21  ;;  %v10013_v21 = vld [vmem:[%s11346_s30 + $0x78c] sm:$0xf] }
 0x3a4   : > { %v2711_v62 = vadd.f32 %v2710_v63, %v2652_v0  ;;  %v2769_v23 = vpop.f32.mrf.mxu3  ;;  %v2595_v26 = vpop.f32.mrf.mxu0 }
 0x3a5   : > { %v2654_v53 = vpop.f32.mrf.mxu1 }
 0x3a6   : > { %v12015_v31 = vadd.f32 %v2769_v23, %v2711_v62  ;;  %v2655_v61 = vadd.f32 %v2654_v53, %v2595_v26 }
 0x3a7   : > { %2820 = vmatmul.bf16.gmra.mxu0 %v11625_v9  ;;  %2879 = vmatmul.bf16.gmra.mxu1 %v11627_v10 }
 0x3a8   : > { %14039 = vst [vmem:[#allocation25_spill] sm:$0xff] %v12015_v31  ;;  %2938 = vmatmul.bf16.gmra.mxu2 %v11629_v11 }
 0x3a9   : > { %2997 = vmatmul.bf16.gmra.mxu3 %v11631_v12 }
 0x3ab   : > { %v2713_v0 = vpop.f32.mrf.mxu2 }
 0x3ac   : > { %v2714_v3 = vadd.f32 %v2713_v0, %v2655_v61  ;;  %v2772_v25 = vpop.f32.mrf.mxu3  ;;  %v2597_v2 = vpop.f32.mrf.mxu0  ;;  %v8215_v61 = vld [vmem:[%s11346_s30 + $0x698] sm:$0xf0] }
 0x3ad   : > { %v2656_v59 = vpop.f32.mrf.mxu1  ;;  %v8218_v0 = vor.u32 %v9981_v54, %v8215_v61 }
 0x3ae   : > { %v12025_v63 = vadd.f32 %v2772_v25, %v2714_v3  ;;  %v2657_v62 = vadd.f32 %v2656_v59, %v2597_v2  ;;  %v8343_v3 = vld [vmem:[%s11346_s30 + $0x798] sm:$0xf0]  ;;  %v9917_v2 = vld [vmem:[%s11346_s30 + $0x48c] sm:$0xf] }
 0x3af   : > { %v8346_v25 = vor.u32 %v10013_v21, %v8343_v3  ;;  %3164 = vmatpush.bf16.msrb.mxu2 %v8218_v0  ;;  %v7959_v59 = vld [vmem:[%s11346_s30 + $0x498] sm:$0xf0] }
 0x3b0   : > { %14040 = vst [vmem:[#allocation26_spill] sm:$0xff] %v12025_v63 }
 0x3b1   : > { %3223 = vmatpush.bf16.msrb.mxu3 %v8346_v25 }
 0x3b3   : > { %v2715_v23 = vpop.f32.mrf.mxu2 }
 0x3b4   : > { %v2716_v26 = vadd.f32 %v2715_v23, %v2657_v62  ;;  %v2774_v53 = vpop.f32.mrf.mxu3  ;;  %v2600_v6 = vpop.f32.mrf.mxu0  ;;  %v9949_v62 = vld [vmem:[%s11346_s30 + $0x58c] sm:$0xf]  ;;  %v7962_v23 = vor.u32 %v9917_v2, %v7959_v59 }
 0x3b5   : > { %v2659_v4 = vpop.f32.mrf.mxu1 }
 0x3b6   : > { %v12027_v1 = vadd.f32 %v2774_v53, %v2716_v26  ;;  %v2660_v56 = vadd.f32 %v2659_v4, %v2600_v6  ;;  %v8087_v26 = vld [vmem:[%s11346_s30 + $0x598] sm:$0xf0]  ;;  %3046 = vmatpush.bf16.msrb.mxu0 %v7962_v23  ;;  %v10009_v23 = vld [vmem:[%s11346_s30 + $0x76c] sm:$0xf] }
 0x3b7   : > { %2825 = vmatmul.bf16.gmra.mxu0 %v11649_v27  ;;  %2884 = vmatmul.bf16.gmra.mxu1 %v11651_v28  ;;  %v8090_v6 = vor.u32 %v9949_v62, %v8087_v26  ;;  %v8199_v62 = vld [vmem:[%s11346_s30 + $0x678] sm:$0xf0] }
 0x3b8   : > { %14041 = vst [vmem:[#allocation27_spill] sm:$0xff] %v12027_v1  ;;  %2943 = vmatmul.bf16.gmra.mxu2 %v11653_v29 }
 0x3b9   : > { %3002 = vmatmul.bf16.gmra.mxu3 %v11655_v30  ;;  %3105 = vmatpush.bf16.msrb.mxu1 %v8090_v6 }
 0x3bb   : > { %v2718_v53 = vpop.f32.mrf.mxu2 }
 0x3bc   : > { %v2719_v4 = vadd.f32 %v2718_v53, %v2660_v56  ;;  %v2777_v1 = vpop.f32.mrf.mxu3  ;;  %v2602_v54 = vpop.f32.mrf.mxu0  ;;  %v8327_v53 = vld [vmem:[%s11346_s30 + $0x778] sm:$0xf0] }
 0x3bd   : > { %v2661_v61 = vpop.f32.mrf.mxu1  ;;  %v8330_v6 = vor.u32 %v10009_v23, %v8327_v53 }
 0x3be   : > { %v12041_v21 = vadd.f32 %v2777_v1, %v2719_v4  ;;  %v2662_v0 = vadd.f32 %v2661_v61, %v2602_v54  ;;  %v9977_v1 = vld [vmem:[%s11346_s30 + $0x66c] sm:$0xf] }
 0x3bf   : > { %v8202_v26 = vor.u32 %v9977_v1, %v8199_v62  ;;  %3224 = vmatpush.bf16.msrb.mxu3 %v8330_v6 }
 0x3c0   : > { %14042 = vst [vmem:[#allocation28_spill] sm:$0xff] %v12041_v21 }
 0x3c1   : > { %3165 = vmatpush.bf16.msrb.mxu2 %v8202_v26 }
 0x3c3   : > { %v2720_v3 = vpop.f32.mrf.mxu2 }
 0x3c4   : > { %v2721_v63 = vadd.f32 %v2720_v3, %v2662_v0  ;;  %v2779_v25 = vpop.f32.mrf.mxu3  ;;  %v2605_v2 = vpop.f32.mrf.mxu0 }
 0x3c5   : > { %v2664_v59 = vpop.f32.mrf.mxu1 }
 0x3c6   : > { %v12043_v31 = vadd.f32 %v2779_v25, %v2721_v63  ;;  %v2665_v56 = vadd.f32 %v2664_v59, %v2605_v2  ;;  %v9913_v2 = vld [vmem:[%s11346_s30 + $0x46c] sm:$0xf]  ;;  %v7943_v59 = vld [vmem:[%s11346_s30 + $0x478] sm:$0xf0] }
 0x3c7   : > { %2830 = vmatmul.bf16.gmra.mxu0 %v11673_v49  ;;  %2889 = vmatmul.bf16.gmra.mxu1 %v11675_v50  ;;  %v7946_v21 = vor.u32 %v9913_v2, %v7943_v59  ;;  %v8311_v59 = vld [vmem:[%s11346_s30 + $0x758] sm:$0xf0] }
 0x3c8   : > { %14043 = vst [vmem:[#allocation29_spill] sm:$0xff] %v12043_v31  ;;  %2948 = vmatmul.bf16.gmra.mxu2 %v11677_v51  ;;  %v9945_v31 = vld [vmem:[%s11346_s30 + $0x56c] sm:$0xf] }
 0x3c9   : > { %3007 = vmatmul.bf16.gmra.mxu3 %v11679_v52  ;;  %v8074_v41 = vor.u32 %v9945_v31, %v8071_v58  ;;  %3047 = vmatpush.bf16.msrb.mxu0 %v7946_v21 }
 0x3cb   : > { %v2723_v63 = vpop.f32.mrf.mxu2  ;;  %3106 = vmatpush.bf16.msrb.mxu1 %v8074_v41 }
 0x3cc   : > { %v2724_v4 = vadd.f32 %v2723_v63, %v2665_v56  ;;  %v2782_v54 = vpop.f32.mrf.mxu3  ;;  %v2607_v61 = vpop.f32.mrf.mxu0 }
 0x3cd   : > { %v2666_v0 = vpop.f32.mrf.mxu1 }
 0x3ce   : > { %v12053_v3 = vadd.f32 %v2782_v54, %v2724_v4  ;;  %v2667_v25 = vadd.f32 %v2666_v0, %v2607_v61  ;;  %v9973_v61 = vld [vmem:[%s11346_s30 + $0x64c] sm:$0xf]  ;;  %v8183_v0 = vld [vmem:[%s11346_s30 + $0x658] sm:$0xf0] }
 0x3cf   : > { %v8186_v2 = vor.u32 %v9973_v61, %v8183_v0 }
 0x3d0   : > { %14044 = vst [vmem:[#allocation30_spill] sm:$0xff] %v12053_v3 }
 0x3d1   : > { %3166 = vmatpush.bf16.msrb.mxu2 %v8186_v2 }
 0x3d3   : > { %v2725_v1 = vpop.f32.mrf.mxu2 }
 0x3d4   : > { %v2726_v62 = vadd.f32 %v2725_v1, %v2667_v25  ;;  %v2784_v23 = vpop.f32.mrf.mxu3  ;;  %v2610_v56 = vpop.f32.mrf.mxu0  ;;  %v10005_v25 = vld [vmem:[%s11346_s30 + $0x74c] sm:$0xf] }
 0x3d5   : > { %v2669_v26 = vpop.f32.mrf.mxu1  ;;  %v9909_v1 = vld [vmem:[%s11346_s30 + $0x44c] sm:$0xf] }
 0x3d6   : > { %v12059_v53 = vadd.f32 %v2784_v23, %v2726_v62  ;;  %v2670_v63 = vadd.f32 %v2669_v26, %v2610_v56  ;;  %v7927_v62 = vld [vmem:[%s11346_s30 + $0x458] sm:$0xf0]  ;;  %v8314_v23 = vor.u32 %v10005_v25, %v8311_v59  ;;  %v9941_v26 = vld [vmem:[%s11346_s30 + $0x54c] sm:$0xf] }
 0x3d7   : > { %2835 = vmatmul.bf16.gmra.mxu0 %v11701_v13  ;;  %2894 = vmatmul.bf16.gmra.mxu1 %v11703_v14  ;;  %v7930_v56 = vor.u32 %v9909_v1, %v7927_v62 }
 0x3d8   : > { %14045 = vst [vmem:[#allocation31_spill] sm:$0xff] %v12059_v53  ;;  %2953 = vmatmul.bf16.gmra.mxu2 %v11705_v15  ;;  %v8055_v53 = vld [vmem:[%s11346_s30 + $0x558] sm:$0xf0]  ;;  %3225 = vmatpush.bf16.msrb.mxu3 %v8314_v23  ;;  %v9969_v23 = vld [vmem:[%s11346_s30 + $0x62c] sm:$0xf] }
 0x3d9   : > { %3012 = vmatmul.bf16.gmra.mxu3 %v11707_v16  ;;  %3048 = vmatpush.bf16.msrb.mxu0 %v7930_v56  ;;  %v8167_v56 = vld [vmem:[%s11346_s30 + $0x638] sm:$0xf0] }
 0x3db   : > { %v2728_v41 = vpop.f32.mrf.mxu2 }
 0x3dc   : > { %v2729_v58 = vadd.f32 %v2728_v41, %v2670_v63  ;;  %v2787_v31 = vpop.f32.mrf.mxu3  ;;  %v2612_v21 = vpop.f32.mrf.mxu0  ;;  %v8058_v63 = vor.u32 %v9941_v26, %v8055_v53  ;;  %v10001_v26 = vld [vmem:[%s11346_s30 + $0x72c] sm:$0xf] }
 0x3dd   : > { %v2671_v6 = vpop.f32.mrf.mxu1 }
 0x3de   : > { %v12065_v4 = vadd.f32 %v2787_v31, %v2729_v58  ;;  %v2672_v54 = vadd.f32 %v2671_v6, %v2612_v21  ;;  %3107 = vmatpush.bf16.msrb.mxu1 %v8058_v63  ;;  %v8170_v63 = vor.u32 %v9969_v23, %v8167_v56  ;;  %v8039_v23 = vld [vmem:[%s11346_s30 + $0x538] sm:$0xf0] }
 0x3e0   : > { %14046 = vst [vmem:[#allocation32_spill] sm:$0xff] %v12065_v4  ;;  %3167 = vmatpush.bf16.msrb.mxu2 %v8170_v63  ;;  %v9830_v4 = vld [vmem:[%s11346_s30 + $0x1ec] sm:$0xf0] }
 0x3e3   : > { %v2730_v41 = vpop.f32.mrf.mxu2 }
 0x3e4   : > { %v2731_v58 = vadd.f32 %v2730_v41, %v2672_v54  ;;  %v2789_v31 = vpop.f32.mrf.mxu3  ;;  %v2615_v21 = vpop.f32.mrf.mxu0  ;;  %v8295_v41 = vld [vmem:[%s11346_s30 + $0x738] sm:$0xf0] }
 0x3e5   : > { %v2674_v6 = vpop.f32.mrf.mxu1 }
 0x3e6   : > { %v12075_v61 = vadd.f32 %v2789_v31, %v2731_v58  ;;  %v2675_v0 = vadd.f32 %v2674_v6, %v2615_v21  ;;  %v8298_v58 = vor.u32 %v10001_v26, %v8295_v41 }
 0x3e7   : > { %2840 = vmatmul.bf16.gmra.mxu0 %v11729_v45  ;;  %2899 = vmatmul.bf16.gmra.mxu1 %v11731_v46 }
 0x3e8   : > { %14047 = vst [vmem:[#allocation33_spill] sm:$0xff] %v12075_v61  ;;  %2958 = vmatmul.bf16.gmra.mxu2 %v11733_v47  ;;  %3226 = vmatpush.bf16.msrb.mxu3 %v8298_v58 }
 0x3e9   : > { %3017 = vmatmul.bf16.gmra.mxu3 %v11735_v48 }
 0x3eb   : > { %v2733_v53 = vpop.f32.mrf.mxu2 }
 0x3ec   : > { %v2734_v54 = vadd.f32 %v2733_v53, %v2675_v0  ;;  %v2792_v25 = vpop.f32.mrf.mxu3  ;;  %v2617_v2 = vpop.f32.mrf.mxu0 }
 0x3ed   : > { %v2676_v59 = vpop.f32.mrf.mxu1 }
 0x3ee   : > { %v12081_v1 = vadd.f32 %v2792_v25, %v2734_v54  ;;  %v2677_v62 = vadd.f32 %v2676_v59, %v2617_v2  ;;  %v9905_v2 = vld [vmem:[%s11346_s30 + $0x42c] sm:$0xf]  ;;  %v7911_v59 = vld [vmem:[%s11346_s30 + $0x438] sm:$0xf0] }
 0x3ef   : > { %v7914_v61 = vor.u32 %v9905_v2, %v7911_v59 }
 0x3f0   : > { %14048 = vst [vmem:[#allocation34_spill] sm:$0xff] %v12081_v1  ;;  %v9937_v1 = vld [vmem:[%s11346_s30 + $0x52c] sm:$0xf] }
 0x3f1   : > { %v8042_v56 = vor.u32 %v9937_v1, %v8039_v23  ;;  %3049 = vmatpush.bf16.msrb.mxu0 %v7914_v61  ;;  %v9965_v23 = vld [vmem:[%s11346_s30 + $0x60c] sm:$0xf] }
 0x3f3   : > { %v2735_v31 = vpop.f32.mrf.mxu2  ;;  %3108 = vmatpush.bf16.msrb.mxu1 %v8042_v56  ;;  %v9997_v56 = vld [vmem:[%s11346_s30 + $0x70c] sm:$0xf] }
 0x3f4   : > { %v2736_v21 = vadd.f32 %v2735_v31, %v2677_v62  ;;  %v2794_v6 = vpop.f32.mrf.mxu3  ;;  %v2620_v0 = vpop.f32.mrf.mxu0 }
 0x3f5   : > { %v2679_v53 = vpop.f32.mrf.mxu1 }
 0x3f6   : > { %v12087_v54 = vadd.f32 %v2794_v6, %v2736_v21  ;;  %v2680_v25 = vadd.f32 %v2679_v53, %v2620_v0 }
 0x3f7   : > { %2845 = vmatmul.bf16.gmra.mxu0 %v11757_v17  ;;  %2904 = vmatmul.bf16.gmra.mxu1 %v11759_v18 }
 0x3f8   : > { %14049 = vst [vmem:[#allocation35_spill] sm:$0xff] %v12087_v54  ;;  %2963 = vmatmul.bf16.gmra.mxu2 %v11761_v19 }
 0x3f9   : > { %3022 = vmatmul.bf16.gmra.mxu3 %v11763_v20 }
 0x3fb   : > { %v2738_v62 = vpop.f32.mrf.mxu2 }
 0x3fc   : > { %v2739_v26 = vadd.f32 %v2738_v62, %v2680_v25  ;;  %v2797_v63 = vpop.f32.mrf.mxu3  ;;  %v2622_v41 = vpop.f32.mrf.mxu0  ;;  %v8151_v25 = vld [vmem:[%s11346_s30 + $0x618] sm:$0xf0] }
 0x3fd   : > { %v2681_v58 = vpop.f32.mrf.mxu1  ;;  %v8154_v62 = vor.u32 %v9965_v23, %v8151_v25 }
 0x3fe   : > { %v12097_v31 = vadd.f32 %v2797_v63, %v2739_v26  ;;  %v2682_v21 = vadd.f32 %v2681_v58, %v2622_v41  ;;  %v8279_v26 = vld [vmem:[%s11346_s30 + $0x718] sm:$0xf0]  ;;  %v9901_v41 = vld [vmem:[%s11346_s30 + $0x40c] sm:$0xf] }
 0x3ff   : > { %v8282_v63 = vor.u32 %v9997_v56, %v8279_v26  ;;  %3168 = vmatpush.bf16.msrb.mxu2 %v8154_v62  ;;  %v7895_v58 = vld [vmem:[%s11346_s30 + $0x418] sm:$0xf0] }
 0x400   : > { %14050 = vst [vmem:[#allocation36_spill] sm:$0xff] %v12097_v31 }
 0x401   : > { %3227 = vmatpush.bf16.msrb.mxu3 %v8282_v63 }
 0x403   : > { %v2740_v6 = vpop.f32.mrf.mxu2 }
 0x404   : > { %v2741_v0 = vadd.f32 %v2740_v6, %v2682_v21  ;;  %v2799_v53 = vpop.f32.mrf.mxu3  ;;  %v2625_v1 = vpop.f32.mrf.mxu0  ;;  %v9933_v21 = vld [vmem:[%s11346_s30 + $0x50c] sm:$0xf]  ;;  %v7898_v6 = vor.u32 %v9901_v41, %v7895_v58 }
 0x405   : > { %v2684_v61 = vpop.f32.mrf.mxu1 }
 0x406   : > { %v12099_v2 = vadd.f32 %v2799_v53, %v2741_v0  ;;  %v2685_v59 = vadd.f32 %v2684_v61, %v2625_v1  ;;  %v8023_v0 = vld [vmem:[%s11346_s30 + $0x518] sm:$0xf0]  ;;  %3050 = vmatpush.bf16.msrb.mxu0 %v7898_v6  ;;  %v8909_v6 = vld [vmem:[%s11346_s30 + $0x3e0] sm:$0xf] }
 0x407   : > { %2850 = vmatmul.bf16.gmra.mxu0 %v11777_v34  ;;  %2909 = vmatmul.bf16.gmra.mxu1 %v11779_v35  ;;  %v8026_v1 = vor.u32 %v9933_v21, %v8023_v0  ;;  %v9862_v21 = vld [vmem:[%s11346_s30 + $0x2ec] sm:$0xf0] }
 0x408   : > { %14051 = vst [vmem:[#allocation37_spill] sm:$0xff] %v12099_v2  ;;  %2968 = vmatmul.bf16.gmra.mxu2 %v11781_v36 }
 0x409   : > { %3027 = vmatmul.bf16.gmra.mxu3 %v11783_v37  ;;  %3109 = vmatpush.bf16.msrb.mxu1 %v8026_v1 }
 0x40b   : > { %v2743_v53 = vpop.f32.mrf.mxu2 }
 0x40c   : > { %v2744_v61 = vadd.f32 %v2743_v53, %v2685_v59  ;;  %v2802_v2 = vpop.f32.mrf.mxu3  ;;  %v2627_v23 = vpop.f32.mrf.mxu0  ;;  %v9894_v53 = vld [vmem:[%s11346_s30 + $0x3ec] sm:$0xf0] }
 0x40d   : > { %v2686_v25 = vpop.f32.mrf.mxu1  ;;  %v8910_v1 = vor.u32 %v9894_v53, %v8909_v6 }
 0x40e   : > { %v12113_v56 = vadd.f32 %v2802_v2, %v2744_v61  ;;  %v2687_v62 = vadd.f32 %v2686_v25, %v2627_v23  ;;  %v8781_v2 = vld [vmem:[%s11346_s30 + $0x2e0] sm:$0xf] }
 0x40f   : > { %v8782_v0 = vor.u32 %v9862_v21, %v8781_v2  ;;  %4116 = vmatpush.bf16.msra.mxu3 %v8910_v1 }
 0x410   : > { %14052 = vst [vmem:[#allocation38_spill] sm:$0xff] %v12113_v56 }
 0x411   : > { %4057 = vmatpush.bf16.msra.mxu2 %v8782_v0 }
 0x413   : > { %v2745_v26 = vpop.f32.mrf.mxu2 }
 0x414   : > { %v2746_v31 = vadd.f32 %v2745_v26, %v2687_v62  ;;  %v2804_v63 = vpop.f32.mrf.mxu3  ;;  %v2816_v41 = vpop.f32.mrf.mxu0 }
 0x415   : > { %v2875_v58 = vpop.f32.mrf.mxu1 }
 0x416   : > { %v12115_v54 = vadd.f32 %v2804_v63, %v2746_v31  ;;  %v2876_v59 = vadd.f32 %v2875_v58, %v2816_v41  ;;  %v8525_v41 = vld [vmem:[%s11346_s30 + $0xe0] sm:$0xf]  ;;  %v9798_v58 = vld [vmem:[%s11346_s30 + $0xec] sm:$0xf0] }
 0x417   : > { %2855 = vmatmul.bf16.gmra.mxu0 %v11805_v5  ;;  %2914 = vmatmul.bf16.gmra.mxu1 %v11807_v7  ;;  %v8526_v56 = vor.u32 %v9798_v58, %v8525_v41  ;;  %v9890_v58 = vld [vmem:[%s11346_s30 + $0x3cc] sm:$0xf0] }
 0x418   : > { %14053 = vst [vmem:[#allocation39_spill] sm:$0xff] %v12115_v54  ;;  %2973 = vmatmul.bf16.gmra.mxu2 %v11809_v8  ;;  %v8653_v54 = vld [vmem:[%s11346_s30 + $0x1e0] sm:$0xf] }
 0x419   : > { %3032 = vmatmul.bf16.gmra.mxu3 %v11811_v22  ;;  %v8654_v3 = vor.u32 %v9830_v4, %v8653_v54  ;;  %3939 = vmatpush.bf16.msra.mxu0 %v8526_v56 }
 0x41b   : > { %v2934_v31 = vpop.f32.mrf.mxu2  ;;  %3998 = vmatpush.bf16.msra.mxu1 %v8654_v3 }
 0x41c   : > { %v2935_v61 = vadd.f32 %v2934_v31, %v2876_v59  ;;  %v2993_v23 = vpop.f32.mrf.mxu3  ;;  %v2818_v25 = vpop.f32.mrf.mxu0 }
 0x41d   : > { %v2877_v62 = vpop.f32.mrf.mxu1 }
 0x41e   : > { %v12125_v26 = vadd.f32 %v2993_v23, %v2935_v61  ;;  %v2878_v63 = vadd.f32 %v2877_v62, %v2818_v25  ;;  %v8765_v25 = vld [vmem:[%s11346_s30 + $0x2c0] sm:$0xf]  ;;  %v9858_v62 = vld [vmem:[%s11346_s30 + $0x2cc] sm:$0xf0] }
 0x41f   : > { %v8766_v41 = vor.u32 %v9858_v62, %v8765_v25 }
 0x420   : > { %14054 = vst [vmem:[#allocation40_spill] sm:$0xff] %v12125_v26 }
 0x421   : > { %4058 = vmatpush.bf16.msra.mxu2 %v8766_v41 }
 0x423   : > { %v2936_v2 = vpop.f32.mrf.mxu2 }
 0x424   : > { %v2937_v21 = vadd.f32 %v2936_v2, %v2878_v63  ;;  %v2995_v6 = vpop.f32.mrf.mxu3  ;;  %v2821_v59 = vpop.f32.mrf.mxu0  ;;  %v8893_v63 = vld [vmem:[%s11346_s30 + $0x3c0] sm:$0xf] }
 0x425   : > { %v2880_v0 = vpop.f32.mrf.mxu1  ;;  %v8509_v2 = vld [vmem:[%s11346_s30 + $0xc0] sm:$0xf] }
 0x426   : > { %v12131_v53 = vadd.f32 %v2995_v6, %v2937_v21  ;;  %v2881_v31 = vadd.f32 %v2880_v0, %v2821_v59  ;;  %v9794_v21 = vld [vmem:[%s11346_s30 + $0xcc] sm:$0xf0]  ;;  %v8894_v6 = vor.u32 %v9890_v58, %v8893_v63  ;;  %v8637_v0 = vld [vmem:[%s11346_s30 + $0x1c0] sm:$0xf] }
 0x427   : > { %2860 = vmatmul.bf16.gmra.mxu0 %v11835_v24  ;;  %2919 = vmatmul.bf16.gmra.mxu1 %v11837_v32  ;;  %v8510_v59 = vor.u32 %v9794_v21, %v8509_v2 }
 0x428   : > { %14055 = vst [vmem:[#allocation41_spill] sm:$0xff] %v12131_v53  ;;  %2978 = vmatmul.bf16.gmra.mxu2 %v11839_v40  ;;  %v9826_v53 = vld [vmem:[%s11346_s30 + $0x1cc] sm:$0xf0]  ;;  %4117 = vmatpush.bf16.msra.mxu3 %v8894_v6  ;;  %v8749_v6 = vld [vmem:[%s11346_s30 + $0x2a0] sm:$0xf] }
 0x429   : > { %3037 = vmatmul.bf16.gmra.mxu3 %v11841_v43  ;;  %3940 = vmatpush.bf16.msra.mxu0 %v8510_v59  ;;  %v9854_v59 = vld [vmem:[%s11346_s30 + $0x2ac] sm:$0xf0] }
 0x42b   : > { %v2939_v3 = vpop.f32.mrf.mxu2 }
 0x42c   : > { %v2940_v4 = vadd.f32 %v2939_v3, %v2881_v31  ;;  %v2998_v54 = vpop.f32.mrf.mxu3  ;;  %v2823_v56 = vpop.f32.mrf.mxu0  ;;  %v8638_v31 = vor.u32 %v9826_v53, %v8637_v0  ;;  %v8877_v0 = vld [vmem:[%s11346_s30 + $0x3a0] sm:$0xf] }
 0x42d   : > { %v2882_v1 = vpop.f32.mrf.mxu1 }
 0x42e   : > { %v12137_v61 = vadd.f32 %v2998_v54, %v2940_v4  ;;  %v2883_v23 = vadd.f32 %v2882_v1, %v2823_v56  ;;  %3999 = vmatpush.bf16.msra.mxu1 %v8638_v31  ;;  %v8750_v31 = vor.u32 %v9854_v59, %v8749_v6  ;;  %v9822_v6 = vld [vmem:[%s11346_s30 + $0x1ac] sm:$0xf0] }
 0x430   : > { %14056 = vst [vmem:[#allocation42_spill] sm:$0xff] %v12137_v61  ;;  %4059 = vmatpush.bf16.msra.mxu2 %v8750_v31  ;;  %v9814_v61 = vld [vmem:[%s11346_s30 + $0x16c] sm:$0xf0] }
 0x433   : > { %v2941_v3 = vpop.f32.mrf.mxu2 }
 0x434   : > { %v2942_v4 = vadd.f32 %v2941_v3, %v2883_v23  ;;  %v3000_v54 = vpop.f32.mrf.mxu3  ;;  %v2826_v56 = vpop.f32.mrf.mxu0  ;;  %v9886_v3 = vld [vmem:[%s11346_s30 + $0x3ac] sm:$0xf0] }
 0x435   : > { %v2885_v1 = vpop.f32.mrf.mxu1 }
 0x436   : > { %v12147_v25 = vadd.f32 %v3000_v54, %v2942_v4  ;;  %v2886_v62 = vadd.f32 %v2885_v1, %v2826_v56  ;;  %v8878_v4 = vor.u32 %v9886_v3, %v8877_v0 }
 0x437   : > { %3051 = vmatmul.bf16.vlgmr.msrb.gmra.mxu0 %v11588_v33  ;;  %3110 = vmatmul.bf16.vlgmr.msrb.gmra.mxu1 %v11593_v38 }
 0x438   : > { %14057 = vst [vmem:[#allocation43_spill] sm:$0xff] %v12147_v25  ;;  %3169 = vmatmul.bf16.vlgmr.msrb.gmra.mxu2 %v11595_v39  ;;  %4118 = vmatpush.bf16.msra.mxu3 %v8878_v4 }
 0x439   : > { %3228 = vmatmul.bf16.vlgmr.msrb.gmra.mxu3 %v11599_v42 }
 0x43b   : > { %v2944_v53 = vpop.f32.mrf.mxu2 }
 0x43c   : > { %v2945_v23 = vadd.f32 %v2944_v53, %v2886_v62  ;;  %v3003_v63 = vpop.f32.mrf.mxu3  ;;  %v2828_v41 = vpop.f32.mrf.mxu0 }
 0x43d   : > { %v2887_v58 = vpop.f32.mrf.mxu1 }
 0x43e   : > { %v12153_v2 = vadd.f32 %v3003_v63, %v2945_v23  ;;  %v2888_v21 = vadd.f32 %v2887_v58, %v2828_v41  ;;  %v8493_v41 = vld [vmem:[%s11346_s30 + $0xa0] sm:$0xf]  ;;  %v9790_v58 = vld [vmem:[%s11346_s30 + $0xac] sm:$0xf0] }
 0x43f   : > { %v8494_v25 = vor.u32 %v9790_v58, %v8493_v41 }
 0x440   : > { %14058 = vst [vmem:[#allocation44_spill] sm:$0xff] %v12153_v2  ;;  %v8621_v2 = vld [vmem:[%s11346_s30 + $0x1a0] sm:$0xf] }
 0x441   : > { %v8622_v59 = vor.u32 %v9822_v6, %v8621_v2  ;;  %3941 = vmatpush.bf16.msra.mxu0 %v8494_v25  ;;  %v8733_v6 = vld [vmem:[%s11346_s30 + $0x280] sm:$0xf] }
 0x443   : > { %v2946_v54 = vpop.f32.mrf.mxu2  ;;  %4000 = vmatpush.bf16.msra.mxu1 %v8622_v59  ;;  %v8861_v59 = vld [vmem:[%s11346_s30 + $0x380] sm:$0xf] }
 0x444   : > { %v2947_v56 = vadd.f32 %v2946_v54, %v2888_v21  ;;  %v3005_v1 = vpop.f32.mrf.mxu3  ;;  %v2831_v62 = vpop.f32.mrf.mxu0 }
 0x445   : > { %v2890_v53 = vpop.f32.mrf.mxu1 }
 0x446   : > { %v12159_v23 = vadd.f32 %v3005_v1, %v2947_v56  ;;  %v2891_v63 = vadd.f32 %v2890_v53, %v2831_v62 }
 0x447   : > { %3056 = vmatmul.bf16.gmra.mxu0 %v11625_v9  ;;  %3115 = vmatmul.bf16.gmra.mxu1 %v11627_v10 }
 0x448   : > { %14059 = vst [vmem:[#allocation45_spill] sm:$0xff] %v12159_v23  ;;  %3174 = vmatmul.bf16.gmra.mxu2 %v11629_v11 }
 0x449   : > { %3233 = vmatmul.bf16.gmra.mxu3 %v11631_v12 }
 0x44b   : > { %v2949_v21 = vpop.f32.mrf.mxu2 }
 0x44c   : > { %v2950_v0 = vadd.f32 %v2949_v21, %v2891_v63  ;;  %v3008_v31 = vpop.f32.mrf.mxu3  ;;  %v2833_v3 = vpop.f32.mrf.mxu0  ;;  %v9850_v63 = vld [vmem:[%s11346_s30 + $0x28c] sm:$0xf0] }
 0x44d   : > { %v2892_v4 = vpop.f32.mrf.mxu1  ;;  %v8734_v21 = vor.u32 %v9850_v63, %v8733_v6 }
 0x44e   : > { %v12169_v54 = vadd.f32 %v3008_v31, %v2950_v0  ;;  %v2893_v56 = vadd.f32 %v2892_v4, %v2833_v3  ;;  %v9882_v0 = vld [vmem:[%s11346_s30 + $0x38c] sm:$0xf0]  ;;  %v8477_v3 = vld [vmem:[%s11346_s30 + $0x80] sm:$0xf] }
 0x44f   : > { %v8862_v31 = vor.u32 %v9882_v0, %v8861_v59  ;;  %4060 = vmatpush.bf16.msra.mxu2 %v8734_v21  ;;  %v9786_v4 = vld [vmem:[%s11346_s30 + $0x8c] sm:$0xf0] }
 0x450   : > { %14060 = vst [vmem:[#allocation46_spill] sm:$0xff] %v12169_v54 }
 0x451   : > { %4119 = vmatpush.bf16.msra.mxu3 %v8862_v31 }
 0x453   : > { %v2951_v1 = vpop.f32.mrf.mxu2 }
 0x454   : > { %v2952_v62 = vadd.f32 %v2951_v1, %v2893_v56  ;;  %v3010_v53 = vpop.f32.mrf.mxu3  ;;  %v2836_v2 = vpop.f32.mrf.mxu0  ;;  %v8605_v56 = vld [vmem:[%s11346_s30 + $0x180] sm:$0xf]  ;;  %v8478_v1 = vor.u32 %v9786_v4, %v8477_v3 }
 0x455   : > { %v2895_v25 = vpop.f32.mrf.mxu1 }
 0x456   : > { %v12171_v41 = vadd.f32 %v3010_v53, %v2952_v62  ;;  %v2896_v58 = vadd.f32 %v2895_v25, %v2836_v2  ;;  %v9818_v62 = vld [vmem:[%s11346_s30 + $0x18c] sm:$0xf0]  ;;  %3942 = vmatpush.bf16.msra.mxu0 %v8478_v1  ;;  %v8845_v1 = vld [vmem:[%s11346_s30 + $0x360] sm:$0xf] }
 0x457   : > { %3061 = vmatmul.bf16.gmra.mxu0 %v11649_v27  ;;  %3120 = vmatmul.bf16.gmra.mxu1 %v11651_v28  ;;  %v8606_v2 = vor.u32 %v9818_v62, %v8605_v56  ;;  %v9846_v56 = vld [vmem:[%s11346_s30 + $0x26c] sm:$0xf0] }
 0x458   : > { %14061 = vst [vmem:[#allocation47_spill] sm:$0xff] %v12171_v41  ;;  %3179 = vmatmul.bf16.gmra.mxu2 %v11653_v29 }
 0x459   : > { %3238 = vmatmul.bf16.gmra.mxu3 %v11655_v30  ;;  %4001 = vmatpush.bf16.msra.mxu1 %v8606_v2 }
 0x45b   : > { %v2954_v53 = vpop.f32.mrf.mxu2 }
 0x45c   : > { %v2955_v25 = vadd.f32 %v2954_v53, %v2896_v58  ;;  %v3013_v41 = vpop.f32.mrf.mxu3  ;;  %v2838_v6 = vpop.f32.mrf.mxu0  ;;  %v9878_v53 = vld [vmem:[%s11346_s30 + $0x36c] sm:$0xf0] }
 0x45d   : > { %v2897_v63 = vpop.f32.mrf.mxu1  ;;  %v8846_v2 = vor.u32 %v9878_v53, %v8845_v1 }
 0x45e   : > { %v12185_v59 = vadd.f32 %v3013_v41, %v2955_v25  ;;  %v2898_v21 = vadd.f32 %v2897_v63, %v2838_v6  ;;  %v8717_v41 = vld [vmem:[%s11346_s30 + $0x260] sm:$0xf] }
 0x45f   : > { %v8718_v62 = vor.u32 %v9846_v56, %v8717_v41  ;;  %4120 = vmatpush.bf16.msra.mxu3 %v8846_v2 }
 0x460   : > { %14062 = vst [vmem:[#allocation48_spill] sm:$0xff] %v12185_v59 }
 0x461   : > { %4061 = vmatpush.bf16.msra.mxu2 %v8718_v62 }
 0x463   : > { %v2956_v0 = vpop.f32.mrf.mxu2 }
 0x464   : > { %v2957_v54 = vadd.f32 %v2956_v0, %v2898_v21  ;;  %v3015_v31 = vpop.f32.mrf.mxu3  ;;  %v2841_v3 = vpop.f32.mrf.mxu0 }
 0x465   : > { %v2900_v4 = vpop.f32.mrf.mxu1 }
 0x466   : > { %v12187_v23 = vadd.f32 %v3015_v31, %v2957_v54  ;;  %v2901_v58 = vadd.f32 %v2900_v4, %v2841_v3  ;;  %v8461_v3 = vld [vmem:[%s11346_s30 + $0x60] sm:$0xf]  ;;  %v9782_v4 = vld [vmem:[%s11346_s30 + $0x6c] sm:$0xf0] }
 0x467   : > { %3066 = vmatmul.bf16.gmra.mxu0 %v11673_v49  ;;  %3125 = vmatmul.bf16.gmra.mxu1 %v11675_v50  ;;  %v8462_v59 = vor.u32 %v9782_v4, %v8461_v3  ;;  %v9874_v4 = vld [vmem:[%s11346_s30 + $0x34c] sm:$0xf0] }
 0x468   : > { %14063 = vst [vmem:[#allocation49_spill] sm:$0xff] %v12187_v23  ;;  %3184 = vmatmul.bf16.gmra.mxu2 %v11677_v51  ;;  %v8589_v23 = vld [vmem:[%s11346_s30 + $0x160] sm:$0xf] }
 0x469   : > { %3243 = vmatmul.bf16.gmra.mxu3 %v11679_v52  ;;  %v8590_v26 = vor.u32 %v9814_v61, %v8589_v23  ;;  %3943 = vmatpush.bf16.msra.mxu0 %v8462_v59 }
 0x46b   : > { %v2959_v54 = vpop.f32.mrf.mxu2  ;;  %4002 = vmatpush.bf16.msra.mxu1 %v8590_v26 }
 0x46c   : > { %v2960_v25 = vadd.f32 %v2959_v54, %v2901_v58  ;;  %v3018_v6 = vpop.f32.mrf.mxu3  ;;  %v2843_v63 = vpop.f32.mrf.mxu0 }
 0x46d   : > { %v2902_v21 = vpop.f32.mrf.mxu1 }
 0x46e   : > { %v12197_v0 = vadd.f32 %v3018_v6, %v2960_v25  ;;  %v2903_v31 = vadd.f32 %v2902_v21, %v2843_v63  ;;  %v8701_v63 = vld [vmem:[%s11346_s30 + $0x240] sm:$0xf]  ;;  %v9842_v21 = vld [vmem:[%s11346_s30 + $0x24c] sm:$0xf0] }
 0x46f   : > { %v8702_v3 = vor.u32 %v9842_v21, %v8701_v63 }
 0x470   : > { %14064 = vst [vmem:[#allocation50_spill] sm:$0xff] %v12197_v0 }
 0x471   : > { %4062 = vmatpush.bf16.msra.mxu2 %v8702_v3 }
 0x473   : > { %v2961_v41 = vpop.f32.mrf.mxu2 }
 0x474   : > { %v2962_v56 = vadd.f32 %v2961_v41, %v2903_v31  ;;  %v3020_v1 = vpop.f32.mrf.mxu3  ;;  %v2846_v58 = vpop.f32.mrf.mxu0  ;;  %v8829_v31 = vld [vmem:[%s11346_s30 + $0x340] sm:$0xf] }
 0x475   : > { %v2905_v62 = vpop.f32.mrf.mxu1  ;;  %v8445_v41 = vld [vmem:[%s11346_s30 + $0x40] sm:$0xf] }
 0x476   : > { %v12203_v53 = vadd.f32 %v3020_v1, %v2962_v56  ;;  %v2906_v54 = vadd.f32 %v2905_v62, %v2846_v58  ;;  %v9778_v56 = vld [vmem:[%s11346_s30 + $0x4c] sm:$0xf0]  ;;  %v8830_v1 = vor.u32 %v9874_v4, %v8829_v31  ;;  %v8573_v62 = vld [vmem:[%s11346_s30 + $0x140] sm:$0xf] }
 0x477   : > { %3071 = vmatmul.bf16.gmra.mxu0 %v11701_v13  ;;  %3130 = vmatmul.bf16.gmra.mxu1 %v11703_v14  ;;  %v8446_v58 = vor.u32 %v9778_v56, %v8445_v41 }
 0x478   : > { %14065 = vst [vmem:[#allocation51_spill] sm:$0xff] %v12203_v53  ;;  %3189 = vmatmul.bf16.gmra.mxu2 %v11705_v15  ;;  %v9810_v53 = vld [vmem:[%s11346_s30 + $0x14c] sm:$0xf0]  ;;  %4121 = vmatpush.bf16.msra.mxu3 %v8830_v1  ;;  %v8685_v1 = vld [vmem:[%s11346_s30 + $0x220] sm:$0xf] }
 0x479   : > { %3248 = vmatmul.bf16.gmra.mxu3 %v11707_v16  ;;  %3944 = vmatpush.bf16.msra.mxu0 %v8446_v58  ;;  %v9838_v58 = vld [vmem:[%s11346_s30 + $0x22c] sm:$0xf0] }
 0x47b   : > { %v2964_v26 = vpop.f32.mrf.mxu2 }
 0x47c   : > { %v2965_v61 = vadd.f32 %v2964_v26, %v2906_v54  ;;  %v3023_v23 = vpop.f32.mrf.mxu3  ;;  %v2848_v59 = vpop.f32.mrf.mxu0  ;;  %v8574_v54 = vor.u32 %v9810_v53, %v8573_v62  ;;  %v8813_v62 = vld [vmem:[%s11346_s30 + $0x320] sm:$0xf] }
 0x47d   : > { %v2907_v2 = vpop.f32.mrf.mxu1 }
 0x47e   : > { %v12209_v25 = vadd.f32 %v3023_v23, %v2965_v61  ;;  %v2908_v6 = vadd.f32 %v2907_v2, %v2848_v59  ;;  %4003 = vmatpush.bf16.msra.mxu1 %v8574_v54  ;;  %v8686_v54 = vor.u32 %v9838_v58, %v8685_v1  ;;  %v9806_v1 = vld [vmem:[%s11346_s30 + $0x12c] sm:$0xf0] }
 0x480   : > { %14066 = vst [vmem:[#allocation52_spill] sm:$0xff] %v12209_v25  ;;  %4063 = vmatpush.bf16.msra.mxu2 %v8686_v54  ;;  %v8655_v25 = vld [vmem:[%s11346_s30 + $0x1f0] sm:$0xf0] }
 0x483   : > { %v2966_v26 = vpop.f32.mrf.mxu2 }
 0x484   : > { %v2967_v61 = vadd.f32 %v2966_v26, %v2908_v6  ;;  %v3025_v23 = vpop.f32.mrf.mxu3  ;;  %v2851_v59 = vpop.f32.mrf.mxu0  ;;  %v9870_v26 = vld [vmem:[%s11346_s30 + $0x32c] sm:$0xf0] }
 0x485   : > { %v2910_v2 = vpop.f32.mrf.mxu1 }
 0x486   : > { %v12219_v63 = vadd.f32 %v3025_v23, %v2967_v61  ;;  %v2911_v21 = vadd.f32 %v2910_v2, %v2851_v59  ;;  %v8814_v61 = vor.u32 %v9870_v26, %v8813_v62 }
 0x487   : > { %3076 = vmatmul.bf16.gmra.mxu0 %v11729_v45  ;;  %3135 = vmatmul.bf16.gmra.mxu1 %v11731_v46 }
 0x488   : > { %14067 = vst [vmem:[#allocation53_spill] sm:$0xff] %v12219_v63  ;;  %3194 = vmatmul.bf16.gmra.mxu2 %v11733_v47  ;;  %4122 = vmatpush.bf16.msra.mxu3 %v8814_v61 }
 0x489   : > { %3253 = vmatmul.bf16.gmra.mxu3 %v11735_v48 }
 0x48b   : > { %v2969_v53 = vpop.f32.mrf.mxu2 }
 0x48c   : > { %v2970_v6 = vadd.f32 %v2969_v53, %v2911_v21  ;;  %v3028_v31 = vpop.f32.mrf.mxu3  ;;  %v2853_v3 = vpop.f32.mrf.mxu0 }
 0x48d   : > { %v2912_v4 = vpop.f32.mrf.mxu1 }
 0x48e   : > { %v12225_v41 = vadd.f32 %v3028_v31, %v2970_v6  ;;  %v2913_v56 = vadd.f32 %v2912_v4, %v2853_v3  ;;  %v8429_v3 = vld [vmem:[%s11346_s30 + $0x20] sm:$0xf]  ;;  %v9774_v4 = vld [vmem:[%s11346_s30 + $0x2c] sm:$0xf0] }
 0x48f   : > { %v8430_v63 = vor.u32 %v9774_v4, %v8429_v3 }
 0x490   : > { %14068 = vst [vmem:[#allocation54_spill] sm:$0xff] %v12225_v41  ;;  %v8557_v41 = vld [vmem:[%s11346_s30 + $0x120] sm:$0xf] }
 0x491   : > { %v8558_v58 = vor.u32 %v9806_v1, %v8557_v41  ;;  %3945 = vmatpush.bf16.msra.mxu0 %v8430_v63  ;;  %v8669_v1 = vld [vmem:[%s11346_s30 + $0x200] sm:$0xf] }
 0x493   : > { %v2971_v23 = vpop.f32.mrf.mxu2  ;;  %4004 = vmatpush.bf16.msra.mxu1 %v8558_v58  ;;  %v8797_v58 = vld [vmem:[%s11346_s30 + $0x300] sm:$0xf] }
 0x494   : > { %v2972_v59 = vadd.f32 %v2971_v23, %v2913_v56  ;;  %v3030_v2 = vpop.f32.mrf.mxu3  ;;  %v2856_v21 = vpop.f32.mrf.mxu0 }
 0x495   : > { %v2915_v53 = vpop.f32.mrf.mxu1 }
 0x496   : > { %v12231_v6 = vadd.f32 %v3030_v2, %v2972_v59  ;;  %v2916_v31 = vadd.f32 %v2915_v53, %v2856_v21 }
 0x497   : > { %3081 = vmatmul.bf16.gmra.mxu0 %v11757_v17  ;;  %3140 = vmatmul.bf16.gmra.mxu1 %v11759_v18 }
 0x498   : > { %14069 = vst [vmem:[#allocation55_spill] sm:$0xff] %v12231_v6  ;;  %3199 = vmatmul.bf16.gmra.mxu2 %v11761_v19 }
 0x499   : > { %3258 = vmatmul.bf16.gmra.mxu3 %v11763_v20 }
 0x49b   : > { %v2974_v56 = vpop.f32.mrf.mxu2 }
 0x49c   : > { %v2975_v62 = vadd.f32 %v2974_v56, %v2916_v31  ;;  %v3033_v54 = vpop.f32.mrf.mxu3  ;;  %v2858_v26 = vpop.f32.mrf.mxu0  ;;  %v9834_v31 = vld [vmem:[%s11346_s30 + $0x20c] sm:$0xf0] }
 0x49d   : > { %v2917_v61 = vpop.f32.mrf.mxu1  ;;  %v8670_v56 = vor.u32 %v9834_v31, %v8669_v1 }
 0x49e   : > { %v12241_v23 = vadd.f32 %v3033_v54, %v2975_v62  ;;  %v2918_v59 = vadd.f32 %v2917_v61, %v2858_v26  ;;  %v9866_v62 = vld [vmem:[%s11346_s30 + $0x30c] sm:$0xf0]  ;;  %v8413_v26 = vld [vmem:[%s11346_s30] sm:$0xf] }
 0x49f   : > { %v8798_v54 = vor.u32 %v9866_v62, %v8797_v58  ;;  %4064 = vmatpush.bf16.msra.mxu2 %v8670_v56  ;;  %v9770_v61 = vld [vmem:[%s11346_s30 + $0xc] sm:$0xf0] }
 0x4a0   : > { %14070 = vst [vmem:[#allocation56_spill] sm:$0xff] %v12241_v23 }
 0x4a1   : > { %4123 = vmatpush.bf16.msra.mxu3 %v8798_v54 }
 0x4a3   : > { %v2976_v2 = vpop.f32.mrf.mxu2 }
 0x4a4   : > { %v2977_v21 = vadd.f32 %v2976_v2, %v2918_v59  ;;  %v3035_v53 = vpop.f32.mrf.mxu3  ;;  %v2861_v41 = vpop.f32.mrf.mxu0  ;;  %v8541_v59 = vld [vmem:[%s11346_s30 + $0x100] sm:$0xf]  ;;  %v8414_v2 = vor.u32 %v9770_v61, %v8413_v26 }
 0x4a5   : > { %v2920_v63 = vpop.f32.mrf.mxu1 }
 0x4a6   : > { %v12243_v3 = vadd.f32 %v3035_v53, %v2977_v21  ;;  %v2921_v4 = vadd.f32 %v2920_v63, %v2861_v41  ;;  %v9802_v21 = vld [vmem:[%s11346_s30 + $0x10c] sm:$0xf0]  ;;  %3946 = vmatpush.bf16.msra.mxu0 %v8414_v2  ;;  %v9892_v2 = vld [vmem:[%s11346_s30 + $0x3e4] sm:$0xf] }
 0x4a7   : > { %3086 = vmatmul.bf16.gmra.mxu0 %v11777_v34  ;;  %3145 = vmatmul.bf16.gmra.mxu1 %v11779_v35  ;;  %v8542_v41 = vor.u32 %v9802_v21, %v8541_v59  ;;  %v8783_v59 = vld [vmem:[%s11346_s30 + $0x2f0] sm:$0xf0] }
 0x4a8   : > { %14071 = vst [vmem:[#allocation57_spill] sm:$0xff] %v12243_v3  ;;  %3204 = vmatmul.bf16.gmra.mxu2 %v11781_v36 }
 0x4a9   : > { %3263 = vmatmul.bf16.gmra.mxu3 %v11783_v37  ;;  %4005 = vmatpush.bf16.msra.mxu1 %v8542_v41 }
 0x4ab   : > { %v2979_v53 = vpop.f32.mrf.mxu2 }
 0x4ac   : > { %v2980_v63 = vadd.f32 %v2979_v53, %v2921_v4  ;;  %v3038_v3 = vpop.f32.mrf.mxu3  ;;  %v2863_v1 = vpop.f32.mrf.mxu0  ;;  %v8911_v53 = vld [vmem:[%s11346_s30 + $0x3f0] sm:$0xf0] }
 0x4ad   : > { %v2922_v31 = vpop.f32.mrf.mxu1  ;;  %v8914_v41 = vor.u32 %v9892_v2, %v8911_v53 }
 0x4ae   : > { %v12257_v58 = vadd.f32 %v3038_v3, %v2980_v63  ;;  %v2923_v56 = vadd.f32 %v2922_v31, %v2863_v1  ;;  %v9860_v3 = vld [vmem:[%s11346_s30 + $0x2e4] sm:$0xf] }
 0x4af   : > { %v8786_v21 = vor.u32 %v9860_v3, %v8783_v59  ;;  %4352 = vmatpush.bf16.msrb.mxu3 %v8914_v41 }
 0x4b0   : > { %14072 = vst [vmem:[#allocation58_spill] sm:$0xff] %v12257_v58 }
 0x4b1   : > { %4293 = vmatpush.bf16.msrb.mxu2 %v8786_v21 }
 0x4b3   : > { %v2981_v62 = vpop.f32.mrf.mxu2 }
 0x4b4   : > { %v2982_v23 = vadd.f32 %v2981_v62, %v2923_v56  ;;  %v3040_v54 = vpop.f32.mrf.mxu3  ;;  %v3052_v26 = vpop.f32.mrf.mxu0 }
 0x4b5   : > { %v3111_v61 = vpop.f32.mrf.mxu1 }
 0x4b6   : > { %v12259_v6 = vadd.f32 %v3040_v54, %v2982_v23  ;;  %v3112_v4 = vadd.f32 %v3111_v61, %v3052_v26  ;;  %v9796_v26 = vld [vmem:[%s11346_s30 + $0xe4] sm:$0xf]  ;;  %v8527_v61 = vld [vmem:[%s11346_s30 + $0xf0] sm:$0xf0] }
 0x4b7   : > { %3091 = vmatmul.bf16.gmra.mxu0 %v11805_v5  ;;  %3150 = vmatmul.bf16.gmra.mxu1 %v11807_v7  ;;  %v8530_v58 = vor.u32 %v9796_v26, %v8527_v61  ;;  %v9792_v26 = vld [vmem:[%s11346_s30 + $0xc4] sm:$0xf]  ;;  %v8511_v61 = vld [vmem:[%s11346_s30 + $0xd0] sm:$0xf0] }
 0x4b8   : > { %14073 = vst [vmem:[#allocation59_spill] sm:$0xff] %v12259_v6  ;;  %3209 = vmatmul.bf16.gmra.mxu2 %v11809_v8  ;;  %v9828_v6 = vld [vmem:[%s11346_s30 + $0x1e4] sm:$0xf] }
 0x4b9   : > { %3268 = vmatmul.bf16.gmra.mxu3 %v11811_v22  ;;  %v8658_v0 = vor.u32 %v9828_v6, %v8655_v25  ;;  %4175 = vmatpush.bf16.msrb.mxu0 %v8530_v58 }
 0x4bb   : > { %v3170_v23 = vpop.f32.mrf.mxu2  ;;  %4234 = vmatpush.bf16.msrb.mxu1 %v8658_v0 }
 0x4bc   : > { %v3171_v63 = vadd.f32 %v3170_v23, %v3112_v4  ;;  %v3229_v1 = vpop.f32.mrf.mxu3  ;;  %v3054_v31 = vpop.f32.mrf.mxu0 }
 0x4bd   : > { %v3113_v56 = vpop.f32.mrf.mxu1 }
 0x4be   : > { %v12269_v62 = vadd.f32 %v3229_v1, %v3171_v63  ;;  %v3114_v54 = vadd.f32 %v3113_v56, %v3054_v31  ;;  %v9856_v1 = vld [vmem:[%s11346_s30 + $0x2c4] sm:$0xf]  ;;  %v8767_v31 = vld [vmem:[%s11346_s30 + $0x2d0] sm:$0xf0] }
 0x4bf   : > { %v8770_v56 = vor.u32 %v9856_v1, %v8767_v31 }
 0x4c0   : > { %14074 = vst [vmem:[#allocation60_spill] sm:$0xff] %v12269_v62 }
 0x4c1   : > { %4294 = vmatpush.bf16.msrb.mxu2 %v8770_v56 }
 0x4c3   : > { %v3172_v3 = vpop.f32.mrf.mxu2 }
 0x4c4   : > { %v3173_v59 = vadd.f32 %v3172_v3, %v3114_v54  ;;  %v3231_v2 = vpop.f32.mrf.mxu3  ;;  %v3057_v4 = vpop.f32.mrf.mxu0  ;;  %v8895_v54 = vld [vmem:[%s11346_s30 + $0x3d0] sm:$0xf0]  ;;  %v9728_v3 = vld [vmem:[%s11344_s29 + $0x4] sm:$0xf] }
 0x4c5   : > { %v3116_v21 = vpop.f32.mrf.mxu1 }
 0x4c6   : > { %v12275_v53 = vadd.f32 %v3231_v2, %v3173_v59  ;;  %v3117_v23 = vadd.f32 %v3116_v21, %v3057_v4  ;;  %v8514_v2 = vor.u32 %v9792_v26, %v8511_v61  ;;  %v9824_v4 = vld [vmem:[%s11346_s30 + $0x1c4] sm:$0xf]  ;;  %v8639_v21 = vld [vmem:[%s11346_s30 + $0x1d0] sm:$0xf0] }
 0x4c7   : > { %3096 = vmatmul.bf16.gmra.mxu0 %v11835_v24  ;;  %3155 = vmatmul.bf16.gmra.mxu1 %v11837_v32  ;;  %v8397_v32 = vld [vmem:[%s11344_s29] sm:$0xf] }
 0x4c8   : > { %14075 = vst [vmem:[#allocation61_spill] sm:$0xff] %v12275_v53  ;;  %3214 = vmatmul.bf16.gmra.mxu2 %v11839_v40  ;;  %v9730_v40 = vld [vmem:[%s11344_s29 + $0xc] sm:$0xf0]  ;;  %4176 = vmatpush.bf16.msrb.mxu0 %v8514_v2 }
 0x4c9   : > { %3273 = vmatmul.bf16.gmra.mxu3 %v11841_v43  ;;  %v9888_v43 = vld [vmem:[%s11346_s30 + $0x3c4] sm:$0xf]  ;;  %v12299_v53 = vor.u32 %v9730_v40, %v8397_v32 }
 0x4ca   : > { %v8898_v59 = vor.u32 %v9888_v43, %v8895_v54 }
 0x4cb   : > { %v3175_v0 = vpop.f32.mrf.mxu2 }
 0x4cc   : > { %v3176_v25 = vadd.f32 %v3175_v0, %v3117_v23  ;;  %v3234_v6 = vpop.f32.mrf.mxu3  ;;  %v3059_v58 = vpop.f32.mrf.mxu0  ;;  %v8399_v23 = vld [vmem:[%s11344_s29 + $0x10] sm:$0xf0]  ;;  %v8405_v0 = vld [vmem:[%s11344_s29 + $0x8] sm:$0xf]  ;;  %4353 = vmatpush.bf16.msrb.mxu3 %v8898_v59 }
 0x4cd   : > { %v3118_v41 = vpop.f32.mrf.mxu1  ;;  %v12301_v43 = vor.u32 %v9728_v3, %v8399_v23  ;;  %v9884_v23 = vld [vmem:[%s11346_s30 + $0x3a4] sm:$0xf] }
 0x4ce   : > { %v12281_v63 = vadd.f32 %v3234_v6, %v3176_v25  ;;  %v3119_v24 = vadd.f32 %v3118_v41, %v3059_v58  ;;  %v9731_v25 = vld [vmem:[%s11344_s29 + $0x14] sm:$0xf0]  ;;  %v8642_v6 = vor.u32 %v9824_v4, %v8639_v21  ;;  %v9729_v58 = vld [vmem:[%s11344_s29 + $0xc] sm:$0xf]  ;;  %v8407_v41 = vld [vmem:[%s11344_s29 + $0x18] sm:$0xf0] }
 0x4cf   : > { %v12303_v54 = vor.u32 %v9731_v25, %v8405_v0  ;;  %v12305_v56 = vor.u32 %v9729_v58, %v8407_v41  ;;  %v9852_v21 = vld [vmem:[%s11346_s30 + $0x2a4] sm:$0xf]  ;;  %v8879_v25 = vld [vmem:[%s11346_s30 + $0x3b0] sm:$0xf0] }
 0x4d0   : > { %14076 = vst [vmem:[#allocation62_spill] sm:$0xff] %v12281_v63  ;;  %4235 = vmatpush.bf16.msrb.mxu1 %v8642_v6  ;;  %v8882_v6 = vor.u32 %v9884_v23, %v8879_v25 }
 0x4d2   : > { %4354 = vmatpush.bf16.msrb.mxu3 %v8882_v6 }
 0x4d3   : > { %v3177_v63 = vpop.f32.mrf.mxu2 }
 0x4d4   : > { %v3178_v1 = vadd.f32 %v3177_v63, %v3119_v24  ;;  %v3236_v31 = vpop.f32.mrf.mxu3  ;;  %v3062_v62 = vpop.f32.mrf.mxu0 }
 0x4d5   : > { %v3121_v26 = vpop.f32.mrf.mxu1 }
 0x4d6   : > { %v12307_v61 = vadd.f32 %v3236_v31, %v3178_v1  ;;  %v3122_v59 = vadd.f32 %v3121_v26, %v3062_v62  ;;  %v8751_v62 = vld [vmem:[%s11346_s30 + $0x2b0] sm:$0xf0] }
 0x4d7   : > { %3947 = vmatmul.bf16.vlgmr.msra.gmra.mxu0 %v12299_v53  ;;  %4006 = vmatmul.bf16.vlgmr.msra.gmra.mxu1 %v12301_v43  ;;  %v8754_v0 = vor.u32 %v9852_v21, %v8751_v62  ;;  %v8623_v21 = vld [vmem:[%s11346_s30 + $0x1b0] sm:$0xf0] }
 0x4d8   : > { %14077 = vst [vmem:[#allocation63_spill] sm:$0xff] %v12307_v61  ;;  %4065 = vmatmul.bf16.vlgmr.msra.gmra.mxu2 %v12303_v54 }
 0x4d9   : > { %4124 = vmatmul.bf16.vlgmr.msra.gmra.mxu3 %v12305_v56  ;;  %4295 = vmatpush.bf16.msrb.mxu2 %v8754_v0 }
 0x4db   : > { %v3180_v63 = vpop.f32.mrf.mxu2 }
 0x4dc   : > { %v3181_v24 = vadd.f32 %v3180_v63, %v3122_v59  ;;  %v3239_v32 = vpop.f32.mrf.mxu3  ;;  %v3064_v40 = vpop.f32.mrf.mxu0 }
 0x4dd   : > { %v3123_v3 = vpop.f32.mrf.mxu1 }
 0x4de   : > { %v12313_v2 = vadd.f32 %v3239_v32, %v3181_v24  ;;  %v3124_v4 = vadd.f32 %v3123_v3, %v3064_v40  ;;  %v9788_v24 = vld [vmem:[%s11346_s30 + $0xa4] sm:$0xf]  ;;  %v8495_v32 = vld [vmem:[%s11346_s30 + $0xb0] sm:$0xf0] }
 0x4df   : > { %v9820_v40 = vld [vmem:[%s11346_s30 + $0x1a4] sm:$0xf]  ;;  %v8498_v3 = vor.u32 %v9788_v24, %v8495_v32 }
 0x4e0   : > { %14078 = vst [vmem:[#allocation64_spill] sm:$0xff] %v12313_v2  ;;  %v8626_v62 = vor.u32 %v9820_v40, %v8623_v21  ;;  %v9848_v21 = vld [vmem:[%s11346_s30 + $0x284] sm:$0xf]  ;;  %v8591_v2 = vld [vmem:[%s11346_s30 + $0x170] sm:$0xf0] }
 0x4e1   : > { %4177 = vmatpush.bf16.msrb.mxu0 %v8498_v3 }
 0x4e2   : > { %4236 = vmatpush.bf16.msrb.mxu1 %v8626_v62  ;;  %v9880_v62 = vld [vmem:[%s11346_s30 + $0x384] sm:$0xf] }
 0x4e3   : > { %v3182_v58 = vpop.f32.mrf.mxu2 }
 0x4e4   : > { %v3183_v41 = vadd.f32 %v3182_v58, %v3124_v4  ;;  %v3241_v1 = vpop.f32.mrf.mxu3  ;;  %v3067_v31 = vpop.f32.mrf.mxu0 }
 0x4e5   : > { %v3126_v26 = vpop.f32.mrf.mxu1 }
 0x4e6   : > { %v12319_v59 = vadd.f32 %v3241_v1, %v3183_v41  ;;  %v3127_v63 = vadd.f32 %v3126_v26, %v3067_v31 }
 0x4e7   : > { %3952 = vmatmul.bf16.gmra.mxu0 %v11588_v33  ;;  %4011 = vmatmul.bf16.gmra.mxu1 %v11593_v38 }
 0x4e8   : > { %14079 = vst [vmem:[#allocation65_spill] sm:$0xff] %v12319_v59  ;;  %4070 = vmatmul.bf16.gmra.mxu2 %v11595_v39 }
 0x4e9   : > { %4129 = vmatmul.bf16.gmra.mxu3 %v11599_v42 }
 0x4eb   : > { %v3185_v4 = vpop.f32.mrf.mxu2 }
 0x4ec   : > { %v3186_v23 = vadd.f32 %v3185_v4, %v3127_v63  ;;  %v3244_v0 = vpop.f32.mrf.mxu3  ;;  %v3069_v25 = vpop.f32.mrf.mxu0  ;;  %v8735_v63 = vld [vmem:[%s11346_s30 + $0x290] sm:$0xf0] }
 0x4ed   : > { %v3128_v6 = vpop.f32.mrf.mxu1  ;;  %v8738_v4 = vor.u32 %v9848_v21, %v8735_v63 }
 0x4ee   : > { %v12329_v58 = vadd.f32 %v3244_v0, %v3186_v23  ;;  %v3129_v41 = vadd.f32 %v3128_v6, %v3069_v25  ;;  %v8863_v23 = vld [vmem:[%s11346_s30 + $0x390] sm:$0xf0]  ;;  %v9784_v25 = vld [vmem:[%s11346_s30 + $0x84] sm:$0xf] }
 0x4ef   : > { %v8866_v0 = vor.u32 %v9880_v62, %v8863_v23  ;;  %4296 = vmatpush.bf16.msrb.mxu2 %v8738_v4  ;;  %v8479_v6 = vld [vmem:[%s11346_s30 + $0x90] sm:$0xf0] }
 0x4f0   : > { %14080 = vst [vmem:[#allocation66_spill] sm:$0xff] %v12329_v58 }
 0x4f1   : > { %4355 = vmatpush.bf16.msrb.mxu3 %v8866_v0 }
 0x4f3   : > { %v3187_v1 = vpop.f32.mrf.mxu2 }
 0x4f4   : > { %v3188_v31 = vadd.f32 %v3187_v1, %v3129_v41  ;;  %v3246_v26 = vpop.f32.mrf.mxu3  ;;  %v3072_v24 = vpop.f32.mrf.mxu0  ;;  %v9816_v41 = vld [vmem:[%s11346_s30 + $0x184] sm:$0xf]  ;;  %v8482_v1 = vor.u32 %v9784_v25, %v8479_v6 }
 0x4f5   : > { %v3131_v32 = vpop.f32.mrf.mxu1 }
 0x4f6   : > { %v12331_v40 = vadd.f32 %v3246_v26, %v3188_v31  ;;  %v3132_v3 = vadd.f32 %v3131_v32, %v3072_v24  ;;  %v8607_v31 = vld [vmem:[%s11346_s30 + $0x190] sm:$0xf0]  ;;  %4178 = vmatpush.bf16.msrb.mxu0 %v8482_v1  ;;  %v9876_v1 = vld [vmem:[%s11346_s30 + $0x364] sm:$0xf] }
 0x4f7   : > { %3957 = vmatmul.bf16.gmra.mxu0 %v11625_v9  ;;  %4016 = vmatmul.bf16.gmra.mxu1 %v11627_v10  ;;  %v8610_v24 = vor.u32 %v9816_v41, %v8607_v31  ;;  %v8719_v41 = vld [vmem:[%s11346_s30 + $0x270] sm:$0xf0] }
 0x4f8   : > { %14081 = vst [vmem:[#allocation67_spill] sm:$0xff] %v12331_v40  ;;  %4075 = vmatmul.bf16.gmra.mxu2 %v11629_v11 }
 0x4f9   : > { %4134 = vmatmul.bf16.gmra.mxu3 %v11631_v12  ;;  %4237 = vmatpush.bf16.msrb.mxu1 %v8610_v24 }
 0x4fb   : > { %v3190_v26 = vpop.f32.mrf.mxu2 }
 0x4fc   : > { %v3191_v32 = vadd.f32 %v3190_v26, %v3132_v3  ;;  %v3249_v40 = vpop.f32.mrf.mxu3  ;;  %v3074_v21 = vpop.f32.mrf.mxu0  ;;  %v8847_v26 = vld [vmem:[%s11346_s30 + $0x370] sm:$0xf0] }
 0x4fd   : > { %v3133_v63 = vpop.f32.mrf.mxu1  ;;  %v8850_v24 = vor.u32 %v9876_v1, %v8847_v26 }
 0x4fe   : > { %v12345_v62 = vadd.f32 %v3249_v40, %v3191_v32  ;;  %v3134_v4 = vadd.f32 %v3133_v63, %v3074_v21  ;;  %v9844_v40 = vld [vmem:[%s11346_s30 + $0x264] sm:$0xf] }
 0x4ff   : > { %v8722_v31 = vor.u32 %v9844_v40, %v8719_v41  ;;  %4356 = vmatpush.bf16.msrb.mxu3 %v8850_v24 }
 0x500   : > { %14082 = vst [vmem:[#allocation68_spill] sm:$0xff] %v12345_v62 }
 0x501   : > { %4297 = vmatpush.bf16.msrb.mxu2 %v8722_v31 }
 0x503   : > { %v3192_v23 = vpop.f32.mrf.mxu2 }
 0x504   : > { %v3193_v58 = vadd.f32 %v3192_v23, %v3134_v4  ;;  %v3251_v0 = vpop.f32.mrf.mxu3  ;;  %v3077_v25 = vpop.f32.mrf.mxu0 }
 0x505   : > { %v3136_v6 = vpop.f32.mrf.mxu1 }
 0x506   : > { %v12347_v59 = vadd.f32 %v3251_v0, %v3193_v58  ;;  %v3137_v3 = vadd.f32 %v3136_v6, %v3077_v25  ;;  %v9780_v25 = vld [vmem:[%s11346_s30 + $0x64] sm:$0xf]  ;;  %v8463_v6 = vld [vmem:[%s11346_s30 + $0x70] sm:$0xf0] }
 0x507   : > { %3962 = vmatmul.bf16.gmra.mxu0 %v11649_v27  ;;  %4021 = vmatmul.bf16.gmra.mxu1 %v11651_v28  ;;  %v8466_v62 = vor.u32 %v9780_v25, %v8463_v6  ;;  %v8831_v6 = vld [vmem:[%s11346_s30 + $0x350] sm:$0xf0] }
 0x508   : > { %14083 = vst [vmem:[#allocation69_spill] sm:$0xff] %v12347_v59  ;;  %4080 = vmatmul.bf16.gmra.mxu2 %v11653_v29  ;;  %v9812_v59 = vld [vmem:[%s11346_s30 + $0x164] sm:$0xf] }
 0x509   : > { %4139 = vmatmul.bf16.gmra.mxu3 %v11655_v30  ;;  %v8594_v61 = vor.u32 %v9812_v59, %v8591_v2  ;;  %4179 = vmatpush.bf16.msrb.mxu0 %v8466_v62 }
 0x50b   : > { %v3195_v58 = vpop.f32.mrf.mxu2  ;;  %4238 = vmatpush.bf16.msrb.mxu1 %v8594_v61 }
 0x50c   : > { %v3196_v32 = vadd.f32 %v3195_v58, %v3137_v3  ;;  %v3254_v21 = vpop.f32.mrf.mxu3  ;;  %v3079_v63 = vpop.f32.mrf.mxu0 }
 0x50d   : > { %v3138_v4 = vpop.f32.mrf.mxu1 }
 0x50e   : > { %v12357_v23 = vadd.f32 %v3254_v21, %v3196_v32  ;;  %v3139_v0 = vadd.f32 %v3138_v4, %v3079_v63  ;;  %v9840_v63 = vld [vmem:[%s11346_s30 + $0x244] sm:$0xf]  ;;  %v8703_v4 = vld [vmem:[%s11346_s30 + $0x250] sm:$0xf0] }
 0x50f   : > { %v8706_v25 = vor.u32 %v9840_v63, %v8703_v4 }
 0x511   : > { %4298 = vmatpush.bf16.msrb.mxu2 %v8706_v25 }
 0x513   : > { %v3197_v40 = vpop.f32.mrf.mxu2 }
 0x514   : > { %v3198_v41 = vadd.f32 %v3197_v40, %v3139_v0  ;;  %v3256_v1 = vpop.f32.mrf.mxu3  ;;  %v3082_v3 = vpop.f32.mrf.mxu0  ;;  %v9872_v0 = vld [vmem:[%s11346_s30 + $0x344] sm:$0xf] }
 0x515   : > { %v3141_v31 = vpop.f32.mrf.mxu1  ;;  %v9776_v40 = vld [vmem:[%s11346_s30 + $0x44] sm:$0xf] }
 0x516   : > { %v12363_v26 = vadd.f32 %v3256_v1, %v3198_v41  ;;  %v3142_v58 = vadd.f32 %v3141_v31, %v3082_v3  ;;  %v8447_v41 = vld [vmem:[%s11346_s30 + $0x50] sm:$0xf0]  ;;  %v8834_v1 = vor.u32 %v9872_v0, %v8831_v6  ;;  %v9808_v31 = vld [vmem:[%s11346_s30 + $0x144] sm:$0xf] }
 0x517   : > { %3967 = vmatmul.bf16.gmra.mxu0 %v11673_v49  ;;  %4026 = vmatmul.bf16.gmra.mxu1 %v11675_v50  ;;  %v8450_v3 = vor.u32 %v9776_v40, %v8447_v41 }
 0x518   : > { %14084 = vst [vmem:[#allocation70_spill] sm:$0xff] %v12363_v26  ;;  %4085 = vmatmul.bf16.gmra.mxu2 %v11677_v51  ;;  %v8575_v26 = vld [vmem:[%s11346_s30 + $0x150] sm:$0xf0]  ;;  %4357 = vmatpush.bf16.msrb.mxu3 %v8834_v1  ;;  %v9836_v1 = vld [vmem:[%s11346_s30 + $0x224] sm:$0xf] }
 0x519   : > { %4144 = vmatmul.bf16.gmra.mxu3 %v11679_v52  ;;  %4180 = vmatpush.bf16.msrb.mxu0 %v8450_v3  ;;  %v8687_v3 = vld [vmem:[%s11346_s30 + $0x230] sm:$0xf0] }
 0x51b   : > { %v3200_v61 = vpop.f32.mrf.mxu2 }
 0x51c   : > { %v3201_v2 = vadd.f32 %v3200_v61, %v3142_v58  ;;  %v3259_v59 = vpop.f32.mrf.mxu3  ;;  %v3084_v62 = vpop.f32.mrf.mxu0  ;;  %v8578_v58 = vor.u32 %v9808_v31, %v8575_v26  ;;  %v9868_v31 = vld [vmem:[%s11346_s30 + $0x324] sm:$0xf] }
 0x51d   : > { %v3143_v24 = vpop.f32.mrf.mxu1 }
 0x51e   : > { %v12369_v32 = vadd.f32 %v3259_v59, %v3201_v2  ;;  %v3144_v21 = vadd.f32 %v3143_v24, %v3084_v62  ;;  %4239 = vmatpush.bf16.msrb.mxu1 %v8578_v58  ;;  %v8690_v58 = vor.u32 %v9836_v1, %v8687_v3  ;;  %v8559_v1 = vld [vmem:[%s11346_s30 + $0x130] sm:$0xf0] }
 0x520   : > { %4299 = vmatpush.bf16.msrb.mxu2 %v8690_v58 }
 0x523   : > { %v3202_v61 = vpop.f32.mrf.mxu2 }
 0x524   : > { %v3203_v2 = vadd.f32 %v3202_v61, %v3144_v21  ;;  %v3261_v59 = vpop.f32.mrf.mxu3  ;;  %v3087_v62 = vpop.f32.mrf.mxu0  ;;  %v8815_v61 = vld [vmem:[%s11346_s30 + $0x330] sm:$0xf0] }
 0x525   : > { %v3146_v24 = vpop.f32.mrf.mxu1 }
 0x526   : > { %v12379_v63 = vadd.f32 %v3261_v59, %v3203_v2  ;;  %v3147_v4 = vadd.f32 %v3146_v24, %v3087_v62  ;;  %v8818_v2 = vor.u32 %v9868_v31, %v8815_v61 }
 0x527   : > { %3972 = vmatmul.bf16.gmra.mxu0 %v11701_v13  ;;  %4031 = vmatmul.bf16.gmra.mxu1 %v11703_v14 }
 0x528   : > { %14085 = vst [vmem:[#allocation71_spill] sm:$0xff] %v12379_v63  ;;  %4090 = vmatmul.bf16.gmra.mxu2 %v11705_v15  ;;  %4358 = vmatpush.bf16.msrb.mxu3 %v8818_v2 }
 0x529   : > { %4149 = vmatmul.bf16.gmra.mxu3 %v11707_v16 }
 0x52b   : > { %v3205_v26 = vpop.f32.mrf.mxu2 }
 0x52c   : > { %v3206_v21 = vadd.f32 %v3205_v26, %v3147_v4  ;;  %v3264_v0 = vpop.f32.mrf.mxu3  ;;  %v3089_v25 = vpop.f32.mrf.mxu0 }
 0x52d   : > { %v3148_v6 = vpop.f32.mrf.mxu1 }
 0x52e   : > { %v12385_v40 = vadd.f32 %v3264_v0, %v3206_v21  ;;  %v3149_v41 = vadd.f32 %v3148_v6, %v3089_v25  ;;  %v9772_v25 = vld [vmem:[%s11346_s30 + $0x24] sm:$0xf]  ;;  %v8431_v6 = vld [vmem:[%s11346_s30 + $0x30] sm:$0xf0] }
 0x52f   : > { %v8434_v63 = vor.u32 %v9772_v25, %v8431_v6 }
 0x530   : > { %14086 = vst [vmem:[#allocation72_spill] sm:$0xff] %v12385_v40  ;;  %v9804_v40 = vld [vmem:[%s11346_s30 + $0x124] sm:$0xf] }
 0x531   : > { %v8562_v3 = vor.u32 %v9804_v40, %v8559_v1  ;;  %4181 = vmatpush.bf16.msrb.mxu0 %v8434_v63  ;;  %v8671_v1 = vld [vmem:[%s11346_s30 + $0x210] sm:$0xf0] }
 0x533   : > { %v3207_v59 = vpop.f32.mrf.mxu2  ;;  %4240 = vmatpush.bf16.msrb.mxu1 %v8562_v3 }
 0x534   : > { %v3208_v62 = vadd.f32 %v3207_v59, %v3149_v41  ;;  %v3266_v24 = vpop.f32.mrf.mxu3  ;;  %v3092_v4 = vpop.f32.mrf.mxu0 }
 0x535   : > { %v3151_v26 = vpop.f32.mrf.mxu1 }
 0x536   : > { %v12391_v21 = vadd.f32 %v3266_v24, %v3208_v62  ;;  %v3152_v0 = vadd.f32 %v3151_v26, %v3092_v4 }
 0x537   : > { %3977 = vmatmul.bf16.gmra.mxu0 %v11729_v45  ;;  %4036 = vmatmul.bf16.gmra.mxu1 %v11731_v46 }
 0x538   : > { %14087 = vst [vmem:[#allocation73_spill] sm:$0xff] %v12391_v21  ;;  %4095 = vmatmul.bf16.gmra.mxu2 %v11733_v47 }
 0x539   : > { %4154 = vmatmul.bf16.gmra.mxu3 %v11735_v48 }
 0x53b   : > { %v3210_v41 = vpop.f32.mrf.mxu2 }
 0x53c   : > { %v3211_v31 = vadd.f32 %v3210_v41, %v3152_v0  ;;  %v3269_v58 = vpop.f32.mrf.mxu3  ;;  %v3094_v61 = vpop.f32.mrf.mxu0  ;;  %v9832_v0 = vld [vmem:[%s11346_s30 + $0x204] sm:$0xf] }
 0x53d   : > { %v3153_v2 = vpop.f32.mrf.mxu1  ;;  %v8674_v3 = vor.u32 %v9832_v0, %v8671_v1  ;;  %v9864_v41 = vld [vmem:[%s11346_s30 + $0x304] sm:$0xf] }
 0x53e   : > { %v12401_v59 = vadd.f32 %v3269_v58, %v3211_v31  ;;  %v3154_v62 = vadd.f32 %v3153_v2, %v3094_v61  ;;  %v8799_v31 = vld [vmem:[%s11346_s30 + $0x310] sm:$0xf0]  ;;  %v9768_v61 = vld [vmem:[%s11346_s30 + $0x4] sm:$0xf] }
 0x53f   : > { %v8802_v58 = vor.u32 %v9864_v41, %v8799_v31  ;;  %4300 = vmatpush.bf16.msrb.mxu2 %v8674_v3  ;;  %v8415_v2 = vld [vmem:[%s11346_s30 + $0x10] sm:$0xf0] }
 0x540   : > { %14088 = vst [vmem:[#allocation74_spill] sm:$0xff] %v12401_v59 }
 0x541   : > { %4359 = vmatpush.bf16.msrb.mxu3 %v8802_v58 }
 0x543   : > { %v3212_v24 = vpop.f32.mrf.mxu2 }
 0x544   : > { %v3213_v4 = vadd.f32 %v3212_v24, %v3154_v62  ;;  %v3271_v26 = vpop.f32.mrf.mxu3  ;;  %v3097_v40 = vpop.f32.mrf.mxu0  ;;  %v9800_v62 = vld [vmem:[%s11346_s30 + $0x104] sm:$0xf]  ;;  %v8418_v24 = vor.u32 %v9768_v61, %v8415_v2 }
 0x545   : > { %v3156_v63 = vpop.f32.mrf.mxu1 }
 0x546   : > { %v12403_v25 = vadd.f32 %v3271_v26, %v3213_v4  ;;  %v3157_v6 = vadd.f32 %v3156_v63, %v3097_v40  ;;  %v8543_v4 = vld [vmem:[%s11346_s30 + $0x110] sm:$0xf0]  ;;  %4182 = vmatpush.bf16.msrb.mxu0 %v8418_v24  ;;  %v9863_v24 = vld [vmem:[%s11346_s30 + $0x2f4] sm:$0xf0] }
 0x547   : > { %3982 = vmatmul.bf16.gmra.mxu0 %v11757_v17  ;;  %4041 = vmatmul.bf16.gmra.mxu1 %v11759_v18  ;;  %v8546_v40 = vor.u32 %v9800_v62, %v8543_v4 }
 0x548   : > { %14089 = vst [vmem:[#allocation75_spill] sm:$0xff] %v12403_v25  ;;  %4100 = vmatmul.bf16.gmra.mxu2 %v11761_v19 }
 0x549   : > { %4159 = vmatmul.bf16.gmra.mxu3 %v11763_v20  ;;  %4241 = vmatpush.bf16.msrb.mxu1 %v8546_v40 }
 0x54b   : > { %v3215_v26 = vpop.f32.mrf.mxu2 }
 0x54c   : > { %v3216_v63 = vadd.f32 %v3215_v26, %v3157_v6  ;;  %v3274_v0 = vpop.f32.mrf.mxu3  ;;  %v3099_v1 = vpop.f32.mrf.mxu0  ;;  %v8917_v26 = vld [vmem:[%s11346_s30 + $0x3e8] sm:$0xf] }
 0x54d   : > { %v3158_v25 = vpop.f32.mrf.mxu1 }
 0x54e   : > { %v12417_v41 = vadd.f32 %v3274_v0, %v3216_v63  ;;  %v3159_v3 = vadd.f32 %v3158_v25, %v3099_v1  ;;  %v8789_v25 = vld [vmem:[%s11346_s30 + $0x2e8] sm:$0xf] }
 0x54f   : > { %v8790_v40 = vor.u32 %v9863_v24, %v8789_v25  ;;  %v9831_v25 = vld [vmem:[%s11346_s30 + $0x1f4] sm:$0xf0] }
 0x550   : > { %14090 = vst [vmem:[#allocation76_spill] sm:$0xff] %v12417_v41 }
 0x551   : > { %4529 = vmatpush.bf16.msra.mxu2 %v8790_v40 }
 0x553   : > { %v3217_v31 = vpop.f32.mrf.mxu2 }
 0x554   : > { %v3218_v59 = vadd.f32 %v3217_v31, %v3159_v3  ;;  %v3276_v58 = vpop.f32.mrf.mxu3  ;;  %v3948_v61 = vpop.f32.mrf.mxu0 }
 0x555   : > { %v3949_v2 = vadd.f32 %v3948_v61, %v11821_v55  ;;  %v4007_v62 = vpop.f32.mrf.mxu1  ;;  %v9895_v55 = vld [vmem:[%s11346_s30 + $0x3f4] sm:$0xf0] }
 0x556   : > { %v12420_v6 = vadd.f32 %v3276_v58, %v3218_v59  ;;  %v8918_v63 = vor.u32 %v9895_v55, %v8917_v26 }
 0x557   : > { %v4008_v4 = vadd.f32 %v4007_v62, %v3949_v2  ;;  %3987 = vmatmul.bf16.gmra.mxu0 %v11777_v34  ;;  %4046 = vmatmul.bf16.gmra.mxu1 %v11779_v35  ;;  %v8533_v2 = vld [vmem:[%s11346_s30 + $0xe8] sm:$0xf]  ;;  %v9799_v62 = vld [vmem:[%s11346_s30 + $0xf4] sm:$0xf0] }
 0x558   : > { %14091 = vst [vmem:[#allocation77_spill] sm:$0xff] %v12420_v6  ;;  %4105 = vmatmul.bf16.gmra.mxu2 %v11781_v36  ;;  %4588 = vmatpush.bf16.msra.mxu3 %v8918_v63  ;;  %v8661_v6 = vld [vmem:[%s11346_s30 + $0x1e8] sm:$0xf]  ;;  %v8534_v21 = vor.u32 %v9799_v62, %v8533_v2  ;;  %v9859_v2 = vld [vmem:[%s11346_s30 + $0x2d4] sm:$0xf0] }
 0x559   : > { %4164 = vmatmul.bf16.gmra.mxu3 %v11783_v37  ;;  %v8662_v24 = vor.u32 %v9831_v25, %v8661_v6 }
 0x55a   : > { %4411 = vmatpush.bf16.msra.mxu0 %v8534_v21 }
 0x55b   : > { %v4066_v59 = vpop.f32.mrf.mxu2  ;;  %4470 = vmatpush.bf16.msra.mxu1 %v8662_v24  ;;  %v8901_v24 = vld [vmem:[%s11346_s30 + $0x3c8] sm:$0xf] }
 0x55c   : > { %v4067_v0 = vadd.f32 %v4066_v59, %v4008_v4  ;;  %v4125_v1 = vpop.f32.mrf.mxu3  ;;  %v3950_v3 = vpop.f32.mrf.mxu0 }
 0x55d   : > { %v3951_v31 = vadd.f32 %v3950_v3, %v11843_v44  ;;  %v4009_v58 = vpop.f32.mrf.mxu1 }
 0x55e   : > { %v12431_v61 = vadd.f32 %v4125_v1, %v4067_v0 }
 0x55f   : > { %v4010_v41 = vadd.f32 %v4009_v58, %v3951_v31  ;;  %v8773_v58 = vld [vmem:[%s11346_s30 + $0x2c8] sm:$0xf] }
 0x560   : > { %v8774_v25 = vor.u32 %v9859_v2, %v8773_v58 }
 0x562   : > { %4530 = vmatpush.bf16.msra.mxu2 %v8774_v25 }
 0x563   : > { %v4068_v26 = vpop.f32.mrf.mxu2 }
 0x564   : > { %v4069_v4 = vadd.f32 %v4068_v26, %v4010_v41  ;;  %v4127_v55 = vpop.f32.mrf.mxu3  ;;  %v3953_v59 = vpop.f32.mrf.mxu0  ;;  %v9891_v26 = vld [vmem:[%s11346_s30 + $0x3d4] sm:$0xf0] }
 0x565   : > { %v3954_v44 = vadd.f32 %v3953_v59, %v11849_v60  ;;  %v4012_v40 = vpop.f32.mrf.mxu1  ;;  %v9795_v59 = vld [vmem:[%s11346_s30 + $0xd4] sm:$0xf0] }
 0x566   : > { %v12438_v63 = vadd.f32 %v4127_v55, %v4069_v4  ;;  %v8517_v4 = vld [vmem:[%s11346_s30 + $0xc8] sm:$0xf]  ;;  %v8902_v55 = vor.u32 %v9891_v26, %v8901_v24 }
 0x567   : > { %v4013_v0 = vadd.f32 %v4012_v40, %v3954_v44  ;;  %3992 = vmatmul.bf16.gmra.mxu0 %v11805_v5  ;;  %4051 = vmatmul.bf16.gmra.mxu1 %v11807_v7  ;;  %v8645_v44 = vld [vmem:[%s11346_s30 + $0x1c8] sm:$0xf]  ;;  %v9827_v40 = vld [vmem:[%s11346_s30 + $0x1d4] sm:$0xf0] }
 0x568   : > { %14092 = vst [vmem:[#allocation78_spill] sm:$0xff] %v12438_v63  ;;  %4110 = vmatmul.bf16.gmra.mxu2 %v11809_v8  ;;  %4589 = vmatpush.bf16.msra.mxu3 %v8902_v55  ;;  %v14096_v26 = vld [vmem:[#allocation5_spill] sm:$0xff] }
 0x569   : > { %4169 = vmatmul.bf16.gmra.mxu3 %v11811_v22 }
 0x56b   : > { %v4071_v21 = vpop.f32.mrf.mxu2 }
 0x56c   : > { %v4072_v60 = vadd.f32 %v4071_v21, %v4013_v0  ;;  %v4130_v41 = vpop.f32.mrf.mxu3  ;;  %v3955_v6 = vpop.f32.mrf.mxu0  ;;  %v8518_v0 = vor.u32 %v9795_v59, %v8517_v4  ;;  %v8646_v21 = vor.u32 %v9827_v40, %v8645_v44  ;;  %v8757_v40 = vld [vmem:[%s11346_s30 + $0x2a8] sm:$0xf] }
 0x56d   : > { %v3956_v1 = vadd.f32 %v3955_v6, %v11859_v57  ;;  %v4014_v3 = vpop.f32.mrf.mxu1  ;;  %v14094_v6 = vld [vmem:[#allocation4_spill] sm:$0xff] }
 0x56e   : > { %v12445_v31 = vadd.f32 %v4130_v41, %v4072_v60  ;;  %4412 = vmatpush.bf16.msra.mxu0 %v8518_v0  ;;  %4471 = vmatpush.bf16.msra.mxu1 %v8646_v21  ;;  %v9855_v0 = vld [vmem:[%s11346_s30 + $0x2b4] sm:$0xf0]  ;;  %v8885_v21 = vld [vmem:[%s11346_s30 + $0x3a8] sm:$0xf] }
 0x56f   : > { %v4015_v62 = vadd.f32 %v4014_v3, %v3956_v1 }
 0x570   : > { %14093 = vst [vmem:[#allocation79_spill] sm:$0xff] %v12445_v31 }
 0x573   : > { %v4073_v63 = vpop.f32.mrf.mxu2 }
 0x574   : > { %v4074_v57 = vadd.f32 %v4073_v63, %v4015_v62  ;;  %v4132_v60 = vpop.f32.mrf.mxu3  ;;  %v3958_v41 = vpop.f32.mrf.mxu0 }
 0x575   : > { %v3959_v1 = vadd.f32 %v3958_v41, %v14094_v6  ;;  %v4017_v3 = vpop.f32.mrf.mxu1 }
 0x576   : > { %v12456_v58 = vadd.f32 %v4132_v60, %v4074_v57  ;;  %v8758_v57 = vor.u32 %v9855_v0, %v8757_v40  ;;  %v9887_v60 = vld [vmem:[%s11346_s30 + $0x3b4] sm:$0xf0] }
 0x577   : > { %v4018_v2 = vadd.f32 %v4017_v3, %v3959_v1  ;;  %4183 = vmatmul.bf16.vlgmr.msrb.gmra.mxu0 %v12299_v53  ;;  %4242 = vmatmul.bf16.vlgmr.msrb.gmra.mxu1 %v12301_v43  ;;  %v8886_v41 = vor.u32 %v9887_v60, %v8885_v21  ;;  %v9823_v0 = vld [vmem:[%s11346_s30 + $0x1b4] sm:$0xf0] }
 0x578   : > { %14095 = vst [vmem:[#allocation4_spill] sm:$0xff] %v12456_v58  ;;  %4301 = vmatmul.bf16.vlgmr.msrb.gmra.mxu2 %v12303_v54 }
 0x579   : > { %4360 = vmatmul.bf16.vlgmr.msrb.gmra.mxu3 %v12305_v56  ;;  %4531 = vmatpush.bf16.msra.mxu2 %v8758_v57 }
 0x57a   : > { %4590 = vmatpush.bf16.msra.mxu3 %v8886_v41 }
 0x57b   : > { %v4076_v63 = vpop.f32.mrf.mxu2 }
 0x57c   : > { %v4077_v62 = vadd.f32 %v4076_v63, %v4018_v2  ;;  %v4135_v25 = vpop.f32.mrf.mxu3  ;;  %v3960_v24 = vpop.f32.mrf.mxu0  ;;  %v14098_v63 = vld [vmem:[#allocation6_spill] sm:$0xff] }
 0x57d   : > { %v3961_v4 = vadd.f32 %v3960_v24, %v14096_v26  ;;  %v4019_v55 = vpop.f32.mrf.mxu1  ;;  %v8501_v26 = vld [vmem:[%s11346_s30 + $0xa8] sm:$0xf] }
 0x57e   : > { %v12463_v59 = vadd.f32 %v4135_v25, %v4077_v62 }
 0x57f   : > { %v4020_v44 = vadd.f32 %v4019_v55, %v3961_v4  ;;  %v9791_v4 = vld [vmem:[%s11346_s30 + $0xb4] sm:$0xf0]  ;;  %v8629_v55 = vld [vmem:[%s11346_s30 + $0x1a8] sm:$0xf] }
 0x580   : > { %14097 = vst [vmem:[#allocation5_spill] sm:$0xff] %v12463_v59  ;;  %v8502_v40 = vor.u32 %v9791_v4, %v8501_v26 }
 0x582   : > { %4413 = vmatpush.bf16.msra.mxu0 %v8502_v40 }
 0x583   : > { %v4078_v6 = vpop.f32.mrf.mxu2 }
 0x584   : > { %v4079_v1 = vadd.f32 %v4078_v6, %v4020_v44  ;;  %v4137_v3 = vpop.f32.mrf.mxu3  ;;  %v3963_v2 = vpop.f32.mrf.mxu0  ;;  %v8630_v44 = vor.u32 %v9823_v0, %v8629_v55  ;;  %v14100_v6 = vld [vmem:[#allocation7_spill] sm:$0xff]  ;;  %v14102_v55 = vld [vmem:[#allocation8_spill] sm:$0xff] }
 0x585   : > { %v3964_v62 = vadd.f32 %v3963_v2, %v14098_v63  ;;  %v4022_v25 = vpop.f32.mrf.mxu1 }
 0x586   : > { %v12470_v24 = vadd.f32 %v4137_v3, %v4079_v1  ;;  %4472 = vmatpush.bf16.msra.mxu1 %v8630_v44  ;;  %v8741_v44 = vld [vmem:[%s11346_s30 + $0x288] sm:$0xf] }
 0x587   : > { %v4023_v59 = vadd.f32 %v4022_v25, %v3964_v62  ;;  %4188 = vmatmul.bf16.gmra.mxu0 %v11588_v33  ;;  %4247 = vmatmul.bf16.gmra.mxu1 %v11593_v38 }
 0x588   : > { %14099 = vst [vmem:[#allocation6_spill] sm:$0xff] %v12470_v24  ;;  %4306 = vmatmul.bf16.gmra.mxu2 %v11595_v39 }
 0x589   : > { %4365 = vmatmul.bf16.gmra.mxu3 %v11599_v42 }
 0x58b   : > { %v4081_v21 = vpop.f32.mrf.mxu2 }
 0x58c   : > { %v4082_v57 = vadd.f32 %v4081_v21, %v4023_v59  ;;  %v4140_v60 = vpop.f32.mrf.mxu3  ;;  %v3965_v41 = vpop.f32.mrf.mxu0  ;;  %v9851_v21 = vld [vmem:[%s11346_s30 + $0x294] sm:$0xf0] }
 0x58d   : > { %v3966_v1 = vadd.f32 %v3965_v41, %v14100_v6  ;;  %v4024_v3 = vpop.f32.mrf.mxu1  ;;  %v9883_v6 = vld [vmem:[%s11346_s30 + $0x394] sm:$0xf0] }
 0x58e   : > { %v12481_v2 = vadd.f32 %v4140_v60, %v4082_v57  ;;  %v8742_v57 = vor.u32 %v9851_v21, %v8741_v44  ;;  %v8869_v60 = vld [vmem:[%s11346_s30 + $0x388] sm:$0xf] }
 0x58f   : > { %v4025_v63 = vadd.f32 %v4024_v3, %v3966_v1  ;;  %v8870_v1 = vor.u32 %v9883_v6, %v8869_v60  ;;  %v8485_v3 = vld [vmem:[%s11346_s30 + $0x88] sm:$0xf] }
 0x590   : > { %14101 = vst [vmem:[#allocation7_spill] sm:$0xff] %v12481_v2  ;;  %4532 = vmatpush.bf16.msra.mxu2 %v8742_v57  ;;  %v14104_v21 = vld [vmem:[#allocation9_spill] sm:$0xff] }
 0x591   : > { %4591 = vmatpush.bf16.msra.mxu3 %v8870_v1 }
 0x593   : > { %v4083_v62 = vpop.f32.mrf.mxu2 }
 0x594   : > { %v4084_v25 = vadd.f32 %v4083_v62, %v4025_v63  ;;  %v4142_v26 = vpop.f32.mrf.mxu3  ;;  %v3968_v4 = vpop.f32.mrf.mxu0  ;;  %v9787_v63 = vld [vmem:[%s11346_s30 + $0x94] sm:$0xf0]  ;;  %v8613_v62 = vld [vmem:[%s11346_s30 + $0x188] sm:$0xf] }
 0x595   : > { %v3969_v40 = vadd.f32 %v3968_v4, %v14102_v55  ;;  %v4027_v0 = vpop.f32.mrf.mxu1 }
 0x596   : > { %v12484_v59 = vadd.f32 %v4142_v26, %v4084_v25  ;;  %v8486_v25 = vor.u32 %v9787_v63, %v8485_v3  ;;  %v9819_v26 = vld [vmem:[%s11346_s30 + $0x194] sm:$0xf0] }
 0x597   : > { %v4028_v41 = vadd.f32 %v4027_v0, %v3969_v40  ;;  %4193 = vmatmul.bf16.gmra.mxu0 %v11625_v9  ;;  %4252 = vmatmul.bf16.gmra.mxu1 %v11627_v10  ;;  %v8614_v55 = vor.u32 %v9819_v26, %v8613_v62  ;;  %v14106_v62 = vld [vmem:[#allocation10_spill] sm:$0xff] }
 0x598   : > { %14103 = vst [vmem:[#allocation8_spill] sm:$0xff] %v12484_v59  ;;  %4311 = vmatmul.bf16.gmra.mxu2 %v11629_v11  ;;  %4414 = vmatpush.bf16.msra.mxu0 %v8486_v25 }
 0x599   : > { %4370 = vmatmul.bf16.gmra.mxu3 %v11631_v12  ;;  %4473 = vmatpush.bf16.msra.mxu1 %v8614_v55  ;;  %v8853_v55 = vld [vmem:[%s11346_s30 + $0x368] sm:$0xf] }
 0x59b   : > { %v4086_v4 = vpop.f32.mrf.mxu2 }
 0x59c   : > { %v4087_v40 = vadd.f32 %v4086_v4, %v4028_v41  ;;  %v4145_v0 = vpop.f32.mrf.mxu3  ;;  %v3970_v44 = vpop.f32.mrf.mxu0 }
 0x59d   : > { %v3971_v59 = vadd.f32 %v3970_v44, %v14104_v21  ;;  %v4029_v2 = vpop.f32.mrf.mxu1 }
 0x59e   : > { %v12499_v60 = vadd.f32 %v4145_v0, %v4087_v40  ;;  %v9879_v0 = vld [vmem:[%s11346_s30 + $0x374] sm:$0xf0] }
 0x59f   : > { %v4030_v57 = vadd.f32 %v4029_v2, %v3971_v59  ;;  %v8725_v2 = vld [vmem:[%s11346_s30 + $0x268] sm:$0xf]  ;;  %v9847_v59 = vld [vmem:[%s11346_s30 + $0x274] sm:$0xf0]  ;;  %v8854_v21 = vor.u32 %v9879_v0, %v8853_v55 }
 0x5a0   : > { %14105 = vst [vmem:[#allocation9_spill] sm:$0xff] %v12499_v60  ;;  %v8726_v40 = vor.u32 %v9847_v59, %v8725_v2  ;;  %v8597_v60 = vld [vmem:[%s11346_s30 + $0x168] sm:$0xf]  ;;  %v9815_v2 = vld [vmem:[%s11346_s30 + $0x174] sm:$0xf0] }
 0x5a1   : > { %4592 = vmatpush.bf16.msra.mxu3 %v8854_v21  ;;  %v8598_v59 = vor.u32 %v9815_v2, %v8597_v60  ;;  %v8709_v2 = vld [vmem:[%s11346_s30 + $0x248] sm:$0xf] }
 0x5a2   : > { %4533 = vmatpush.bf16.msra.mxu2 %v8726_v40  ;;  %v14110_v40 = vld [vmem:[#allocation12_spill] sm:$0xff] }
 0x5a3   : > { %v4088_v6 = vpop.f32.mrf.mxu2  ;;  %4474 = vmatpush.bf16.msra.mxu1 %v8598_v59  ;;  %v9843_v59 = vld [vmem:[%s11346_s30 + $0x254] sm:$0xf0] }
 0x5a4   : > { %v4089_v1 = vadd.f32 %v4088_v6, %v4030_v57  ;;  %v4147_v3 = vpop.f32.mrf.mxu3  ;;  %v3973_v63 = vpop.f32.mrf.mxu0 }
 0x5a5   : > { %v3974_v41 = vadd.f32 %v3973_v63, %v14106_v62  ;;  %v4032_v26 = vpop.f32.mrf.mxu1 }
 0x5a6   : > { %v12502_v4 = vadd.f32 %v4147_v3, %v4089_v1  ;;  %v14108_v3 = vld [vmem:[#allocation11_spill] sm:$0xff] }
 0x5a7   : > { %v4033_v25 = vadd.f32 %v4032_v26, %v3974_v41  ;;  %4198 = vmatmul.bf16.gmra.mxu0 %v11649_v27  ;;  %4257 = vmatmul.bf16.gmra.mxu1 %v11651_v28  ;;  %v8469_v26 = vld [vmem:[%s11346_s30 + $0x68] sm:$0xf] }
 0x5a8   : > { %14107 = vst [vmem:[#allocation10_spill] sm:$0xff] %v12502_v4  ;;  %4316 = vmatmul.bf16.gmra.mxu2 %v11653_v29  ;;  %v9783_v4 = vld [vmem:[%s11346_s30 + $0x74] sm:$0xf0] }
 0x5a9   : > { %4375 = vmatmul.bf16.gmra.mxu3 %v11655_v30  ;;  %v8470_v58 = vor.u32 %v9783_v4, %v8469_v26 }
 0x5ab   : > { %v4091_v44 = vpop.f32.mrf.mxu2  ;;  %4415 = vmatpush.bf16.msra.mxu0 %v8470_v58 }
 0x5ac   : > { %v4092_v57 = vadd.f32 %v4091_v44, %v4033_v25  ;;  %v4150_v6 = vpop.f32.mrf.mxu3  ;;  %v3975_v1 = vpop.f32.mrf.mxu0 }
 0x5ad   : > { %v3976_v63 = vadd.f32 %v3975_v1, %v14108_v3  ;;  %v4034_v62 = vpop.f32.mrf.mxu1  ;;  %v14112_v3 = vld [vmem:[#allocation13_spill] sm:$0xff] }
 0x5ae   : > { %v12513_v41 = vadd.f32 %v4150_v6, %v4092_v57 }
 0x5af   : > { %v4035_v24 = vadd.f32 %v4034_v62, %v3976_v63 }
 0x5b0   : > { %14109 = vst [vmem:[#allocation11_spill] sm:$0xff] %v12513_v41  ;;  %v9811_v41 = vld [vmem:[%s11346_s30 + $0x154] sm:$0xf0] }
 0x5b3   : > { %v4093_v55 = vpop.f32.mrf.mxu2 }
 0x5b4   : > { %v4094_v25 = vadd.f32 %v4093_v55, %v4035_v24  ;;  %v4152_v0 = vpop.f32.mrf.mxu3  ;;  %v3978_v44 = vpop.f32.mrf.mxu0 }
 0x5b5   : > { %v3979_v1 = vadd.f32 %v3978_v44, %v14110_v40  ;;  %v4037_v21 = vpop.f32.mrf.mxu1  ;;  %v9875_v44 = vld [vmem:[%s11346_s30 + $0x354] sm:$0xf0]  ;;  %v8453_v40 = vld [vmem:[%s11346_s30 + $0x48] sm:$0xf] }
 0x5b6   : > { %v12520_v57 = vadd.f32 %v4152_v0, %v4094_v25  ;;  %v8710_v25 = vor.u32 %v9843_v59, %v8709_v2  ;;  %v8837_v0 = vld [vmem:[%s11346_s30 + $0x348] sm:$0xf] }
 0x5b7   : > { %v4038_v6 = vadd.f32 %v4037_v21, %v3979_v1  ;;  %4203 = vmatmul.bf16.gmra.mxu0 %v11673_v49  ;;  %4262 = vmatmul.bf16.gmra.mxu1 %v11675_v50  ;;  %v8838_v1 = vor.u32 %v9875_v44, %v8837_v0  ;;  %v9779_v21 = vld [vmem:[%s11346_s30 + $0x54] sm:$0xf0] }
 0x5b8   : > { %14111 = vst [vmem:[#allocation12_spill] sm:$0xff] %v12520_v57  ;;  %4321 = vmatmul.bf16.gmra.mxu2 %v11677_v51  ;;  %v8581_v57 = vld [vmem:[%s11346_s30 + $0x148] sm:$0xf] }
 0x5b9   : > { %4380 = vmatmul.bf16.gmra.mxu3 %v11679_v52  ;;  %4534 = vmatpush.bf16.msra.mxu2 %v8710_v25  ;;  %v14116_v25 = vld [vmem:[#allocation15_spill] sm:$0xff] }
 0x5ba   : > { %4593 = vmatpush.bf16.msra.mxu3 %v8838_v1 }
 0x5bb   : > { %v4096_v58 = vpop.f32.mrf.mxu2 }
 0x5bc   : > { %v4097_v24 = vadd.f32 %v4096_v58, %v4038_v6  ;;  %v4155_v60 = vpop.f32.mrf.mxu3  ;;  %v3980_v4 = vpop.f32.mrf.mxu0  ;;  %v8454_v6 = vor.u32 %v9779_v21, %v8453_v40  ;;  %v8582_v58 = vor.u32 %v9811_v41, %v8581_v57  ;;  %v8693_v21 = vld [vmem:[%s11346_s30 + $0x228] sm:$0xf] }
 0x5bd   : > { %v3981_v63 = vadd.f32 %v3980_v4, %v14112_v3  ;;  %v4039_v62 = vpop.f32.mrf.mxu1  ;;  %v14114_v3 = vld [vmem:[#allocation14_spill] sm:$0xff] }
 0x5be   : > { %v12527_v26 = vadd.f32 %v4155_v60, %v4097_v24  ;;  %4416 = vmatpush.bf16.msra.mxu0 %v8454_v6  ;;  %4475 = vmatpush.bf16.msra.mxu1 %v8582_v58  ;;  %v9839_v6 = vld [vmem:[%s11346_s30 + $0x234] sm:$0xf0]  ;;  %v8821_v58 = vld [vmem:[%s11346_s30 + $0x328] sm:$0xf] }
 0x5bf   : > { %v4040_v55 = vadd.f32 %v4039_v62, %v3981_v63 }
 0x5c0   : > { %14113 = vst [vmem:[#allocation13_spill] sm:$0xff] %v12527_v26 }
 0x5c3   : > { %v4098_v31 = vpop.f32.mrf.mxu2 }
 0x5c4   : > { %v4099_v24 = vadd.f32 %v4098_v31, %v4040_v55  ;;  %v4157_v60 = vpop.f32.mrf.mxu3  ;;  %v3983_v4 = vpop.f32.mrf.mxu0 }
 0x5c5   : > { %v3984_v63 = vadd.f32 %v3983_v4, %v14114_v3  ;;  %v4042_v62 = vpop.f32.mrf.mxu1 }
 0x5c6   : > { %v12538_v2 = vadd.f32 %v4157_v60, %v4099_v24  ;;  %v8694_v24 = vor.u32 %v9839_v6, %v8693_v21  ;;  %v9871_v60 = vld [vmem:[%s11346_s30 + $0x334] sm:$0xf0] }
 0x5c7   : > { %v4043_v59 = vadd.f32 %v4042_v62, %v3984_v63  ;;  %4208 = vmatmul.bf16.gmra.mxu0 %v11701_v13  ;;  %4267 = vmatmul.bf16.gmra.mxu1 %v11703_v14  ;;  %v8822_v4 = vor.u32 %v9871_v60, %v8821_v58  ;;  %v9807_v6 = vld [vmem:[%s11346_s30 + $0x134] sm:$0xf0] }
 0x5c8   : > { %14115 = vst [vmem:[#allocation14_spill] sm:$0xff] %v12538_v2  ;;  %4326 = vmatmul.bf16.gmra.mxu2 %v11705_v15 }
 0x5c9   : > { %4385 = vmatmul.bf16.gmra.mxu3 %v11707_v16  ;;  %4535 = vmatpush.bf16.msra.mxu2 %v8694_v24 }
 0x5ca   : > { %4594 = vmatpush.bf16.msra.mxu3 %v8822_v4 }
 0x5cb   : > { %v4101_v31 = vpop.f32.mrf.mxu2 }
 0x5cc   : > { %v4102_v41 = vadd.f32 %v4101_v31, %v4043_v59  ;;  %v4160_v57 = vpop.f32.mrf.mxu3  ;;  %v3985_v55 = vpop.f32.mrf.mxu0  ;;  %v14118_v31 = vld [vmem:[#allocation16_spill] sm:$0xff] }
 0x5cd   : > { %v3986_v0 = vadd.f32 %v3985_v55, %v14116_v25  ;;  %v4044_v44 = vpop.f32.mrf.mxu1  ;;  %v8437_v25 = vld [vmem:[%s11346_s30 + $0x28] sm:$0xf] }
 0x5ce   : > { %v12545_v40 = vadd.f32 %v4160_v57, %v4102_v41 }
 0x5cf   : > { %v4045_v1 = vadd.f32 %v4044_v44, %v3986_v0  ;;  %v9775_v0 = vld [vmem:[%s11346_s30 + $0x34] sm:$0xf0]  ;;  %v8565_v44 = vld [vmem:[%s11346_s30 + $0x128] sm:$0xf] }
 0x5d0   : > { %14117 = vst [vmem:[#allocation15_spill] sm:$0xff] %v12545_v40  ;;  %v8438_v21 = vor.u32 %v9775_v0, %v8437_v25 }
 0x5d2   : > { %4417 = vmatpush.bf16.msra.mxu0 %v8438_v21 }
 0x5d3   : > { %v4103_v3 = vpop.f32.mrf.mxu2 }
 0x5d4   : > { %v4104_v63 = vadd.f32 %v4103_v3, %v4045_v1  ;;  %v4162_v62 = vpop.f32.mrf.mxu3  ;;  %v3988_v59 = vpop.f32.mrf.mxu0  ;;  %v8566_v1 = vor.u32 %v9807_v6, %v8565_v44  ;;  %v14120_v3 = vld [vmem:[#allocation17_spill] sm:$0xff]  ;;  %v14122_v44 = vld [vmem:[#allocation18_spill] sm:$0xff] }
 0x5d5   : > { %v3989_v41 = vadd.f32 %v3988_v59, %v14118_v31  ;;  %v4047_v57 = vpop.f32.mrf.mxu1 }
 0x5d6   : > { %v12552_v55 = vadd.f32 %v4162_v62, %v4104_v63  ;;  %4476 = vmatpush.bf16.msra.mxu1 %v8566_v1  ;;  %v8677_v1 = vld [vmem:[%s11346_s30 + $0x208] sm:$0xf] }
 0x5d7   : > { %v4048_v40 = vadd.f32 %v4047_v57, %v3989_v41  ;;  %4213 = vmatmul.bf16.gmra.mxu0 %v11729_v45  ;;  %4272 = vmatmul.bf16.gmra.mxu1 %v11731_v46 }
 0x5d8   : > { %14119 = vst [vmem:[#allocation16_spill] sm:$0xff] %v12552_v55  ;;  %4331 = vmatmul.bf16.gmra.mxu2 %v11733_v47 }
 0x5d9   : > { %4390 = vmatmul.bf16.gmra.mxu3 %v11735_v48 }
 0x5db   : > { %v4106_v58 = vpop.f32.mrf.mxu2 }
 0x5dc   : > { %v4107_v24 = vadd.f32 %v4106_v58, %v4048_v40  ;;  %v4165_v60 = vpop.f32.mrf.mxu3  ;;  %v3990_v4 = vpop.f32.mrf.mxu0  ;;  %v9835_v58 = vld [vmem:[%s11346_s30 + $0x214] sm:$0xf0] }
 0x5dd   : > { %v3991_v63 = vadd.f32 %v3990_v4, %v14120_v3  ;;  %v4049_v62 = vpop.f32.mrf.mxu1  ;;  %v9867_v3 = vld [vmem:[%s11346_s30 + $0x314] sm:$0xf0] }
 0x5de   : > { %v12563_v59 = vadd.f32 %v4165_v60, %v4107_v24  ;;  %v8678_v24 = vor.u32 %v9835_v58, %v8677_v1  ;;  %v8805_v60 = vld [vmem:[%s11346_s30 + $0x308] sm:$0xf]  ;;  %v14124_v58 = vld [vmem:[#allocation19_spill] sm:$0xff] }
 0x5df   : > { %v4050_v31 = vadd.f32 %v4049_v62, %v3991_v63  ;;  %v8806_v63 = vor.u32 %v9867_v3, %v8805_v60  ;;  %v8421_v62 = vld [vmem:[%s11346_s30 + $0x8] sm:$0xf] }
 0x5e0   : > { %14121 = vst [vmem:[#allocation17_spill] sm:$0xff] %v12563_v59  ;;  %4536 = vmatpush.bf16.msra.mxu2 %v8678_v24 }
 0x5e1   : > { %4595 = vmatpush.bf16.msra.mxu3 %v8806_v63 }
 0x5e3   : > { %v4108_v41 = vpop.f32.mrf.mxu2 }
 0x5e4   : > { %v4109_v57 = vadd.f32 %v4108_v41, %v4050_v31  ;;  %v4167_v25 = vpop.f32.mrf.mxu3  ;;  %v3993_v0 = vpop.f32.mrf.mxu0  ;;  %v9771_v31 = vld [vmem:[%s11346_s30 + $0x14] sm:$0xf0]  ;;  %v8549_v41 = vld [vmem:[%s11346_s30 + $0x108] sm:$0xf] }
 0x5e5   : > { %v3994_v21 = vadd.f32 %v3993_v0, %v14122_v44  ;;  %v4052_v6 = vpop.f32.mrf.mxu1 }
 0x5e6   : > { %v12566_v40 = vadd.f32 %v4167_v25, %v4109_v57  ;;  %v8422_v57 = vor.u32 %v9771_v31, %v8421_v62  ;;  %v9803_v25 = vld [vmem:[%s11346_s30 + $0x114] sm:$0xf0] }
 0x5e7   : > { %v4053_v4 = vadd.f32 %v4052_v6, %v3994_v21  ;;  %4218 = vmatmul.bf16.gmra.mxu0 %v11757_v17  ;;  %4277 = vmatmul.bf16.gmra.mxu1 %v11759_v18  ;;  %v8550_v44 = vor.u32 %v9803_v25, %v8549_v41  ;;  %v14126_v41 = vld [vmem:[#allocation20_spill] sm:$0xff] }
 0x5e8   : > { %14123 = vst [vmem:[#allocation18_spill] sm:$0xff] %v12566_v40  ;;  %4336 = vmatmul.bf16.gmra.mxu2 %v11761_v19  ;;  %4418 = vmatpush.bf16.msra.mxu0 %v8422_v57 }
 0x5e9   : > { %4395 = vmatmul.bf16.gmra.mxu3 %v11763_v20  ;;  %4477 = vmatpush.bf16.msra.mxu1 %v8550_v44  ;;  %v9893_v44 = vld [vmem:[%s11346_s30 + $0x3ec] sm:$0xf] }
 0x5eb   : > { %v4111_v0 = vpop.f32.mrf.mxu2 }
 0x5ec   : > { %v4112_v21 = vadd.f32 %v4111_v0, %v4053_v4  ;;  %v4170_v6 = vpop.f32.mrf.mxu3  ;;  %v3995_v1 = vpop.f32.mrf.mxu0 }
 0x5ed   : > { %v3996_v40 = vadd.f32 %v3995_v1, %v14124_v58  ;;  %v4054_v59 = vpop.f32.mrf.mxu1 }
 0x5ee   : > { %v12581_v60 = vadd.f32 %v4170_v6, %v4112_v21  ;;  %v8919_v6 = vld [vmem:[%s11346_s30 + $0x3f8] sm:$0xf0] }
 0x5ef   : > { %v4055_v24 = vadd.f32 %v4054_v59, %v3996_v40  ;;  %v9861_v59 = vld [vmem:[%s11346_s30 + $0x2ec] sm:$0xf]  ;;  %v8791_v40 = vld [vmem:[%s11346_s30 + $0x2f8] sm:$0xf0]  ;;  %v8922_v58 = vor.u32 %v9893_v44, %v8919_v6 }
 0x5f0   : > { %14125 = vst [vmem:[#allocation19_spill] sm:$0xff] %v12581_v60  ;;  %v8794_v21 = vor.u32 %v9861_v59, %v8791_v40  ;;  %v9829_v60 = vld [vmem:[%s11346_s30 + $0x1ec] sm:$0xf]  ;;  %v8663_v59 = vld [vmem:[%s11346_s30 + $0x1f8] sm:$0xf0] }
 0x5f1   : > { %4824 = vmatpush.bf16.msrb.mxu3 %v8922_v58  ;;  %v8666_v40 = vor.u32 %v9829_v60, %v8663_v59  ;;  %v9857_v59 = vld [vmem:[%s11346_s30 + $0x2cc] sm:$0xf] }
 0x5f2   : > { %4765 = vmatpush.bf16.msrb.mxu2 %v8794_v21  ;;  %v14130_v21 = vld [vmem:[#allocation22_spill] sm:$0xff] }
 0x5f3   : > { %v4113_v3 = vpop.f32.mrf.mxu2  ;;  %4706 = vmatpush.bf16.msrb.mxu1 %v8666_v40  ;;  %v8775_v40 = vld [vmem:[%s11346_s30 + $0x2d8] sm:$0xf0] }
 0x5f4   : > { %v4114_v63 = vadd.f32 %v4113_v3, %v4055_v24  ;;  %v4172_v62 = vpop.f32.mrf.mxu3  ;;  %v4184_v31 = vpop.f32.mrf.mxu0 }
 0x5f5   : > { %v4185_v4 = vadd.f32 %v4184_v31, %v14126_v41  ;;  %v4243_v25 = vpop.f32.mrf.mxu1 }
 0x5f6   : > { %v12584_v0 = vadd.f32 %v4172_v62, %v4114_v63  ;;  %v14128_v62 = vld [vmem:[#allocation21_spill] sm:$0xff] }
 0x5f7   : > { %v4244_v57 = vadd.f32 %v4243_v25, %v4185_v4  ;;  %4223 = vmatmul.bf16.gmra.mxu0 %v11777_v34  ;;  %4282 = vmatmul.bf16.gmra.mxu1 %v11779_v35  ;;  %v9797_v25 = vld [vmem:[%s11346_s30 + $0xec] sm:$0xf] }
 0x5f8   : > { %14127 = vst [vmem:[#allocation20_spill] sm:$0xff] %v12584_v0  ;;  %4341 = vmatmul.bf16.gmra.mxu2 %v11781_v36  ;;  %v8535_v0 = vld [vmem:[%s11346_s30 + $0xf8] sm:$0xf0] }
 0x5f9   : > { %4400 = vmatmul.bf16.gmra.mxu3 %v11783_v37  ;;  %v8538_v2 = vor.u32 %v9797_v25, %v8535_v0 }
 0x5fb   : > { %v4302_v1 = vpop.f32.mrf.mxu2  ;;  %4647 = vmatpush.bf16.msrb.mxu0 %v8538_v2 }
 0x5fc   : > { %v4303_v24 = vadd.f32 %v4302_v1, %v4244_v57  ;;  %v4361_v3 = vpop.f32.mrf.mxu3  ;;  %v4186_v63 = vpop.f32.mrf.mxu0 }
 0x5fd   : > { %v4187_v31 = vadd.f32 %v4186_v63, %v14128_v62  ;;  %v4245_v41 = vpop.f32.mrf.mxu1  ;;  %v14132_v62 = vld [vmem:[#allocation23_spill] sm:$0xff] }
 0x5fe   : > { %v12595_v4 = vadd.f32 %v4361_v3, %v4303_v24 }
 0x5ff   : > { %v4246_v55 = vadd.f32 %v4245_v41, %v4187_v31 }
 0x600   : > { %14129 = vst [vmem:[#allocation21_spill] sm:$0xff] %v12595_v4  ;;  %v8647_v4 = vld [vmem:[%s11346_s30 + $0x1d8] sm:$0xf0] }
 0x603   : > { %v4304_v44 = vpop.f32.mrf.mxu2 }
 0x604   : > { %v4305_v57 = vadd.f32 %v4304_v44, %v4246_v55  ;;  %v4363_v6 = vpop.f32.mrf.mxu3  ;;  %v4189_v1 = vpop.f32.mrf.mxu0 }
 0x605   : > { %v4190_v63 = vadd.f32 %v4189_v1, %v14130_v21  ;;  %v4248_v58 = vpop.f32.mrf.mxu1  ;;  %v8903_v1 = vld [vmem:[%s11346_s30 + $0x3d8] sm:$0xf0]  ;;  %v9793_v21 = vld [vmem:[%s11346_s30 + $0xcc] sm:$0xf] }
 0x606   : > { %v12602_v24 = vadd.f32 %v4363_v6, %v4305_v57  ;;  %v8778_v57 = vor.u32 %v9857_v59, %v8775_v40  ;;  %v9889_v6 = vld [vmem:[%s11346_s30 + $0x3cc] sm:$0xf] }
 0x607   : > { %v4249_v3 = vadd.f32 %v4248_v58, %v4190_v63  ;;  %4228 = vmatmul.bf16.gmra.mxu0 %v11805_v5  ;;  %4287 = vmatmul.bf16.gmra.mxu1 %v11807_v7  ;;  %v8906_v63 = vor.u32 %v9889_v6, %v8903_v1  ;;  %v8519_v58 = vld [vmem:[%s11346_s30 + $0xd8] sm:$0xf0] }
 0x608   : > { %14131 = vst [vmem:[#allocation22_spill] sm:$0xff] %v12602_v24  ;;  %4346 = vmatmul.bf16.gmra.mxu2 %v11809_v8  ;;  %v9825_v24 = vld [vmem:[%s11346_s30 + $0x1cc] sm:$0xf] }
 0x609   : > { %4405 = vmatmul.bf16.gmra.mxu3 %v11811_v22  ;;  %4766 = vmatpush.bf16.msrb.mxu2 %v8778_v57  ;;  %v14136_v57 = vld [vmem:[#allocation25_spill] sm:$0xff] }
 0x60a   : > { %4825 = vmatpush.bf16.msrb.mxu3 %v8906_v63 }
 0x60b   : > { %v4307_v2 = vpop.f32.mrf.mxu2 }
 0x60c   : > { %v4308_v55 = vadd.f32 %v4307_v2, %v4249_v3  ;;  %v4366_v60 = vpop.f32.mrf.mxu3  ;;  %v4191_v0 = vpop.f32.mrf.mxu0  ;;  %v8522_v3 = vor.u32 %v9793_v21, %v8519_v58  ;;  %v8650_v2 = vor.u32 %v9825_v24, %v8647_v4  ;;  %v9853_v58 = vld [vmem:[%s11346_s30 + $0x2ac] sm:$0xf] }
 0x60d   : > { %v4192_v31 = vadd.f32 %v4191_v0, %v14132_v62  ;;  %v4250_v41 = vpop.f32.mrf.mxu1  ;;  %v14134_v62 = vld [vmem:[#allocation24_spill] sm:$0xff] }
 0x60e   : > { %v12609_v25 = vadd.f32 %v4366_v60, %v4308_v55  ;;  %4648 = vmatpush.bf16.msrb.mxu0 %v8522_v3  ;;  %4707 = vmatpush.bf16.msrb.mxu1 %v8650_v2  ;;  %v8759_v3 = vld [vmem:[%s11346_s30 + $0x2b8] sm:$0xf0]  ;;  %v9885_v2 = vld [vmem:[%s11346_s30 + $0x3ac] sm:$0xf] }
 0x60f   : > { %v4251_v44 = vadd.f32 %v4250_v41, %v4192_v31 }
 0x610   : > { %14133 = vst [vmem:[#allocation23_spill] sm:$0xff] %v12609_v25 }
 0x613   : > { %v4309_v26 = vpop.f32.mrf.mxu2 }
 0x614   : > { %v4310_v55 = vadd.f32 %v4309_v26, %v4251_v44  ;;  %v4368_v60 = vpop.f32.mrf.mxu3  ;;  %v4194_v0 = vpop.f32.mrf.mxu0 }
 0x615   : > { %v4195_v31 = vadd.f32 %v4194_v0, %v14134_v62  ;;  %v4253_v41 = vpop.f32.mrf.mxu1 }
 0x616   : > { %v12620_v59 = vadd.f32 %v4368_v60, %v4310_v55  ;;  %v8762_v55 = vor.u32 %v9853_v58, %v8759_v3  ;;  %v8887_v60 = vld [vmem:[%s11346_s30 + $0x3b8] sm:$0xf0] }
 0x617   : > { %v4254_v40 = vadd.f32 %v4253_v41, %v4195_v31  ;;  %4419 = vmatmul.bf16.vlgmr.msra.gmra.mxu0 %v12299_v53  ;;  %4478 = vmatmul.bf16.vlgmr.msra.gmra.mxu1 %v12301_v43  ;;  %v8890_v0 = vor.u32 %v9885_v2, %v8887_v60  ;;  %v8631_v3 = vld [vmem:[%s11346_s30 + $0x1b8] sm:$0xf0] }
 0x618   : > { %14135 = vst [vmem:[#allocation24_spill] sm:$0xff] %v12620_v59  ;;  %4537 = vmatmul.bf16.vlgmr.msra.gmra.mxu2 %v12303_v54 }
 0x619   : > { %4596 = vmatmul.bf16.vlgmr.msra.gmra.mxu3 %v12305_v56  ;;  %4767 = vmatpush.bf16.msrb.mxu2 %v8762_v55 }
 0x61a   : > { %4826 = vmatpush.bf16.msrb.mxu3 %v8890_v0 }
 0x61b   : > { %v4312_v26 = vpop.f32.mrf.mxu2 }
 0x61c   : > { %v4313_v4 = vadd.f32 %v4312_v26, %v4254_v40  ;;  %v4371_v24 = vpop.f32.mrf.mxu3  ;;  %v4196_v44 = vpop.f32.mrf.mxu0  ;;  %v14138_v26 = vld [vmem:[#allocation26_spill] sm:$0xff] }
 0x61d   : > { %v4197_v6 = vadd.f32 %v4196_v44, %v14136_v57  ;;  %v4255_v1 = vpop.f32.mrf.mxu1  ;;  %v9789_v57 = vld [vmem:[%s11346_s30 + $0xac] sm:$0xf] }
 0x61e   : > { %v12627_v21 = vadd.f32 %v4371_v24, %v4313_v4 }
 0x61f   : > { %v4256_v63 = vadd.f32 %v4255_v1, %v4197_v6  ;;  %v8503_v6 = vld [vmem:[%s11346_s30 + $0xb8] sm:$0xf0]  ;;  %v9821_v1 = vld [vmem:[%s11346_s30 + $0x1ac] sm:$0xf] }
 0x620   : > { %14137 = vst [vmem:[#allocation25_spill] sm:$0xff] %v12627_v21  ;;  %v8506_v58 = vor.u32 %v9789_v57, %v8503_v6 }
 0x622   : > { %4649 = vmatpush.bf16.msrb.mxu0 %v8506_v58 }
 0x623   : > { %v4314_v62 = vpop.f32.mrf.mxu2 }
 0x624   : > { %v4315_v31 = vadd.f32 %v4314_v62, %v4256_v63  ;;  %v4373_v41 = vpop.f32.mrf.mxu3  ;;  %v4199_v40 = vpop.f32.mrf.mxu0  ;;  %v8634_v63 = vor.u32 %v9821_v1, %v8631_v3  ;;  %v14140_v62 = vld [vmem:[#allocation27_spill] sm:$0xff]  ;;  %v14142_v1 = vld [vmem:[#allocation28_spill] sm:$0xff] }
 0x625   : > { %v4200_v4 = vadd.f32 %v4199_v40, %v14138_v26  ;;  %v4258_v24 = vpop.f32.mrf.mxu1 }
 0x626   : > { %v12634_v44 = vadd.f32 %v4373_v41, %v4315_v31  ;;  %4708 = vmatpush.bf16.msrb.mxu1 %v8634_v63  ;;  %v9849_v63 = vld [vmem:[%s11346_s30 + $0x28c] sm:$0xf] }
 0x627   : > { %v4259_v21 = vadd.f32 %v4258_v24, %v4200_v4  ;;  %4424 = vmatmul.bf16.gmra.mxu0 %v11588_v33  ;;  %4483 = vmatmul.bf16.gmra.mxu1 %v11593_v38 }
 0x628   : > { %14139 = vst [vmem:[#allocation26_spill] sm:$0xff] %v12634_v44  ;;  %4542 = vmatmul.bf16.gmra.mxu2 %v11595_v39 }
 0x629   : > { %4601 = vmatmul.bf16.gmra.mxu3 %v11599_v42 }
 0x62b   : > { %v4317_v2 = vpop.f32.mrf.mxu2 }
 0x62c   : > { %v4318_v55 = vadd.f32 %v4317_v2, %v4259_v21  ;;  %v4376_v60 = vpop.f32.mrf.mxu3  ;;  %v4201_v0 = vpop.f32.mrf.mxu0  ;;  %v8743_v2 = vld [vmem:[%s11346_s30 + $0x298] sm:$0xf0] }
 0x62d   : > { %v4202_v31 = vadd.f32 %v4201_v0, %v14140_v62  ;;  %v4260_v41 = vpop.f32.mrf.mxu1  ;;  %v8871_v62 = vld [vmem:[%s11346_s30 + $0x398] sm:$0xf0] }
 0x62e   : > { %v12645_v40 = vadd.f32 %v4376_v60, %v4318_v55  ;;  %v8746_v55 = vor.u32 %v9849_v63, %v8743_v2  ;;  %v9881_v60 = vld [vmem:[%s11346_s30 + $0x38c] sm:$0xf] }
 0x62f   : > { %v4261_v26 = vadd.f32 %v4260_v41, %v4202_v31  ;;  %v8874_v31 = vor.u32 %v9881_v60, %v8871_v62  ;;  %v9785_v41 = vld [vmem:[%s11346_s30 + $0x8c] sm:$0xf] }
 0x630   : > { %14141 = vst [vmem:[#allocation27_spill] sm:$0xff] %v12645_v40  ;;  %4768 = vmatpush.bf16.msrb.mxu2 %v8746_v55  ;;  %v14144_v2 = vld [vmem:[#allocation29_spill] sm:$0xff] }
 0x631   : > { %4827 = vmatpush.bf16.msrb.mxu3 %v8874_v31 }
 0x633   : > { %v4319_v4 = vpop.f32.mrf.mxu2 }
 0x634   : > { %v4320_v24 = vadd.f32 %v4319_v4, %v4261_v26  ;;  %v4378_v57 = vpop.f32.mrf.mxu3  ;;  %v4204_v6 = vpop.f32.mrf.mxu0  ;;  %v8487_v26 = vld [vmem:[%s11346_s30 + $0x98] sm:$0xf0]  ;;  %v9817_v4 = vld [vmem:[%s11346_s30 + $0x18c] sm:$0xf] }
 0x635   : > { %v4205_v58 = vadd.f32 %v4204_v6, %v14142_v1  ;;  %v4263_v3 = vpop.f32.mrf.mxu1 }
 0x636   : > { %v12648_v21 = vadd.f32 %v4378_v57, %v4320_v24  ;;  %v8490_v24 = vor.u32 %v9785_v41, %v8487_v26  ;;  %v8615_v57 = vld [vmem:[%s11346_s30 + $0x198] sm:$0xf0] }
 0x637   : > { %v4264_v0 = vadd.f32 %v4263_v3, %v4205_v58  ;;  %4429 = vmatmul.bf16.gmra.mxu0 %v11625_v9  ;;  %4488 = vmatmul.bf16.gmra.mxu1 %v11627_v10  ;;  %v8618_v1 = vor.u32 %v9817_v4, %v8615_v57  ;;  %v14146_v4 = vld [vmem:[#allocation30_spill] sm:$0xff] }
 0x638   : > { %14143 = vst [vmem:[#allocation28_spill] sm:$0xff] %v12648_v21  ;;  %4547 = vmatmul.bf16.gmra.mxu2 %v11629_v11  ;;  %4650 = vmatpush.bf16.msrb.mxu0 %v8490_v24 }
 0x639   : > { %4606 = vmatmul.bf16.gmra.mxu3 %v11631_v12  ;;  %4709 = vmatpush.bf16.msrb.mxu1 %v8618_v1  ;;  %v9877_v1 = vld [vmem:[%s11346_s30 + $0x36c] sm:$0xf] }
 0x63b   : > { %v4322_v6 = vpop.f32.mrf.mxu2 }
 0x63c   : > { %v4323_v58 = vadd.f32 %v4322_v6, %v4264_v0  ;;  %v4381_v3 = vpop.f32.mrf.mxu3  ;;  %v4206_v63 = vpop.f32.mrf.mxu0 }
 0x63d   : > { %v4207_v21 = vadd.f32 %v4206_v63, %v14144_v2  ;;  %v4265_v40 = vpop.f32.mrf.mxu1 }
 0x63e   : > { %v12663_v60 = vadd.f32 %v4381_v3, %v4323_v58  ;;  %v8855_v3 = vld [vmem:[%s11346_s30 + $0x378] sm:$0xf0] }
 0x63f   : > { %v4266_v55 = vadd.f32 %v4265_v40, %v4207_v21  ;;  %v9845_v40 = vld [vmem:[%s11346_s30 + $0x26c] sm:$0xf]  ;;  %v8727_v21 = vld [vmem:[%s11346_s30 + $0x278] sm:$0xf0]  ;;  %v8858_v2 = vor.u32 %v9877_v1, %v8855_v3 }
 0x640   : > { %14145 = vst [vmem:[#allocation29_spill] sm:$0xff] %v12663_v60  ;;  %v8730_v58 = vor.u32 %v9845_v40, %v8727_v21  ;;  %v9813_v60 = vld [vmem:[%s11346_s30 + $0x16c] sm:$0xf]  ;;  %v8599_v40 = vld [vmem:[%s11346_s30 + $0x178] sm:$0xf0] }
 0x641   : > { %4828 = vmatpush.bf16.msrb.mxu3 %v8858_v2  ;;  %v8602_v21 = vor.u32 %v9813_v60, %v8599_v40  ;;  %v9841_v40 = vld [vmem:[%s11346_s30 + $0x24c] sm:$0xf] }
 0x642   : > { %4769 = vmatpush.bf16.msrb.mxu2 %v8730_v58  ;;  %v14150_v58 = vld [vmem:[#allocation32_spill] sm:$0xff] }
 0x643   : > { %v4324_v62 = vpop.f32.mrf.mxu2  ;;  %4710 = vmatpush.bf16.msrb.mxu1 %v8602_v21  ;;  %v8711_v21 = vld [vmem:[%s11346_s30 + $0x258] sm:$0xf0] }
 0x644   : > { %v4325_v31 = vadd.f32 %v4324_v62, %v4266_v55  ;;  %v4383_v41 = vpop.f32.mrf.mxu3  ;;  %v4209_v26 = vpop.f32.mrf.mxu0 }
 0x645   : > { %v4210_v0 = vadd.f32 %v4209_v26, %v14146_v4  ;;  %v4268_v57 = vpop.f32.mrf.mxu1 }
 0x646   : > { %v12666_v6 = vadd.f32 %v4383_v41, %v4325_v31  ;;  %v14148_v41 = vld [vmem:[#allocation31_spill] sm:$0xff] }
 0x647   : > { %v4269_v24 = vadd.f32 %v4268_v57, %v4210_v0  ;;  %4434 = vmatmul.bf16.gmra.mxu0 %v11649_v27  ;;  %4493 = vmatmul.bf16.gmra.mxu1 %v11651_v28  ;;  %v9781_v57 = vld [vmem:[%s11346_s30 + $0x6c] sm:$0xf] }
 0x648   : > { %14147 = vst [vmem:[#allocation30_spill] sm:$0xff] %v12666_v6  ;;  %4552 = vmatmul.bf16.gmra.mxu2 %v11653_v29  ;;  %v8471_v6 = vld [vmem:[%s11346_s30 + $0x78] sm:$0xf0] }
 0x649   : > { %4611 = vmatmul.bf16.gmra.mxu3 %v11655_v30  ;;  %v8474_v59 = vor.u32 %v9781_v57, %v8471_v6 }
 0x64b   : > { %v4327_v63 = vpop.f32.mrf.mxu2  ;;  %4651 = vmatpush.bf16.msrb.mxu0 %v8474_v59 }
 0x64c   : > { %v4328_v55 = vadd.f32 %v4327_v63, %v4269_v24  ;;  %v4386_v62 = vpop.f32.mrf.mxu3  ;;  %v4211_v31 = vpop.f32.mrf.mxu0 }
 0x64d   : > { %v4212_v26 = vadd.f32 %v4211_v31, %v14148_v41  ;;  %v4270_v4 = vpop.f32.mrf.mxu1  ;;  %v14152_v41 = vld [vmem:[#allocation33_spill] sm:$0xff] }
 0x64e   : > { %v12677_v0 = vadd.f32 %v4386_v62, %v4328_v55 }
 0x64f   : > { %v4271_v44 = vadd.f32 %v4270_v4, %v4212_v26 }
 0x650   : > { %14149 = vst [vmem:[#allocation31_spill] sm:$0xff] %v12677_v0  ;;  %v8583_v0 = vld [vmem:[%s11346_s30 + $0x158] sm:$0xf0] }
 0x653   : > { %v4329_v1 = vpop.f32.mrf.mxu2 }
 0x654   : > { %v4330_v24 = vadd.f32 %v4329_v1, %v4271_v44  ;;  %v4388_v3 = vpop.f32.mrf.mxu3  ;;  %v4214_v63 = vpop.f32.mrf.mxu0 }
 0x655   : > { %v4215_v31 = vadd.f32 %v4214_v63, %v14150_v58  ;;  %v4273_v2 = vpop.f32.mrf.mxu1  ;;  %v8839_v63 = vld [vmem:[%s11346_s30 + $0x358] sm:$0xf0]  ;;  %v9777_v58 = vld [vmem:[%s11346_s30 + $0x4c] sm:$0xf] }
 0x656   : > { %v12684_v55 = vadd.f32 %v4388_v3, %v4330_v24  ;;  %v8714_v24 = vor.u32 %v9841_v40, %v8711_v21  ;;  %v9873_v3 = vld [vmem:[%s11346_s30 + $0x34c] sm:$0xf] }
 0x657   : > { %v4274_v62 = vadd.f32 %v4273_v2, %v4215_v31  ;;  %4439 = vmatmul.bf16.gmra.mxu0 %v11673_v49  ;;  %4498 = vmatmul.bf16.gmra.mxu1 %v11675_v50  ;;  %v8842_v31 = vor.u32 %v9873_v3, %v8839_v63  ;;  %v8455_v2 = vld [vmem:[%s11346_s30 + $0x58] sm:$0xf0] }
 0x658   : > { %14151 = vst [vmem:[#allocation32_spill] sm:$0xff] %v12684_v55  ;;  %4557 = vmatmul.bf16.gmra.mxu2 %v11677_v51  ;;  %v9809_v55 = vld [vmem:[%s11346_s30 + $0x14c] sm:$0xf] }
 0x659   : > { %4616 = vmatmul.bf16.gmra.mxu3 %v11679_v52  ;;  %4770 = vmatpush.bf16.msrb.mxu2 %v8714_v24  ;;  %v14156_v24 = vld [vmem:[#allocation35_spill] sm:$0xff] }
 0x65a   : > { %4829 = vmatpush.bf16.msrb.mxu3 %v8842_v31 }
 0x65b   : > { %v4332_v59 = vpop.f32.mrf.mxu2 }
 0x65c   : > { %v4333_v44 = vadd.f32 %v4332_v59, %v4274_v62  ;;  %v4391_v60 = vpop.f32.mrf.mxu3  ;;  %v4216_v6 = vpop.f32.mrf.mxu0  ;;  %v8458_v62 = vor.u32 %v9777_v58, %v8455_v2  ;;  %v8586_v59 = vor.u32 %v9809_v55, %v8583_v0  ;;  %v9837_v2 = vld [vmem:[%s11346_s30 + $0x22c] sm:$0xf] }
 0x65d   : > { %v4217_v26 = vadd.f32 %v4216_v6, %v14152_v41  ;;  %v4275_v4 = vpop.f32.mrf.mxu1  ;;  %v14154_v41 = vld [vmem:[#allocation34_spill] sm:$0xff] }
 0x65e   : > { %v12691_v57 = vadd.f32 %v4391_v60, %v4333_v44  ;;  %4652 = vmatpush.bf16.msrb.mxu0 %v8458_v62  ;;  %4711 = vmatpush.bf16.msrb.mxu1 %v8586_v59  ;;  %v8695_v62 = vld [vmem:[%s11346_s30 + $0x238] sm:$0xf0]  ;;  %v9869_v59 = vld [vmem:[%s11346_s30 + $0x32c] sm:$0xf] }
 0x65f   : > { %v4276_v1 = vadd.f32 %v4275_v4, %v4217_v26 }
 0x660   : > { %14153 = vst [vmem:[#allocation33_spill] sm:$0xff] %v12691_v57 }
 0x663   : > { %v4334_v25 = vpop.f32.mrf.mxu2 }
 0x664   : > { %v4335_v44 = vadd.f32 %v4334_v25, %v4276_v1  ;;  %v4393_v60 = vpop.f32.mrf.mxu3  ;;  %v4219_v6 = vpop.f32.mrf.mxu0 }
 0x665   : > { %v4220_v26 = vadd.f32 %v4219_v6, %v14154_v41  ;;  %v4278_v4 = vpop.f32.mrf.mxu1 }
 0x666   : > { %v12702_v40 = vadd.f32 %v4393_v60, %v4335_v44  ;;  %v8698_v44 = vor.u32 %v9837_v2, %v8695_v62  ;;  %v8823_v60 = vld [vmem:[%s11346_s30 + $0x338] sm:$0xf0] }
 0x667   : > { %v4279_v21 = vadd.f32 %v4278_v4, %v4220_v26  ;;  %4444 = vmatmul.bf16.gmra.mxu0 %v11701_v13  ;;  %4503 = vmatmul.bf16.gmra.mxu1 %v11703_v14  ;;  %v8826_v6 = vor.u32 %v9869_v59, %v8823_v60  ;;  %v8567_v62 = vld [vmem:[%s11346_s30 + $0x138] sm:$0xf0] }
 0x668   : > { %14155 = vst [vmem:[#allocation34_spill] sm:$0xff] %v12702_v40  ;;  %4562 = vmatmul.bf16.gmra.mxu2 %v11705_v15 }
 0x669   : > { %4621 = vmatmul.bf16.gmra.mxu3 %v11707_v16  ;;  %4771 = vmatpush.bf16.msrb.mxu2 %v8698_v44 }
 0x66a   : > { %4830 = vmatpush.bf16.msrb.mxu3 %v8826_v6 }
 0x66b   : > { %v4337_v25 = vpop.f32.mrf.mxu2 }
 0x66c   : > { %v4338_v0 = vadd.f32 %v4337_v25, %v4279_v21  ;;  %v4396_v55 = vpop.f32.mrf.mxu3  ;;  %v4221_v1 = vpop.f32.mrf.mxu0  ;;  %v14158_v25 = vld [vmem:[#allocation36_spill] sm:$0xff] }
 0x66d   : > { %v4222_v3 = vadd.f32 %v4221_v1, %v14156_v24  ;;  %v4280_v63 = vpop.f32.mrf.mxu1  ;;  %v9773_v24 = vld [vmem:[%s11346_s30 + $0x2c] sm:$0xf] }
 0x66e   : > { %v12709_v58 = vadd.f32 %v4396_v55, %v4338_v0 }
 0x66f   : > { %v4281_v31 = vadd.f32 %v4280_v63, %v4222_v3  ;;  %v8439_v3 = vld [vmem:[%s11346_s30 + $0x38] sm:$0xf0]  ;;  %v9805_v63 = vld [vmem:[%s11346_s30 + $0x12c] sm:$0xf] }
 0x670   : > { %14157 = vst [vmem:[#allocation35_spill] sm:$0xff] %v12709_v58  ;;  %v8442_v2 = vor.u32 %v9773_v24, %v8439_v3 }
 0x672   : > { %4653 = vmatpush.bf16.msrb.mxu0 %v8442_v2 }
 0x673   : > { %v4339_v41 = vpop.f32.mrf.mxu2 }
 0x674   : > { %v4340_v26 = vadd.f32 %v4339_v41, %v4281_v31  ;;  %v4398_v4 = vpop.f32.mrf.mxu3  ;;  %v4224_v21 = vpop.f32.mrf.mxu0  ;;  %v8570_v31 = vor.u32 %v9805_v63, %v8567_v62  ;;  %v14160_v41 = vld [vmem:[#allocation37_spill] sm:$0xff]  ;;  %v14162_v63 = vld [vmem:[#allocation38_spill] sm:$0xff] }
 0x675   : > { %v4225_v0 = vadd.f32 %v4224_v21, %v14158_v25  ;;  %v4283_v55 = vpop.f32.mrf.mxu1 }
 0x676   : > { %v12716_v1 = vadd.f32 %v4398_v4, %v4340_v26  ;;  %4712 = vmatpush.bf16.msrb.mxu1 %v8570_v31  ;;  %v9833_v31 = vld [vmem:[%s11346_s30 + $0x20c] sm:$0xf] }
 0x677   : > { %v4284_v58 = vadd.f32 %v4283_v55, %v4225_v0  ;;  %4449 = vmatmul.bf16.gmra.mxu0 %v11729_v45  ;;  %4508 = vmatmul.bf16.gmra.mxu1 %v11731_v46 }
 0x678   : > { %14159 = vst [vmem:[#allocation36_spill] sm:$0xff] %v12716_v1  ;;  %4567 = vmatmul.bf16.gmra.mxu2 %v11733_v47 }
 0x679   : > { %4626 = vmatmul.bf16.gmra.mxu3 %v11735_v48 }
 0x67b   : > { %v4342_v59 = vpop.f32.mrf.mxu2 }
 0x67c   : > { %v4343_v44 = vadd.f32 %v4342_v59, %v4284_v58  ;;  %v4401_v60 = vpop.f32.mrf.mxu3  ;;  %v4226_v6 = vpop.f32.mrf.mxu0  ;;  %v8679_v59 = vld [vmem:[%s11346_s30 + $0x218] sm:$0xf0] }
 0x67d   : > { %v4227_v26 = vadd.f32 %v4226_v6, %v14160_v41  ;;  %v4285_v4 = vpop.f32.mrf.mxu1  ;;  %v8807_v41 = vld [vmem:[%s11346_s30 + $0x318] sm:$0xf0] }
 0x67e   : > { %v12727_v21 = vadd.f32 %v4401_v60, %v4343_v44  ;;  %v8682_v44 = vor.u32 %v9833_v31, %v8679_v59  ;;  %v9865_v60 = vld [vmem:[%s11346_s30 + $0x30c] sm:$0xf]  ;;  %v14164_v59 = vld [vmem:[#allocation39_spill] sm:$0xff] }
 0x67f   : > { %v4286_v25 = vadd.f32 %v4285_v4, %v4227_v26  ;;  %v8810_v26 = vor.u32 %v9865_v60, %v8807_v41  ;;  %v9769_v4 = vld [vmem:[%s11346_s30 + $0xc] sm:$0xf] }
 0x680   : > { %14161 = vst [vmem:[#allocation37_spill] sm:$0xff] %v12727_v21  ;;  %4772 = vmatpush.bf16.msrb.mxu2 %v8682_v44 }
 0x681   : > { %4831 = vmatpush.bf16.msrb.mxu3 %v8810_v26 }
 0x683   : > { %v4344_v0 = vpop.f32.mrf.mxu2 }
 0x684   : > { %v4345_v55 = vadd.f32 %v4344_v0, %v4286_v25  ;;  %v4403_v24 = vpop.f32.mrf.mxu3  ;;  %v4229_v3 = vpop.f32.mrf.mxu0  ;;  %v8423_v25 = vld [vmem:[%s11346_s30 + $0x18] sm:$0xf0]  ;;  %v9801_v0 = vld [vmem:[%s11346_s30 + $0x10c] sm:$0xf] }
 0x685   : > { %v4230_v2 = vadd.f32 %v4229_v3, %v14162_v63  ;;  %v4288_v62 = vpop.f32.mrf.mxu1 }
 0x686   : > { %v12730_v58 = vadd.f32 %v4403_v24, %v4345_v55  ;;  %v8426_v55 = vor.u32 %v9769_v4, %v8423_v25  ;;  %v8551_v24 = vld [vmem:[%s11346_s30 + $0x118] sm:$0xf0] }
 0x687   : > { %v4289_v6 = vadd.f32 %v4288_v62, %v4230_v2  ;;  %4454 = vmatmul.bf16.gmra.mxu0 %v11757_v17  ;;  %4513 = vmatmul.bf16.gmra.mxu1 %v11759_v18  ;;  %v8554_v63 = vor.u32 %v9801_v0, %v8551_v24  ;;  %v14166_v0 = vld [vmem:[#allocation40_spill] sm:$0xff] }
 0x688   : > { %14163 = vst [vmem:[#allocation38_spill] sm:$0xff] %v12730_v58  ;;  %4572 = vmatmul.bf16.gmra.mxu2 %v11761_v19  ;;  %4654 = vmatpush.bf16.msrb.mxu0 %v8426_v55 }
 0x689   : > { %4631 = vmatmul.bf16.gmra.mxu3 %v11763_v20  ;;  %4713 = vmatpush.bf16.msrb.mxu1 %v8554_v63  ;;  %v9709_v63 = vld [vmem:[%s11346_s30 + $0xbe0] sm:$0xf] }
 0x68b   : > { %v4347_v3 = vpop.f32.mrf.mxu2 }
 0x68c   : > { %v4348_v2 = vadd.f32 %v4347_v3, %v4289_v6  ;;  %v4406_v62 = vpop.f32.mrf.mxu3  ;;  %v4231_v31 = vpop.f32.mrf.mxu0 }
 0x68d   : > { %v4232_v58 = vadd.f32 %v4231_v31, %v14164_v59  ;;  %v4290_v21 = vpop.f32.mrf.mxu1 }
 0x68e   : > { %v12745_v60 = vadd.f32 %v4406_v62, %v4348_v2  ;;  %v10194_v62 = vld [vmem:[%s11346_s30 + $0xbec] sm:$0xf0] }
 0x68f   : > { %v4291_v44 = vadd.f32 %v4290_v21, %v4232_v58  ;;  %v9581_v21 = vld [vmem:[%s11346_s30 + $0xae0] sm:$0xf]  ;;  %v10162_v58 = vld [vmem:[%s11346_s30 + $0xaec] sm:$0xf0]  ;;  %v9710_v59 = vor.u32 %v10194_v62, %v9709_v63 }
 0x690   : > { %14165 = vst [vmem:[#allocation39_spill] sm:$0xff] %v12745_v60  ;;  %v9582_v2 = vor.u32 %v10162_v58, %v9581_v21  ;;  %v9453_v60 = vld [vmem:[%s11346_s30 + $0x9e0] sm:$0xf]  ;;  %v10130_v21 = vld [vmem:[%s11346_s30 + $0x9ec] sm:$0xf0] }
 0x691   : > { %6069 = vmatpush.bf16.msra.mxu3 %v9710_v59  ;;  %v9454_v58 = vor.u32 %v10130_v21, %v9453_v60  ;;  %v9565_v21 = vld [vmem:[%s11346_s30 + $0xac0] sm:$0xf] }
 0x692   : > { %6010 = vmatpush.bf16.msra.mxu2 %v9582_v2  ;;  %v14170_v2 = vld [vmem:[#allocation42_spill] sm:$0xff] }
 0x693   : > { %v4349_v41 = vpop.f32.mrf.mxu2  ;;  %5951 = vmatpush.bf16.msra.mxu1 %v9454_v58  ;;  %v10158_v58 = vld [vmem:[%s11346_s30 + $0xacc] sm:$0xf0] }
 0x694   : > { %v4350_v26 = vadd.f32 %v4349_v41, %v4291_v44  ;;  %v4408_v4 = vpop.f32.mrf.mxu3  ;;  %v4420_v25 = vpop.f32.mrf.mxu0 }
 0x695   : > { %v4421_v6 = vadd.f32 %v4420_v25, %v14166_v0  ;;  %v4479_v24 = vpop.f32.mrf.mxu1 }
 0x696   : > { %v12748_v3 = vadd.f32 %v4408_v4, %v4350_v26  ;;  %v14168_v4 = vld [vmem:[#allocation41_spill] sm:$0xff] }
 0x697   : > { %v4480_v55 = vadd.f32 %v4479_v24, %v4421_v6  ;;  %4459 = vmatmul.bf16.gmra.mxu0 %v11777_v34  ;;  %4518 = vmatmul.bf16.gmra.mxu1 %v11779_v35  ;;  %v9325_v24 = vld [vmem:[%s11346_s30 + $0x8e0] sm:$0xf] }
 0x698   : > { %14167 = vst [vmem:[#allocation40_spill] sm:$0xff] %v12748_v3  ;;  %4577 = vmatmul.bf16.gmra.mxu2 %v11781_v36  ;;  %v10098_v3 = vld [vmem:[%s11346_s30 + $0x8ec] sm:$0xf0] }
 0x699   : > { %4636 = vmatmul.bf16.gmra.mxu3 %v11783_v37  ;;  %v9326_v40 = vor.u32 %v10098_v3, %v9325_v24 }
 0x69b   : > { %v4538_v31 = vpop.f32.mrf.mxu2  ;;  %5892 = vmatpush.bf16.msra.mxu0 %v9326_v40 }
 0x69c   : > { %v4539_v44 = vadd.f32 %v4538_v31, %v4480_v55  ;;  %v4597_v41 = vpop.f32.mrf.mxu3  ;;  %v4422_v26 = vpop.f32.mrf.mxu0 }
 0x69d   : > { %v4423_v25 = vadd.f32 %v4422_v26, %v14168_v4  ;;  %v4481_v0 = vpop.f32.mrf.mxu1  ;;  %v14172_v4 = vld [vmem:[#allocation43_spill] sm:$0xff] }
 0x69e   : > { %v12759_v6 = vadd.f32 %v4597_v41, %v4539_v44 }
 0x69f   : > { %v4482_v1 = vadd.f32 %v4481_v0, %v4423_v25 }
 0x6a0   : > { %14169 = vst [vmem:[#allocation41_spill] sm:$0xff] %v12759_v6  ;;  %v10126_v6 = vld [vmem:[%s11346_s30 + $0x9cc] sm:$0xf0] }
 0x6a3   : > { %v4540_v63 = vpop.f32.mrf.mxu2 }
 0x6a4   : > { %v4541_v55 = vadd.f32 %v4540_v63, %v4482_v1  ;;  %v4599_v62 = vpop.f32.mrf.mxu3  ;;  %v4425_v31 = vpop.f32.mrf.mxu0 }
 0x6a5   : > { %v4426_v26 = vadd.f32 %v4425_v31, %v14170_v2  ;;  %v4484_v59 = vpop.f32.mrf.mxu1  ;;  %v10190_v31 = vld [vmem:[%s11346_s30 + $0xbcc] sm:$0xf0]  ;;  %v9309_v2 = vld [vmem:[%s11346_s30 + $0x8c0] sm:$0xf] }
 0x6a6   : > { %v12766_v44 = vadd.f32 %v4599_v62, %v4541_v55  ;;  %v9566_v55 = vor.u32 %v10158_v58, %v9565_v21  ;;  %v9693_v62 = vld [vmem:[%s11346_s30 + $0xbc0] sm:$0xf] }
 0x6a7   : > { %v4485_v41 = vadd.f32 %v4484_v59, %v4426_v26  ;;  %4464 = vmatmul.bf16.gmra.mxu0 %v11805_v5  ;;  %4523 = vmatmul.bf16.gmra.mxu1 %v11807_v7  ;;  %v9694_v26 = vor.u32 %v10190_v31, %v9693_v62  ;;  %v10094_v59 = vld [vmem:[%s11346_s30 + $0x8cc] sm:$0xf0] }
 0x6a8   : > { %14171 = vst [vmem:[#allocation42_spill] sm:$0xff] %v12766_v44  ;;  %4582 = vmatmul.bf16.gmra.mxu2 %v11809_v8  ;;  %v9437_v44 = vld [vmem:[%s11346_s30 + $0x9c0] sm:$0xf] }
 0x6a9   : > { %4641 = vmatmul.bf16.gmra.mxu3 %v11811_v22  ;;  %6011 = vmatpush.bf16.msra.mxu2 %v9566_v55  ;;  %v14174_v55 = vld [vmem:[#allocation45_spill] sm:$0xff] }
 0x6aa   : > { %6070 = vmatpush.bf16.msra.mxu3 %v9694_v26 }
 0x6ab   : > { %v4543_v40 = vpop.f32.mrf.mxu2 }
 0x6ac   : > { %v4544_v1 = vadd.f32 %v4543_v40, %v4485_v41  ;;  %v4602_v60 = vpop.f32.mrf.mxu3  ;;  %v4427_v3 = vpop.f32.mrf.mxu0  ;;  %v9310_v41 = vor.u32 %v10094_v59, %v9309_v2  ;;  %v9438_v40 = vor.u32 %v10126_v6, %v9437_v44  ;;  %v9549_v59 = vld [vmem:[%s11346_s30 + $0xaa0] sm:$0xf] }
 0x6ad   : > { %v4428_v25 = vadd.f32 %v4427_v3, %v14172_v4  ;;  %v4486_v0 = vpop.f32.mrf.mxu1  ;;  %v14173_v4 = vld [vmem:[#allocation44_spill] sm:$0xff] }
 0x6ae   : > { %v12773_v24 = vadd.f32 %v4602_v60, %v4544_v1  ;;  %5893 = vmatpush.bf16.msra.mxu0 %v9310_v41  ;;  %5952 = vmatpush.bf16.msra.mxu1 %v9438_v40 }
 0x6af   : > { %v4487_v63 = vadd.f32 %v4486_v0, %v4428_v25 }
 0x6b3   : > { %v4545_v57 = vpop.f32.mrf.mxu2 }
 0x6b4   : > { %v4546_v1 = vadd.f32 %v4545_v57, %v4487_v63  ;;  %v4604_v60 = vpop.f32.mrf.mxu3  ;;  %v4430_v3 = vpop.f32.mrf.mxu0 }
 0x6b5   : > { %v4431_v25 = vadd.f32 %v4430_v3, %v14173_v4  ;;  %v4489_v0 = vpop.f32.mrf.mxu1  ;;  %v14176_v4 = vld [vmem:[#allocation46_spill] sm:$0xff] }
 0x6b6   : > { %v12784_v21 = vadd.f32 %v4604_v60, %v4546_v1 }
 0x6b7   : > { %v4490_v58 = vadd.f32 %v4489_v0, %v4431_v25  ;;  %4655 = vmatmul.bf16.vlgmr.msrb.gmra.mxu0 %v12299_v53  ;;  %4714 = vmatmul.bf16.vlgmr.msrb.gmra.mxu1 %v12301_v43  ;;  %v10154_v53 = vld [vmem:[%s11346_s30 + $0xaac] sm:$0xf0]  ;;  %v9677_v43 = vld [vmem:[%s11346_s30 + $0xba0] sm:$0xf] }
 0x6b8   : > { %4773 = vmatmul.bf16.vlgmr.msrb.gmra.mxu2 %v12303_v54  ;;  %v9550_v41 = vor.u32 %v10154_v53, %v9549_v59  ;;  %v10186_v54 = vld [vmem:[%s11346_s30 + $0xbac] sm:$0xf0] }
 0x6b9   : > { %4832 = vmatmul.bf16.vlgmr.msrb.gmra.mxu3 %v12305_v56  ;;  %v9678_v40 = vor.u32 %v10186_v54, %v9677_v43 }
 0x6ba   : > { %6012 = vmatpush.bf16.msra.mxu2 %v9550_v41  ;;  %v14178_v41 = vld [vmem:[#allocation47_spill] sm:$0xff] }
 0x6bb   : > { %v4548_v57 = vpop.f32.mrf.mxu2  ;;  %6071 = vmatpush.bf16.msra.mxu3 %v9678_v40 }
 0x6bc   : > { %v4549_v6 = vadd.f32 %v4548_v57, %v4490_v58  ;;  %v4607_v44 = vpop.f32.mrf.mxu3  ;;  %v4432_v63 = vpop.f32.mrf.mxu0  ;;  %v9293_v57 = vld [vmem:[%s11346_s30 + $0x8a0] sm:$0xf] }
 0x6bd   : > { %v4433_v62 = vadd.f32 %v4432_v63, %v14174_v55  ;;  %v4491_v31 = vpop.f32.mrf.mxu1 }
 0x6be   : > { %v12791_v2 = vadd.f32 %v4607_v44, %v4549_v6  ;;  %v10090_v6 = vld [vmem:[%s11346_s30 + $0x8ac] sm:$0xf0]  ;;  %v9421_v44 = vld [vmem:[%s11346_s30 + $0x9a0] sm:$0xf] }
 0x6bf   : > { %v4492_v26 = vadd.f32 %v4491_v31, %v4433_v62  ;;  %v9294_v55 = vor.u32 %v10090_v6, %v9293_v57  ;;  %v10122_v62 = vld [vmem:[%s11346_s30 + $0x9ac] sm:$0xf0] }
 0x6c0   : > { %14175 = vst [vmem:[#allocation43_spill] sm:$0xff] %v12791_v2  ;;  %v9422_v31 = vor.u32 %v10122_v62, %v9421_v44  ;;  %v10150_v57 = vld [vmem:[%s11346_s30 + $0xa8c] sm:$0xf0]  ;;  %v6952_v2 = vld [vmem:[%s11342_s27 + $0x120] sm:$0xff] }
 0x6c1   : > { %5894 = vmatpush.bf16.msra.mxu0 %v9294_v55  ;;  %v10182_v55 = vld [vmem:[%s11346_s30 + $0xb8c] sm:$0xf0] }
 0x6c2   : > { %5953 = vmatpush.bf16.msra.mxu1 %v9422_v31  ;;  %v9277_v31 = vld [vmem:[%s11346_s30 + $0x880] sm:$0xf] }
 0x6c3   : > { %v4550_v56 = vpop.f32.mrf.mxu2 }
 0x6c4   : > { %v4551_v1 = vadd.f32 %v4550_v56, %v4492_v26  ;;  %v4609_v60 = vpop.f32.mrf.mxu3  ;;  %v4435_v3 = vpop.f32.mrf.mxu0 }
 0x6c5   : > { %v4436_v25 = vadd.f32 %v4435_v3, %v14176_v4  ;;  %v4494_v0 = vpop.f32.mrf.mxu1 }
 0x6c6   : > { %v12798_v58 = vadd.f32 %v4609_v60, %v4551_v1  ;;  %v14180_v60 = vld [vmem:[#allocation48_spill] sm:$0xff] }
 0x6c7   : > { %v4495_v63 = vadd.f32 %v4494_v0, %v4436_v25  ;;  %4660 = vmatmul.bf16.gmra.mxu0 %v11588_v33  ;;  %4719 = vmatmul.bf16.gmra.mxu1 %v11593_v38  ;;  %v9533_v0 = vld [vmem:[%s11346_s30 + $0xa80] sm:$0xf] }
 0x6c8   : > { %14177 = vst [vmem:[#allocation44_spill] sm:$0xff] %v12798_v58  ;;  %4778 = vmatmul.bf16.gmra.mxu2 %v11595_v39  ;;  %v9534_v44 = vor.u32 %v10150_v57, %v9533_v0  ;;  %v6920_v58 = vld [vmem:[%s11342_s27 + $0x20] sm:$0xff] }
 0x6c9   : > { %4837 = vmatmul.bf16.gmra.mxu3 %v11599_v42 }
 0x6ca   : > { %6013 = vmatpush.bf16.msra.mxu2 %v9534_v44 }
 0x6cb   : > { %v4553_v26 = vpop.f32.mrf.mxu2 }
 0x6cc   : > { %v4554_v59 = vadd.f32 %v4553_v26, %v4495_v63  ;;  %v4612_v53 = vpop.f32.mrf.mxu3  ;;  %v4437_v43 = vpop.f32.mrf.mxu0  ;;  %v9661_v63 = vld [vmem:[%s11346_s30 + $0xb80] sm:$0xf]  ;;  %v10086_v26 = vld [vmem:[%s11346_s30 + $0x88c] sm:$0xf0] }
 0x6cd   : > { %v4438_v54 = vadd.f32 %v4437_v43, %v14178_v41  ;;  %v4496_v33 = vpop.f32.mrf.mxu1  ;;  %v9662_v62 = vor.u32 %v10182_v55, %v9661_v63  ;;  %v10118_v43 = vld [vmem:[%s11346_s30 + $0x98c] sm:$0xf0]  ;;  %v9517_v63 = vld [vmem:[%s11346_s30 + $0xa60] sm:$0xf] }
 0x6ce   : > { %v12809_v40 = vadd.f32 %v4612_v53, %v4554_v59  ;;  %v9405_v59 = vld [vmem:[%s11346_s30 + $0x980] sm:$0xf]  ;;  %v9278_v53 = vor.u32 %v10086_v26, %v9277_v31  ;;  %v10146_v55 = vld [vmem:[%s11346_s30 + $0xa6c] sm:$0xf0] }
 0x6cf   : > { %v4497_v38 = vadd.f32 %v4496_v33, %v4438_v54  ;;  %6072 = vmatpush.bf16.msra.mxu3 %v9662_v62  ;;  %v9406_v54 = vor.u32 %v10118_v43, %v9405_v59  ;;  %v9645_v62 = vld [vmem:[%s11346_s30 + $0xb60] sm:$0xf]  ;;  %v9518_v31 = vor.u32 %v10146_v55, %v9517_v63  ;;  %v10178_v26 = vld [vmem:[%s11346_s30 + $0xb6c] sm:$0xf0] }
 0x6d0   : > { %14179 = vst [vmem:[#allocation45_spill] sm:$0xff] %v12809_v40  ;;  %5895 = vmatpush.bf16.msra.mxu0 %v9278_v53  ;;  %v9646_v53 = vor.u32 %v10178_v26, %v9645_v62  ;;  %v9461_v40 = vld [vmem:[%s11346_s30 + $0x9e8] sm:$0xf] }
 0x6d1   : > { %5954 = vmatpush.bf16.msra.mxu1 %v9406_v54  ;;  %6014 = vmatpush.bf16.msra.mxu2 %v9518_v31 }
 0x6d3   : > { %v4555_v39 = vpop.f32.mrf.mxu2  ;;  %6073 = vmatpush.bf16.msra.mxu3 %v9646_v53 }
 0x6d4   : > { %v4556_v56 = vadd.f32 %v4555_v39, %v4497_v38  ;;  %v4614_v1 = vpop.f32.mrf.mxu3  ;;  %v4440_v42 = vpop.f32.mrf.mxu0  ;;  %v14182_v39 = vld [vmem:[#allocation49_spill] sm:$0xff] }
 0x6d5   : > { %v4441_v3 = vadd.f32 %v4440_v42, %v14180_v60  ;;  %v4499_v4 = vpop.f32.mrf.mxu1 }
 0x6d6   : > { %v12812_v25 = vadd.f32 %v4614_v1, %v4556_v56 }
 0x6d7   : > { %v4500_v6 = vadd.f32 %v4499_v4, %v4441_v3  ;;  %4665 = vmatmul.bf16.gmra.mxu0 %v11625_v9  ;;  %4724 = vmatmul.bf16.gmra.mxu1 %v11627_v10  ;;  %v14184_v4 = vld [vmem:[#allocation50_spill] sm:$0xff] }
 0x6d8   : > { %14181 = vst [vmem:[#allocation46_spill] sm:$0xff] %v12812_v25  ;;  %4783 = vmatmul.bf16.gmra.mxu2 %v11629_v11  ;;  %v10099_v25 = vld [vmem:[%s11346_s30 + $0x8f4] sm:$0xf0] }
 0x6d9   : > { %4842 = vmatmul.bf16.gmra.mxu3 %v11631_v12 }
 0x6db   : > { %v4558_v41 = vpop.f32.mrf.mxu2 }
 0x6dc   : > { %v4559_v9 = vadd.f32 %v4558_v41, %v4500_v6  ;;  %v4617_v33 = vpop.f32.mrf.mxu3  ;;  %v4442_v38 = vpop.f32.mrf.mxu0 }
 0x6dd   : > { %v4443_v10 = vadd.f32 %v4442_v38, %v14182_v39  ;;  %v4501_v56 = vpop.f32.mrf.mxu1  ;;  %v9389_v38 = vld [vmem:[%s11346_s30 + $0x960] sm:$0xf] }
 0x6de   : > { %v12827_v11 = vadd.f32 %v4617_v33, %v4559_v9  ;;  %v9261_v9 = vld [vmem:[%s11346_s30 + $0x860] sm:$0xf]  ;;  %v10082_v33 = vld [vmem:[%s11346_s30 + $0x86c] sm:$0xf0] }
 0x6df   : > { %v4502_v12 = vadd.f32 %v4501_v56, %v4443_v10  ;;  %v9262_v10 = vor.u32 %v10082_v33, %v9261_v9  ;;  %v10114_v56 = vld [vmem:[%s11346_s30 + $0x96c] sm:$0xf0]  ;;  %v9373_v33 = vld [vmem:[%s11346_s30 + $0x940] sm:$0xf] }
 0x6e0   : > { %14183 = vst [vmem:[#allocation47_spill] sm:$0xff] %v12827_v11  ;;  %v10078_v9 = vld [vmem:[%s11346_s30 + $0x84c] sm:$0xf0]  ;;  %v9333_v11 = vld [vmem:[%s11346_s30 + $0x8e8] sm:$0xf] }
 0x6e1   : > { %5896 = vmatpush.bf16.msra.mxu0 %v9262_v10 }
 0x6e3   : > { %v4560_v1 = vpop.f32.mrf.mxu2 }
 0x6e4   : > { %v4561_v42 = vadd.f32 %v4560_v1, %v4502_v12  ;;  %v4619_v60 = vpop.f32.mrf.mxu3  ;;  %v4445_v3 = vpop.f32.mrf.mxu0  ;;  %v9390_v12 = vor.u32 %v10114_v56, %v9389_v38  ;;  %v10110_v38 = vld [vmem:[%s11346_s30 + $0x94c] sm:$0xf0] }
 0x6e5   : > { %v4446_v0 = vadd.f32 %v4445_v3, %v14184_v4  ;;  %v4504_v57 = vpop.f32.mrf.mxu1  ;;  %v14188_v4 = vld [vmem:[#allocation52_spill] sm:$0xff]  ;;  %v9374_v10 = vor.u32 %v10110_v38, %v9373_v33 }
 0x6e6   : > { %v12830_v6 = vadd.f32 %v4619_v60, %v4561_v42  ;;  %5955 = vmatpush.bf16.msra.mxu1 %v9390_v12 }
 0x6e7   : > { %v4505_v44 = vadd.f32 %v4504_v57, %v4446_v0  ;;  %4670 = vmatmul.bf16.gmra.mxu0 %v11649_v27  ;;  %4729 = vmatmul.bf16.gmra.mxu1 %v11651_v28  ;;  %v14186_v28 = vld [vmem:[#allocation51_spill] sm:$0xff] }
 0x6e8   : > { %14185 = vst [vmem:[#allocation48_spill] sm:$0xff] %v12830_v6  ;;  %4788 = vmatmul.bf16.gmra.mxu2 %v11653_v29  ;;  %v10065_v6 = vld [vmem:[%s11344_s29 + $0x16c] sm:$0xf] }
 0x6e9   : > { %4847 = vmatmul.bf16.gmra.mxu3 %v11655_v30 }
 0x6ea   : > { %5956 = vmatpush.bf16.msra.mxu1 %v9374_v10  ;;  %v10074_v10 = vld [vmem:[%s11346_s30 + $0x82c] sm:$0xf0] }
 0x6eb   : > { %v4563_v59 = vpop.f32.mrf.mxu2 }
 0x6ec   : > { %v4564_v43 = vadd.f32 %v4563_v59, %v4505_v44  ;;  %v4622_v41 = vpop.f32.mrf.mxu3  ;;  %v4447_v27 = vpop.f32.mrf.mxu0  ;;  %v14190_v59 = vld [vmem:[#allocation53_spill] sm:$0xff] }
 0x6ed   : > { %v4448_v54 = vadd.f32 %v4447_v27, %v14186_v28  ;;  %v4506_v29 = vpop.f32.mrf.mxu1  ;;  %v10142_v27 = vld [vmem:[%s11346_s30 + $0xa4c] sm:$0xf0] }
 0x6ee   : > { %v12841_v30 = vadd.f32 %v4622_v41, %v4564_v43 }
 0x6ef   : > { %v4507_v39 = vadd.f32 %v4506_v29, %v4448_v54  ;;  %v9629_v54 = vld [vmem:[%s11346_s30 + $0xb40] sm:$0xf] }
 0x6f0   : > { %14187 = vst [vmem:[#allocation49_spill] sm:$0xff] %v12841_v30  ;;  %v9245_v29 = vld [vmem:[%s11346_s30 + $0x840] sm:$0xf] }
 0x6f3   : > { %v4565_v1 = vpop.f32.mrf.mxu2 }
 0x6f4   : > { %v4566_v42 = vadd.f32 %v4565_v1, %v4507_v39  ;;  %v4624_v60 = vpop.f32.mrf.mxu3  ;;  %v4450_v3 = vpop.f32.mrf.mxu0  ;;  %v9246_v39 = vor.u32 %v10078_v9, %v9245_v29 }
 0x6f5   : > { %v4451_v0 = vadd.f32 %v4450_v3, %v14188_v4  ;;  %v4509_v57 = vpop.f32.mrf.mxu1 }
 0x6f6   : > { %v12848_v44 = vadd.f32 %v4624_v60, %v4566_v42  ;;  %5897 = vmatpush.bf16.msra.mxu0 %v9246_v39  ;;  %v14192_v60 = vld [vmem:[#allocation54_spill] sm:$0xff]  ;;  %v9229_v39 = vld [vmem:[%s11346_s30 + $0x820] sm:$0xf] }
 0x6f7   : > { %v4510_v63 = vadd.f32 %v4509_v57, %v4451_v0  ;;  %4675 = vmatmul.bf16.gmra.mxu0 %v11673_v49  ;;  %4734 = vmatmul.bf16.gmra.mxu1 %v11675_v50  ;;  %v9501_v49 = vld [vmem:[%s11346_s30 + $0xa40] sm:$0xf] }
 0x6f8   : > { %14189 = vst [vmem:[#allocation50_spill] sm:$0xff] %v12848_v44  ;;  %4793 = vmatmul.bf16.gmra.mxu2 %v11677_v51  ;;  %v9502_v28 = vor.u32 %v10142_v27, %v9501_v49  ;;  %v10174_v51 = vld [vmem:[%s11346_s30 + $0xb4c] sm:$0xf0]  ;;  %v9485_v27 = vld [vmem:[%s11346_s30 + $0xa20] sm:$0xf] }
 0x6f9   : > { %4852 = vmatmul.bf16.gmra.mxu3 %v11679_v52  ;;  %v9630_v52 = vor.u32 %v10174_v51, %v9629_v54  ;;  %v10063_v44 = vld [vmem:[%s11344_s29 + $0x154] sm:$0xf0] }
 0x6fa   : > { %6015 = vmatpush.bf16.msra.mxu2 %v9502_v28 }
 0x6fb   : > { %v4568_v55 = vpop.f32.mrf.mxu2  ;;  %6074 = vmatpush.bf16.msra.mxu3 %v9630_v52  ;;  %v14196_v52 = vld [vmem:[#allocation56_spill] sm:$0xff] }
 0x6fc   : > { %v4569_v62 = vadd.f32 %v4568_v55, %v4510_v63  ;;  %v4627_v31 = vpop.f32.mrf.mxu3  ;;  %v4452_v26 = vpop.f32.mrf.mxu0 }
 0x6fd   : > { %v4453_v53 = vadd.f32 %v4452_v26, %v14190_v59  ;;  %v4511_v43 = vpop.f32.mrf.mxu1  ;;  %v14194_v26 = vld [vmem:[#allocation55_spill] sm:$0xff] }
 0x6fe   : > { %v12855_v41 = vadd.f32 %v4627_v31, %v4569_v62 }
 0x6ff   : > { %v4512_v50 = vadd.f32 %v4511_v43, %v4453_v53 }
 0x700   : > { %14191 = vst [vmem:[#allocation51_spill] sm:$0xff] %v12855_v41  ;;  %v9189_v41 = vld [vmem:[%s11344_s29 + $0x148] sm:$0xf] }
 0x703   : > { %v4570_v56 = vpop.f32.mrf.mxu2 }
 0x704   : > { %v4571_v12 = vadd.f32 %v4570_v56, %v4512_v50  ;;  %v4629_v1 = vpop.f32.mrf.mxu3  ;;  %v4455_v42 = vpop.f32.mrf.mxu0  ;;  %v9357_v56 = vld [vmem:[%s11346_s30 + $0x920] sm:$0xf] }
 0x705   : > { %v4456_v3 = vadd.f32 %v4455_v42, %v14192_v60  ;;  %v4514_v4 = vpop.f32.mrf.mxu1  ;;  %v10106_v42 = vld [vmem:[%s11346_s30 + $0x92c] sm:$0xf0] }
 0x706   : > { %v12866_v0 = vadd.f32 %v4629_v1, %v4571_v12  ;;  %v9230_v1 = vor.u32 %v10074_v10, %v9229_v39  ;;  %v9358_v60 = vor.u32 %v10106_v42, %v9357_v56  ;;  %v10102_v39 = vld [vmem:[%s11346_s30 + $0x90c] sm:$0xf0]  ;;  %v14202_v42 = vld [vmem:[#allocation59_spill] sm:$0xff] }
 0x707   : > { %v4515_v57 = vadd.f32 %v4514_v4, %v4456_v3  ;;  %4680 = vmatmul.bf16.gmra.mxu0 %v11701_v13  ;;  %4739 = vmatmul.bf16.gmra.mxu1 %v11703_v14  ;;  %v10138_v13 = vld [vmem:[%s11346_s30 + $0xa2c] sm:$0xf0]  ;;  %v9613_v14 = vld [vmem:[%s11346_s30 + $0xb20] sm:$0xf] }
 0x708   : > { %14193 = vst [vmem:[#allocation52_spill] sm:$0xff] %v12866_v0  ;;  %4798 = vmatmul.bf16.gmra.mxu2 %v11705_v15  ;;  %v9486_v50 = vor.u32 %v10138_v13, %v9485_v27  ;;  %v10170_v15 = vld [vmem:[%s11346_s30 + $0xb2c] sm:$0xf0]  ;;  %5898 = vmatpush.bf16.msra.mxu0 %v9230_v1 }
 0x709   : > { %4857 = vmatmul.bf16.gmra.mxu3 %v11707_v16  ;;  %v9614_v28 = vor.u32 %v10170_v15, %v9613_v14  ;;  %5957 = vmatpush.bf16.msra.mxu1 %v9358_v60  ;;  %v9469_v14 = vld [vmem:[%s11346_s30 + $0xa00] sm:$0xf]  ;;  %v10062_v0 = vld [vmem:[%s11344_s29 + $0x14c] sm:$0xf0] }
 0x70a   : > { %6016 = vmatpush.bf16.msra.mxu2 %v9486_v50  ;;  %v10134_v50 = vld [vmem:[%s11346_s30 + $0xa0c] sm:$0xf0] }
 0x70b   : > { %v4573_v63 = vpop.f32.mrf.mxu2  ;;  %6075 = vmatpush.bf16.msra.mxu3 %v9614_v28  ;;  %v9470_v28 = vor.u32 %v10134_v50, %v9469_v14 }
 0x70c   : > { %v4574_v55 = vadd.f32 %v4573_v63, %v4515_v57  ;;  %v4632_v62 = vpop.f32.mrf.mxu3  ;;  %v4457_v31 = vpop.f32.mrf.mxu0 }
 0x70d   : > { %v4458_v59 = vadd.f32 %v4457_v31, %v14194_v26  ;;  %v4516_v53 = vpop.f32.mrf.mxu1 }
 0x70e   : > { %v12873_v43 = vadd.f32 %v4632_v62, %v4574_v55  ;;  %v14198_v55 = vld [vmem:[#allocation57_spill] sm:$0xff]  ;;  %6017 = vmatpush.bf16.msra.mxu2 %v9470_v28 }
 0x70f   : > { %v4517_v49 = vadd.f32 %v4516_v53, %v4458_v59  ;;  %v14200_v53 = vld [vmem:[#allocation58_spill] sm:$0xff] }
 0x710   : > { %14195 = vst [vmem:[#allocation53_spill] sm:$0xff] %v12873_v43 }
 0x713   : > { %v4575_v16 = vpop.f32.mrf.mxu2 }
 0x714   : > { %v4576_v54 = vadd.f32 %v4575_v16, %v4517_v49  ;;  %v4634_v51 = vpop.f32.mrf.mxu3  ;;  %v4460_v29 = vpop.f32.mrf.mxu0  ;;  %v9597_v16 = vld [vmem:[%s11346_s30 + $0xb00] sm:$0xf] }
 0x715   : > { %v4461_v9 = vadd.f32 %v4460_v29, %v14196_v52  ;;  %v4519_v33 = vpop.f32.mrf.mxu1  ;;  %v9213_v29 = vld [vmem:[%s11346_s30 + $0x800] sm:$0xf]  ;;  %v10070_v52 = vld [vmem:[%s11346_s30 + $0x80c] sm:$0xf0] }
 0x716   : > { %v12880_v38 = vadd.f32 %v4634_v51, %v4576_v54  ;;  %v10166_v54 = vld [vmem:[%s11346_s30 + $0xb0c] sm:$0xf0] }
 0x717   : > { %v4520_v12 = vadd.f32 %v4519_v33, %v4461_v9  ;;  %4685 = vmatmul.bf16.gmra.mxu0 %v11729_v45  ;;  %4744 = vmatmul.bf16.gmra.mxu1 %v11731_v46  ;;  %v9598_v51 = vor.u32 %v10166_v54, %v9597_v16  ;;  %v9341_v9 = vld [vmem:[%s11346_s30 + $0x900] sm:$0xf]  ;;  %v9214_v33 = vor.u32 %v10070_v52, %v9213_v29  ;;  %v10096_v16 = vld [vmem:[%s11346_s30 + $0x8e4] sm:$0xf]  ;;  %v9327_v54 = vld [vmem:[%s11346_s30 + $0x8f0] sm:$0xf0] }
 0x718   : > { %14197 = vst [vmem:[#allocation54_spill] sm:$0xff] %v12880_v38  ;;  %4803 = vmatmul.bf16.gmra.mxu2 %v11733_v47  ;;  %v9342_v56 = vor.u32 %v10102_v39, %v9341_v9  ;;  %v9330_v52 = vor.u32 %v10096_v16, %v9327_v54  ;;  %v9455_v9 = vld [vmem:[%s11346_s30 + $0x9f0] sm:$0xf0]  ;;  %v10029_v54 = vld [vmem:[%s11344_s29 + $0x4c] sm:$0xf] }
 0x719   : > { %4862 = vmatmul.bf16.gmra.mxu3 %v11735_v48  ;;  %5899 = vmatpush.bf16.msra.mxu0 %v9214_v33  ;;  %v9343_v38 = vld [vmem:[%s11346_s30 + $0x910] sm:$0xf0] }
 0x71a   : > { %6076 = vmatpush.bf16.msra.mxu3 %v9598_v51  ;;  %5958 = vmatpush.bf16.msra.mxu1 %v9342_v56  ;;  %v10128_v51 = vld [vmem:[%s11346_s30 + $0x9e4] sm:$0xf] }
 0x71b   : > { %v4578_v3 = vpop.f32.mrf.mxu2  ;;  %v9458_v33 = vor.u32 %v10128_v51, %v9455_v9  ;;  %v9063_v51 = vld [vmem:[%s11344_s29 + $0x58] sm:$0xf0] }
 0x71c   : > { %v4579_v4 = vadd.f32 %v4578_v3, %v4520_v12  ;;  %v4637_v57 = vpop.f32.mrf.mxu3  ;;  %v4462_v63 = vpop.f32.mrf.mxu0 }
 0x71d   : > { %v4463_v62 = vadd.f32 %v4462_v63, %v14198_v55  ;;  %v4521_v45 = vpop.f32.mrf.mxu1  ;;  %v14204_v55 = vld [vmem:[#allocation60_spill] sm:$0xff]  ;;  %6128 = vmatpush.bf16.msrb.mxu0 %v9330_v52 }
 0x71e   : > { %v12891_v31 = vadd.f32 %v4637_v57, %v4579_v4  ;;  %6187 = vmatpush.bf16.msrb.mxu1 %v9458_v33 }
 0x71f   : > { %v4522_v46 = vadd.f32 %v4521_v45, %v4463_v62 }
 0x720   : > { %14199 = vst [vmem:[#allocation55_spill] sm:$0xff] %v12891_v31 }
 0x723   : > { %v4580_v47 = vpop.f32.mrf.mxu2 }
 0x724   : > { %v4581_v26 = vadd.f32 %v4580_v47, %v4522_v46  ;;  %v4639_v59 = vpop.f32.mrf.mxu3  ;;  %v4465_v48 = vpop.f32.mrf.mxu0 }
 0x725   : > { %v4466_v49 = vadd.f32 %v4465_v48, %v14200_v53  ;;  %v4524_v27 = vpop.f32.mrf.mxu1  ;;  %v10192_v48 = vld [vmem:[%s11346_s30 + $0xbe4] sm:$0xf] }
 0x726   : > { %v12894_v13 = vadd.f32 %v4639_v59, %v4581_v26  ;;  %v10160_v26 = vld [vmem:[%s11346_s30 + $0xae4] sm:$0xf]  ;;  %v9583_v59 = vld [vmem:[%s11346_s30 + $0xaf0] sm:$0xf0] }
 0x727   : > { %v4525_v15 = vadd.f32 %v4524_v27, %v4466_v49  ;;  %4690 = vmatmul.bf16.gmra.mxu0 %v11757_v17  ;;  %4749 = vmatmul.bf16.gmra.mxu1 %v11759_v18  ;;  %v9586_v53 = vor.u32 %v10160_v26, %v9583_v59  ;;  %v9711_v49 = vld [vmem:[%s11346_s30 + $0xbf0] sm:$0xf0]  ;;  %v10028_v26 = vld [vmem:[%s11344_s29 + $0x44] sm:$0xf] }
 0x728   : > { %14201 = vst [vmem:[#allocation56_spill] sm:$0xff] %v12894_v13  ;;  %4808 = vmatmul.bf16.gmra.mxu2 %v11761_v19  ;;  %v9714_v14 = vor.u32 %v10192_v48, %v9711_v49  ;;  %v10188_v48 = vld [vmem:[%s11346_s30 + $0xbc4] sm:$0xf]  ;;  %v9231_v13 = vld [vmem:[%s11346_s30 + $0x830] sm:$0xf0] }
 0x729   : > { %4867 = vmatmul.bf16.gmra.mxu3 %v11763_v20  ;;  %6246 = vmatpush.bf16.msrb.mxu2 %v9586_v53  ;;  %v9695_v53 = vld [vmem:[%s11346_s30 + $0xbd0] sm:$0xf0]  ;;  %v10092_v49 = vld [vmem:[%s11346_s30 + $0x8c4] sm:$0xf] }
 0x72a   : > { %6305 = vmatpush.bf16.msrb.mxu3 %v9714_v14  ;;  %v9311_v14 = vld [vmem:[%s11346_s30 + $0x8d0] sm:$0xf0] }
 0x72b   : > { %v4583_v10 = vpop.f32.mrf.mxu2 }
 0x72c   : > { %v4584_v17 = vadd.f32 %v4583_v10, %v4525_v15  ;;  %v4642_v12 = vpop.f32.mrf.mxu3  ;;  %v4467_v1 = vpop.f32.mrf.mxu0 }
 0x72d   : > { %v4468_v18 = vadd.f32 %v4467_v1, %v14202_v42  ;;  %v4526_v60 = vpop.f32.mrf.mxu1 }
 0x72e   : > { %v12909_v19 = vadd.f32 %v4642_v12, %v4584_v17  ;;  %v14208_v12 = vld [vmem:[#allocation62_spill] sm:$0xff] }
 0x72f   : > { %v4527_v20 = vadd.f32 %v4526_v60, %v4468_v18 }
 0x730   : > { %14203 = vst [vmem:[#allocation57_spill] sm:$0xff] %v12909_v19 }
 0x733   : > { %v4585_v3 = vpop.f32.mrf.mxu2 }
 0x734   : > { %v4586_v4 = vadd.f32 %v4585_v3, %v4527_v20  ;;  %v4644_v57 = vpop.f32.mrf.mxu3  ;;  %v4656_v63 = vpop.f32.mrf.mxu0 }
 0x735   : > { %v4657_v62 = vadd.f32 %v4656_v63, %v14204_v55  ;;  %v4715_v45 = vpop.f32.mrf.mxu1  ;;  %v14210_v63 = vld [vmem:[#allocation63_spill] sm:$0xff] }
 0x736   : > { %v12912_v46 = vadd.f32 %v4644_v57, %v4586_v4 }
 0x737   : > { %v4716_v47 = vadd.f32 %v4715_v45, %v4657_v62  ;;  %4695 = vmatmul.bf16.gmra.mxu0 %v11777_v34  ;;  %4754 = vmatmul.bf16.gmra.mxu1 %v11779_v35  ;;  %v14206_v35 = vld [vmem:[#allocation61_spill] sm:$0xff]  ;;  %v9567_v45 = vld [vmem:[%s11346_s30 + $0xad0] sm:$0xf0] }
 0x738   : > { %14205 = vst [vmem:[#allocation58_spill] sm:$0xff] %v12912_v46  ;;  %4813 = vmatmul.bf16.gmra.mxu2 %v11781_v36 }
 0x739   : > { %4872 = vmatmul.bf16.gmra.mxu3 %v11783_v37 }
 0x73b   : > { %v4774_v27 = vpop.f32.mrf.mxu2 }
 0x73c   : > { %v4775_v50 = vadd.f32 %v4774_v27, %v4716_v47  ;;  %v4833_v15 = vpop.f32.mrf.mxu3  ;;  %v4658_v34 = vpop.f32.mrf.mxu0  ;;  %v9698_v27 = vor.u32 %v10188_v48, %v9695_v53  ;;  %v10034_v48 = vld [vmem:[%s11344_s29 + $0x6c] sm:$0xf0]  ;;  %v10032_v53 = vld [vmem:[%s11344_s29 + $0x64] sm:$0xf] }
 0x73d   : > { %v4659_v28 = vadd.f32 %v4658_v34, %v14206_v35  ;;  %v4717_v36 = vpop.f32.mrf.mxu1  ;;  %v9055_v34 = vld [vmem:[%s11344_s29 + $0x50] sm:$0xf0]  ;;  %v9061_v35 = vld [vmem:[%s11344_s29 + $0x48] sm:$0xf] }
 0x73e   : > { %v12923_v37 = vadd.f32 %v4833_v15, %v4775_v50  ;;  %v10124_v50 = vld [vmem:[%s11346_s30 + $0x9c4] sm:$0xf]  ;;  %v9439_v15 = vld [vmem:[%s11346_s30 + $0x9d0] sm:$0xf0]  ;;  %6306 = vmatpush.bf16.msrb.mxu3 %v9698_v27 }
 0x73f   : > { %v4718_v29 = vadd.f32 %v4717_v36, %v4659_v28  ;;  %v10031_v28 = vld [vmem:[%s11344_s29 + $0x54] sm:$0xf0]  ;;  %v9314_v36 = vor.u32 %v10092_v49, %v9311_v14  ;;  %v9442_v16 = vor.u32 %v10124_v50, %v9439_v15  ;;  %v9679_v27 = vld [vmem:[%s11346_s30 + $0xbb0] sm:$0xf0]  ;;  %v9077_v50 = vld [vmem:[%s11344_s29 + $0x68] sm:$0xf] }
 0x740   : > { %14207 = vst [vmem:[#allocation59_spill] sm:$0xff] %v12923_v37  ;;  %v9071_v14 = vld [vmem:[%s11344_s29 + $0x70] sm:$0xf0]  ;;  %v10035_v15 = vld [vmem:[%s11344_s29 + $0x74] sm:$0xf0]  ;;  %v14230_v37 = vld [vmem:[#allocation72_spill] sm:$0xff] }
 0x741   : > { %6129 = vmatpush.bf16.msrb.mxu0 %v9314_v36  ;;  %6188 = vmatpush.bf16.msrb.mxu1 %v9442_v16 }
 0x743   : > { %v4776_v39 = vpop.f32.mrf.mxu2 }
 0x744   : > { %v4777_v10 = vadd.f32 %v4776_v39, %v4718_v29  ;;  %v4835_v56 = vpop.f32.mrf.mxu3  ;;  %v4661_v17 = vpop.f32.mrf.mxu0 }
 0x745   : > { %v4662_v1 = vadd.f32 %v4661_v17, %v14208_v12  ;;  %v4720_v42 = vpop.f32.mrf.mxu1  ;;  %v14212_v17 = vld [vmem:[#allocation64_spill] sm:$0xff] }
 0x746   : > { %v12930_v18 = vadd.f32 %v4835_v56, %v4777_v10  ;;  %v12957_v10 = vor.u32 %v10028_v26, %v9055_v34  ;;  %v12959_v56 = vor.u32 %v10031_v28, %v9061_v35  ;;  %v9551_v26 = vld [vmem:[%s11346_s30 + $0xab0] sm:$0xf0]  ;;  %v10033_v35 = vld [vmem:[%s11344_s29 + $0x6c] sm:$0xf]  ;;  %v9079_v28 = vld [vmem:[%s11344_s29 + $0x78] sm:$0xf0] }
 0x747   : > { %v4721_v60 = vadd.f32 %v4720_v42, %v4662_v1  ;;  %4700 = vmatmul.bf16.gmra.mxu0 %v11805_v5  ;;  %4759 = vmatmul.bf16.gmra.mxu1 %v11807_v7  ;;  %v9053_v7 = vld [vmem:[%s11344_s29 + $0x40] sm:$0xf]  ;;  %v12962_v42 = vor.u32 %v10029_v54, %v9063_v51 }
 0x748   : > { %14209 = vst [vmem:[#allocation60_spill] sm:$0xff] %v12930_v18  ;;  %4818 = vmatmul.bf16.gmra.mxu2 %v11809_v8  ;;  %v10030_v8 = vld [vmem:[%s11344_s29 + $0x4c] sm:$0xf0] }
 0x749   : > { %4877 = vmatmul.bf16.gmra.mxu3 %v11811_v22  ;;  %v10156_v22 = vld [vmem:[%s11346_s30 + $0xac4] sm:$0xf]  ;;  %v12955_v52 = vor.u32 %v10030_v8, %v9053_v7 }
 0x74a   : > { %v9570_v59 = vor.u32 %v10156_v22, %v9567_v45  ;;  %v9069_v22 = vld [vmem:[%s11344_s29 + $0x60] sm:$0xf] }
 0x74b   : > { %v4779_v20 = vpop.f32.mrf.mxu2  ;;  %v12985_v16 = vor.u32 %v10034_v48, %v9069_v22 }
 0x74c   : > { %v4780_v3 = vadd.f32 %v4779_v20, %v4721_v60  ;;  %v4838_v4 = vpop.f32.mrf.mxu3  ;;  %v4663_v57 = vpop.f32.mrf.mxu0  ;;  %6247 = vmatpush.bf16.msrb.mxu2 %v9570_v59  ;;  %v10184_v59 = vld [vmem:[%s11346_s30 + $0xba4] sm:$0xf] }
 0x74d   : > { %v4664_v55 = vadd.f32 %v4663_v57, %v14210_v63  ;;  %v4722_v5 = vpop.f32.mrf.mxu1  ;;  %v9682_v34 = vor.u32 %v10184_v59, %v9679_v27  ;;  %v14218_v59 = vld [vmem:[#allocation67_spill] sm:$0xff] }
 0x74e   : > { %v12937_v62 = vadd.f32 %v4838_v4, %v4780_v3 }
 0x74f   : > { %v4723_v47 = vadd.f32 %v4722_v5, %v4664_v55  ;;  %v14214_v55 = vld [vmem:[#allocation65_spill] sm:$0xff]  ;;  %6307 = vmatpush.bf16.msrb.mxu3 %v9682_v34  ;;  %v9087_v34 = vld [vmem:[%s11344_s29 + $0x90] sm:$0xf0] }
 0x750   : > { %14211 = vst [vmem:[#allocation61_spill] sm:$0xff] %v12937_v62  ;;  %v9143_v62 = vld [vmem:[%s11344_s29 + $0xf8] sm:$0xf0] }
 0x753   : > { %v4781_v29 = vpop.f32.mrf.mxu2 }
 0x754   : > { %v4782_v9 = vadd.f32 %v4781_v29, %v4723_v47  ;;  %v4840_v33 = vpop.f32.mrf.mxu3  ;;  %v4666_v39 = vpop.f32.mrf.mxu0  ;;  %v10152_v47 = vld [vmem:[%s11346_s30 + $0xaa4] sm:$0xf] }
 0x755   : > { %v4667_v12 = vadd.f32 %v4666_v39, %v14212_v17  ;;  %v4725_v1 = vpop.f32.mrf.mxu1  ;;  %v9554_v49 = vor.u32 %v10152_v47, %v9551_v26  ;;  %v14216_v39 = vld [vmem:[#allocation66_spill] sm:$0xff] }
 0x756   : > { %v12964_v60 = vadd.f32 %v4840_v33, %v4782_v9  ;;  %v12987_v9 = vor.u32 %v10032_v53, %v9071_v14  ;;  %v12989_v33 = vor.u32 %v10035_v15, %v9077_v50  ;;  %v9085_v14 = vld [vmem:[%s11344_s29 + $0x80] sm:$0xf]  ;;  %v10038_v50 = vld [vmem:[%s11344_s29 + $0x8c] sm:$0xf0]  ;;  %v10036_v15 = vld [vmem:[%s11344_s29 + $0x84] sm:$0xf] }
 0x757   : > { %v4726_v20 = vadd.f32 %v4725_v1, %v4667_v12  ;;  %5900 = vmatmul.bf16.vlgmr.msra.gmra.mxu0 %v12955_v52  ;;  %5959 = vmatmul.bf16.vlgmr.msra.gmra.mxu1 %v12957_v10  ;;  %v12992_v1 = vor.u32 %v10033_v35, %v9079_v28  ;;  %v9093_v35 = vld [vmem:[%s11344_s29 + $0x88] sm:$0xf]  ;;  %v10039_v28 = vld [vmem:[%s11344_s29 + $0x94] sm:$0xf0] }
 0x758   : > { %14213 = vst [vmem:[#allocation62_spill] sm:$0xff] %v12964_v60  ;;  %6018 = vmatmul.bf16.vlgmr.msra.gmra.mxu2 %v12959_v56  ;;  %v10049_v60 = vld [vmem:[%s11344_s29 + $0xec] sm:$0xf] }
 0x759   : > { %6077 = vmatmul.bf16.vlgmr.msra.gmra.mxu3 %v12962_v42  ;;  %6248 = vmatpush.bf16.msrb.mxu2 %v9554_v49 }
 0x75b   : > { %v4784_v3 = vpop.f32.mrf.mxu2 }
 0x75c   : > { %v4785_v4 = vadd.f32 %v4784_v3, %v4726_v20  ;;  %v4843_v57 = vpop.f32.mrf.mxu3  ;;  %v4668_v63 = vpop.f32.mrf.mxu0  ;;  %v10088_v3 = vld [vmem:[%s11346_s30 + $0x8a4] sm:$0xf] }
 0x75d   : > { %v4669_v5 = vadd.f32 %v4668_v63, %v14214_v55  ;;  %v4727_v7 = vpop.f32.mrf.mxu1 }
 0x75e   : > { %v12971_v8 = vadd.f32 %v4843_v57, %v4785_v4  ;;  %v9295_v4 = vld [vmem:[%s11346_s30 + $0x8b0] sm:$0xf0]  ;;  %v10120_v57 = vld [vmem:[%s11346_s30 + $0x9a4] sm:$0xf] }
 0x75f   : > { %v4728_v45 = vadd.f32 %v4727_v7, %v4669_v5  ;;  %v9298_v55 = vor.u32 %v10088_v3, %v9295_v4  ;;  %v9423_v5 = vld [vmem:[%s11346_s30 + $0x9b0] sm:$0xf0]  ;;  %v13017_v3 = vor.u32 %v10036_v15, %v9087_v34  ;;  %v13019_v4 = vor.u32 %v10039_v28, %v9093_v35 }
 0x760   : > { %14215 = vst [vmem:[#allocation63_spill] sm:$0xff] %v12971_v8  ;;  %v9426_v7 = vor.u32 %v10120_v57, %v9423_v5  ;;  %v14220_v57 = vld [vmem:[#allocation68_spill] sm:$0xff]  ;;  %v9407_v35 = vld [vmem:[%s11346_s30 + $0x990] sm:$0xf0] }
 0x761   : > { %6130 = vmatpush.bf16.msrb.mxu0 %v9298_v55 }
 0x762   : > { %6189 = vmatpush.bf16.msrb.mxu1 %v9426_v7 }
 0x763   : > { %v4786_v36 = vpop.f32.mrf.mxu2 }
 0x764   : > { %v4787_v54 = vadd.f32 %v4786_v36, %v4728_v45  ;;  %v4845_v51 = vpop.f32.mrf.mxu3  ;;  %v4671_v29 = vpop.f32.mrf.mxu0  ;;  %v10037_v36 = vld [vmem:[%s11344_s29 + $0x8c] sm:$0xf] }
 0x765   : > { %v4672_v17 = vadd.f32 %v4671_v29, %v14216_v39  ;;  %v4730_v12 = vpop.f32.mrf.mxu1  ;;  %v13015_v29 = vor.u32 %v10038_v50, %v9085_v14  ;;  %v9279_v14 = vld [vmem:[%s11346_s30 + $0x890] sm:$0xf0]  ;;  %v10116_v50 = vld [vmem:[%s11346_s30 + $0x984] sm:$0xf] }
 0x766   : > { %v12994_v20 = vadd.f32 %v4845_v51, %v4787_v54  ;;  %v9095_v54 = vld [vmem:[%s11344_s29 + $0x98] sm:$0xf0] }
 0x767   : > { %v4731_v63 = vadd.f32 %v4730_v12, %v4672_v17  ;;  %5905 = vmatmul.bf16.gmra.mxu0 %v12985_v16  ;;  %5964 = vmatmul.bf16.gmra.mxu1 %v12987_v9  ;;  %v13022_v5 = vor.u32 %v10037_v36, %v9095_v54 }
 0x768   : > { %14217 = vst [vmem:[#allocation64_spill] sm:$0xff] %v12994_v20  ;;  %6023 = vmatmul.bf16.gmra.mxu2 %v12989_v33 }
 0x769   : > { %6082 = vmatmul.bf16.gmra.mxu3 %v12992_v1 }
 0x76b   : > { %v4789_v22 = vpop.f32.mrf.mxu2 }
 0x76c   : > { %v4790_v45 = vadd.f32 %v4789_v22, %v4731_v63  ;;  %v4848_v47 = vpop.f32.mrf.mxu3  ;;  %v4673_v26 = vpop.f32.mrf.mxu0  ;;  %v10148_v22 = vld [vmem:[%s11346_s30 + $0xa84] sm:$0xf] }
 0x76d   : > { %v4674_v48 = vadd.f32 %v4673_v26, %v14218_v59  ;;  %v4732_v53 = vpop.f32.mrf.mxu1  ;;  %v10180_v59 = vld [vmem:[%s11346_s30 + $0xb84] sm:$0xf] }
 0x76e   : > { %v13005_v49 = vadd.f32 %v4848_v47, %v4790_v45  ;;  %v9535_v45 = vld [vmem:[%s11346_s30 + $0xa90] sm:$0xf0] }
 0x76f   : > { %v4733_v27 = vadd.f32 %v4732_v53, %v4674_v48  ;;  %v9538_v26 = vor.u32 %v10148_v22, %v9535_v45  ;;  %v9663_v48 = vld [vmem:[%s11346_s30 + $0xb90] sm:$0xf0]  ;;  %v10042_v22 = vld [vmem:[%s11344_s29 + $0xac] sm:$0xf0]  ;;  %v10040_v45 = vld [vmem:[%s11344_s29 + $0xa4] sm:$0xf] }
 0x770   : > { %14219 = vst [vmem:[#allocation65_spill] sm:$0xff] %v13005_v49  ;;  %v9666_v53 = vor.u32 %v10180_v59, %v9663_v48  ;;  %v9109_v59 = vld [vmem:[%s11344_s29 + $0xa8] sm:$0xf]  ;;  %v10043_v48 = vld [vmem:[%s11344_s29 + $0xb4] sm:$0xf0] }
 0x771   : > { %6249 = vmatpush.bf16.msrb.mxu2 %v9538_v26  ;;  %v9103_v26 = vld [vmem:[%s11344_s29 + $0xb0] sm:$0xf0] }
 0x772   : > { %6308 = vmatpush.bf16.msrb.mxu3 %v9666_v53  ;;  %v9111_v53 = vld [vmem:[%s11344_s29 + $0xb8] sm:$0xf0] }
 0x773   : > { %v4791_v51 = vpop.f32.mrf.mxu2 }
 0x774   : > { %v4792_v39 = vadd.f32 %v4791_v51, %v4733_v27  ;;  %v4850_v17 = vpop.f32.mrf.mxu3  ;;  %v4676_v12 = vpop.f32.mrf.mxu0  ;;  %v10084_v27 = vld [vmem:[%s11346_s30 + $0x884] sm:$0xf]  ;;  %v9410_v51 = vor.u32 %v10116_v50, %v9407_v35  ;;  %v13051_v35 = vor.u32 %v10040_v45, %v9103_v26 }
 0x775   : > { %v4677_v63 = vadd.f32 %v4676_v12, %v14220_v57  ;;  %v4735_v55 = vpop.f32.mrf.mxu1  ;;  %v9282_v34 = vor.u32 %v10084_v27, %v9279_v14 }
 0x776   : > { %v13024_v7 = vadd.f32 %v4850_v17, %v4792_v39  ;;  %v14222_v39 = vld [vmem:[#allocation69_spill] sm:$0xff]  ;;  %6190 = vmatpush.bf16.msrb.mxu1 %v9410_v51 }
 0x777   : > { %v4736_v47 = vadd.f32 %v4735_v55, %v4677_v63  ;;  %5910 = vmatmul.bf16.gmra.mxu0 %v13015_v29  ;;  %5969 = vmatmul.bf16.gmra.mxu1 %v13017_v3  ;;  %v9101_v55 = vld [vmem:[%s11344_s29 + $0xa0] sm:$0xf] }
 0x778   : > { %14221 = vst [vmem:[#allocation66_spill] sm:$0xff] %v13024_v7  ;;  %6028 = vmatmul.bf16.gmra.mxu2 %v13019_v4  ;;  %6131 = vmatpush.bf16.msrb.mxu0 %v9282_v34  ;;  %v13049_v14 = vor.u32 %v10042_v22, %v9101_v55  ;;  %v9647_v22 = vld [vmem:[%s11346_s30 + $0xb70] sm:$0xf0] }
 0x779   : > { %6087 = vmatmul.bf16.gmra.mxu3 %v13022_v5 }
 0x77b   : > { %v4794_v15 = vpop.f32.mrf.mxu2 }
 0x77c   : > { %v4795_v28 = vadd.f32 %v4794_v15, %v4736_v47  ;;  %v4853_v36 = vpop.f32.mrf.mxu3  ;;  %v4678_v54 = vpop.f32.mrf.mxu0  ;;  %v10041_v47 = vld [vmem:[%s11344_s29 + $0xac] sm:$0xf] }
 0x77d   : > { %v4679_v17 = vadd.f32 %v4678_v54, %v14222_v39  ;;  %v4737_v12 = vpop.f32.mrf.mxu1  ;;  %v13056_v51 = vor.u32 %v10041_v47, %v9111_v53  ;;  %v14225_v53 = vld [vmem:[#allocation70_spill] sm:$0xff] }
 0x77e   : > { %v13039_v57 = vadd.f32 %v4853_v36, %v4795_v28  ;;  %v13053_v28 = vor.u32 %v10043_v48, %v9109_v59 }
 0x77f   : > { %v4738_v63 = vadd.f32 %v4737_v12, %v4679_v17  ;;  %v10144_v12 = vld [vmem:[%s11346_s30 + $0xa64] sm:$0xf] }
 0x780   : > { %14223 = vst [vmem:[#allocation67_spill] sm:$0xff] %v13039_v57  ;;  %v9125_v57 = vld [vmem:[%s11344_s29 + $0xc8] sm:$0xf] }
 0x783   : > { %v4796_v27 = vpop.f32.mrf.mxu2 }
 0x784   : > { %v4797_v50 = vadd.f32 %v4796_v27, %v4738_v63  ;;  %v4855_v15 = vpop.f32.mrf.mxu3  ;;  %v4681_v34 = vpop.f32.mrf.mxu0  ;;  %v9519_v63 = vld [vmem:[%s11346_s30 + $0xa70] sm:$0xf0] }
 0x785   : > { %v4682_v36 = vadd.f32 %v4681_v34, %v12357_v23  ;;  %v4740_v54 = vpop.f32.mrf.mxu1  ;;  %v10176_v23 = vld [vmem:[%s11346_s30 + $0xb64] sm:$0xf]  ;;  %v9522_v55 = vor.u32 %v10144_v12, %v9519_v63  ;;  %v9391_v63 = vld [vmem:[%s11346_s30 + $0x970] sm:$0xf0] }
 0x786   : > { %v13058_v39 = vadd.f32 %v4855_v15, %v4797_v50  ;;  %v9650_v26 = vor.u32 %v10176_v23, %v9647_v22  ;;  %v10080_v34 = vld [vmem:[%s11346_s30 + $0x864] sm:$0xf]  ;;  %v9117_v23 = vld [vmem:[%s11344_s29 + $0xc0] sm:$0xf]  ;;  %v10046_v22 = vld [vmem:[%s11344_s29 + $0xcc] sm:$0xf0] }
 0x787   : > { %v4741_v17 = vadd.f32 %v4740_v54, %v4682_v36  ;;  %5915 = vmatmul.bf16.gmra.mxu0 %v13049_v14  ;;  %5974 = vmatmul.bf16.gmra.mxu1 %v13051_v35  ;;  %v9263_v36 = vld [vmem:[%s11346_s30 + $0x870] sm:$0xf0]  ;;  %v10112_v54 = vld [vmem:[%s11346_s30 + $0x964] sm:$0xf] }
 0x788   : > { %14224 = vst [vmem:[#allocation68_spill] sm:$0xff] %v13058_v39  ;;  %6033 = vmatmul.bf16.gmra.mxu2 %v13053_v28  ;;  %6309 = vmatpush.bf16.msrb.mxu3 %v9650_v26  ;;  %v9119_v39 = vld [vmem:[%s11344_s29 + $0xd0] sm:$0xf0]  ;;  %v9127_v26 = vld [vmem:[%s11344_s29 + $0xd8] sm:$0xf0] }
 0x789   : > { %6092 = vmatmul.bf16.gmra.mxu3 %v13056_v51  ;;  %6250 = vmatpush.bf16.msrb.mxu2 %v9522_v55  ;;  %v9394_v55 = vor.u32 %v10112_v54, %v9391_v63 }
 0x78b   : > { %v4799_v45 = vpop.f32.mrf.mxu2  ;;  %6191 = vmatpush.bf16.msrb.mxu1 %v9394_v55  ;;  %v10140_v55 = vld [vmem:[%s11346_s30 + $0xa44] sm:$0xf] }
 0x78c   : > { %v4800_v59 = vadd.f32 %v4799_v45, %v4741_v17  ;;  %v4858_v48 = vpop.f32.mrf.mxu3  ;;  %v4683_v47 = vpop.f32.mrf.mxu0  ;;  %v9266_v17 = vor.u32 %v10080_v34, %v9263_v36  ;;  %v10044_v45 = vld [vmem:[%s11344_s29 + $0xc4] sm:$0xf] }
 0x78d   : > { %v4684_v27 = vadd.f32 %v4683_v47, %v14225_v53  ;;  %v4742_v50 = vpop.f32.mrf.mxu1  ;;  %v10047_v47 = vld [vmem:[%s11344_s29 + $0xd4] sm:$0xf0]  ;;  %v10045_v53 = vld [vmem:[%s11344_s29 + $0xcc] sm:$0xf] }
 0x78e   : > { %v13069_v15 = vadd.f32 %v4858_v48, %v4800_v59  ;;  %6132 = vmatpush.bf16.msrb.mxu0 %v9266_v17  ;;  %v13083_v48 = vor.u32 %v10046_v22, %v9117_v23  ;;  %v13090_v54 = vor.u32 %v10045_v53, %v9127_v26  ;;  %v9133_v22 = vld [vmem:[%s11344_s29 + $0xe0] sm:$0xf]  ;;  %v10048_v26 = vld [vmem:[%s11344_s29 + $0xe4] sm:$0xf] }
 0x78f   : > { %v4743_v12 = vadd.f32 %v4742_v50, %v4684_v27  ;;  %v13085_v27 = vor.u32 %v10044_v45, %v9119_v39  ;;  %v13087_v50 = vor.u32 %v10047_v47, %v9125_v57  ;;  %v14228_v39 = vld [vmem:[#allocation71_spill] sm:$0xff]  ;;  %v10050_v45 = vld [vmem:[%s11344_s29 + $0xec] sm:$0xf0]  ;;  %v9503_v47 = vld [vmem:[%s11346_s30 + $0xa50] sm:$0xf0] }
 0x790   : > { %14226 = vst [vmem:[#allocation69_spill] sm:$0xff] %v13069_v15 }
 0x793   : > { %v4801_v59 = vpop.f32.mrf.mxu2 }
 0x794   : > { %v4802_v15 = vadd.f32 %v4801_v59, %v4743_v12  ;;  %v4860_v7 = vpop.f32.mrf.mxu3  ;;  %v4686_v49 = vpop.f32.mrf.mxu0  ;;  %v9506_v59 = vor.u32 %v10140_v55, %v9503_v47 }
 0x795   : > { %v4687_v34 = vadd.f32 %v4686_v49, %v12369_v32  ;;  %v4745_v36 = vpop.f32.mrf.mxu1 }
 0x796   : > { %v13092_v17 = vadd.f32 %v4860_v7, %v4802_v15  ;;  %6251 = vmatpush.bf16.msrb.mxu2 %v9506_v59 }
 0x797   : > { %v4746_v63 = vadd.f32 %v4745_v36, %v4687_v34  ;;  %5920 = vmatmul.bf16.gmra.mxu0 %v13083_v48  ;;  %5979 = vmatmul.bf16.gmra.mxu1 %v13085_v27  ;;  %v10172_v34 = vld [vmem:[%s11346_s30 + $0xb44] sm:$0xf]  ;;  %v9631_v36 = vld [vmem:[%s11346_s30 + $0xb50] sm:$0xf0] }
 0x798   : > { %14227 = vst [vmem:[#allocation70_spill] sm:$0xff] %v13092_v17  ;;  %6038 = vmatmul.bf16.gmra.mxu2 %v13087_v50  ;;  %v9375_v17 = vld [vmem:[%s11346_s30 + $0x950] sm:$0xf0] }
 0x799   : > { %6097 = vmatmul.bf16.gmra.mxu3 %v13090_v54 }
 0x79b   : > { %v4804_v32 = vpop.f32.mrf.mxu2 }
 0x79c   : > { %v4805_v49 = vadd.f32 %v4804_v32, %v4746_v63  ;;  %v4863_v57 = vpop.f32.mrf.mxu3  ;;  %v4688_v7 = vpop.f32.mrf.mxu0  ;;  %v10076_v63 = vld [vmem:[%s11346_s30 + $0x844] sm:$0xf]  ;;  %v9634_v32 = vor.u32 %v10172_v34, %v9631_v36 }
 0x79d   : > { %v4689_v15 = vadd.f32 %v4688_v7, %v14228_v39  ;;  %v4747_v12 = vpop.f32.mrf.mxu1  ;;  %v9247_v7 = vld [vmem:[%s11346_s30 + $0x850] sm:$0xf0]  ;;  %v10108_v39 = vld [vmem:[%s11346_s30 + $0x944] sm:$0xf] }
 0x79e   : > { %v13099_v23 = vadd.f32 %v4863_v57, %v4805_v49  ;;  %v9135_v49 = vld [vmem:[%s11344_s29 + $0xf0] sm:$0xf0]  ;;  %v9141_v57 = vld [vmem:[%s11344_s29 + $0xe8] sm:$0xf]  ;;  %v9250_v20 = vor.u32 %v10076_v63, %v9247_v7  ;;  %v9378_v8 = vor.u32 %v10108_v39, %v9375_v17  ;;  %6310 = vmatpush.bf16.msrb.mxu3 %v9634_v32  ;;  %v13124_v17 = vor.u32 %v10049_v60, %v9143_v62  ;;  %v10136_v32 = vld [vmem:[%s11346_s30 + $0xa24] sm:$0xf] }
 0x79f   : > { %v4748_v53 = vadd.f32 %v4747_v12, %v4689_v15  ;;  %v13117_v12 = vor.u32 %v10050_v45, %v9133_v22  ;;  %v13119_v36 = vor.u32 %v10048_v26, %v9135_v49  ;;  %v9487_v7 = vld [vmem:[%s11346_s30 + $0xa30] sm:$0xf0]  ;;  %v10168_v39 = vld [vmem:[%s11346_s30 + $0xb24] sm:$0xf]  ;;  %v10054_v49 = vld [vmem:[%s11344_s29 + $0x10c] sm:$0xf0] }
 0x7a0   : > { %14229 = vst [vmem:[#allocation71_spill] sm:$0xff] %v13099_v23  ;;  %v10051_v23 = vld [vmem:[%s11344_s29 + $0xf4] sm:$0xf0]  ;;  %6133 = vmatpush.bf16.msrb.mxu0 %v9250_v20  ;;  %6192 = vmatpush.bf16.msrb.mxu1 %v9378_v8 }
 0x7a1   : > { %v13121_v18 = vor.u32 %v10051_v23, %v9141_v57  ;;  %v10052_v57 = vld [vmem:[%s11344_s29 + $0x104] sm:$0xf] }
 0x7a3   : > { %v4806_v15 = vpop.f32.mrf.mxu2 }
 0x7a4   : > { %v4807_v55 = vadd.f32 %v4806_v15, %v4748_v53  ;;  %v4865_v47 = vpop.f32.mrf.mxu3  ;;  %v4691_v34 = vpop.f32.mrf.mxu0  ;;  %v9149_v53 = vld [vmem:[%s11344_s29 + $0x100] sm:$0xf]  ;;  %v9490_v15 = vor.u32 %v10136_v32, %v9487_v7 }
 0x7a5   : > { %v4692_v46 = vadd.f32 %v4691_v34, %v14230_v37  ;;  %v4750_v59 = vpop.f32.mrf.mxu1  ;;  %v9157_v34 = vld [vmem:[%s11344_s29 + $0x108] sm:$0xf] }
 0x7a6   : > { %v13126_v63 = vadd.f32 %v4865_v47, %v4807_v55  ;;  %v9615_v55 = vld [vmem:[%s11346_s30 + $0xb30] sm:$0xf0]  ;;  %6252 = vmatpush.bf16.msrb.mxu2 %v9490_v15  ;;  %v10072_v15 = vld [vmem:[%s11346_s30 + $0x824] sm:$0xf] }
 0x7a7   : > { %v4751_v22 = vadd.f32 %v4750_v59, %v4692_v46  ;;  %5925 = vmatmul.bf16.gmra.mxu0 %v13117_v12  ;;  %5984 = vmatmul.bf16.gmra.mxu1 %v13119_v36  ;;  %v14232_v46 = vld [vmem:[#allocation73_spill] sm:$0xff]  ;;  %v9151_v47 = vld [vmem:[%s11344_s29 + $0x110] sm:$0xf0]  ;;  %v10055_v59 = vld [vmem:[%s11344_s29 + $0x114] sm:$0xf0] }
 0x7a8   : > { %14231 = vst [vmem:[#allocation72_spill] sm:$0xff] %v13126_v63  ;;  %6043 = vmatmul.bf16.gmra.mxu2 %v13121_v18  ;;  %v13149_v32 = vor.u32 %v10052_v57, %v9151_v47  ;;  %v13151_v7 = vor.u32 %v10055_v59, %v9157_v34  ;;  %v14236_v59 = vld [vmem:[#allocation75_spill] sm:$0xff] }
 0x7a9   : > { %6102 = vmatmul.bf16.gmra.mxu3 %v13124_v17 }
 0x7ab   : > { %v4809_v37 = vpop.f32.mrf.mxu2 }
 0x7ac   : > { %v4810_v62 = vadd.f32 %v4809_v37, %v4751_v22  ;;  %v4868_v60 = vpop.f32.mrf.mxu3  ;;  %v4693_v8 = vpop.f32.mrf.mxu0  ;;  %v9618_v22 = vor.u32 %v10168_v39, %v9615_v55  ;;  %v10053_v37 = vld [vmem:[%s11344_s29 + $0x10c] sm:$0xf] }
 0x7ad   : > { %v4694_v20 = vadd.f32 %v4693_v8, %v14232_v46  ;;  %v4752_v23 = vpop.f32.mrf.mxu1  ;;  %v9159_v8 = vld [vmem:[%s11344_s29 + $0x118] sm:$0xf0] }
 0x7ae   : > { %v13133_v45 = vadd.f32 %v4868_v60, %v4810_v62  ;;  %v13147_v60 = vor.u32 %v10054_v49, %v9149_v53  ;;  %6311 = vmatpush.bf16.msrb.mxu3 %v9618_v22  ;;  %v13154_v63 = vor.u32 %v10053_v37, %v9159_v8  ;;  %v10104_v53 = vld [vmem:[%s11346_s30 + $0x924] sm:$0xf]  ;;  %v9359_v22 = vld [vmem:[%s11346_s30 + $0x930] sm:$0xf0] }
 0x7af   : > { %v4753_v26 = vadd.f32 %v4752_v23, %v4694_v20 }
 0x7b0   : > { %14233 = vst [vmem:[#allocation73_spill] sm:$0xff] %v13133_v45  ;;  %v14234_v45 = vld [vmem:[#allocation74_spill] sm:$0xff] }
 0x7b3   : > { %v4811_v62 = vpop.f32.mrf.mxu2 }
 0x7b4   : > { %v4812_v46 = vadd.f32 %v4811_v62, %v4753_v26  ;;  %v4870_v20 = vpop.f32.mrf.mxu3  ;;  %v4696_v23 = vpop.f32.mrf.mxu0  ;;  %v9234_v26 = vor.u32 %v10072_v15, %v9231_v13  ;;  %v9173_v15 = vld [vmem:[%s11344_s29 + $0x128] sm:$0xf] }
 0x7b5   : > { %v4697_v39 = vadd.f32 %v4696_v23, %v14234_v45  ;;  %v4755_v55 = vpop.f32.mrf.mxu1  ;;  %v9362_v45 = vor.u32 %v10104_v53, %v9359_v22  ;;  %v10058_v23 = vld [vmem:[%s11344_s29 + $0x12c] sm:$0xf0]  ;;  %v10059_v53 = vld [vmem:[%s11344_s29 + $0x134] sm:$0xf0]  ;;  %v9175_v22 = vld [vmem:[%s11344_s29 + $0x138] sm:$0xf0] }
 0x7b6   : > { %v13156_v19 = vadd.f32 %v4870_v20, %v4812_v46  ;;  %6134 = vmatpush.bf16.msrb.mxu0 %v9234_v26  ;;  %v9165_v20 = vld [vmem:[%s11344_s29 + $0x120] sm:$0xf]  ;;  %v10057_v26 = vld [vmem:[%s11344_s29 + $0x12c] sm:$0xf] }
 0x7b7   : > { %v4756_v49 = vadd.f32 %v4755_v55, %v4697_v39  ;;  %5930 = vmatmul.bf16.gmra.mxu0 %v13147_v60  ;;  %5989 = vmatmul.bf16.gmra.mxu1 %v13149_v32  ;;  %v10056_v39 = vld [vmem:[%s11344_s29 + $0x124] sm:$0xf]  ;;  %v9167_v55 = vld [vmem:[%s11344_s29 + $0x130] sm:$0xf0] }
 0x7b8   : > { %14235 = vst [vmem:[#allocation74_spill] sm:$0xff] %v13156_v19  ;;  %6048 = vmatmul.bf16.gmra.mxu2 %v13151_v7  ;;  %6193 = vmatpush.bf16.msrb.mxu1 %v9362_v45  ;;  %v13177_v19 = vor.u32 %v10058_v23, %v9165_v20 }
 0x7b9   : > { %6107 = vmatmul.bf16.gmra.mxu3 %v13154_v63 }
 0x7bb   : > { %v4814_v57 = vpop.f32.mrf.mxu2 }
 0x7bc   : > { %v4815_v13 = vadd.f32 %v4814_v57, %v4756_v49  ;;  %v4873_v47 = vpop.f32.mrf.mxu3  ;;  %v4698_v34 = vpop.f32.mrf.mxu0 }
 0x7bd   : > { %v4699_v37 = vadd.f32 %v4698_v34, %v14236_v59  ;;  %v4757_v8 = vpop.f32.mrf.mxu1  ;;  %v13179_v34 = vor.u32 %v10056_v39, %v9167_v55  ;;  %v10132_v55 = vld [vmem:[%s11346_s30 + $0xa04] sm:$0xf] }
 0x7be   : > { %v13167_v62 = vadd.f32 %v4873_v47, %v4815_v13  ;;  %v13181_v13 = vor.u32 %v10059_v53, %v9173_v15  ;;  %v14238_v47 = vld [vmem:[#allocation76_spill] sm:$0xff]  ;;  %v9471_v15 = vld [vmem:[%s11346_s30 + $0xa10] sm:$0xf0] }
 0x7bf   : > { %v4758_v46 = vadd.f32 %v4757_v8, %v4699_v37  ;;  %v13184_v8 = vor.u32 %v10057_v26, %v9175_v22  ;;  %v10164_v53 = vld [vmem:[%s11346_s30 + $0xb04] sm:$0xf]  ;;  %v14240_v26 = vld [vmem:[#allocation77_spill] sm:$0xff] }
 0x7c0   : > { %14237 = vst [vmem:[#allocation75_spill] sm:$0xff] %v13167_v62 }
 0x7c3   : > { %v4816_v45 = vpop.f32.mrf.mxu2 }
 0x7c4   : > { %v4817_v49 = vadd.f32 %v4816_v45, %v4758_v46  ;;  %v4875_v57 = vpop.f32.mrf.mxu3  ;;  %v4701_v31 = vpop.f32.mrf.mxu0 }
 0x7c5   : > { %v4702_v59 = vadd.f32 %v4701_v31, %v14238_v47  ;;  %v4760_v37 = vpop.f32.mrf.mxu1  ;;  %v10068_v47 = vld [vmem:[%s11346_s30 + $0x804] sm:$0xf] }
 0x7c6   : > { %v13186_v62 = vadd.f32 %v4875_v57, %v4817_v49  ;;  %v9474_v49 = vor.u32 %v10132_v55, %v9471_v15  ;;  %v9599_v57 = vld [vmem:[%s11346_s30 + $0xb10] sm:$0xf0]  ;;  %v10060_v55 = vld [vmem:[%s11344_s29 + $0x144] sm:$0xf] }
 0x7c7   : > { %v4761_v20 = vadd.f32 %v4760_v37, %v4702_v59  ;;  %5935 = vmatmul.bf16.gmra.mxu0 %v13177_v19  ;;  %5994 = vmatmul.bf16.gmra.mxu1 %v13179_v34  ;;  %v9215_v59 = vld [vmem:[%s11346_s30 + $0x810] sm:$0xf0] }
 0x7c8   : > { %14239 = vst [vmem:[#allocation76_spill] sm:$0xff] %v13186_v62  ;;  %6053 = vmatmul.bf16.gmra.mxu2 %v13181_v13  ;;  %v10100_v62 = vld [vmem:[%s11346_s30 + $0x904] sm:$0xf]  ;;  %v9183_v15 = vld [vmem:[%s11344_s29 + $0x150] sm:$0xf0] }
 0x7c9   : > { %6112 = vmatmul.bf16.gmra.mxu3 %v13184_v8  ;;  %6253 = vmatpush.bf16.msrb.mxu2 %v9474_v49 }
 0x7cb   : > { %v4819_v46 = vpop.f32.mrf.mxu2 }
 0x7cc   : > { %v4820_v31 = vadd.f32 %v4819_v46, %v4761_v20  ;;  %v4878_v23 = vpop.f32.mrf.mxu3  ;;  %v4703_v39 = vpop.f32.mrf.mxu0  ;;  %v9602_v20 = vor.u32 %v10164_v53, %v9599_v57  ;;  %v9218_v46 = vor.u32 %v10068_v47, %v9215_v59 }
 0x7cd   : > { %v4704_v22 = vadd.f32 %v4703_v39, %v14240_v26  ;;  %v4762_v45 = vpop.f32.mrf.mxu1  ;;  %v9346_v39 = vor.u32 %v10100_v62, %v9343_v38  ;;  %v9181_v26 = vld [vmem:[%s11344_s29 + $0x140] sm:$0xf]  ;;  %v13213_v38 = vor.u32 %v10060_v55, %v9183_v15  ;;  %v13215_v62 = vor.u32 %v10063_v44, %v9189_v41  ;;  %v9717_v55 = vld [vmem:[%s11346_s30 + $0xbe8] sm:$0xf] }
 0x7ce   : > { %v13199_v37 = vadd.f32 %v4878_v23, %v4820_v31  ;;  %6312 = vmatpush.bf16.msrb.mxu3 %v9602_v20  ;;  %6135 = vmatpush.bf16.msrb.mxu0 %v9218_v46  ;;  %v10061_v31 = vld [vmem:[%s11344_s29 + $0x14c] sm:$0xf]  ;;  %v9191_v23 = vld [vmem:[%s11344_s29 + $0x158] sm:$0xf0]  ;;  %v13211_v57 = vor.u32 %v10062_v0, %v9181_v26  ;;  %v10163_v26 = vld [vmem:[%s11346_s30 + $0xaf4] sm:$0xf0] }
 0x7cf   : > { %v4763_v43 = vadd.f32 %v4762_v45, %v4704_v22  ;;  %6194 = vmatpush.bf16.msrb.mxu1 %v9346_v39  ;;  %v13217_v49 = vor.u32 %v10061_v31, %v9191_v23  ;;  %v9589_v39 = vld [vmem:[%s11346_s30 + $0xae8] sm:$0xf]  ;;  %v10195_v23 = vld [vmem:[%s11346_s30 + $0xbf4] sm:$0xf0] }
 0x7d0   : > { %14241 = vst [vmem:[#allocation77_spill] sm:$0xff] %v13199_v37  ;;  %v9590_v31 = vor.u32 %v10163_v26, %v9589_v39  ;;  %v9205_v37 = vld [vmem:[%s11344_s29 + $0x168] sm:$0xf]  ;;  %v10067_v39 = vld [vmem:[%s11344_s29 + $0x174] sm:$0xf0] }
 0x7d2   : > { %6482 = vmatpush.bf16.msra.mxu2 %v9590_v31 }
 0x7d3   : > { %v4821_v53 = vpop.f32.mrf.mxu2 }
 0x7d4   : > { %v4822_v47 = vadd.f32 %v4821_v53, %v4763_v43  ;;  %v4880_v59 = vpop.f32.mrf.mxu3  ;;  %v5901_v22 = vpop.f32.mrf.mxu0 }
 0x7d5   : > { %v5960_v45 = vpop.f32.mrf.mxu1 }
 0x7d6   : > { %v13219_v20 = vadd.f32 %v4880_v59, %v4822_v47  ;;  %v5961_v0 = vadd.f32 %v5960_v45, %v5901_v22  ;;  %v9718_v47 = vor.u32 %v10195_v23, %v9717_v55  ;;  %v6916_v59 = vld [vmem:[%s11342_s27] sm:$0xff] }
 0x7d7   : > { %5940 = vmatmul.bf16.gmra.mxu0 %v13211_v57  ;;  %5999 = vmatmul.bf16.gmra.mxu1 %v13213_v38  ;;  %v9197_v45 = vld [vmem:[%s11344_s29 + $0x160] sm:$0xf] }
 0x7d8   : > { %14242 = vst [vmem:[#allocation80_spill] sm:$0xff] %v13219_v20  ;;  %6058 = vmatmul.bf16.gmra.mxu2 %v13215_v62  ;;  %6541 = vmatpush.bf16.msra.mxu3 %v9718_v47  ;;  %v9199_v20 = vld [vmem:[%s11344_s29 + $0x170] sm:$0xf0]  ;;  %v13244_v47 = vor.u32 %v10067_v39, %v9205_v37 }
 0x7d9   : > { %6117 = vmatmul.bf16.gmra.mxu3 %v13217_v49 }
 0x7db   : > { %v6019_v43 = vpop.f32.mrf.mxu2 }
 0x7dc   : > { %v6020_v44 = vadd.f32 %v6019_v43, %v5961_v0  ;;  %v6078_v41 = vpop.f32.mrf.mxu3  ;;  %v5903_v46 = vpop.f32.mrf.mxu0  ;;  %v10066_v0 = vld [vmem:[%s11344_s29 + $0x16c] sm:$0xf0]  ;;  %v10064_v43 = vld [vmem:[%s11344_s29 + $0x164] sm:$0xf] }
 0x7dd   : > { %v5962_v15 = vpop.f32.mrf.mxu1  ;;  %v13239_v55 = vor.u32 %v10066_v0, %v9197_v45 }
 0x7de   : > { %v6079_v53 = vadd.f32 %v6078_v41, %v6020_v44  ;;  %v5963_v30 = vadd.f32 %v5962_v15, %v5903_v46  ;;  %v9207_v44 = vld [vmem:[%s11344_s29 + $0x178] sm:$0xf0]  ;;  %v9334_v15 = vor.u32 %v10099_v25, %v9333_v11 }
 0x7df   : > { %v13249_v46 = vor.u32 %v10065_v6, %v9207_v44  ;;  %v6924_v44 = vld [vmem:[%s11342_s27 + $0x40] sm:$0xff] }
 0x7e0   : > { %v6836_v22 = vadd.f32 %v6079_v53, %v12431_v61  ;;  %v13242_v53 = vor.u32 %v10064_v43, %v9199_v20  ;;  %6364 = vmatpush.bf16.msra.mxu0 %v9334_v15 }
 0x7e2   : > { %v6996_v26 = vadd.f32 %v6916_v59, %v6836_v22  ;;  %v10131_v22 = vld [vmem:[%s11346_s30 + $0x9f4] sm:$0xf0] }
 0x7e3   : > { %v6021_v41 = vpop.f32.mrf.mxu2  ;;  %v9462_v0 = vor.u32 %v10131_v22, %v9461_v40 }
 0x7e4   : > { %7076 = vst [vmem:[%s11342_s27] sm:$0xff] %v6996_v26  ;;  %v6022_v61 = vadd.f32 %v6021_v41, %v5963_v30  ;;  %v6080_v31 = vpop.f32.mrf.mxu3  ;;  %v5906_v23 = vpop.f32.mrf.mxu0  ;;  %v14243_v30 = vld [vmem:[#allocation78_spill] sm:$0xff]  ;;  %v14244_v41 = vld [vmem:[#allocation79_spill] sm:$0xff] }
 0x7e5   : > { %v5965_v59 = vpop.f32.mrf.mxu1  ;;  %6423 = vmatpush.bf16.msra.mxu1 %v9462_v0  ;;  %v10159_v0 = vld [vmem:[%s11346_s30 + $0xad4] sm:$0xf0] }
 0x7e6   : > { %v6081_v45 = vadd.f32 %v6080_v31, %v6022_v61  ;;  %v5966_v43 = vadd.f32 %v5965_v59, %v5906_v23 }
 0x7e7   : > { %5945 = vmatmul.bf16.gmra.mxu0 %v13239_v55  ;;  %6004 = vmatmul.bf16.gmra.mxu1 %v13242_v53 }
 0x7e8   : > { %v6840_v20 = vadd.f32 %v6081_v45, %v14243_v30  ;;  %6063 = vmatmul.bf16.gmra.mxu2 %v13244_v47  ;;  %v9573_v45 = vld [vmem:[%s11346_s30 + $0xac8] sm:$0xf] }
 0x7e9   : > { %6122 = vmatmul.bf16.gmra.mxu3 %v13249_v46 }
 0x7ea   : > { %v7000_v6 = vadd.f32 %v6920_v58, %v6840_v20  ;;  %v9574_v20 = vor.u32 %v10159_v0, %v9573_v45 }
 0x7eb   : > { %v6024_v25 = vpop.f32.mrf.mxu2 }
 0x7ec   : > { %7080 = vst [vmem:[%s11342_s27 + $0x20] sm:$0xff] %v7000_v6  ;;  %v6025_v40 = vadd.f32 %v6024_v25, %v5966_v43  ;;  %v6083_v11 = vpop.f32.mrf.mxu3  ;;  %v5908_v37 = vpop.f32.mrf.mxu0  ;;  %v9701_v43 = vld [vmem:[%s11346_s30 + $0xbc8] sm:$0xf]  ;;  %v10191_v6 = vld [vmem:[%s11346_s30 + $0xbd4] sm:$0xf0]  ;;  %6483 = vmatpush.bf16.msra.mxu2 %v9574_v20 }
 0x7ed   : > { %v5967_v39 = vpop.f32.mrf.mxu1  ;;  %v9317_v25 = vld [vmem:[%s11346_s30 + $0x8c8] sm:$0xf] }
 0x7ee   : > { %v6084_v26 = vadd.f32 %v6083_v11, %v6025_v40  ;;  %v5968_v23 = vadd.f32 %v5967_v39, %v5908_v37  ;;  %v9702_v11 = vor.u32 %v10191_v6, %v9701_v43  ;;  %v10127_v37 = vld [vmem:[%s11346_s30 + $0x9d4] sm:$0xf0]  ;;  %v6928_v39 = vld [vmem:[%s11342_s27 + $0x60] sm:$0xff]  ;;  %v14246_v6 = vld [vmem:[#allocation5_spill] sm:$0xff] }
 0x7ef   : > { %v6932_v43 = vld [vmem:[%s11342_s27 + $0x80] sm:$0xff] }
 0x7f0   : > { %v6844_v61 = vadd.f32 %v6084_v26, %v14244_v41  ;;  %v10095_v26 = vld [vmem:[%s11346_s30 + $0x8d4] sm:$0xf0]  ;;  %6542 = vmatpush.bf16.msra.mxu3 %v9702_v11 }
 0x7f1   : > { %v9318_v41 = vor.u32 %v10095_v26, %v9317_v25 }
 0x7f2   : > { %v7004_v31 = vadd.f32 %v6924_v44, %v6844_v61  ;;  %v9445_v44 = vld [vmem:[%s11346_s30 + $0x9c8] sm:$0xf] }
 0x7f3   : > { %v6026_v58 = vpop.f32.mrf.mxu2  ;;  %v9446_v61 = vor.u32 %v10127_v37, %v9445_v44  ;;  %6365 = vmatpush.bf16.msra.mxu0 %v9318_v41  ;;  %v9557_v41 = vld [vmem:[%s11346_s30 + $0xaa8] sm:$0xf] }
 0x7f4   : > { %7084 = vst [vmem:[%s11342_s27 + $0x40] sm:$0xff] %v7004_v31  ;;  %v6027_v59 = vadd.f32 %v6026_v58, %v5968_v23  ;;  %v6085_v15 = vpop.f32.mrf.mxu3  ;;  %v5911_v22 = vpop.f32.mrf.mxu0  ;;  %v14245_v31 = vld [vmem:[#allocation4_spill] sm:$0xff] }
 0x7f5   : > { %v5970_v30 = vpop.f32.mrf.mxu1  ;;  %6424 = vmatpush.bf16.msra.mxu1 %v9446_v61  ;;  %v10155_v61 = vld [vmem:[%s11346_s30 + $0xab4] sm:$0xf0] }
 0x7f6   : > { %v6086_v40 = vadd.f32 %v6085_v15, %v6027_v59  ;;  %v5971_v58 = vadd.f32 %v5970_v30, %v5911_v22 }
 0x7f7   : > { %6136 = vmatmul.bf16.vlgmr.msrb.gmra.mxu0 %v12955_v52  ;;  %6195 = vmatmul.bf16.vlgmr.msrb.gmra.mxu1 %v12957_v10 }
 0x7f8   : > { %v6848_v23 = vadd.f32 %v6086_v40, %v14245_v31  ;;  %6254 = vmatmul.bf16.vlgmr.msrb.gmra.mxu2 %v12959_v56 }
 0x7f9   : > { %6313 = vmatmul.bf16.vlgmr.msrb.gmra.mxu3 %v12962_v42 }
 0x7fa   : > { %v7008_v59 = vadd.f32 %v6928_v39, %v6848_v23  ;;  %v9558_v23 = vor.u32 %v10155_v61, %v9557_v41  ;;  %v9429_v41 = vld [vmem:[%s11346_s30 + $0x9a8] sm:$0xf]  ;;  %v10123_v61 = vld [vmem:[%s11346_s30 + $0x9b4] sm:$0xf0] }
 0x7fb   : > { %v6029_v15 = vpop.f32.mrf.mxu2 }
 0x7fc   : > { %7088 = vst [vmem:[%s11342_s27 + $0x60] sm:$0xff] %v7008_v59  ;;  %v6030_v45 = vadd.f32 %v6029_v15, %v5971_v58  ;;  %v6088_v0 = vpop.f32.mrf.mxu3  ;;  %v5913_v20 = vpop.f32.mrf.mxu0  ;;  %v9685_v58 = vld [vmem:[%s11346_s30 + $0xba8] sm:$0xf]  ;;  %v10187_v59 = vld [vmem:[%s11346_s30 + $0xbb4] sm:$0xf0]  ;;  %6484 = vmatpush.bf16.msra.mxu2 %v9558_v23  ;;  %v9430_v23 = vor.u32 %v10123_v61, %v9429_v41 }
 0x7fd   : > { %v5972_v22 = vpop.f32.mrf.mxu1 }
 0x7fe   : > { %v6089_v30 = vadd.f32 %v6088_v0, %v6030_v45  ;;  %v5973_v26 = vadd.f32 %v5972_v22, %v5913_v20  ;;  %v9686_v45 = vor.u32 %v10187_v59, %v9685_v58  ;;  %v6936_v0 = vld [vmem:[%s11342_s27 + $0xa0] sm:$0xff]  ;;  %v14247_v20 = vld [vmem:[#allocation6_spill] sm:$0xff]  ;;  %v14248_v59 = vld [vmem:[#allocation7_spill] sm:$0xff]  ;;  %6425 = vmatpush.bf16.msra.mxu1 %v9430_v23 }
 0x7ff   : > { %v6940_v58 = vld [vmem:[%s11342_s27 + $0xc0] sm:$0xff]  ;;  %v9541_v23 = vld [vmem:[%s11346_s30 + $0xa88] sm:$0xf] }
 0x800   : > { %v6852_v25 = vadd.f32 %v6089_v30, %v14246_v6  ;;  %6543 = vmatpush.bf16.msra.mxu3 %v9686_v45 }
 0x802   : > { %v7012_v40 = vadd.f32 %v6932_v43, %v6852_v25 }
 0x803   : > { %v6031_v44 = vpop.f32.mrf.mxu2 }
 0x804   : > { %7092 = vst [vmem:[%s11342_s27 + $0x80] sm:$0xff] %v7012_v40  ;;  %v6032_v11 = vadd.f32 %v6031_v44, %v5973_v26  ;;  %v6090_v37 = vpop.f32.mrf.mxu3  ;;  %v5916_v39 = vpop.f32.mrf.mxu0  ;;  %v9301_v44 = vld [vmem:[%s11346_s30 + $0x8a8] sm:$0xf] }
 0x805   : > { %v5975_v31 = vpop.f32.mrf.mxu1 }
 0x806   : > { %v6091_v15 = vadd.f32 %v6090_v37, %v6032_v11  ;;  %v5976_v30 = vadd.f32 %v5975_v31, %v5916_v39  ;;  %v10091_v11 = vld [vmem:[%s11346_s30 + $0x8b4] sm:$0xf0] }
 0x807   : > { %6141 = vmatmul.bf16.gmra.mxu0 %v12985_v16  ;;  %6200 = vmatmul.bf16.gmra.mxu1 %v12987_v9  ;;  %v9302_v39 = vor.u32 %v10091_v11, %v9301_v44  ;;  %v6944_v11 = vld [vmem:[%s11342_s27 + $0xe0] sm:$0xff] }
 0x808   : > { %v6856_v22 = vadd.f32 %v6091_v15, %v14247_v20  ;;  %6259 = vmatmul.bf16.gmra.mxu2 %v12989_v33 }
 0x809   : > { %6318 = vmatmul.bf16.gmra.mxu3 %v12992_v1  ;;  %6366 = vmatpush.bf16.msra.mxu0 %v9302_v39 }
 0x80a   : > { %v7016_v43 = vadd.f32 %v6936_v0, %v6856_v22 }
 0x80b   : > { %v6034_v6 = vpop.f32.mrf.mxu2 }
 0x80c   : > { %7096 = vst [vmem:[%s11342_s27 + $0xa0] sm:$0xff] %v7016_v43  ;;  %v6035_v25 = vadd.f32 %v6034_v6, %v5976_v30  ;;  %v6093_v40 = vpop.f32.mrf.mxu3  ;;  %v5918_v26 = vpop.f32.mrf.mxu0 }
 0x80d   : > { %v5977_v37 = vpop.f32.mrf.mxu1 }
 0x80e   : > { %v6094_v31 = vadd.f32 %v6093_v40, %v6035_v25  ;;  %v5978_v0 = vadd.f32 %v5977_v37, %v5918_v26  ;;  %v14249_v25 = vld [vmem:[#allocation8_spill] sm:$0xff] }
 0x810   : > { %v6860_v15 = vadd.f32 %v6094_v31, %v14248_v59 }
 0x812   : > { %v7020_v45 = vadd.f32 %v6940_v58, %v6860_v15  ;;  %v10151_v58 = vld [vmem:[%s11346_s30 + $0xa94] sm:$0xf0] }
 0x813   : > { %v6036_v20 = vpop.f32.mrf.mxu2  ;;  %v9542_v15 = vor.u32 %v10151_v58, %v9541_v23 }
 0x814   : > { %7100 = vst [vmem:[%s11342_s27 + $0xc0] sm:$0xff] %v7020_v45  ;;  %v6037_v22 = vadd.f32 %v6036_v20, %v5978_v0  ;;  %v6095_v30 = vpop.f32.mrf.mxu3  ;;  %v5921_v43 = vpop.f32.mrf.mxu0  ;;  %v9669_v45 = vld [vmem:[%s11346_s30 + $0xb88] sm:$0xf]  ;;  %v10183_v0 = vld [vmem:[%s11346_s30 + $0xb94] sm:$0xf0] }
 0x815   : > { %v5980_v6 = vpop.f32.mrf.mxu1  ;;  %v9285_v20 = vld [vmem:[%s11346_s30 + $0x888] sm:$0xf]  ;;  %6485 = vmatpush.bf16.msra.mxu2 %v9542_v15 }
 0x816   : > { %v6096_v44 = vadd.f32 %v6095_v30, %v6037_v22  ;;  %v5981_v39 = vadd.f32 %v5980_v6, %v5921_v43  ;;  %v9670_v30 = vor.u32 %v10183_v0, %v9669_v45  ;;  %v10087_v43 = vld [vmem:[%s11346_s30 + $0x894] sm:$0xf0]  ;;  %v9413_v6 = vld [vmem:[%s11346_s30 + $0x988] sm:$0xf] }
 0x817   : > { %6146 = vmatmul.bf16.gmra.mxu0 %v13015_v29  ;;  %6205 = vmatmul.bf16.gmra.mxu1 %v13017_v3 }
 0x818   : > { %v6864_v40 = vadd.f32 %v6096_v44, %v14249_v25  ;;  %6264 = vmatmul.bf16.gmra.mxu2 %v13019_v4  ;;  %v10119_v44 = vld [vmem:[%s11346_s30 + $0x994] sm:$0xf0]  ;;  %v9286_v25 = vor.u32 %v10087_v43, %v9285_v20  ;;  %6544 = vmatpush.bf16.msra.mxu3 %v9670_v30  ;;  %v14251_v20 = vld [vmem:[#allocation10_spill] sm:$0xff] }
 0x819   : > { %6323 = vmatmul.bf16.gmra.mxu3 %v13022_v5 }
 0x81a   : > { %v7024_v26 = vadd.f32 %v6944_v11, %v6864_v40  ;;  %v6948_v11 = vld [vmem:[%s11342_s27 + $0x100] sm:$0xff]  ;;  %v9414_v40 = vor.u32 %v10119_v44, %v9413_v6  ;;  %6367 = vmatpush.bf16.msra.mxu0 %v9286_v25  ;;  %v10147_v25 = vld [vmem:[%s11346_s30 + $0xa74] sm:$0xf0] }
 0x81b   : > { %v6039_v37 = vpop.f32.mrf.mxu2 }
 0x81c   : > { %7104 = vst [vmem:[%s11342_s27 + $0xe0] sm:$0xff] %v7024_v26  ;;  %v6040_v41 = vadd.f32 %v6039_v37, %v5981_v39  ;;  %v6098_v61 = vpop.f32.mrf.mxu3  ;;  %v5923_v31 = vpop.f32.mrf.mxu0  ;;  %v14250_v39 = vld [vmem:[#allocation9_spill] sm:$0xff]  ;;  %6426 = vmatpush.bf16.msra.mxu1 %v9414_v40 }
 0x81d   : > { %v5982_v59 = vpop.f32.mrf.mxu1 }
 0x81e   : > { %v6099_v22 = vadd.f32 %v6098_v61, %v6040_v41  ;;  %v5983_v23 = vadd.f32 %v5982_v59, %v5923_v31 }
 0x820   : > { %v6868_v26 = vadd.f32 %v6099_v22, %v14250_v39 }
 0x822   : > { %v7028_v37 = vadd.f32 %v6948_v11, %v6868_v26  ;;  %v9525_v11 = vld [vmem:[%s11346_s30 + $0xa68] sm:$0xf] }
 0x823   : > { %v6041_v58 = vpop.f32.mrf.mxu2  ;;  %v9526_v39 = vor.u32 %v10147_v25, %v9525_v11  ;;  %v9653_v26 = vld [vmem:[%s11346_s30 + $0xb68] sm:$0xf]  ;;  %v10115_v25 = vld [vmem:[%s11346_s30 + $0x974] sm:$0xf0] }
 0x824   : > { %7108 = vst [vmem:[%s11342_s27 + $0x100] sm:$0xff] %v7028_v37  ;;  %v6042_v41 = vadd.f32 %v6041_v58, %v5983_v23  ;;  %v6100_v61 = vpop.f32.mrf.mxu3  ;;  %v5926_v45 = vpop.f32.mrf.mxu0  ;;  %v10179_v37 = vld [vmem:[%s11346_s30 + $0xb74] sm:$0xf0] }
 0x825   : > { %v5985_v0 = vpop.f32.mrf.mxu1  ;;  %v9654_v58 = vor.u32 %v10179_v37, %v9653_v26  ;;  %6486 = vmatpush.bf16.msra.mxu2 %v9526_v39  ;;  %v6960_v37 = vld [vmem:[%s11342_s27 + $0x160] sm:$0xff] }
 0x826   : > { %v6101_v15 = vadd.f32 %v6100_v61, %v6042_v41  ;;  %v5986_v30 = vadd.f32 %v5985_v0, %v5926_v45  ;;  %v6956_v41 = vld [vmem:[%s11342_s27 + $0x140] sm:$0xff] }
 0x827   : > { %6151 = vmatmul.bf16.gmra.mxu0 %v13049_v14  ;;  %6210 = vmatmul.bf16.gmra.mxu1 %v13051_v35 }
 0x828   : > { %v6872_v22 = vadd.f32 %v6101_v15, %v14251_v20  ;;  %6269 = vmatmul.bf16.gmra.mxu2 %v13053_v28  ;;  %6545 = vmatpush.bf16.msra.mxu3 %v9654_v58 }
 0x829   : > { %6328 = vmatmul.bf16.gmra.mxu3 %v13056_v51 }
 0x82a   : > { %v7032_v31 = vadd.f32 %v6952_v2, %v6872_v22  ;;  %v14252_v2 = vld [vmem:[#allocation11_spill] sm:$0xff] }
 0x82b   : > { %v6044_v59 = vpop.f32.mrf.mxu2 }
 0x82c   : > { %7112 = vst [vmem:[%s11342_s27 + $0x120] sm:$0xff] %v7032_v31  ;;  %v6045_v43 = vadd.f32 %v6044_v59, %v5986_v30  ;;  %v6103_v6 = vpop.f32.mrf.mxu3  ;;  %v5928_v44 = vpop.f32.mrf.mxu0  ;;  %v9269_v31 = vld [vmem:[%s11346_s30 + $0x868] sm:$0xf]  ;;  %v10083_v59 = vld [vmem:[%s11346_s30 + $0x874] sm:$0xf0] }
 0x82d   : > { %v5987_v40 = vpop.f32.mrf.mxu1 }
 0x82e   : > { %v6104_v23 = vadd.f32 %v6103_v6, %v6045_v43  ;;  %v5988_v0 = vadd.f32 %v5987_v40, %v5928_v44  ;;  %v9270_v43 = vor.u32 %v10083_v59, %v9269_v31  ;;  %v9397_v6 = vld [vmem:[%s11346_s30 + $0x968] sm:$0xf] }
 0x82f   : > { %v9398_v39 = vor.u32 %v10115_v25, %v9397_v6 }
 0x830   : > { %v6876_v61 = vadd.f32 %v6104_v23, %v14252_v2  ;;  %v14253_v23 = vld [vmem:[#allocation12_spill] sm:$0xff]  ;;  %6368 = vmatpush.bf16.msra.mxu0 %v9270_v43 }
 0x831   : > { %6427 = vmatpush.bf16.msra.mxu1 %v9398_v39  ;;  %v10143_v39 = vld [vmem:[%s11346_s30 + $0xa54] sm:$0xf0] }
 0x832   : > { %v7036_v45 = vadd.f32 %v6956_v41, %v6876_v61 }
 0x833   : > { %v6046_v15 = vpop.f32.mrf.mxu2 }
 0x834   : > { %7116 = vst [vmem:[%s11342_s27 + $0x140] sm:$0xff] %v7036_v45  ;;  %v6047_v20 = vadd.f32 %v6046_v15, %v5988_v0  ;;  %v6105_v22 = vpop.f32.mrf.mxu3  ;;  %v5931_v30 = vpop.f32.mrf.mxu0 }
 0x835   : > { %v5990_v11 = vpop.f32.mrf.mxu1 }
 0x836   : > { %v6106_v26 = vadd.f32 %v6105_v22, %v6047_v20  ;;  %v5991_v40 = vadd.f32 %v5990_v11, %v5931_v30  ;;  %v6964_v20 = vld [vmem:[%s11342_s27 + $0x180] sm:$0xff]  ;;  %v14254_v22 = vld [vmem:[#allocation13_spill] sm:$0xff] }
 0x837   : > { %6156 = vmatmul.bf16.gmra.mxu0 %v13083_v48  ;;  %6215 = vmatmul.bf16.gmra.mxu1 %v13085_v27 }
 0x838   : > { %v6880_v44 = vadd.f32 %v6106_v26, %v14253_v23  ;;  %6274 = vmatmul.bf16.gmra.mxu2 %v13087_v50  ;;  %v9509_v26 = vld [vmem:[%s11346_s30 + $0xa48] sm:$0xf] }
 0x839   : > { %6333 = vmatmul.bf16.gmra.mxu3 %v13090_v54  ;;  %v9510_v23 = vor.u32 %v10143_v39, %v9509_v26 }
 0x83a   : > { %v7040_v58 = vadd.f32 %v6960_v37, %v6880_v44  ;;  %v9637_v44 = vld [vmem:[%s11346_s30 + $0xb48] sm:$0xf] }
 0x83b   : > { %v6049_v41 = vpop.f32.mrf.mxu2  ;;  %6487 = vmatpush.bf16.msra.mxu2 %v9510_v23  ;;  %v6972_v23 = vld [vmem:[%s11342_s27 + $0x1c0] sm:$0xff] }
 0x83c   : > { %7120 = vst [vmem:[%s11342_s27 + $0x160] sm:$0xff] %v7040_v58  ;;  %v6050_v2 = vadd.f32 %v6049_v41, %v5991_v40  ;;  %v6108_v61 = vpop.f32.mrf.mxu3  ;;  %v5933_v45 = vpop.f32.mrf.mxu0  ;;  %v10175_v40 = vld [vmem:[%s11346_s30 + $0xb54] sm:$0xf0]  ;;  %v9253_v58 = vld [vmem:[%s11346_s30 + $0x848] sm:$0xf] }
 0x83d   : > { %v5992_v0 = vpop.f32.mrf.mxu1 }
 0x83e   : > { %v6109_v15 = vadd.f32 %v6108_v61, %v6050_v2  ;;  %v5993_v59 = vadd.f32 %v5992_v0, %v5933_v45  ;;  %v9638_v2 = vor.u32 %v10175_v40, %v9637_v44  ;;  %v10079_v61 = vld [vmem:[%s11346_s30 + $0x854] sm:$0xf0]  ;;  %v6968_v0 = vld [vmem:[%s11342_s27 + $0x1a0] sm:$0xff] }
 0x83f   : > { %v10111_v45 = vld [vmem:[%s11346_s30 + $0x954] sm:$0xf0] }
 0x840   : > { %v6884_v30 = vadd.f32 %v6109_v15, %v14254_v22  ;;  %v9381_v15 = vld [vmem:[%s11346_s30 + $0x948] sm:$0xf]  ;;  %6546 = vmatpush.bf16.msra.mxu3 %v9638_v2  ;;  %v14256_v44 = vld [vmem:[#allocation15_spill] sm:$0xff] }
 0x841   : > { %v9382_v22 = vor.u32 %v10111_v45, %v9381_v15 }
 0x842   : > { %v7044_v31 = vadd.f32 %v6964_v20, %v6884_v30  ;;  %v9254_v20 = vor.u32 %v10079_v61, %v9253_v58  ;;  %v14255_v30 = vld [vmem:[#allocation14_spill] sm:$0xff] }
 0x843   : > { %v6051_v11 = vpop.f32.mrf.mxu2  ;;  %6428 = vmatpush.bf16.msra.mxu1 %v9382_v22 }
 0x844   : > { %7124 = vst [vmem:[%s11342_s27 + $0x180] sm:$0xff] %v7044_v31  ;;  %v6052_v43 = vadd.f32 %v6051_v11, %v5993_v59  ;;  %v6110_v6 = vpop.f32.mrf.mxu3  ;;  %v5936_v25 = vpop.f32.mrf.mxu0  ;;  %6369 = vmatpush.bf16.msra.mxu0 %v9254_v20  ;;  %v10139_v20 = vld [vmem:[%s11346_s30 + $0xa34] sm:$0xf0] }
 0x845   : > { %v5995_v37 = vpop.f32.mrf.mxu1 }
 0x846   : > { %v6111_v41 = vadd.f32 %v6110_v6, %v6052_v43  ;;  %v5996_v59 = vadd.f32 %v5995_v37, %v5936_v25 }
 0x847   : > { %6161 = vmatmul.bf16.gmra.mxu0 %v13117_v12  ;;  %6220 = vmatmul.bf16.gmra.mxu1 %v13119_v36 }
 0x848   : > { %v6888_v31 = vadd.f32 %v6111_v41, %v14255_v30  ;;  %6279 = vmatmul.bf16.gmra.mxu2 %v13121_v18 }
 0x849   : > { %6338 = vmatmul.bf16.gmra.mxu3 %v13124_v17 }
 0x84a   : > { %v7048_v11 = vadd.f32 %v6968_v0, %v6888_v31  ;;  %v9493_v0 = vld [vmem:[%s11346_s30 + $0xa28] sm:$0xf] }
 0x84b   : > { %v6054_v43 = vpop.f32.mrf.mxu2  ;;  %v9494_v30 = vor.u32 %v10139_v20, %v9493_v0  ;;  %v9621_v31 = vld [vmem:[%s11346_s30 + $0xb28] sm:$0xf]  ;;  %v10107_v0 = vld [vmem:[%s11346_s30 + $0x934] sm:$0xf0] }
 0x84c   : > { %7128 = vst [vmem:[%s11342_s27 + $0x1a0] sm:$0xff] %v7048_v11  ;;  %v6055_v6 = vadd.f32 %v6054_v43, %v5996_v59  ;;  %v6113_v26 = vpop.f32.mrf.mxu3  ;;  %v5938_v39 = vpop.f32.mrf.mxu0  ;;  %v10171_v59 = vld [vmem:[%s11346_s30 + $0xb34] sm:$0xf0] }
 0x84d   : > { %v5997_v25 = vpop.f32.mrf.mxu1  ;;  %v9622_v43 = vor.u32 %v10171_v59, %v9621_v31  ;;  %6488 = vmatpush.bf16.msra.mxu2 %v9494_v30  ;;  %v6980_v30 = vld [vmem:[%s11342_s27 + $0x200] sm:$0xff]  ;;  %v14258_v31 = vld [vmem:[#allocation17_spill] sm:$0xff] }
 0x84e   : > { %v6114_v37 = vadd.f32 %v6113_v26, %v6055_v6  ;;  %v5998_v41 = vadd.f32 %v5997_v25, %v5938_v39  ;;  %v6976_v6 = vld [vmem:[%s11342_s27 + $0x1e0] sm:$0xff] }
 0x84f   : > { %v14257_v26 = vld [vmem:[#allocation16_spill] sm:$0xff]  ;;  %6547 = vmatpush.bf16.msra.mxu3 %v9622_v43 }
 0x850   : > { %v6892_v40 = vadd.f32 %v6114_v37, %v14256_v44 }
 0x852   : > { %v7052_v58 = vadd.f32 %v6972_v23, %v6892_v40 }
 0x853   : > { %v6056_v61 = vpop.f32.mrf.mxu2 }
 0x854   : > { %7132 = vst [vmem:[%s11342_s27 + $0x1c0] sm:$0xff] %v7052_v58  ;;  %v6057_v2 = vadd.f32 %v6056_v61, %v5998_v41  ;;  %v6115_v15 = vpop.f32.mrf.mxu3  ;;  %v5941_v45 = vpop.f32.mrf.mxu0  ;;  %v9237_v41 = vld [vmem:[%s11346_s30 + $0x828] sm:$0xf]  ;;  %v10075_v61 = vld [vmem:[%s11346_s30 + $0x834] sm:$0xf0] }
 0x855   : > { %v6000_v22 = vpop.f32.mrf.mxu1 }
 0x856   : > { %v6116_v11 = vadd.f32 %v6115_v15, %v6057_v2  ;;  %v6001_v25 = vadd.f32 %v6000_v22, %v5941_v45  ;;  %v9238_v15 = vor.u32 %v10075_v61, %v9237_v41  ;;  %v9365_v45 = vld [vmem:[%s11346_s30 + $0x928] sm:$0xf]  ;;  %v6984_v41 = vld [vmem:[%s11342_s27 + $0x220] sm:$0xff] }
 0x857   : > { %6166 = vmatmul.bf16.gmra.mxu0 %v13147_v60  ;;  %6225 = vmatmul.bf16.gmra.mxu1 %v13149_v32  ;;  %v9366_v22 = vor.u32 %v10107_v0, %v9365_v45 }
 0x858   : > { %v6896_v39 = vadd.f32 %v6116_v11, %v14257_v26  ;;  %6284 = vmatmul.bf16.gmra.mxu2 %v13151_v7  ;;  %6370 = vmatpush.bf16.msra.mxu0 %v9238_v15 }
 0x859   : > { %6343 = vmatmul.bf16.gmra.mxu3 %v13154_v63  ;;  %6429 = vmatpush.bf16.msra.mxu1 %v9366_v22  ;;  %v10135_v22 = vld [vmem:[%s11346_s30 + $0xa14] sm:$0xf0] }
 0x85a   : > { %v7056_v37 = vadd.f32 %v6976_v6, %v6896_v39 }
 0x85b   : > { %v6059_v23 = vpop.f32.mrf.mxu2 }
 0x85c   : > { %7136 = vst [vmem:[%s11342_s27 + $0x1e0] sm:$0xff] %v7056_v37  ;;  %v6060_v44 = vadd.f32 %v6059_v23, %v6001_v25  ;;  %v6118_v40 = vpop.f32.mrf.mxu3  ;;  %v5943_v58 = vpop.f32.mrf.mxu0 }
 0x85d   : > { %v6002_v2 = vpop.f32.mrf.mxu1 }
 0x85e   : > { %v6119_v20 = vadd.f32 %v6118_v40, %v6060_v44  ;;  %v6003_v43 = vadd.f32 %v6002_v2, %v5943_v58  ;;  %v14259_v44 = vld [vmem:[#allocation18_spill] sm:$0xff] }
 0x860   : > { %v6900_v59 = vadd.f32 %v6119_v20, %v14258_v31  ;;  %v9477_v20 = vld [vmem:[%s11346_s30 + $0xa08] sm:$0xf] }
 0x861   : > { %v9478_v31 = vor.u32 %v10135_v22, %v9477_v20 }
 0x862   : > { %v7060_v11 = vadd.f32 %v6980_v30, %v6900_v59  ;;  %v9605_v59 = vld [vmem:[%s11346_s30 + $0xb08] sm:$0xf] }
 0x863   : > { %v6061_v6 = vpop.f32.mrf.mxu2  ;;  %6489 = vmatpush.bf16.msra.mxu2 %v9478_v31 }
 0x864   : > { %7140 = vst [vmem:[%s11342_s27 + $0x200] sm:$0xff] %v7060_v11  ;;  %v6062_v26 = vadd.f32 %v6061_v6, %v6003_v43  ;;  %v6120_v39 = vpop.f32.mrf.mxu3  ;;  %v5946_v25 = vpop.f32.mrf.mxu0  ;;  %v10167_v11 = vld [vmem:[%s11346_s30 + $0xb14] sm:$0xf0]  ;;  %v9221_v43 = vld [vmem:[%s11346_s30 + $0x808] sm:$0xf] }
 0x865   : > { %v6005_v37 = vpop.f32.mrf.mxu1 }
 0x866   : > { %v6121_v23 = vadd.f32 %v6120_v39, %v6062_v26  ;;  %v6006_v61 = vadd.f32 %v6005_v37, %v5946_v25  ;;  %v9606_v26 = vor.u32 %v10167_v11, %v9605_v59  ;;  %v10071_v39 = vld [vmem:[%s11346_s30 + $0x814] sm:$0xf0]  ;;  %v9349_v25 = vld [vmem:[%s11346_s30 + $0x908] sm:$0xf]  ;;  %v6992_v11 = vld [vmem:[%s11342_s27 + $0x260] sm:$0xff] }
 0x867   : > { %6171 = vmatmul.bf16.gmra.mxu0 %v13177_v19  ;;  %6230 = vmatmul.bf16.gmra.mxu1 %v13179_v34  ;;  %v10103_v37 = vld [vmem:[%s11346_s30 + $0x914] sm:$0xf0] }
 0x868   : > { %v6904_v40 = vadd.f32 %v6121_v23, %v14259_v44  ;;  %6289 = vmatmul.bf16.gmra.mxu2 %v13181_v13  ;;  %v6988_v23 = vld [vmem:[%s11342_s27 + $0x240] sm:$0xff]  ;;  %v9350_v44 = vor.u32 %v10103_v37, %v9349_v25  ;;  %6548 = vmatpush.bf16.msra.mxu3 %v9606_v26 }
 0x869   : > { %6348 = vmatmul.bf16.gmra.mxu3 %v13184_v8 }
 0x86a   : > { %v7064_v58 = vadd.f32 %v6984_v41, %v6904_v40  ;;  %v9222_v41 = vor.u32 %v10071_v39, %v9221_v43  ;;  %v14260_v40 = vld [vmem:[#allocation19_spill] sm:$0xff]  ;;  %6430 = vmatpush.bf16.msra.mxu1 %v9350_v44  ;;  %v14261_v43 = vld [vmem:[#allocation20_spill] sm:$0xff] }
 0x86b   : > { %v6064_v2 = vpop.f32.mrf.mxu2 }
 0x86c   : > { %7144 = vst [vmem:[%s11342_s27 + $0x220] sm:$0xff] %v7064_v58  ;;  %v6065_v15 = vadd.f32 %v6064_v2, %v6006_v61  ;;  %v6123_v45 = vpop.f32.mrf.mxu3  ;;  %v5948_v0 = vpop.f32.mrf.mxu0  ;;  %6371 = vmatpush.bf16.msra.mxu0 %v9222_v41  ;;  %v9591_v41 = vld [vmem:[%s11346_s30 + $0xaf8] sm:$0xf0] }
 0x86d   : > { %v6007_v30 = vpop.f32.mrf.mxu1 }
 0x86e   : > { %v6124_v6 = vadd.f32 %v6123_v45, %v6065_v15  ;;  %v6008_v2 = vadd.f32 %v6007_v30, %v5948_v0 }
 0x870   : > { %v6908_v61 = vadd.f32 %v6124_v6, %v14260_v40 }
 0x872   : > { %v7068_v58 = vadd.f32 %v6988_v23, %v6908_v61  ;;  %v10161_v23 = vld [vmem:[%s11346_s30 + $0xaec] sm:$0xf] }
 0x873   : > { %v6066_v20 = vpop.f32.mrf.mxu2  ;;  %v9594_v40 = vor.u32 %v10161_v23, %v9591_v41  ;;  %v10193_v61 = vld [vmem:[%s11346_s30 + $0xbec] sm:$0xf]  ;;  %v9463_v41 = vld [vmem:[%s11346_s30 + $0x9f8] sm:$0xf0] }
 0x874   : > { %7148 = vst [vmem:[%s11342_s27 + $0x240] sm:$0xff] %v7068_v58  ;;  %v6067_v15 = vadd.f32 %v6066_v20, %v6008_v2  ;;  %v6125_v45 = vpop.f32.mrf.mxu3  ;;  %v6137_v22 = vpop.f32.mrf.mxu0  ;;  %v9719_v58 = vld [vmem:[%s11346_s30 + $0xbf8] sm:$0xf0] }
 0x875   : > { %v6196_v59 = vpop.f32.mrf.mxu1  ;;  %v9722_v20 = vor.u32 %v10193_v61, %v9719_v58  ;;  %6718 = vmatpush.bf16.msrb.mxu2 %v9594_v40  ;;  %v6921_v58 = vld [vmem:[%s11342_s27 + $0x28] sm:$0xff] }
 0x876   : > { %v6126_v31 = vadd.f32 %v6125_v45, %v6067_v15  ;;  %v6197_v26 = vadd.f32 %v6196_v59, %v6137_v22  ;;  %v6917_v15 = vld [vmem:[%s11342_s27 + $0x8] sm:$0xff] }
 0x877   : > { %6176 = vmatmul.bf16.gmra.mxu0 %v13211_v57  ;;  %6235 = vmatmul.bf16.gmra.mxu1 %v13213_v38  ;;  %v14262_v45 = vld [vmem:[#allocation21_spill] sm:$0xff] }
 0x878   : > { %v6912_v6 = vadd.f32 %v6126_v31, %v14261_v43  ;;  %6294 = vmatmul.bf16.gmra.mxu2 %v13215_v62  ;;  %6777 = vmatpush.bf16.msrb.mxu3 %v9722_v20 }
 0x879   : > { %6353 = vmatmul.bf16.gmra.mxu3 %v13217_v49 }
 0x87a   : > { %v7072_v0 = vadd.f32 %v6992_v11, %v6912_v6 }
 0x87b   : > { %v6255_v30 = vpop.f32.mrf.mxu2 }
 0x87c   : > { %7152 = vst [vmem:[%s11342_s27 + $0x260] sm:$0xff] %v7072_v0  ;;  %v6256_v39 = vadd.f32 %v6255_v30, %v6197_v26  ;;  %v6314_v25 = vpop.f32.mrf.mxu3  ;;  %v6139_v37 = vpop.f32.mrf.mxu0  ;;  %v10097_v0 = vld [vmem:[%s11346_s30 + $0x8ec] sm:$0xf]  ;;  %v9335_v30 = vld [vmem:[%s11346_s30 + $0x8f8] sm:$0xf0] }
 0x87d   : > { %v6198_v44 = vpop.f32.mrf.mxu1 }
 0x87e   : > { %v6315_v2 = vadd.f32 %v6314_v25, %v6256_v39  ;;  %v6199_v31 = vadd.f32 %v6198_v44, %v6139_v37  ;;  %v9338_v39 = vor.u32 %v10097_v0, %v9335_v30  ;;  %v10129_v25 = vld [vmem:[%s11346_s30 + $0x9ec] sm:$0xf] }
 0x87f   : > { %v9466_v40 = vor.u32 %v10129_v25, %v9463_v41 }
 0x880   : > { %v6837_v22 = vadd.f32 %v6315_v2, %v14262_v45  ;;  %v14263_v2 = vld [vmem:[#allocation22_spill] sm:$0xff]  ;;  %6600 = vmatpush.bf16.msrb.mxu0 %v9338_v39 }
 0x881   : > { %6659 = vmatpush.bf16.msrb.mxu1 %v9466_v40  ;;  %v9575_v40 = vld [vmem:[%s11346_s30 + $0xad8] sm:$0xf0] }
 0x882   : > { %v6997_v59 = vadd.f32 %v6917_v15, %v6837_v22 }
 0x883   : > { %v6257_v11 = vpop.f32.mrf.mxu2 }
 0x884   : > { %7077 = vst [vmem:[%s11342_s27 + $0x8] sm:$0xff] %v6997_v59  ;;  %v6258_v43 = vadd.f32 %v6257_v11, %v6199_v31  ;;  %v6316_v6 = vpop.f32.mrf.mxu3  ;;  %v6142_v26 = vpop.f32.mrf.mxu0 }
 0x885   : > { %v6201_v23 = vpop.f32.mrf.mxu1 }
 0x886   : > { %v6317_v61 = vadd.f32 %v6316_v6, %v6258_v43  ;;  %v6202_v44 = vadd.f32 %v6201_v23, %v6142_v26  ;;  %v6925_v43 = vld [vmem:[%s11342_s27 + $0x48] sm:$0xff]  ;;  %v14264_v6 = vld [vmem:[#allocation23_spill] sm:$0xff] }
 0x887   : > { %6181 = vmatmul.bf16.gmra.mxu0 %v13239_v55  ;;  %6240 = vmatmul.bf16.gmra.mxu1 %v13242_v53 }
 0x888   : > { %v6841_v37 = vadd.f32 %v6317_v61, %v14263_v2  ;;  %6299 = vmatmul.bf16.gmra.mxu2 %v13244_v47  ;;  %v10157_v61 = vld [vmem:[%s11346_s30 + $0xacc] sm:$0xf] }
 0x889   : > { %6358 = vmatmul.bf16.gmra.mxu3 %v13249_v46  ;;  %v9578_v2 = vor.u32 %v10157_v61, %v9575_v40 }
 0x88a   : > { %v7001_v20 = vadd.f32 %v6921_v58, %v6841_v37  ;;  %v10189_v37 = vld [vmem:[%s11346_s30 + $0xbcc] sm:$0xf] }
 0x88b   : > { %v6260_v15 = vpop.f32.mrf.mxu2  ;;  %6719 = vmatpush.bf16.msrb.mxu2 %v9578_v2  ;;  %v6933_v2 = vld [vmem:[%s11342_s27 + $0x88] sm:$0xff] }
 0x88c   : > { %7081 = vst [vmem:[%s11342_s27 + $0x28] sm:$0xff] %v7001_v20  ;;  %v6261_v45 = vadd.f32 %v6260_v15, %v6202_v44  ;;  %v6319_v22 = vpop.f32.mrf.mxu3  ;;  %v6144_v59 = vpop.f32.mrf.mxu0  ;;  %v9703_v44 = vld [vmem:[%s11346_s30 + $0xbd8] sm:$0xf0]  ;;  %v10093_v20 = vld [vmem:[%s11346_s30 + $0x8cc] sm:$0xf] }
 0x88d   : > { %v6203_v31 = vpop.f32.mrf.mxu1 }
 0x88e   : > { %v6320_v11 = vadd.f32 %v6319_v22, %v6261_v45  ;;  %v6204_v30 = vadd.f32 %v6203_v31, %v6144_v59  ;;  %v9706_v45 = vor.u32 %v10189_v37, %v9703_v44  ;;  %v9319_v22 = vld [vmem:[%s11346_s30 + $0x8d8] sm:$0xf0]  ;;  %v6929_v31 = vld [vmem:[%s11342_s27 + $0x68] sm:$0xff] }
 0x88f   : > { %v9447_v59 = vld [vmem:[%s11346_s30 + $0x9d8] sm:$0xf0]  ;;  %v14266_v37 = vld [vmem:[#allocation25_spill] sm:$0xff] }
 0x890   : > { %v6845_v26 = vadd.f32 %v6320_v11, %v14264_v6  ;;  %v10125_v11 = vld [vmem:[%s11346_s30 + $0x9cc] sm:$0xf]  ;;  %6778 = vmatpush.bf16.msrb.mxu3 %v9706_v45 }
 0x891   : > { %v9450_v6 = vor.u32 %v10125_v11, %v9447_v59 }
 0x892   : > { %v7005_v0 = vadd.f32 %v6925_v43, %v6845_v26  ;;  %v9322_v43 = vor.u32 %v10093_v20, %v9319_v22  ;;  %v14265_v26 = vld [vmem:[#allocation24_spill] sm:$0xff] }
 0x893   : > { %v6262_v23 = vpop.f32.mrf.mxu2  ;;  %6660 = vmatpush.bf16.msrb.mxu1 %v9450_v6 }
 0x894   : > { %7085 = vst [vmem:[%s11342_s27 + $0x48] sm:$0xff] %v7005_v0  ;;  %v6263_v39 = vadd.f32 %v6262_v23, %v6204_v30  ;;  %v6321_v25 = vpop.f32.mrf.mxu3  ;;  %v6147_v41 = vpop.f32.mrf.mxu0  ;;  %6601 = vmatpush.bf16.msrb.mxu0 %v9322_v43  ;;  %v9559_v43 = vld [vmem:[%s11346_s30 + $0xab8] sm:$0xf0] }
 0x895   : > { %v6206_v58 = vpop.f32.mrf.mxu1 }
 0x896   : > { %v6322_v15 = vadd.f32 %v6321_v25, %v6263_v39  ;;  %v6207_v30 = vadd.f32 %v6206_v58, %v6147_v41 }
 0x897   : > { %6372 = vmatmul.bf16.vlgmr.msra.gmra.mxu0 %v12955_v52  ;;  %6431 = vmatmul.bf16.vlgmr.msra.gmra.mxu1 %v12957_v10 }
 0x898   : > { %v6849_v0 = vadd.f32 %v6322_v15, %v14265_v26  ;;  %6490 = vmatmul.bf16.vlgmr.msra.gmra.mxu2 %v12959_v56 }
 0x899   : > { %6549 = vmatmul.bf16.vlgmr.msra.gmra.mxu3 %v12962_v42 }
 0x89a   : > { %v7009_v23 = vadd.f32 %v6929_v31, %v6849_v0  ;;  %v10153_v31 = vld [vmem:[%s11346_s30 + $0xaac] sm:$0xf] }
 0x89b   : > { %v6265_v39 = vpop.f32.mrf.mxu2  ;;  %v9562_v26 = vor.u32 %v10153_v31, %v9559_v43  ;;  %v10185_v0 = vld [vmem:[%s11346_s30 + $0xbac] sm:$0xf]  ;;  %v9431_v31 = vld [vmem:[%s11346_s30 + $0x9b8] sm:$0xf0] }
 0x89c   : > { %7089 = vst [vmem:[%s11342_s27 + $0x68] sm:$0xff] %v7009_v23  ;;  %v6266_v25 = vadd.f32 %v6265_v39, %v6207_v30  ;;  %v6324_v61 = vpop.f32.mrf.mxu3  ;;  %v6149_v40 = vpop.f32.mrf.mxu0  ;;  %v9687_v30 = vld [vmem:[%s11346_s30 + $0xbb8] sm:$0xf0] }
 0x89d   : > { %v6208_v41 = vpop.f32.mrf.mxu1  ;;  %v9690_v39 = vor.u32 %v10185_v0, %v9687_v30  ;;  %6720 = vmatpush.bf16.msrb.mxu2 %v9562_v26  ;;  %v6941_v26 = vld [vmem:[%s11342_s27 + $0xc8] sm:$0xff]  ;;  %v14268_v0 = vld [vmem:[#allocation27_spill] sm:$0xff] }
 0x89e   : > { %v6325_v58 = vadd.f32 %v6324_v61, %v6266_v25  ;;  %v6209_v15 = vadd.f32 %v6208_v41, %v6149_v40  ;;  %v6937_v25 = vld [vmem:[%s11342_s27 + $0xa8] sm:$0xff]  ;;  %v14267_v61 = vld [vmem:[#allocation26_spill] sm:$0xff] }
 0x89f   : > { %6779 = vmatpush.bf16.msrb.mxu3 %v9690_v39 }
 0x8a0   : > { %v6853_v44 = vadd.f32 %v6325_v58, %v14266_v37 }
 0x8a2   : > { %v7013_v20 = vadd.f32 %v6933_v2, %v6853_v44 }
 0x8a3   : > { %v6267_v22 = vpop.f32.mrf.mxu2 }
 0x8a4   : > { %7093 = vst [vmem:[%s11342_s27 + $0x88] sm:$0xff] %v7013_v20  ;;  %v6268_v45 = vadd.f32 %v6267_v22, %v6209_v15  ;;  %v6326_v11 = vpop.f32.mrf.mxu3  ;;  %v6152_v59 = vpop.f32.mrf.mxu0  ;;  %v10089_v15 = vld [vmem:[%s11346_s30 + $0x8ac] sm:$0xf]  ;;  %v9303_v22 = vld [vmem:[%s11346_s30 + $0x8b8] sm:$0xf0] }
 0x8a5   : > { %v6211_v6 = vpop.f32.mrf.mxu1 }
 0x8a6   : > { %v6327_v23 = vadd.f32 %v6326_v11, %v6268_v45  ;;  %v6212_v41 = vadd.f32 %v6211_v6, %v6152_v59  ;;  %v9306_v11 = vor.u32 %v10089_v15, %v9303_v22  ;;  %v10121_v59 = vld [vmem:[%s11346_s30 + $0x9ac] sm:$0xf] }
 0x8a7   : > { %6377 = vmatmul.bf16.gmra.mxu0 %v12985_v16  ;;  %6436 = vmatmul.bf16.gmra.mxu1 %v12987_v9  ;;  %v9434_v6 = vor.u32 %v10121_v59, %v9431_v31  ;;  %v6945_v15 = vld [vmem:[%s11342_s27 + $0xe8] sm:$0xff] }
 0x8a8   : > { %v6857_v40 = vadd.f32 %v6327_v23, %v14267_v61  ;;  %6495 = vmatmul.bf16.gmra.mxu2 %v12989_v33  ;;  %6602 = vmatpush.bf16.msrb.mxu0 %v9306_v11 }
 0x8a9   : > { %6554 = vmatmul.bf16.gmra.mxu3 %v12992_v1  ;;  %6661 = vmatpush.bf16.msrb.mxu1 %v9434_v6  ;;  %v9543_v6 = vld [vmem:[%s11346_s30 + $0xa98] sm:$0xf0] }
 0x8aa   : > { %v7017_v58 = vadd.f32 %v6937_v25, %v6857_v40 }
 0x8ab   : > { %v6270_v2 = vpop.f32.mrf.mxu2 }
 0x8ac   : > { %7097 = vst [vmem:[%s11342_s27 + $0xa8] sm:$0xff] %v7017_v58  ;;  %v6271_v37 = vadd.f32 %v6270_v2, %v6212_v41  ;;  %v6329_v44 = vpop.f32.mrf.mxu3  ;;  %v6154_v20 = vpop.f32.mrf.mxu0 }
 0x8ad   : > { %v6213_v45 = vpop.f32.mrf.mxu1 }
 0x8ae   : > { %v6330_v43 = vadd.f32 %v6329_v44, %v6271_v37  ;;  %v6214_v39 = vadd.f32 %v6213_v45, %v6154_v20  ;;  %v14269_v37 = vld [vmem:[#allocation28_spill] sm:$0xff] }
 0x8b0   : > { %v6861_v30 = vadd.f32 %v6330_v43, %v14268_v0  ;;  %v10149_v43 = vld [vmem:[%s11346_s30 + $0xa8c] sm:$0xf] }
 0x8b1   : > { %v9546_v0 = vor.u32 %v10149_v43, %v9543_v6 }
 0x8b2   : > { %v7021_v23 = vadd.f32 %v6941_v26, %v6861_v30  ;;  %v10181_v30 = vld [vmem:[%s11346_s30 + $0xb8c] sm:$0xf] }
 0x8b3   : > { %v6272_v25 = vpop.f32.mrf.mxu2  ;;  %6721 = vmatpush.bf16.msrb.mxu2 %v9546_v0 }
 0x8b4   : > { %7101 = vst [vmem:[%s11342_s27 + $0xc8] sm:$0xff] %v7021_v23  ;;  %v6273_v61 = vadd.f32 %v6272_v25, %v6214_v39  ;;  %v6331_v40 = vpop.f32.mrf.mxu3  ;;  %v6157_v41 = vpop.f32.mrf.mxu0  ;;  %v9671_v23 = vld [vmem:[%s11346_s30 + $0xb98] sm:$0xf0]  ;;  %v10085_v39 = vld [vmem:[%s11346_s30 + $0x88c] sm:$0xf] }
 0x8b5   : > { %v6216_v58 = vpop.f32.mrf.mxu1 }
 0x8b6   : > { %v6332_v2 = vadd.f32 %v6331_v40, %v6273_v61  ;;  %v6217_v22 = vadd.f32 %v6216_v58, %v6157_v41  ;;  %v9674_v61 = vor.u32 %v10181_v30, %v9671_v23  ;;  %v9287_v40 = vld [vmem:[%s11346_s30 + $0x898] sm:$0xf0]  ;;  %v10117_v41 = vld [vmem:[%s11346_s30 + $0x98c] sm:$0xf] }
 0x8b7   : > { %6382 = vmatmul.bf16.gmra.mxu0 %v13015_v29  ;;  %6441 = vmatmul.bf16.gmra.mxu1 %v13017_v3  ;;  %v9415_v58 = vld [vmem:[%s11346_s30 + $0x998] sm:$0xf0]  ;;  %v6953_v23 = vld [vmem:[%s11342_s27 + $0x128] sm:$0xff] }
 0x8b8   : > { %v6865_v44 = vadd.f32 %v6332_v2, %v14269_v37  ;;  %6500 = vmatmul.bf16.gmra.mxu2 %v13019_v4  ;;  %v6949_v2 = vld [vmem:[%s11342_s27 + $0x108] sm:$0xff]  ;;  %v9418_v37 = vor.u32 %v10117_v41, %v9415_v58  ;;  %6780 = vmatpush.bf16.msrb.mxu3 %v9674_v61 }
 0x8b9   : > { %6559 = vmatmul.bf16.gmra.mxu3 %v13022_v5 }
 0x8ba   : > { %v7025_v20 = vadd.f32 %v6945_v15, %v6865_v44  ;;  %v9290_v15 = vor.u32 %v10085_v39, %v9287_v40  ;;  %v14270_v44 = vld [vmem:[#allocation29_spill] sm:$0xff]  ;;  %6662 = vmatpush.bf16.msrb.mxu1 %v9418_v37  ;;  %v14271_v39 = vld [vmem:[#allocation30_spill] sm:$0xff] }
 0x8bb   : > { %v6275_v45 = vpop.f32.mrf.mxu2 }
 0x8bc   : > { %7105 = vst [vmem:[%s11342_s27 + $0xe8] sm:$0xff] %v7025_v20  ;;  %v6276_v11 = vadd.f32 %v6275_v45, %v6217_v22  ;;  %v6334_v59 = vpop.f32.mrf.mxu3  ;;  %v6159_v31 = vpop.f32.mrf.mxu0  ;;  %6603 = vmatpush.bf16.msrb.mxu0 %v9290_v15  ;;  %v9527_v15 = vld [vmem:[%s11346_s30 + $0xa78] sm:$0xf0] }
 0x8bd   : > { %v6218_v26 = vpop.f32.mrf.mxu1 }
 0x8be   : > { %v6335_v25 = vadd.f32 %v6334_v59, %v6276_v11  ;;  %v6219_v45 = vadd.f32 %v6218_v26, %v6159_v31 }
 0x8c0   : > { %v6869_v22 = vadd.f32 %v6335_v25, %v14270_v44 }
 0x8c2   : > { %v7029_v20 = vadd.f32 %v6949_v2, %v6869_v22  ;;  %v10145_v2 = vld [vmem:[%s11346_s30 + $0xa6c] sm:$0xf] }
 0x8c3   : > { %v6277_v43 = vpop.f32.mrf.mxu2  ;;  %v9530_v44 = vor.u32 %v10145_v2, %v9527_v15  ;;  %v10177_v22 = vld [vmem:[%s11346_s30 + $0xb6c] sm:$0xf]  ;;  %v9399_v15 = vld [vmem:[%s11346_s30 + $0x978] sm:$0xf0] }
 0x8c4   : > { %7109 = vst [vmem:[%s11342_s27 + $0x108] sm:$0xff] %v7029_v20  ;;  %v6278_v11 = vadd.f32 %v6277_v43, %v6219_v45  ;;  %v6336_v59 = vpop.f32.mrf.mxu3  ;;  %v6162_v6 = vpop.f32.mrf.mxu0  ;;  %v9655_v20 = vld [vmem:[%s11346_s30 + $0xb78] sm:$0xf0] }
 0x8c5   : > { %v6221_v30 = vpop.f32.mrf.mxu1  ;;  %v9658_v43 = vor.u32 %v10177_v22, %v9655_v20  ;;  %6722 = vmatpush.bf16.msrb.mxu2 %v9530_v44  ;;  %v6961_v20 = vld [vmem:[%s11342_s27 + $0x168] sm:$0xff] }
 0x8c6   : > { %v6337_v0 = vadd.f32 %v6336_v59, %v6278_v11  ;;  %v6222_v61 = vadd.f32 %v6221_v30, %v6162_v6  ;;  %v6957_v11 = vld [vmem:[%s11342_s27 + $0x148] sm:$0xff]  ;;  %v14272_v59 = vld [vmem:[#allocation31_spill] sm:$0xff] }
 0x8c7   : > { %6387 = vmatmul.bf16.gmra.mxu0 %v13049_v14  ;;  %6446 = vmatmul.bf16.gmra.mxu1 %v13051_v35 }
 0x8c8   : > { %v6873_v25 = vadd.f32 %v6337_v0, %v14271_v39  ;;  %6505 = vmatmul.bf16.gmra.mxu2 %v13053_v28  ;;  %6781 = vmatpush.bf16.msrb.mxu3 %v9658_v43 }
 0x8c9   : > { %6564 = vmatmul.bf16.gmra.mxu3 %v13056_v51 }
 0x8ca   : > { %v7033_v31 = vadd.f32 %v6953_v23, %v6873_v25 }
 0x8cb   : > { %v6280_v26 = vpop.f32.mrf.mxu2 }
 0x8cc   : > { %7113 = vst [vmem:[%s11342_s27 + $0x128] sm:$0xff] %v7033_v31  ;;  %v6281_v40 = vadd.f32 %v6280_v26, %v6222_v61  ;;  %v6339_v41 = vpop.f32.mrf.mxu3  ;;  %v6164_v58 = vpop.f32.mrf.mxu0  ;;  %v10081_v31 = vld [vmem:[%s11346_s30 + $0x86c] sm:$0xf]  ;;  %v9271_v26 = vld [vmem:[%s11346_s30 + $0x878] sm:$0xf0] }
 0x8cd   : > { %v6223_v37 = vpop.f32.mrf.mxu1 }
 0x8ce   : > { %v6340_v45 = vadd.f32 %v6339_v41, %v6281_v40  ;;  %v6224_v0 = vadd.f32 %v6223_v37, %v6164_v58  ;;  %v9274_v40 = vor.u32 %v10081_v31, %v9271_v26  ;;  %v10113_v41 = vld [vmem:[%s11346_s30 + $0x96c] sm:$0xf] }
 0x8cf   : > { %v9402_v44 = vor.u32 %v10113_v41, %v9399_v15 }
 0x8d0   : > { %v6877_v6 = vadd.f32 %v6340_v45, %v14272_v59  ;;  %v14273_v45 = vld [vmem:[#allocation32_spill] sm:$0xff]  ;;  %6604 = vmatpush.bf16.msrb.mxu0 %v9274_v40 }
 0x8d1   : > { %6663 = vmatpush.bf16.msrb.mxu1 %v9402_v44  ;;  %v9511_v44 = vld [vmem:[%s11346_s30 + $0xa58] sm:$0xf0] }
 0x8d2   : > { %v7037_v30 = vadd.f32 %v6957_v11, %v6877_v6 }
 0x8d3   : > { %v6282_v23 = vpop.f32.mrf.mxu2 }
 0x8d4   : > { %7117 = vst [vmem:[%s11342_s27 + $0x148] sm:$0xff] %v7037_v30  ;;  %v6283_v39 = vadd.f32 %v6282_v23, %v6224_v0  ;;  %v6341_v25 = vpop.f32.mrf.mxu3  ;;  %v6167_v61 = vpop.f32.mrf.mxu0 }
 0x8d5   : > { %v6226_v2 = vpop.f32.mrf.mxu1 }
 0x8d6   : > { %v6342_v22 = vadd.f32 %v6341_v25, %v6283_v39  ;;  %v6227_v37 = vadd.f32 %v6226_v2, %v6167_v61  ;;  %v6965_v39 = vld [vmem:[%s11342_s27 + $0x188] sm:$0xff] }
 0x8d7   : > { %6392 = vmatmul.bf16.gmra.mxu0 %v13083_v48  ;;  %6451 = vmatmul.bf16.gmra.mxu1 %v13085_v27  ;;  %v14274_v25 = vld [vmem:[#allocation33_spill] sm:$0xff] }
 0x8d8   : > { %v6881_v58 = vadd.f32 %v6342_v22, %v14273_v45  ;;  %6510 = vmatmul.bf16.gmra.mxu2 %v13087_v50  ;;  %v10141_v22 = vld [vmem:[%s11346_s30 + $0xa4c] sm:$0xf] }
 0x8d9   : > { %6569 = vmatmul.bf16.gmra.mxu3 %v13090_v54  ;;  %v9514_v45 = vor.u32 %v10141_v22, %v9511_v44 }
 0x8da   : > { %v7041_v43 = vadd.f32 %v6961_v20, %v6881_v58  ;;  %v10173_v58 = vld [vmem:[%s11346_s30 + $0xb4c] sm:$0xf] }
 0x8db   : > { %v6285_v11 = vpop.f32.mrf.mxu2  ;;  %6723 = vmatpush.bf16.msrb.mxu2 %v9514_v45  ;;  %v6973_v45 = vld [vmem:[%s11342_s27 + $0x1c8] sm:$0xff] }
 0x8dc   : > { %7121 = vst [vmem:[%s11342_s27 + $0x168] sm:$0xff] %v7041_v43  ;;  %v6286_v59 = vadd.f32 %v6285_v11, %v6227_v37  ;;  %v6344_v6 = vpop.f32.mrf.mxu3  ;;  %v6169_v30 = vpop.f32.mrf.mxu0  ;;  %v9639_v37 = vld [vmem:[%s11346_s30 + $0xb58] sm:$0xf0]  ;;  %v10077_v43 = vld [vmem:[%s11346_s30 + $0x84c] sm:$0xf] }
 0x8dd   : > { %v6228_v0 = vpop.f32.mrf.mxu1 }
 0x8de   : > { %v6345_v23 = vadd.f32 %v6344_v6, %v6286_v59  ;;  %v6229_v26 = vadd.f32 %v6228_v0, %v6169_v30  ;;  %v9642_v59 = vor.u32 %v10173_v58, %v9639_v37  ;;  %v9255_v6 = vld [vmem:[%s11346_s30 + $0x858] sm:$0xf0]  ;;  %v6969_v0 = vld [vmem:[%s11342_s27 + $0x1a8] sm:$0xff] }
 0x8df   : > { %v9383_v30 = vld [vmem:[%s11346_s30 + $0x958] sm:$0xf0] }
 0x8e0   : > { %v6885_v61 = vadd.f32 %v6345_v23, %v14274_v25  ;;  %v10109_v23 = vld [vmem:[%s11346_s30 + $0x94c] sm:$0xf]  ;;  %6782 = vmatpush.bf16.msrb.mxu3 %v9642_v59  ;;  %v14276_v58 = vld [vmem:[#allocation35_spill] sm:$0xff] }
 0x8e1   : > { %v9386_v25 = vor.u32 %v10109_v23, %v9383_v30 }
 0x8e2   : > { %v7045_v31 = vadd.f32 %v6965_v39, %v6885_v61  ;;  %v9258_v39 = vor.u32 %v10077_v43, %v9255_v6  ;;  %v14275_v61 = vld [vmem:[#allocation34_spill] sm:$0xff] }
 0x8e3   : > { %v6287_v2 = vpop.f32.mrf.mxu2  ;;  %6664 = vmatpush.bf16.msrb.mxu1 %v9386_v25 }
 0x8e4   : > { %7125 = vst [vmem:[%s11342_s27 + $0x188] sm:$0xff] %v7045_v31  ;;  %v6288_v40 = vadd.f32 %v6287_v2, %v6229_v26  ;;  %v6346_v41 = vpop.f32.mrf.mxu3  ;;  %v6172_v15 = vpop.f32.mrf.mxu0  ;;  %6605 = vmatpush.bf16.msrb.mxu0 %v9258_v39  ;;  %v9495_v39 = vld [vmem:[%s11346_s30 + $0xa38] sm:$0xf0] }
 0x8e5   : > { %v6231_v20 = vpop.f32.mrf.mxu1 }
 0x8e6   : > { %v6347_v11 = vadd.f32 %v6346_v41, %v6288_v40  ;;  %v6232_v26 = vadd.f32 %v6231_v20, %v6172_v15 }
 0x8e7   : > { %6397 = vmatmul.bf16.gmra.mxu0 %v13117_v12  ;;  %6456 = vmatmul.bf16.gmra.mxu1 %v13119_v36 }
 0x8e8   : > { %v6889_v31 = vadd.f32 %v6347_v11, %v14275_v61  ;;  %6515 = vmatmul.bf16.gmra.mxu2 %v13121_v18 }
 0x8e9   : > { %6574 = vmatmul.bf16.gmra.mxu3 %v13124_v17 }
 0x8ea   : > { %v7049_v2 = vadd.f32 %v6969_v0, %v6889_v31  ;;  %v10137_v0 = vld [vmem:[%s11346_s30 + $0xa2c] sm:$0xf] }
 0x8eb   : > { %v6290_v40 = vpop.f32.mrf.mxu2  ;;  %v9498_v61 = vor.u32 %v10137_v0, %v9495_v39  ;;  %v10169_v31 = vld [vmem:[%s11346_s30 + $0xb2c] sm:$0xf]  ;;  %v9367_v0 = vld [vmem:[%s11346_s30 + $0x938] sm:$0xf0] }
 0x8ec   : > { %7129 = vst [vmem:[%s11342_s27 + $0x1a8] sm:$0xff] %v7049_v2  ;;  %v6291_v41 = vadd.f32 %v6290_v40, %v6232_v26  ;;  %v6349_v22 = vpop.f32.mrf.mxu3  ;;  %v6174_v44 = vpop.f32.mrf.mxu0  ;;  %v9623_v26 = vld [vmem:[%s11346_s30 + $0xb38] sm:$0xf0] }
 0x8ed   : > { %v6233_v15 = vpop.f32.mrf.mxu1  ;;  %v9626_v40 = vor.u32 %v10169_v31, %v9623_v26  ;;  %6724 = vmatpush.bf16.msrb.mxu2 %v9498_v61  ;;  %v6981_v61 = vld [vmem:[%s11342_s27 + $0x208] sm:$0xff] }
 0x8ee   : > { %v6350_v20 = vadd.f32 %v6349_v22, %v6291_v41  ;;  %v6234_v11 = vadd.f32 %v6233_v15, %v6174_v44  ;;  %v6977_v41 = vld [vmem:[%s11342_s27 + $0x1e8] sm:$0xff]  ;;  %v14277_v22 = vld [vmem:[#allocation36_spill] sm:$0xff] }
 0x8ef   : > { %6783 = vmatpush.bf16.msrb.mxu3 %v9626_v40  ;;  %v14278_v31 = vld [vmem:[#allocation37_spill] sm:$0xff] }
 0x8f0   : > { %v6893_v37 = vadd.f32 %v6350_v20, %v14276_v58 }
 0x8f2   : > { %v7053_v43 = vadd.f32 %v6973_v45, %v6893_v37 }
 0x8f3   : > { %v6292_v6 = vpop.f32.mrf.mxu2 }
 0x8f4   : > { %7133 = vst [vmem:[%s11342_s27 + $0x1c8] sm:$0xff] %v7053_v43  ;;  %v6293_v59 = vadd.f32 %v6292_v6, %v6234_v11  ;;  %v6351_v23 = vpop.f32.mrf.mxu3  ;;  %v6177_v30 = vpop.f32.mrf.mxu0  ;;  %v10073_v11 = vld [vmem:[%s11346_s30 + $0x82c] sm:$0xf]  ;;  %v9239_v6 = vld [vmem:[%s11346_s30 + $0x838] sm:$0xf0] }
 0x8f5   : > { %v6236_v25 = vpop.f32.mrf.mxu1 }
 0x8f6   : > { %v6352_v2 = vadd.f32 %v6351_v23, %v6293_v59  ;;  %v6237_v15 = vadd.f32 %v6236_v25, %v6177_v30  ;;  %v9242_v23 = vor.u32 %v10073_v11, %v9239_v6  ;;  %v10105_v30 = vld [vmem:[%s11346_s30 + $0x92c] sm:$0xf] }
 0x8f7   : > { %6402 = vmatmul.bf16.gmra.mxu0 %v13147_v60  ;;  %6461 = vmatmul.bf16.gmra.mxu1 %v13149_v32  ;;  %v9370_v25 = vor.u32 %v10105_v30, %v9367_v0  ;;  %v6985_v11 = vld [vmem:[%s11342_s27 + $0x228] sm:$0xff] }
 0x8f8   : > { %v6897_v44 = vadd.f32 %v6352_v2, %v14277_v22  ;;  %6520 = vmatmul.bf16.gmra.mxu2 %v13151_v7  ;;  %6606 = vmatpush.bf16.msrb.mxu0 %v9242_v23 }
 0x8f9   : > { %6579 = vmatmul.bf16.gmra.mxu3 %v13154_v63  ;;  %6665 = vmatpush.bf16.msrb.mxu1 %v9370_v25  ;;  %v9479_v25 = vld [vmem:[%s11346_s30 + $0xa18] sm:$0xf0] }
 0x8fa   : > { %v7057_v20 = vadd.f32 %v6977_v41, %v6897_v44 }
 0x8fb   : > { %v6295_v45 = vpop.f32.mrf.mxu2 }
 0x8fc   : > { %7137 = vst [vmem:[%s11342_s27 + $0x1e8] sm:$0xff] %v7057_v20  ;;  %v6296_v58 = vadd.f32 %v6295_v45, %v6237_v15  ;;  %v6354_v37 = vpop.f32.mrf.mxu3  ;;  %v6179_v43 = vpop.f32.mrf.mxu0 }
 0x8fd   : > { %v6238_v59 = vpop.f32.mrf.mxu1 }
 0x8fe   : > { %v6355_v39 = vadd.f32 %v6354_v37, %v6296_v58  ;;  %v6239_v40 = vadd.f32 %v6238_v59, %v6179_v43  ;;  %v14279_v58 = vld [vmem:[#allocation38_spill] sm:$0xff] }
 0x900   : > { %v6901_v26 = vadd.f32 %v6355_v39, %v14278_v31  ;;  %v10133_v39 = vld [vmem:[%s11346_s30 + $0xa0c] sm:$0xf] }
 0x901   : > { %v9482_v31 = vor.u32 %v10133_v39, %v9479_v25 }
 0x902   : > { %v7061_v2 = vadd.f32 %v6981_v61, %v6901_v26  ;;  %v10165_v26 = vld [vmem:[%s11346_s30 + $0xb0c] sm:$0xf] }
 0x903   : > { %v6297_v41 = vpop.f32.mrf.mxu2  ;;  %6725 = vmatpush.bf16.msrb.mxu2 %v9482_v31  ;;  %v6993_v31 = vld [vmem:[%s11342_s27 + $0x268] sm:$0xff] }
 0x904   : > { %7141 = vst [vmem:[%s11342_s27 + $0x208] sm:$0xff] %v7061_v2  ;;  %v6298_v22 = vadd.f32 %v6297_v41, %v6239_v40  ;;  %v6356_v44 = vpop.f32.mrf.mxu3  ;;  %v6182_v15 = vpop.f32.mrf.mxu0  ;;  %v9607_v2 = vld [vmem:[%s11346_s30 + $0xb18] sm:$0xf0]  ;;  %v10069_v40 = vld [vmem:[%s11346_s30 + $0x80c] sm:$0xf] }
 0x905   : > { %v6241_v20 = vpop.f32.mrf.mxu1 }
 0x906   : > { %v6357_v45 = vadd.f32 %v6356_v44, %v6298_v22  ;;  %v6242_v6 = vadd.f32 %v6241_v20, %v6182_v15  ;;  %v9610_v22 = vor.u32 %v10165_v26, %v9607_v2  ;;  %v9223_v44 = vld [vmem:[%s11346_s30 + $0x818] sm:$0xf0]  ;;  %v10101_v15 = vld [vmem:[%s11346_s30 + $0x90c] sm:$0xf] }
 0x907   : > { %6407 = vmatmul.bf16.gmra.mxu0 %v13177_v19  ;;  %6466 = vmatmul.bf16.gmra.mxu1 %v13179_v34  ;;  %v9351_v20 = vld [vmem:[%s11346_s30 + $0x918] sm:$0xf0] }
 0x908   : > { %v6905_v37 = vadd.f32 %v6357_v45, %v14279_v58  ;;  %6525 = vmatmul.bf16.gmra.mxu2 %v13181_v13  ;;  %v6989_v45 = vld [vmem:[%s11342_s27 + $0x248] sm:$0xff]  ;;  %v9354_v58 = vor.u32 %v10101_v15, %v9351_v20  ;;  %6784 = vmatpush.bf16.msrb.mxu3 %v9610_v22 }
 0x909   : > { %6584 = vmatmul.bf16.gmra.mxu3 %v13184_v8 }
 0x90a   : > { %v7065_v43 = vadd.f32 %v6985_v11, %v6905_v37  ;;  %v9226_v11 = vor.u32 %v10069_v40, %v9223_v44  ;;  %v14280_v37 = vld [vmem:[#allocation39_spill] sm:$0xff]  ;;  %6666 = vmatpush.bf16.msrb.mxu1 %v9354_v58  ;;  %v14281_v40 = vld [vmem:[#allocation40_spill] sm:$0xff]  ;;  %v6918_v58 = vld [vmem:[%s11342_s27 + $0x10] sm:$0xff] }
 0x90b   : > { %v6300_v59 = vpop.f32.mrf.mxu2 }
 0x90c   : > { %7145 = vst [vmem:[%s11342_s27 + $0x228] sm:$0xff] %v7065_v43  ;;  %v6301_v23 = vadd.f32 %v6300_v59, %v6242_v6  ;;  %v6359_v30 = vpop.f32.mrf.mxu3  ;;  %v6184_v0 = vpop.f32.mrf.mxu0  ;;  %6607 = vmatpush.bf16.msrb.mxu0 %v9226_v11 }
 0x90d   : > { %v6243_v61 = vpop.f32.mrf.mxu1 }
 0x90e   : > { %v6360_v41 = vadd.f32 %v6359_v30, %v6301_v23  ;;  %v6244_v59 = vadd.f32 %v6243_v61, %v6184_v0 }
 0x910   : > { %v6909_v6 = vadd.f32 %v6360_v41, %v14280_v37  ;;  %v14282_v37 = vld [vmem:[#allocation41_spill] sm:$0xff] }
 0x912   : > { %v7069_v43 = vadd.f32 %v6989_v45, %v6909_v6 }
 0x913   : > { %v6302_v39 = vpop.f32.mrf.mxu2 }
 0x914   : > { %7149 = vst [vmem:[%s11342_s27 + $0x248] sm:$0xff] %v7069_v43  ;;  %v6303_v23 = vadd.f32 %v6302_v39, %v6244_v59  ;;  %v6361_v30 = vpop.f32.mrf.mxu3  ;;  %v6373_v25 = vpop.f32.mrf.mxu0 }
 0x915   : > { %v6432_v26 = vpop.f32.mrf.mxu1 }
 0x916   : > { %v6362_v2 = vadd.f32 %v6361_v30, %v6303_v23  ;;  %v6433_v41 = vadd.f32 %v6432_v26, %v6373_v25 }
 0x917   : > { %6412 = vmatmul.bf16.gmra.mxu0 %v13211_v57  ;;  %6471 = vmatmul.bf16.gmra.mxu1 %v13213_v38 }
 0x918   : > { %v6913_v44 = vadd.f32 %v6362_v2, %v14281_v40  ;;  %6530 = vmatmul.bf16.gmra.mxu2 %v13215_v62  ;;  %v14283_v40 = vld [vmem:[#allocation42_spill] sm:$0xff] }
 0x919   : > { %6589 = vmatmul.bf16.gmra.mxu3 %v13217_v49 }
 0x91a   : > { %v7073_v0 = vadd.f32 %v6993_v31, %v6913_v44  ;;  %v6922_v31 = vld [vmem:[%s11342_s27 + $0x30] sm:$0xff] }
 0x91b   : > { %v6491_v61 = vpop.f32.mrf.mxu2 }
 0x91c   : > { %7153 = vst [vmem:[%s11342_s27 + $0x268] sm:$0xff] %v7073_v0  ;;  %v6492_v22 = vadd.f32 %v6491_v61, %v6433_v41  ;;  %v6550_v15 = vpop.f32.mrf.mxu3  ;;  %v6375_v20 = vpop.f32.mrf.mxu0 }
 0x91d   : > { %v6434_v45 = vpop.f32.mrf.mxu1 }
 0x91e   : > { %v6551_v11 = vadd.f32 %v6550_v15, %v6492_v22  ;;  %v6435_v59 = vadd.f32 %v6434_v45, %v6375_v20 }
 0x920   : > { %v6838_v6 = vadd.f32 %v6551_v11, %v14282_v37 }
 0x922   : > { %v6998_v43 = vadd.f32 %v6918_v58, %v6838_v6  ;;  %v6926_v58 = vld [vmem:[%s11342_s27 + $0x50] sm:$0xff] }
 0x923   : > { %v6493_v39 = vpop.f32.mrf.mxu2 }
 0x924   : > { %7078 = vst [vmem:[%s11342_s27 + $0x10] sm:$0xff] %v6998_v43  ;;  %v6494_v23 = vadd.f32 %v6493_v39, %v6435_v59  ;;  %v6552_v30 = vpop.f32.mrf.mxu3  ;;  %v6378_v25 = vpop.f32.mrf.mxu0 }
 0x925   : > { %v6437_v26 = vpop.f32.mrf.mxu1 }
 0x926   : > { %v6553_v2 = vadd.f32 %v6552_v30, %v6494_v23  ;;  %v6438_v41 = vadd.f32 %v6437_v26, %v6378_v25 }
 0x927   : > { %6417 = vmatmul.bf16.gmra.mxu0 %v13239_v55  ;;  %6476 = vmatmul.bf16.gmra.mxu1 %v13242_v53 }
 0x928   : > { %v6842_v44 = vadd.f32 %v6553_v2, %v14283_v40  ;;  %6535 = vmatmul.bf16.gmra.mxu2 %v13244_v47  ;;  %v6930_v2 = vld [vmem:[%s11342_s27 + $0x70] sm:$0xff] }
 0x929   : > { %6594 = vmatmul.bf16.gmra.mxu3 %v13249_v46 }
 0x92a   : > { %v7002_v0 = vadd.f32 %v6922_v31, %v6842_v44 }
 0x92b   : > { %v6496_v61 = vpop.f32.mrf.mxu2 }
 0x92c   : > { %7082 = vst [vmem:[%s11342_s27 + $0x30] sm:$0xff] %v7002_v0  ;;  %v6497_v22 = vadd.f32 %v6496_v61, %v6438_v41  ;;  %v6555_v15 = vpop.f32.mrf.mxu3  ;;  %v6380_v20 = vpop.f32.mrf.mxu0 }
 0x92d   : > { %v6439_v45 = vpop.f32.mrf.mxu1 }
 0x92e   : > { %v6556_v11 = vadd.f32 %v6555_v15, %v6497_v22  ;;  %v6440_v43 = vadd.f32 %v6439_v45, %v6380_v20  ;;  %v14284_v20 = vld [vmem:[#allocation43_spill] sm:$0xff] }
 0x930   : > { %v6846_v37 = vadd.f32 %v6556_v11, %v12773_v24 }
 0x932   : > { %v7006_v6 = vadd.f32 %v6926_v58, %v6846_v37 }
 0x933   : > { %v6498_v59 = vpop.f32.mrf.mxu2 }
 0x934   : > { %7086 = vst [vmem:[%s11342_s27 + $0x50] sm:$0xff] %v7006_v6  ;;  %v6499_v39 = vadd.f32 %v6498_v59, %v6440_v43  ;;  %v6557_v23 = vpop.f32.mrf.mxu3  ;;  %v6383_v30 = vpop.f32.mrf.mxu0  ;;  %v6938_v43 = vld [vmem:[%s11342_s27 + $0xb0] sm:$0xff]  ;;  %v14285_v59 = vld [vmem:[#allocation44_spill] sm:$0xff] }
 0x935   : > { %v6442_v25 = vpop.f32.mrf.mxu1 }
 0x936   : > { %v6558_v26 = vadd.f32 %v6557_v23, %v6499_v39  ;;  %v6443_v40 = vadd.f32 %v6442_v25, %v6383_v30 }
 0x937   : > { %6608 = vmatmul.bf16.vlgmr.msrb.gmra.mxu0 %v12955_v52  ;;  %6667 = vmatmul.bf16.vlgmr.msrb.gmra.mxu1 %v12957_v10  ;;  %v6934_v52 = vld [vmem:[%s11342_s27 + $0x90] sm:$0xff] }
 0x938   : > { %v6850_v31 = vadd.f32 %v6558_v26, %v12784_v21  ;;  %6726 = vmatmul.bf16.vlgmr.msrb.gmra.mxu2 %v12959_v56 }
 0x939   : > { %6785 = vmatmul.bf16.vlgmr.msrb.gmra.mxu3 %v12962_v42 }
 0x93a   : > { %v7010_v24 = vadd.f32 %v6930_v2, %v6850_v31 }
 0x93b   : > { %v6501_v44 = vpop.f32.mrf.mxu2 }
 0x93c   : > { %7090 = vst [vmem:[%s11342_s27 + $0x70] sm:$0xff] %v7010_v24  ;;  %v6502_v41 = vadd.f32 %v6501_v44, %v6443_v40  ;;  %v6560_v0 = vpop.f32.mrf.mxu3  ;;  %v6385_v61 = vpop.f32.mrf.mxu0  ;;  %v14286_v44 = vld [vmem:[#allocation45_spill] sm:$0xff] }
 0x93d   : > { %v6444_v22 = vpop.f32.mrf.mxu1 }
 0x93e   : > { %v6561_v15 = vadd.f32 %v6560_v0, %v6502_v41  ;;  %v6445_v11 = vadd.f32 %v6444_v22, %v6385_v61 }
 0x940   : > { %v6854_v21 = vadd.f32 %v6561_v15, %v14284_v20  ;;  %v6946_v20 = vld [vmem:[%s11342_s27 + $0xf0] sm:$0xff] }
 0x942   : > { %v7014_v45 = vadd.f32 %v6934_v52, %v6854_v21  ;;  %v14287_v21 = vld [vmem:[#allocation46_spill] sm:$0xff] }
 0x943   : > { %v6503_v10 = vpop.f32.mrf.mxu2 }
 0x944   : > { %7094 = vst [vmem:[%s11342_s27 + $0x90] sm:$0xff] %v7014_v45  ;;  %v6504_v56 = vadd.f32 %v6503_v10, %v6445_v11  ;;  %v6562_v58 = vpop.f32.mrf.mxu3  ;;  %v6388_v42 = vpop.f32.mrf.mxu0 }
 0x945   : > { %v6447_v37 = vpop.f32.mrf.mxu1 }
 0x946   : > { %v6563_v6 = vadd.f32 %v6562_v58, %v6504_v56  ;;  %v6448_v23 = vadd.f32 %v6447_v37, %v6388_v42 }
 0x947   : > { %6613 = vmatmul.bf16.gmra.mxu0 %v12985_v16  ;;  %6672 = vmatmul.bf16.gmra.mxu1 %v12987_v9  ;;  %v6942_v16 = vld [vmem:[%s11342_s27 + $0xd0] sm:$0xff] }
 0x948   : > { %v6858_v39 = vadd.f32 %v6563_v6, %v14285_v59  ;;  %6731 = vmatmul.bf16.gmra.mxu2 %v12989_v33  ;;  %v14288_v59 = vld [vmem:[#allocation47_spill] sm:$0xff] }
 0x949   : > { %6790 = vmatmul.bf16.gmra.mxu3 %v12992_v1 }
 0x94a   : > { %v7018_v30 = vadd.f32 %v6938_v43, %v6858_v39 }
 0x94b   : > { %v6506_v25 = vpop.f32.mrf.mxu2 }
 0x94c   : > { %7098 = vst [vmem:[%s11342_s27 + $0xb0] sm:$0xff] %v7018_v30  ;;  %v6507_v26 = vadd.f32 %v6506_v25, %v6448_v23  ;;  %v6565_v2 = vpop.f32.mrf.mxu3  ;;  %v6390_v31 = vpop.f32.mrf.mxu0 }
 0x94d   : > { %v6449_v40 = vpop.f32.mrf.mxu1 }
 0x94e   : > { %v6566_v24 = vadd.f32 %v6565_v2, %v6507_v26  ;;  %v6450_v61 = vadd.f32 %v6449_v40, %v6390_v31  ;;  %v6954_v31 = vld [vmem:[%s11342_s27 + $0x130] sm:$0xff]  ;;  %v14289_v40 = vld [vmem:[#allocation48_spill] sm:$0xff] }
 0x950   : > { %v6862_v41 = vadd.f32 %v6566_v24, %v14286_v44 }
 0x952   : > { %v7022_v0 = vadd.f32 %v6942_v16, %v6862_v41 }
 0x953   : > { %v6508_v9 = vpop.f32.mrf.mxu2 }
 0x954   : > { %7102 = vst [vmem:[%s11342_s27 + $0xd0] sm:$0xff] %v7022_v0  ;;  %v6509_v33 = vadd.f32 %v6508_v9, %v6450_v61  ;;  %v6567_v22 = vpop.f32.mrf.mxu3  ;;  %v6393_v1 = vpop.f32.mrf.mxu0 }
 0x955   : > { %v6452_v15 = vpop.f32.mrf.mxu1 }
 0x956   : > { %v6568_v52 = vadd.f32 %v6567_v22, %v6509_v33  ;;  %v6453_v11 = vadd.f32 %v6452_v15, %v6393_v1  ;;  %v14290_v1 = vld [vmem:[#allocation49_spill] sm:$0xff] }
 0x957   : > { %6618 = vmatmul.bf16.gmra.mxu0 %v13015_v29  ;;  %6677 = vmatmul.bf16.gmra.mxu1 %v13017_v3  ;;  %v6950_v29 = vld [vmem:[%s11342_s27 + $0x110] sm:$0xff] }
 0x958   : > { %v6866_v45 = vadd.f32 %v6568_v52, %v14287_v21  ;;  %6736 = vmatmul.bf16.gmra.mxu2 %v13019_v4 }
 0x959   : > { %6795 = vmatmul.bf16.gmra.mxu3 %v13022_v5 }
 0x95a   : > { %v7026_v10 = vadd.f32 %v6946_v20, %v6866_v45 }
 0x95b   : > { %v6511_v56 = vpop.f32.mrf.mxu2 }
 0x95c   : > { %7106 = vst [vmem:[%s11342_s27 + $0xf0] sm:$0xff] %v7026_v10  ;;  %v6512_v58 = vadd.f32 %v6511_v56, %v6453_v11  ;;  %v6570_v42 = vpop.f32.mrf.mxu3  ;;  %v6395_v37 = vpop.f32.mrf.mxu0  ;;  %v6962_v10 = vld [vmem:[%s11342_s27 + $0x170] sm:$0xff] }
 0x95d   : > { %v6454_v6 = vpop.f32.mrf.mxu1  ;;  %v14291_v56 = vld [vmem:[#allocation50_spill] sm:$0xff] }
 0x95e   : > { %v6571_v43 = vadd.f32 %v6570_v42, %v6512_v58  ;;  %v6455_v30 = vadd.f32 %v6454_v6, %v6395_v37 }
 0x960   : > { %v6870_v39 = vadd.f32 %v6571_v43, %v14288_v59 }
 0x962   : > { %v7030_v23 = vadd.f32 %v6950_v29, %v6870_v39 }
 0x963   : > { %v6513_v3 = vpop.f32.mrf.mxu2 }
 0x964   : > { %7110 = vst [vmem:[%s11342_s27 + $0x110] sm:$0xff] %v7030_v23  ;;  %v6514_v4 = vadd.f32 %v6513_v3, %v6455_v30  ;;  %v6572_v25 = vpop.f32.mrf.mxu3  ;;  %v6398_v5 = vpop.f32.mrf.mxu0  ;;  %v14292_v30 = vld [vmem:[#allocation51_spill] sm:$0xff] }
 0x965   : > { %v6457_v26 = vpop.f32.mrf.mxu1 }
 0x966   : > { %v6573_v2 = vadd.f32 %v6572_v25, %v6514_v4  ;;  %v6458_v16 = vadd.f32 %v6457_v26, %v6398_v5 }
 0x967   : > { %6623 = vmatmul.bf16.gmra.mxu0 %v13049_v14  ;;  %6682 = vmatmul.bf16.gmra.mxu1 %v13051_v35  ;;  %v6958_v14 = vld [vmem:[%s11342_s27 + $0x150] sm:$0xff] }
 0x968   : > { %v6874_v24 = vadd.f32 %v6573_v2, %v14289_v40  ;;  %6741 = vmatmul.bf16.gmra.mxu2 %v13053_v28  ;;  %v14293_v40 = vld [vmem:[#allocation52_spill] sm:$0xff] }
 0x969   : > { %6800 = vmatmul.bf16.gmra.mxu3 %v13056_v51 }
 0x96a   : > { %v7034_v44 = vadd.f32 %v6954_v31, %v6874_v24  ;;  %v6970_v31 = vld [vmem:[%s11342_s27 + $0x1b0] sm:$0xff] }
 0x96b   : > { %v6516_v41 = vpop.f32.mrf.mxu2 }
 0x96c   : > { %7114 = vst [vmem:[%s11342_s27 + $0x130] sm:$0xff] %v7034_v44  ;;  %v6517_v0 = vadd.f32 %v6516_v41, %v6458_v16  ;;  %v6575_v61 = vpop.f32.mrf.mxu3  ;;  %v6400_v9 = vpop.f32.mrf.mxu0 }
 0x96d   : > { %v6459_v33 = vpop.f32.mrf.mxu1 }
 0x96e   : > { %v6576_v22 = vadd.f32 %v6575_v61, %v6517_v0  ;;  %v6460_v20 = vadd.f32 %v6459_v33, %v6400_v9 }
 0x970   : > { %v6878_v15 = vadd.f32 %v6576_v22, %v14290_v1 }
 0x972   : > { %v7038_v52 = vadd.f32 %v6958_v14, %v6878_v15  ;;  %v14294_v14 = vld [vmem:[#allocation53_spill] sm:$0xff] }
 0x973   : > { %v6518_v35 = vpop.f32.mrf.mxu2 }
 0x974   : > { %7118 = vst [vmem:[%s11342_s27 + $0x150] sm:$0xff] %v7038_v52  ;;  %v6519_v28 = vadd.f32 %v6518_v35, %v6460_v20  ;;  %v6577_v21 = vpop.f32.mrf.mxu3  ;;  %v6403_v51 = vpop.f32.mrf.mxu0 }
 0x975   : > { %v6462_v45 = vpop.f32.mrf.mxu1 }
 0x976   : > { %v6578_v11 = vadd.f32 %v6577_v21, %v6519_v28  ;;  %v6463_v42 = vadd.f32 %v6462_v45, %v6403_v51  ;;  %v6978_v21 = vld [vmem:[%s11342_s27 + $0x1f0] sm:$0xff] }
 0x977   : > { %6628 = vmatmul.bf16.gmra.mxu0 %v13083_v48  ;;  %6687 = vmatmul.bf16.gmra.mxu1 %v13085_v27  ;;  %v6966_v48 = vld [vmem:[%s11342_s27 + $0x190] sm:$0xff] }
 0x978   : > { %v6882_v58 = vadd.f32 %v6578_v11, %v14291_v56  ;;  %6746 = vmatmul.bf16.gmra.mxu2 %v13087_v50  ;;  %v14295_v51 = vld [vmem:[#allocation54_spill] sm:$0xff] }
 0x979   : > { %6805 = vmatmul.bf16.gmra.mxu3 %v13090_v54 }
 0x97a   : > { %v7042_v37 = vadd.f32 %v6962_v10, %v6882_v58 }
 0x97b   : > { %v6521_v6 = vpop.f32.mrf.mxu2 }
 0x97c   : > { %7122 = vst [vmem:[%s11342_s27 + $0x170] sm:$0xff] %v7042_v37  ;;  %v6522_v43 = vadd.f32 %v6521_v6, %v6463_v42  ;;  %v6580_v29 = vpop.f32.mrf.mxu3  ;;  %v6405_v59 = vpop.f32.mrf.mxu0 }
 0x97d   : > { %v6464_v39 = vpop.f32.mrf.mxu1 }
 0x97e   : > { %v6581_v23 = vadd.f32 %v6580_v29, %v6522_v43  ;;  %v6465_v25 = vadd.f32 %v6464_v39, %v6405_v59  ;;  %v14296_v29 = vld [vmem:[#allocation55_spill] sm:$0xff] }
 0x980   : > { %v6886_v3 = vadd.f32 %v6581_v23, %v14292_v30 }
 0x982   : > { %v7046_v4 = vadd.f32 %v6966_v48, %v6886_v3 }
 0x983   : > { %v6523_v27 = vpop.f32.mrf.mxu2 }
 0x984   : > { %7126 = vst [vmem:[%s11342_s27 + $0x190] sm:$0xff] %v7046_v4  ;;  %v6524_v50 = vadd.f32 %v6523_v27, %v6465_v25  ;;  %v6582_v5 = vpop.f32.mrf.mxu3  ;;  %v6408_v54 = vpop.f32.mrf.mxu0  ;;  %v6986_v4 = vld [vmem:[%s11342_s27 + $0x230] sm:$0xff]  ;;  %v14297_v25 = vld [vmem:[#allocation56_spill] sm:$0xff] }
 0x985   : > { %v6467_v26 = vpop.f32.mrf.mxu1 }
 0x986   : > { %v6583_v2 = vadd.f32 %v6582_v5, %v6524_v50  ;;  %v6468_v16 = vadd.f32 %v6467_v26, %v6408_v54 }
 0x987   : > { %6633 = vmatmul.bf16.gmra.mxu0 %v13117_v12  ;;  %6692 = vmatmul.bf16.gmra.mxu1 %v13119_v36  ;;  %v6974_v12 = vld [vmem:[%s11342_s27 + $0x1d0] sm:$0xff] }
 0x988   : > { %v6890_v24 = vadd.f32 %v6583_v2, %v14293_v40  ;;  %6751 = vmatmul.bf16.gmra.mxu2 %v13121_v18 }
 0x989   : > { %6810 = vmatmul.bf16.gmra.mxu3 %v13124_v17 }
 0x98a   : > { %v7050_v44 = vadd.f32 %v6970_v31, %v6890_v24 }
 0x98b   : > { %v6526_v41 = vpop.f32.mrf.mxu2 }
 0x98c   : > { %7130 = vst [vmem:[%s11342_s27 + $0x1b0] sm:$0xff] %v7050_v44  ;;  %v6527_v0 = vadd.f32 %v6526_v41, %v6468_v16  ;;  %v6585_v61 = vpop.f32.mrf.mxu3  ;;  %v6410_v9 = vpop.f32.mrf.mxu0  ;;  %v14298_v16 = vld [vmem:[#allocation57_spill] sm:$0xff] }
 0x98d   : > { %v6469_v33 = vpop.f32.mrf.mxu1 }
 0x98e   : > { %v6586_v22 = vadd.f32 %v6585_v61, %v6527_v0  ;;  %v6470_v52 = vadd.f32 %v6469_v33, %v6410_v9 }
 0x990   : > { %v6894_v1 = vadd.f32 %v6586_v22, %v14294_v14  ;;  %v6994_v22 = vld [vmem:[%s11342_s27 + $0x270] sm:$0xff] }
 0x992   : > { %v7054_v15 = vadd.f32 %v6974_v12, %v6894_v1  ;;  %v14299_v12 = vld [vmem:[#allocation58_spill] sm:$0xff] }
 0x993   : > { %v6528_v36 = vpop.f32.mrf.mxu2 }
 0x994   : > { %7134 = vst [vmem:[%s11342_s27 + $0x1d0] sm:$0xff] %v7054_v15  ;;  %v6529_v18 = vadd.f32 %v6528_v36, %v6470_v52  ;;  %v6587_v20 = vpop.f32.mrf.mxu3  ;;  %v6413_v17 = vpop.f32.mrf.mxu0 }
 0x995   : > { %v6472_v35 = vpop.f32.mrf.mxu1 }
 0x996   : > { %v6588_v28 = vadd.f32 %v6587_v20, %v6529_v18  ;;  %v6473_v11 = vadd.f32 %v6472_v35, %v6413_v17 }
 0x997   : > { %6638 = vmatmul.bf16.gmra.mxu0 %v13147_v60  ;;  %6697 = vmatmul.bf16.gmra.mxu1 %v13149_v32  ;;  %v6982_v60 = vld [vmem:[%s11342_s27 + $0x210] sm:$0xff] }
 0x998   : > { %v6898_v45 = vadd.f32 %v6588_v28, %v14295_v51  ;;  %6756 = vmatmul.bf16.gmra.mxu2 %v13151_v7  ;;  %v14300_v28 = vld [vmem:[#allocation59_spill] sm:$0xff] }
 0x999   : > { %6815 = vmatmul.bf16.gmra.mxu3 %v13154_v63 }
 0x99a   : > { %v7058_v10 = vadd.f32 %v6978_v21, %v6898_v45 }
 0x99b   : > { %v6531_v56 = vpop.f32.mrf.mxu2 }
 0x99c   : > { %7138 = vst [vmem:[%s11342_s27 + $0x1f0] sm:$0xff] %v7058_v10  ;;  %v6532_v58 = vadd.f32 %v6531_v56, %v6473_v11  ;;  %v6590_v42 = vpop.f32.mrf.mxu3  ;;  %v6415_v37 = vpop.f32.mrf.mxu0 }
 0x99d   : > { %v6474_v6 = vpop.f32.mrf.mxu1 }
 0x99e   : > { %v6591_v43 = vadd.f32 %v6590_v42, %v6532_v58  ;;  %v6475_v23 = vadd.f32 %v6474_v6, %v6415_v37  ;;  %v6923_v58 = vld [vmem:[%s11342_s27 + $0x38] sm:$0xff]  ;;  %v14301_v42 = vld [vmem:[#allocation60_spill] sm:$0xff] }
 0x9a0   : > { %v6902_v59 = vadd.f32 %v6591_v43, %v14296_v29 }
 0x9a2   : > { %v7062_v39 = vadd.f32 %v6982_v60, %v6902_v59 }
 0x9a3   : > { %v6533_v32 = vpop.f32.mrf.mxu2 }
 0x9a4   : > { %7142 = vst [vmem:[%s11342_s27 + $0x210] sm:$0xff] %v7062_v39  ;;  %v6534_v7 = vadd.f32 %v6533_v32, %v6475_v23  ;;  %v6592_v48 = vpop.f32.mrf.mxu3  ;;  %v6418_v63 = vpop.f32.mrf.mxu0 }
 0x9a5   : > { %v6477_v30 = vpop.f32.mrf.mxu1 }
 0x9a6   : > { %v6593_v3 = vadd.f32 %v6592_v48, %v6534_v7  ;;  %v6478_v50 = vadd.f32 %v6477_v30, %v6418_v63  ;;  %v14302_v7 = vld [vmem:[#allocation61_spill] sm:$0xff] }
 0x9a7   : > { %6643 = vmatmul.bf16.gmra.mxu0 %v13177_v19  ;;  %6702 = vmatmul.bf16.gmra.mxu1 %v13179_v34  ;;  %v6990_v19 = vld [vmem:[%s11342_s27 + $0x250] sm:$0xff] }
 0x9a8   : > { %v6906_v27 = vadd.f32 %v6593_v3, %v14297_v25  ;;  %6761 = vmatmul.bf16.gmra.mxu2 %v13181_v13 }
 0x9a9   : > { %6820 = vmatmul.bf16.gmra.mxu3 %v13184_v8 }
 0x9aa   : > { %v7066_v5 = vadd.f32 %v6986_v4, %v6906_v27  ;;  %v6931_v27 = vld [vmem:[%s11342_s27 + $0x78] sm:$0xff] }
 0x9ab   : > { %v6536_v54 = vpop.f32.mrf.mxu2 }
 0x9ac   : > { %7146 = vst [vmem:[%s11342_s27 + $0x230] sm:$0xff] %v7066_v5  ;;  %v6537_v26 = vadd.f32 %v6536_v54, %v6478_v50  ;;  %v6595_v2 = vpop.f32.mrf.mxu3  ;;  %v6420_v31 = vpop.f32.mrf.mxu0  ;;  %v14303_v50 = vld [vmem:[#allocation62_spill] sm:$0xff] }
 0x9ad   : > { %v6479_v40 = vpop.f32.mrf.mxu1 }
 0x9ae   : > { %v6596_v24 = vadd.f32 %v6595_v2, %v6537_v26  ;;  %v6480_v0 = vadd.f32 %v6479_v40, %v6420_v31 }
 0x9b0   : > { %v6910_v44 = vadd.f32 %v6596_v24, %v14298_v16 }
 0x9b2   : > { %v7070_v41 = vadd.f32 %v6990_v19, %v6910_v44  ;;  %v6935_v44 = vld [vmem:[%s11342_s27 + $0x98] sm:$0xff] }
 0x9b3   : > { %v6538_v34 = vpop.f32.mrf.mxu2 }
 0x9b4   : > { %7150 = vst [vmem:[%s11342_s27 + $0x250] sm:$0xff] %v7070_v41  ;;  %v6539_v13 = vadd.f32 %v6538_v34, %v6480_v0  ;;  %v6597_v61 = vpop.f32.mrf.mxu3  ;;  %v6609_v8 = vpop.f32.mrf.mxu0  ;;  %v14304_v41 = vld [vmem:[#allocation63_spill] sm:$0xff] }
 0x9b5   : > { %v6668_v9 = vpop.f32.mrf.mxu1 }
 0x9b6   : > { %v6598_v33 = vadd.f32 %v6597_v61, %v6539_v13  ;;  %v6669_v1 = vadd.f32 %v6668_v9, %v6609_v8 }
 0x9b7   : > { %6648 = vmatmul.bf16.gmra.mxu0 %v13211_v57  ;;  %6707 = vmatmul.bf16.gmra.mxu1 %v13213_v38  ;;  %v6919_v57 = vld [vmem:[%s11342_s27 + $0x18] sm:$0xff] }
 0x9b8   : > { %v6914_v14 = vadd.f32 %v6598_v33, %v14299_v12  ;;  %6766 = vmatmul.bf16.gmra.mxu2 %v13215_v62 }
 0x9b9   : > { %6825 = vmatmul.bf16.gmra.mxu3 %v13217_v49 }
 0x9ba   : > { %v7074_v15 = vadd.f32 %v6994_v22, %v6914_v14  ;;  %v6939_v14 = vld [vmem:[%s11342_s27 + $0xb8] sm:$0xff] }
 0x9bb   : > { %v6727_v52 = vpop.f32.mrf.mxu2 }
 0x9bc   : > { %7154 = vst [vmem:[%s11342_s27 + $0x270] sm:$0xff] %v7074_v15  ;;  %v6728_v36 = vadd.f32 %v6727_v52, %v6669_v1  ;;  %v6786_v18 = vpop.f32.mrf.mxu3  ;;  %v6611_v20 = vpop.f32.mrf.mxu0  ;;  %v14305_v1 = vld [vmem:[#allocation64_spill] sm:$0xff] }
 0x9bd   : > { %v6670_v17 = vpop.f32.mrf.mxu1 }
 0x9be   : > { %v6787_v35 = vadd.f32 %v6786_v18, %v6728_v36  ;;  %v6671_v45 = vadd.f32 %v6670_v17, %v6611_v20 }
 0x9c0   : > { %v6839_v21 = vadd.f32 %v6787_v35, %v14300_v28 }
 0x9c2   : > { %v6999_v51 = vadd.f32 %v6919_v57, %v6839_v21  ;;  %v6943_v21 = vld [vmem:[%s11342_s27 + $0xd8] sm:$0xff] }
 0x9c3   : > { %v6729_v38 = vpop.f32.mrf.mxu2 }
 0x9c4   : > { %7079 = vst [vmem:[%s11342_s27 + $0x18] sm:$0xff] %v6999_v51  ;;  %v6730_v62 = vadd.f32 %v6729_v38, %v6671_v45  ;;  %v6788_v11 = vpop.f32.mrf.mxu3  ;;  %v6614_v49 = vpop.f32.mrf.mxu0  ;;  %v14306_v51 = vld [vmem:[#allocation65_spill] sm:$0xff] }
 0x9c5   : > { %v6673_v10 = vpop.f32.mrf.mxu1 }
 0x9c6   : > { %v6789_v56 = vadd.f32 %v6788_v11, %v6730_v62  ;;  %v6674_v6 = vadd.f32 %v6673_v10, %v6614_v49 }
 0x9c7   : > { %6653 = vmatmul.bf16.gmra.mxu0 %v13239_v55  ;;  %6712 = vmatmul.bf16.gmra.mxu1 %v13242_v53  ;;  %v6927_v55 = vld [vmem:[%s11342_s27 + $0x58] sm:$0xff] }
 0x9c8   : > { %v6843_v37 = vadd.f32 %v6789_v56, %v14301_v42  ;;  %6771 = vmatmul.bf16.gmra.mxu2 %v13244_v47 }
 0x9c9   : > { %6830 = vmatmul.bf16.gmra.mxu3 %v13249_v46 }
 0x9ca   : > { %v7003_v43 = vadd.f32 %v6923_v58, %v6843_v37  ;;  %v6947_v37 = vld [vmem:[%s11342_s27 + $0xf8] sm:$0xff] }
 0x9cb   : > { %v6732_v60 = vpop.f32.mrf.mxu2 }
 0x9cc   : > { %7083 = vst [vmem:[%s11342_s27 + $0x38] sm:$0xff] %v7003_v43  ;;  %v6733_v29 = vadd.f32 %v6732_v60, %v6674_v6  ;;  %v6791_v59 = vpop.f32.mrf.mxu3  ;;  %v6616_v39 = vpop.f32.mrf.mxu0  ;;  %v14307_v6 = vld [vmem:[#allocation66_spill] sm:$0xff] }
 0x9cd   : > { %v6675_v23 = vpop.f32.mrf.mxu1 }
 0x9ce   : > { %v6792_v32 = vadd.f32 %v6791_v59, %v6733_v29  ;;  %v6676_v53 = vadd.f32 %v6675_v23, %v6616_v39 }
 0x9d0   : > { %v6847_v48 = vadd.f32 %v6792_v32, %v14302_v7 }
 0x9d2   : > { %v7007_v63 = vadd.f32 %v6927_v55, %v6847_v48  ;;  %v6951_v48 = vld [vmem:[%s11342_s27 + $0x118] sm:$0xff] }
 0x9d3   : > { %v6734_v30 = vpop.f32.mrf.mxu2 }
 0x9d4   : > { %7087 = vst [vmem:[%s11342_s27 + $0x58] sm:$0xff] %v7007_v63  ;;  %v6735_v47 = vadd.f32 %v6734_v30, %v6676_v53  ;;  %v6793_v46 = vpop.f32.mrf.mxu3  ;;  %v6619_v3 = vpop.f32.mrf.mxu0  ;;  %v14308_v63 = vld [vmem:[#allocation67_spill] sm:$0xff] }
 0x9d5   : > { %v6678_v4 = vpop.f32.mrf.mxu1 }
 0x9d6   : > { %v6794_v25 = vadd.f32 %v6793_v46, %v6735_v47  ;;  %v6679_v54 = vadd.f32 %v6678_v4, %v6619_v3 }
 0x9d8   : > { %v6851_v5 = vadd.f32 %v6794_v25, %v14303_v50 }
 0x9da   : > { %v7011_v26 = vadd.f32 %v6931_v27, %v6851_v5  ;;  %v6955_v5 = vld [vmem:[%s11342_s27 + $0x138] sm:$0xff] }
 0x9db   : > { %v6737_v2 = vpop.f32.mrf.mxu2 }
 0x9dc   : > { %7091 = vst [vmem:[%s11342_s27 + $0x78] sm:$0xff] %v7011_v26  ;;  %v6738_v31 = vadd.f32 %v6737_v2, %v6679_v54  ;;  %v6796_v40 = vpop.f32.mrf.mxu3  ;;  %v6621_v24 = vpop.f32.mrf.mxu0  ;;  %v14309_v54 = vld [vmem:[#allocation68_spill] sm:$0xff] }
 0x9dd   : > { %v6680_v19 = vpop.f32.mrf.mxu1 }
 0x9de   : > { %v6797_v16 = vadd.f32 %v6796_v40, %v6738_v31  ;;  %v6681_v13 = vadd.f32 %v6680_v19, %v6621_v24 }
 0x9e0   : > { %v6855_v0 = vadd.f32 %v6797_v16, %v14304_v41 }
 0x9e2   : > { %v7015_v34 = vadd.f32 %v6935_v44, %v6855_v0  ;;  %v6959_v0 = vld [vmem:[%s11342_s27 + $0x158] sm:$0xff] }
 0x9e3   : > { %v6739_v61 = vpop.f32.mrf.mxu2 }
 0x9e4   : > { %7095 = vst [vmem:[%s11342_s27 + $0x98] sm:$0xff] %v7015_v34  ;;  %v6740_v8 = vadd.f32 %v6739_v61, %v6681_v13  ;;  %v6798_v9 = vpop.f32.mrf.mxu3  ;;  %v6624_v33 = vpop.f32.mrf.mxu0  ;;  %v14310_v34 = vld [vmem:[#allocation69_spill] sm:$0xff] }
 0x9e5   : > { %v6683_v22 = vpop.f32.mrf.mxu1 }
 0x9e6   : > { %v6799_v12 = vadd.f32 %v6798_v9, %v6740_v8  ;;  %v6684_v52 = vadd.f32 %v6683_v22, %v6624_v33 }
 0x9e8   : > { %v6859_v15 = vadd.f32 %v6799_v12, %v14305_v1 }
 0x9ea   : > { %v7019_v36 = vadd.f32 %v6939_v14, %v6859_v15  ;;  %v6963_v15 = vld [vmem:[%s11342_s27 + $0x178] sm:$0xff] }
 0x9eb   : > { %v6742_v18 = vpop.f32.mrf.mxu2 }
 0x9ec   : > { %7099 = vst [vmem:[%s11342_s27 + $0xb8] sm:$0xff] %v7019_v36  ;;  %v6743_v20 = vadd.f32 %v6742_v18, %v6684_v52  ;;  %v6801_v17 = vpop.f32.mrf.mxu3  ;;  %v6626_v35 = vpop.f32.mrf.mxu0  ;;  %v14311_v52 = vld [vmem:[#allocation70_spill] sm:$0xff] }
 0x9ed   : > { %v6685_v57 = vpop.f32.mrf.mxu1 }
 0x9ee   : > { %v6802_v28 = vadd.f32 %v6801_v17, %v6743_v20  ;;  %v6686_v62 = vadd.f32 %v6685_v57, %v6626_v35 }
 0x9f0   : > { %v6863_v45 = vadd.f32 %v6802_v28, %v14306_v51 }
 0x9f2   : > { %v7023_v38 = vadd.f32 %v6943_v21, %v6863_v45  ;;  %v6967_v45 = vld [vmem:[%s11342_s27 + $0x198] sm:$0xff] }
 0x9f3   : > { %v6744_v11 = vpop.f32.mrf.mxu2 }
 0x9f4   : > { %7103 = vst [vmem:[%s11342_s27 + $0xd8] sm:$0xff] %v7023_v38  ;;  %v6745_v49 = vadd.f32 %v6744_v11, %v6686_v62  ;;  %v6803_v10 = vpop.f32.mrf.mxu3  ;;  %v6629_v56 = vpop.f32.mrf.mxu0  ;;  %v14312_v38 = vld [vmem:[#allocation71_spill] sm:$0xff] }
 0x9f5   : > { %v6688_v58 = vpop.f32.mrf.mxu1 }
 0x9f6   : > { %v6804_v42 = vadd.f32 %v6803_v10, %v6745_v49  ;;  %v6689_v60 = vadd.f32 %v6688_v58, %v6629_v56 }
 0x9f8   : > { %v6867_v43 = vadd.f32 %v6804_v42, %v14307_v6 }
 0x9fa   : > { %v7027_v29 = vadd.f32 %v6947_v37, %v6867_v43  ;;  %v6971_v43 = vld [vmem:[%s11342_s27 + $0x1b8] sm:$0xff] }
 0x9fb   : > { %v6747_v59 = vpop.f32.mrf.mxu2 }
 0x9fc   : > { %7107 = vst [vmem:[%s11342_s27 + $0xf8] sm:$0xff] %v7027_v29  ;;  %v6748_v39 = vadd.f32 %v6747_v59, %v6689_v60  ;;  %v6806_v23 = vpop.f32.mrf.mxu3  ;;  %v6631_v32 = vpop.f32.mrf.mxu0  ;;  %v14313_v60 = vld [vmem:[#allocation72_spill] sm:$0xff] }
 0x9fd   : > { %v6690_v55 = vpop.f32.mrf.mxu1 }
 0x9fe   : > { %v6807_v7 = vadd.f32 %v6806_v23, %v6748_v39  ;;  %v6691_v47 = vadd.f32 %v6690_v55, %v6631_v32 }
 0xa00   : > { %v6871_v53 = vadd.f32 %v6807_v7, %v14308_v63 }
 0xa02   : > { %v7031_v30 = vadd.f32 %v6951_v48, %v6871_v53  ;;  %v6975_v53 = vld [vmem:[%s11342_s27 + $0x1d8] sm:$0xff] }
 0xa03   : > { %v6749_v46 = vpop.f32.mrf.mxu2 }
 0xa04   : > { %7111 = vst [vmem:[%s11342_s27 + $0x118] sm:$0xff] %v7031_v30  ;;  %v6750_v3 = vadd.f32 %v6749_v46, %v6691_v47  ;;  %v6808_v4 = vpop.f32.mrf.mxu3  ;;  %v6634_v25 = vpop.f32.mrf.mxu0  ;;  %v14314_v30 = vld [vmem:[#allocation73_spill] sm:$0xff] }
 0xa05   : > { %v6693_v27 = vpop.f32.mrf.mxu1 }
 0xa06   : > { %v6809_v50 = vadd.f32 %v6808_v4, %v6750_v3  ;;  %v6694_v2 = vadd.f32 %v6693_v27, %v6634_v25 }
 0xa08   : > { %v6875_v26 = vadd.f32 %v6809_v50, %v14309_v54 }
 0xa0a   : > { %v7035_v31 = vadd.f32 %v6955_v5, %v6875_v26  ;;  %v6979_v26 = vld [vmem:[%s11342_s27 + $0x1f8] sm:$0xff] }
 0xa0b   : > { %v6752_v40 = vpop.f32.mrf.mxu2 }
 0xa0c   : > { %7115 = vst [vmem:[%s11342_s27 + $0x138] sm:$0xff] %v7035_v31  ;;  %v6753_v24 = vadd.f32 %v6752_v40, %v6694_v2  ;;  %v6811_v19 = vpop.f32.mrf.mxu3  ;;  %v6636_v16 = vpop.f32.mrf.mxu0  ;;  %v14315_v2 = vld [vmem:[#allocation74_spill] sm:$0xff] }
 0xa0d   : > { %v6695_v44 = vpop.f32.mrf.mxu1 }
 0xa0e   : > { %v6812_v41 = vadd.f32 %v6811_v19, %v6753_v24  ;;  %v6696_v8 = vadd.f32 %v6695_v44, %v6636_v16 }
 0xa10   : > { %v6879_v13 = vadd.f32 %v6812_v41, %v14310_v34 }
 0xa12   : > { %v7039_v61 = vadd.f32 %v6959_v0, %v6879_v13  ;;  %v6983_v13 = vld [vmem:[%s11342_s27 + $0x218] sm:$0xff] }
 0xa13   : > { %v6754_v9 = vpop.f32.mrf.mxu2 }
 0xa14   : > { %7119 = vst [vmem:[%s11342_s27 + $0x158] sm:$0xff] %v7039_v61  ;;  %v6755_v33 = vadd.f32 %v6754_v9, %v6696_v8  ;;  %v6813_v22 = vpop.f32.mrf.mxu3  ;;  %v6639_v12 = vpop.f32.mrf.mxu0  ;;  %v14316_v61 = vld [vmem:[#allocation75_spill] sm:$0xff] }
 0xa15   : > { %v6698_v14 = vpop.f32.mrf.mxu1 }
 0xa16   : > { %v6814_v1 = vadd.f32 %v6813_v22, %v6755_v33  ;;  %v6699_v18 = vadd.f32 %v6698_v14, %v6639_v12 }
 0xa18   : > { %v6883_v36 = vadd.f32 %v6814_v1, %v14311_v52 }
 0xa1a   : > { %v7043_v20 = vadd.f32 %v6963_v15, %v6883_v36  ;;  %v6987_v36 = vld [vmem:[%s11342_s27 + $0x238] sm:$0xff] }
 0xa1b   : > { %v6757_v17 = vpop.f32.mrf.mxu2 }
 0xa1c   : > { %7123 = vst [vmem:[%s11342_s27 + $0x178] sm:$0xff] %v7043_v20  ;;  %v6758_v35 = vadd.f32 %v6757_v17, %v6699_v18  ;;  %v6816_v57 = vpop.f32.mrf.mxu3  ;;  %v6641_v28 = vpop.f32.mrf.mxu0  ;;  %v14317_v18 = vld [vmem:[#allocation76_spill] sm:$0xff] }
 0xa1d   : > { %v6700_v21 = vpop.f32.mrf.mxu1 }
 0xa1e   : > { %v6817_v51 = vadd.f32 %v6816_v57, %v6758_v35  ;;  %v6701_v49 = vadd.f32 %v6700_v21, %v6641_v28 }
 0xa20   : > { %v6887_v62 = vadd.f32 %v6817_v51, %v14312_v38 }
 0xa22   : > { %v7047_v11 = vadd.f32 %v6967_v45, %v6887_v62  ;;  %v6991_v45 = vld [vmem:[%s11342_s27 + $0x258] sm:$0xff] }
 0xa23   : > { %v6759_v10 = vpop.f32.mrf.mxu2 }
 0xa24   : > { %7127 = vst [vmem:[%s11342_s27 + $0x198] sm:$0xff] %v7047_v11  ;;  %v6760_v56 = vadd.f32 %v6759_v10, %v6701_v49  ;;  %v6818_v58 = vpop.f32.mrf.mxu3  ;;  %v6644_v42 = vpop.f32.mrf.mxu0  ;;  %v14318_v11 = vld [vmem:[#allocation77_spill] sm:$0xff] }
 0xa25   : > { %v6703_v37 = vpop.f32.mrf.mxu1 }
 0xa26   : > { %v6819_v6 = vadd.f32 %v6818_v58, %v6760_v56  ;;  %v6704_v59 = vadd.f32 %v6703_v37, %v6644_v42 }
 0xa28   : > { %v6891_v29 = vadd.f32 %v6819_v6, %v14313_v60  ;;  %v14319_v60 = vld [vmem:[#allocation80_spill] sm:$0xff] }
 0xa2a   : > { %v7051_v39 = vadd.f32 %v6971_v43, %v6891_v29  ;;  %v6995_v43 = vld [vmem:[%s11342_s27 + $0x278] sm:$0xff] }
 0xa2b   : > { %v6762_v23 = vpop.f32.mrf.mxu2 }
 0xa2c   : > { %7131 = vst [vmem:[%s11342_s27 + $0x1b8] sm:$0xff] %v7051_v39  ;;  %v6763_v32 = vadd.f32 %v6762_v23, %v6704_v59  ;;  %v6821_v55 = vpop.f32.mrf.mxu3  ;;  %v6646_v7 = vpop.f32.mrf.mxu0 }
 0xa2d   : > { %v6705_v48 = vpop.f32.mrf.mxu1 }
 0xa2e   : > { %v6822_v63 = vadd.f32 %v6821_v55, %v6763_v32  ;;  %v6706_v3 = vadd.f32 %v6705_v48, %v6646_v7 }
 0xa30   : > { %v6895_v47 = vadd.f32 %v6822_v63, %v14314_v30 }
 0xa32   : > { %v7055_v46 = vadd.f32 %v6975_v53, %v6895_v47 }
 0xa33   : > { %v6764_v4 = vpop.f32.mrf.mxu2 }
 0xa34   : > { %7135 = vst [vmem:[%s11342_s27 + $0x1d8] sm:$0xff] %v7055_v46  ;;  %v6765_v25 = vadd.f32 %v6764_v4, %v6706_v3  ;;  %v6823_v27 = vpop.f32.mrf.mxu3  ;;  %v6649_v50 = vpop.f32.mrf.mxu0 }
 0xa35   : > { %v6708_v5 = vpop.f32.mrf.mxu1 }
 0xa36   : > { %v6824_v54 = vadd.f32 %v6823_v27, %v6765_v25  ;;  %v6709_v40 = vadd.f32 %v6708_v5, %v6649_v50 }
 0xa38   : > { %v6899_v31 = vadd.f32 %v6824_v54, %v14315_v2 }
 0xa3a   : > { %v7059_v24 = vadd.f32 %v6979_v26, %v6899_v31 }
 0xa3b   : > { %v6767_v19 = vpop.f32.mrf.mxu2 }
 0xa3c   : > { %7139 = vst [vmem:[%s11342_s27 + $0x1f8] sm:$0xff] %v7059_v24  ;;  %v6768_v16 = vadd.f32 %v6767_v19, %v6709_v40  ;;  %v6826_v44 = vpop.f32.mrf.mxu3  ;;  %v6651_v41 = vpop.f32.mrf.mxu0 }
 0xa3d   : > { %v6710_v0 = vpop.f32.mrf.mxu1 }
 0xa3e   : > { %v6827_v34 = vadd.f32 %v6826_v44, %v6768_v16  ;;  %v6711_v33 = vadd.f32 %v6710_v0, %v6651_v41 }
 0xa40   : > { %v6903_v8 = vadd.f32 %v6827_v34, %v14316_v61 }
 0xa42   : > { %v7063_v9 = vadd.f32 %v6983_v13, %v6903_v8 }
 0xa43   : > { %v6769_v22 = vpop.f32.mrf.mxu2 }
 0xa44   : > { %7143 = vst [vmem:[%s11342_s27 + $0x218] sm:$0xff] %v7063_v9  ;;  %v6770_v12 = vadd.f32 %v6769_v22, %v6711_v33  ;;  %v6828_v14 = vpop.f32.mrf.mxu3  ;;  %v6654_v1 = vpop.f32.mrf.mxu0 }
 0xa45   : > { %v6713_v15 = vpop.f32.mrf.mxu1 }
 0xa46   : > { %v6829_v52 = vadd.f32 %v6828_v14, %v6770_v12  ;;  %v6714_v17 = vadd.f32 %v6713_v15, %v6654_v1 }
 0xa48   : > { %v6907_v20 = vadd.f32 %v6829_v52, %v14317_v18 }
 0xa4a   : > { %v7067_v35 = vadd.f32 %v6987_v36, %v6907_v20 }
 0xa4b   : > { %v6772_v57 = vpop.f32.mrf.mxu2 }
 0xa4c   : > { %7147 = vst [vmem:[%s11342_s27 + $0x238] sm:$0xff] %v7067_v35  ;;  %v6773_v28 = vadd.f32 %v6772_v57, %v6714_v17  ;;  %v6831_v21 = vpop.f32.mrf.mxu3  ;;  %v6656_v38 = vpop.f32.mrf.mxu0 }
 0xa4d   : > { %v6715_v62 = vpop.f32.mrf.mxu1 }
 0xa4e   : > { %v6832_v51 = vadd.f32 %v6831_v21, %v6773_v28  ;;  %v6716_v56 = vadd.f32 %v6715_v62, %v6656_v38 }
 0xa50   : > { %v6911_v49 = vadd.f32 %v6832_v51, %v14318_v11 }
 0xa52   : > { %v7071_v10 = vadd.f32 %v6991_v45, %v6911_v49 }
 0xa53   : > { %v6774_v58 = vpop.f32.mrf.mxu2 }
 0xa54   : > { %7151 = vst [vmem:[%s11342_s27 + $0x258] sm:$0xff] %v7071_v10  ;;  %v6775_v42 = vadd.f32 %v6774_v58, %v6716_v56  ;;  %v6833_v37 = vpop.f32.mrf.mxu3 }
 0xa56   : > { %v6834_v6 = vadd.f32 %v6833_v37, %v6775_v42 }
 0xa58   : > { %v6915_v29 = vadd.f32 %v6834_v6, %v14319_v60  ;;  %7159 = sbr.rel (%p9723_p1) target bundleno = 2741 (0xab5), region = 86 }
 0xa5a   : > { %v7075_v59 = vadd.f32 %v6995_v43, %v6915_v29 }
 0xa5c   : > { %7155 = vst [vmem:[%s11342_s27 + $0x278] sm:$0xff] %v7075_v59 }
 0xa5d   : > { %v7160_v39 = vld [vmem:[%s11342_s27] sm:$0xff]  ;;  %v7161_v32 = vld [vmem:[%s11342_s27 + $0x8] sm:$0xff]  ;;  %v7162_v48 = vld [vmem:[%s11342_s27 + $0x10] sm:$0xff] }
 0xa5e   : > { %v7240_v23 = vld [vmem:[%s14014_s2] sm:$0xf]  ;;  %v7163_v53 = vld [vmem:[%s11342_s27 + $0x18] sm:$0xff]  ;;  %v7165_v46 = vld [vmem:[%s11342_s27 + $0x28] sm:$0xff] }
 0xa5f   : > { %v13739_v55 = vperm.slane %v7240_v23, 0  ;;  %v13741_v7 = vperm.slane %v7240_v23, 1  ;;  %v13744_v63 = vperm.slane %v7240_v23, 2  ;;  %v13747_v30 = vperm.slane %v7240_v23, 3  ;;  %v7164_v47 = vld [vmem:[%s11342_s27 + $0x20] sm:$0xff]  ;;  %v7166_v3 = vld [vmem:[%s11342_s27 + $0x30] sm:$0xff] }
 0xa60   : > { %v7167_v5 = vld [vmem:[%s11342_s27 + $0x38] sm:$0xff]  ;;  %v7168_v2 = vld [vmem:[%s11342_s27 + $0x40] sm:$0xff]  ;;  %v7169_v16 = vld [vmem:[%s11342_s27 + $0x48] sm:$0xff] }
 0xa61   : > { %v7250_v4 = vadd.f32 %v13739_v55, %v7160_v39  ;;  %v7251_v25 = vadd.f32 %v13741_v7, %v7161_v32  ;;  %v7252_v27 = vadd.f32 %v13744_v63, %v7162_v48  ;;  %v7253_v50 = vadd.f32 %v13747_v30, %v7163_v53  ;;  %v7170_v0 = vld [vmem:[%s11342_s27 + $0x50] sm:$0xff]  ;;  %v7171_v61 = vld [vmem:[%s11342_s27 + $0x58] sm:$0xff]  ;;  %v7172_v33 = vld [vmem:[%s11342_s27 + $0x60] sm:$0xff] }
 0xa62   : > { %v7254_v54 = vadd.f32 %v13739_v55, %v7164_v47  ;;  %v7255_v26 = vadd.f32 %v13741_v7, %v7165_v46  ;;  %v7256_v19 = vadd.f32 %v13744_v63, %v7166_v3  ;;  %v7257_v41 = vadd.f32 %v13747_v30, %v7167_v5  ;;  %v7173_v14 = vld [vmem:[%s11342_s27 + $0x68] sm:$0xff]  ;;  %v7174_v52 = vld [vmem:[%s11342_s27 + $0x70] sm:$0xff]  ;;  %v7175_v20 = vld [vmem:[%s11342_s27 + $0x78] sm:$0xff] }
 0xa63   : > { %v7330_v31 = vmax.f32 %v7250_v4, 0.0  ;;  %v7331_v40 = vmax.f32 %v7251_v25, 0.0  ;;  %v7332_v24 = vmax.f32 %v7252_v27, 0.0  ;;  %v7333_v44 = vmax.f32 %v7253_v50, 0.0  ;;  %v7176_v57 = vld [vmem:[%s11342_s27 + $0x80] sm:$0xff]  ;;  %v7177_v51 = vld [vmem:[%s11342_s27 + $0x88] sm:$0xff] }
 0xa64   : > { %v7334_v34 = vmax.f32 %v7254_v54, 0.0  ;;  %v7258_v13 = vadd.f32 %v13739_v55, %v7168_v2  ;;  %v7335_v8 = vmax.f32 %v7255_v26, 0.0  ;;  %v7259_v9 = vadd.f32 %v13741_v7, %v7169_v16  ;;  %v7178_v62 = vld [vmem:[%s11342_s27 + $0x90] sm:$0xff]  ;;  %v7179_v10 = vld [vmem:[%s11342_s27 + $0x98] sm:$0xff]  ;;  %v7180_v42 = vld [vmem:[%s11342_s27 + $0xa0] sm:$0xff] }
 0xa65   : > { %7410 = vst [vmem:[%s11342_s27] sm:$0xff] %v7330_v31  ;;  %v7336_v22 = vmax.f32 %v7256_v19, 0.0  ;;  %v7260_v12 = vadd.f32 %v13744_v63, %v7170_v0  ;;  %v7337_v1 = vmax.f32 %v7257_v41, 0.0  ;;  %v7261_v15 = vadd.f32 %v13747_v30, %v7171_v61  ;;  %v7181_v43 = vld [vmem:[%s11342_s27 + $0xa8] sm:$0xff]  ;;  %v7182_v59 = vld [vmem:[%s11342_s27 + $0xb0] sm:$0xff]  ;;  %v7183_v32 = vld [vmem:[%s11342_s27 + $0xb8] sm:$0xff] }
 0xa66   : > { %7411 = vst [vmem:[%s11342_s27 + $0x8] sm:$0xff] %v7331_v40  ;;  %v7338_v36 = vmax.f32 %v7258_v13, 0.0  ;;  %v7262_v18 = vadd.f32 %v13739_v55, %v7172_v33  ;;  %v7339_v17 = vmax.f32 %v7259_v9, 0.0  ;;  %v7263_v35 = vadd.f32 %v13741_v7, %v7173_v14  ;;  %v7184_v47 = vld [vmem:[%s11342_s27 + $0xc0] sm:$0xff]  ;;  %v7185_v4 = vld [vmem:[%s11342_s27 + $0xc8] sm:$0xff]  ;;  %v7186_v50 = vld [vmem:[%s11342_s27 + $0xd0] sm:$0xff] }
 0xa67   : > { %7412 = vst [vmem:[%s11342_s27 + $0x10] sm:$0xff] %v7332_v24  ;;  %v7340_v28 = vmax.f32 %v7260_v12, 0.0  ;;  %v7264_v21 = vadd.f32 %v13744_v63, %v7174_v52  ;;  %v7341_v45 = vmax.f32 %v7261_v15, 0.0  ;;  %v7265_v38 = vadd.f32 %v13747_v30, %v7175_v20  ;;  %v7187_v26 = vld [vmem:[%s11342_s27 + $0xd8] sm:$0xff]  ;;  %v7188_v40 = vld [vmem:[%s11342_s27 + $0xe0] sm:$0xff]  ;;  %v7189_v16 = vld [vmem:[%s11342_s27 + $0xe8] sm:$0xff] }
 0xa68   : > { %7413 = vst [vmem:[%s11342_s27 + $0x18] sm:$0xff] %v7333_v44  ;;  %v7342_v11 = vmax.f32 %v7262_v18, 0.0  ;;  %v7266_v49 = vadd.f32 %v13739_v55, %v7176_v57  ;;  %v7343_v56 = vmax.f32 %v7263_v35, 0.0  ;;  %v7267_v58 = vadd.f32 %v13741_v7, %v7177_v51  ;;  %v7190_v0 = vld [vmem:[%s11342_s27 + $0xf0] sm:$0xff]  ;;  %v7191_v61 = vld [vmem:[%s11342_s27 + $0xf8] sm:$0xff]  ;;  %v7192_v33 = vld [vmem:[%s11342_s27 + $0x100] sm:$0xff] }
 0xa69   : > { %7414 = vst [vmem:[%s11342_s27 + $0x20] sm:$0xff] %v7334_v34  ;;  %v7344_v37 = vmax.f32 %v7264_v21, 0.0  ;;  %v7268_v6 = vadd.f32 %v13744_v63, %v7178_v62  ;;  %v7345_v60 = vmax.f32 %v7265_v38, 0.0  ;;  %v7269_v29 = vadd.f32 %v13747_v30, %v7179_v10  ;;  %v7193_v14 = vld [vmem:[%s11342_s27 + $0x108] sm:$0xff]  ;;  %v7194_v52 = vld [vmem:[%s11342_s27 + $0x110] sm:$0xff]  ;;  %v7195_v20 = vld [vmem:[%s11342_s27 + $0x118] sm:$0xff] }
 0xa6a   : > { %7415 = vst [vmem:[%s11342_s27 + $0x28] sm:$0xff] %v7335_v8  ;;  %v7346_v39 = vmax.f32 %v7266_v49, 0.0  ;;  %v7270_v23 = vadd.f32 %v13739_v55, %v7180_v42  ;;  %v7347_v48 = vmax.f32 %v7267_v58, 0.0  ;;  %v7271_v53 = vadd.f32 %v13741_v7, %v7181_v43  ;;  %v7196_v57 = vld [vmem:[%s11342_s27 + $0x120] sm:$0xff]  ;;  %v7197_v51 = vld [vmem:[%s11342_s27 + $0x128] sm:$0xff]  ;;  %v7198_v62 = vld [vmem:[%s11342_s27 + $0x130] sm:$0xff] }
 0xa6b   : > { %7416 = vst [vmem:[%s11342_s27 + $0x30] sm:$0xff] %v7336_v22  ;;  %v7348_v46 = vmax.f32 %v7268_v6, 0.0  ;;  %v7272_v3 = vadd.f32 %v13744_v63, %v7182_v59  ;;  %v7349_v25 = vmax.f32 %v7269_v29, 0.0  ;;  %v7273_v27 = vadd.f32 %v13747_v30, %v7183_v32  ;;  %v7199_v10 = vld [vmem:[%s11342_s27 + $0x138] sm:$0xff]  ;;  %v7200_v42 = vld [vmem:[%s11342_s27 + $0x140] sm:$0xff]  ;;  %v7201_v43 = vld [vmem:[%s11342_s27 + $0x148] sm:$0xff] }
 0xa6c   : > { %7417 = vst [vmem:[%s11342_s27 + $0x38] sm:$0xff] %v7337_v1  ;;  %v7350_v5 = vmax.f32 %v7270_v23, 0.0  ;;  %v7274_v54 = vadd.f32 %v13739_v55, %v7184_v47  ;;  %v7351_v2 = vmax.f32 %v7271_v53, 0.0  ;;  %v7275_v31 = vadd.f32 %v13741_v7, %v7185_v4  ;;  %v7202_v59 = vld [vmem:[%s11342_s27 + $0x150] sm:$0xff]  ;;  %v7203_v32 = vld [vmem:[%s11342_s27 + $0x158] sm:$0xff]  ;;  %v7204_v47 = vld [vmem:[%s11342_s27 + $0x160] sm:$0xff] }
 0xa6d   : > { %7418 = vst [vmem:[%s11342_s27 + $0x40] sm:$0xff] %v7338_v36  ;;  %v7352_v24 = vmax.f32 %v7272_v3, 0.0  ;;  %v7276_v19 = vadd.f32 %v13744_v63, %v7186_v50  ;;  %v7353_v44 = vmax.f32 %v7273_v27, 0.0  ;;  %v7277_v41 = vadd.f32 %v13747_v30, %v7187_v26  ;;  %v7205_v4 = vld [vmem:[%s11342_s27 + $0x168] sm:$0xff]  ;;  %v7206_v50 = vld [vmem:[%s11342_s27 + $0x170] sm:$0xff]  ;;  %v7207_v26 = vld [vmem:[%s11342_s27 + $0x178] sm:$0xff] }
 0xa6e   : > { %7419 = vst [vmem:[%s11342_s27 + $0x48] sm:$0xff] %v7339_v17  ;;  %v7354_v34 = vmax.f32 %v7274_v54, 0.0  ;;  %v7278_v13 = vadd.f32 %v13739_v55, %v7188_v40  ;;  %v7355_v8 = vmax.f32 %v7275_v31, 0.0  ;;  %v7279_v9 = vadd.f32 %v13741_v7, %v7189_v16  ;;  %v7208_v40 = vld [vmem:[%s11342_s27 + $0x180] sm:$0xff]  ;;  %v7209_v16 = vld [vmem:[%s11342_s27 + $0x188] sm:$0xff] }
 0xa6f   : > { %7420 = vst [vmem:[%s11342_s27 + $0x50] sm:$0xff] %v7340_v28  ;;  %v7356_v22 = vmax.f32 %v7276_v19, 0.0  ;;  %v7280_v12 = vadd.f32 %v13744_v63, %v7190_v0  ;;  %v7357_v1 = vmax.f32 %v7277_v41, 0.0  ;;  %v7281_v15 = vadd.f32 %v13747_v30, %v7191_v61  ;;  %v7210_v0 = vld [vmem:[%s11342_s27 + $0x190] sm:$0xff]  ;;  %v7211_v61 = vld [vmem:[%s11342_s27 + $0x198] sm:$0xff] }
 0xa70   : > { %7421 = vst [vmem:[%s11342_s27 + $0x58] sm:$0xff] %v7341_v45  ;;  %v7358_v36 = vmax.f32 %v7278_v13, 0.0  ;;  %v7282_v18 = vadd.f32 %v13739_v55, %v7192_v33  ;;  %v7359_v17 = vmax.f32 %v7279_v9, 0.0  ;;  %v7283_v35 = vadd.f32 %v13741_v7, %v7193_v14  ;;  %v7212_v33 = vld [vmem:[%s11342_s27 + $0x1a0] sm:$0xff]  ;;  %v7213_v14 = vld [vmem:[%s11342_s27 + $0x1a8] sm:$0xff] }
 0xa71   : > { %7422 = vst [vmem:[%s11342_s27 + $0x60] sm:$0xff] %v7342_v11  ;;  %v7360_v28 = vmax.f32 %v7280_v12, 0.0  ;;  %v7284_v21 = vadd.f32 %v13744_v63, %v7194_v52  ;;  %v7361_v45 = vmax.f32 %v7281_v15, 0.0  ;;  %v7285_v38 = vadd.f32 %v13747_v30, %v7195_v20  ;;  %v7214_v52 = vld [vmem:[%s11342_s27 + $0x1b0] sm:$0xff]  ;;  %v7215_v20 = vld [vmem:[%s11342_s27 + $0x1b8] sm:$0xff] }
 0xa72   : > { %7423 = vst [vmem:[%s11342_s27 + $0x68] sm:$0xff] %v7343_v56  ;;  %v7362_v11 = vmax.f32 %v7282_v18, 0.0  ;;  %v7286_v49 = vadd.f32 %v13739_v55, %v7196_v57  ;;  %v7363_v56 = vmax.f32 %v7283_v35, 0.0  ;;  %v7287_v58 = vadd.f32 %v13741_v7, %v7197_v51  ;;  %v7216_v57 = vld [vmem:[%s11342_s27 + $0x1c0] sm:$0xff]  ;;  %v7217_v51 = vld [vmem:[%s11342_s27 + $0x1c8] sm:$0xff] }
 0xa73   : > { %7424 = vst [vmem:[%s11342_s27 + $0x70] sm:$0xff] %v7344_v37  ;;  %v7364_v37 = vmax.f32 %v7284_v21, 0.0  ;;  %v7288_v6 = vadd.f32 %v13744_v63, %v7198_v62  ;;  %v7289_v29 = vadd.f32 %v13747_v30, %v7199_v10  ;;  %v7290_v23 = vadd.f32 %v13739_v55, %v7200_v42  ;;  %v7218_v62 = vld [vmem:[%s11342_s27 + $0x1d0] sm:$0xff]  ;;  %v7219_v10 = vld [vmem:[%s11342_s27 + $0x1d8] sm:$0xff]  ;;  %v7220_v42 = vld [vmem:[%s11342_s27 + $0x1e0] sm:$0xff] }
 0xa74   : > { %7425 = vst [vmem:[%s11342_s27 + $0x78] sm:$0xff] %v7345_v60  ;;  %v7365_v60 = vmax.f32 %v7285_v38, 0.0  ;;  %v7291_v53 = vadd.f32 %v13741_v7, %v7201_v43  ;;  %v7292_v3 = vadd.f32 %v13744_v63, %v7202_v59  ;;  %v7293_v27 = vadd.f32 %v13747_v30, %v7203_v32  ;;  %v7221_v43 = vld [vmem:[%s11342_s27 + $0x1e8] sm:$0xff]  ;;  %v7222_v59 = vld [vmem:[%s11342_s27 + $0x1f0] sm:$0xff]  ;;  %v7223_v32 = vld [vmem:[%s11342_s27 + $0x1f8] sm:$0xff] }
 0xa75   : > { %7426 = vst [vmem:[%s11342_s27 + $0x80] sm:$0xff] %v7346_v39  ;;  %v7366_v39 = vmax.f32 %v7286_v49, 0.0  ;;  %v7294_v54 = vadd.f32 %v13739_v55, %v7204_v47  ;;  %v7295_v31 = vadd.f32 %v13741_v7, %v7205_v4  ;;  %v7296_v19 = vadd.f32 %v13744_v63, %v7206_v50  ;;  %v7224_v47 = vld [vmem:[%s11342_s27 + $0x200] sm:$0xff]  ;;  %v7225_v4 = vld [vmem:[%s11342_s27 + $0x208] sm:$0xff]  ;;  %v7226_v50 = vld [vmem:[%s11342_s27 + $0x210] sm:$0xff] }
 0xa76   : > { %7427 = vst [vmem:[%s11342_s27 + $0x88] sm:$0xff] %v7347_v48  ;;  %v7367_v48 = vmax.f32 %v7287_v58, 0.0  ;;  %v7297_v41 = vadd.f32 %v13747_v30, %v7207_v26  ;;  %v7298_v13 = vadd.f32 %v13739_v55, %v7208_v40  ;;  %v7299_v9 = vadd.f32 %v13741_v7, %v7209_v16  ;;  %v7227_v26 = vld [vmem:[%s11342_s27 + $0x218] sm:$0xff]  ;;  %v7228_v40 = vld [vmem:[%s11342_s27 + $0x220] sm:$0xff]  ;;  %v7229_v16 = vld [vmem:[%s11342_s27 + $0x228] sm:$0xff] }
 0xa77   : > { %7428 = vst [vmem:[%s11342_s27 + $0x90] sm:$0xff] %v7348_v46  ;;  %v7368_v46 = vmax.f32 %v7288_v6, 0.0  ;;  %v7300_v12 = vadd.f32 %v13744_v63, %v7210_v0  ;;  %v7301_v15 = vadd.f32 %v13747_v30, %v7211_v61  ;;  %v7302_v18 = vadd.f32 %v13739_v55, %v7212_v33  ;;  %v7230_v0 = vld [vmem:[%s11342_s27 + $0x230] sm:$0xff]  ;;  %v7231_v61 = vld [vmem:[%s11342_s27 + $0x238] sm:$0xff]  ;;  %v7232_v33 = vld [vmem:[%s11342_s27 + $0x240] sm:$0xff] }
 0xa78   : > { %7429 = vst [vmem:[%s11342_s27 + $0x98] sm:$0xff] %v7349_v25  ;;  %v7369_v25 = vmax.f32 %v7289_v29, 0.0  ;;  %v7303_v35 = vadd.f32 %v13741_v7, %v7213_v14  ;;  %v7304_v21 = vadd.f32 %v13744_v63, %v7214_v52  ;;  %v7305_v38 = vadd.f32 %v13747_v30, %v7215_v20  ;;  %v7233_v14 = vld [vmem:[%s11342_s27 + $0x248] sm:$0xff]  ;;  %v7234_v52 = vld [vmem:[%s11342_s27 + $0x250] sm:$0xff]  ;;  %v7235_v20 = vld [vmem:[%s11342_s27 + $0x258] sm:$0xff] }
 0xa79   : > { %7430 = vst [vmem:[%s11342_s27 + $0xa0] sm:$0xff] %v7350_v5  ;;  %v7370_v5 = vmax.f32 %v7290_v23, 0.0  ;;  %v7306_v49 = vadd.f32 %v13739_v55, %v7216_v57  ;;  %v7307_v58 = vadd.f32 %v13741_v7, %v7217_v51  ;;  %v7308_v6 = vadd.f32 %v13744_v63, %v7218_v62  ;;  %v7236_v57 = vld [vmem:[%s11342_s27 + $0x260] sm:$0xff]  ;;  %v7237_v51 = vld [vmem:[%s11342_s27 + $0x268] sm:$0xff]  ;;  %v7238_v62 = vld [vmem:[%s11342_s27 + $0x270] sm:$0xff] }
 0xa7a   : > { %7431 = vst [vmem:[%s11342_s27 + $0xa8] sm:$0xff] %v7351_v2  ;;  %v7371_v2 = vmax.f32 %v7291_v53, 0.0  ;;  %v7309_v29 = vadd.f32 %v13747_v30, %v7219_v10  ;;  %v7310_v23 = vadd.f32 %v13739_v55, %v7220_v42  ;;  %v7311_v53 = vadd.f32 %v13741_v7, %v7221_v43  ;;  %v7239_v10 = vld [vmem:[%s11342_s27 + $0x278] sm:$0xff] }
 0xa7b   : > { %7432 = vst [vmem:[%s11342_s27 + $0xb0] sm:$0xff] %v7352_v24  ;;  %v7372_v24 = vmax.f32 %v7292_v3, 0.0  ;;  %v7312_v3 = vadd.f32 %v13744_v63, %v7222_v59  ;;  %v7329_v43 = vadd.f32 %v13747_v30, %v7239_v10 }
 0xa7c   : > { %7433 = vst [vmem:[%s11342_s27 + $0xb8] sm:$0xff] %v7353_v44  ;;  %v7373_v44 = vmax.f32 %v7293_v27, 0.0  ;;  %v7313_v27 = vadd.f32 %v13747_v30, %v7223_v32 }
 0xa7d   : > { %7434 = vst [vmem:[%s11342_s27 + $0xc0] sm:$0xff] %v7354_v34  ;;  %v7374_v34 = vmax.f32 %v7294_v54, 0.0  ;;  %v7314_v54 = vadd.f32 %v13739_v55, %v7224_v47  ;;  %v7409_v59 = vmax.f32 %v7329_v43, 0.0 }
 0xa7e   : > { %7435 = vst [vmem:[%s11342_s27 + $0xc8] sm:$0xff] %v7355_v8  ;;  %v7375_v8 = vmax.f32 %v7295_v31, 0.0  ;;  %v7315_v31 = vadd.f32 %v13741_v7, %v7225_v4 }
 0xa7f   : > { %7436 = vst [vmem:[%s11342_s27 + $0xd0] sm:$0xff] %v7356_v22  ;;  %v7376_v22 = vmax.f32 %v7296_v19, 0.0  ;;  %v7316_v19 = vadd.f32 %v13744_v63, %v7226_v50 }
 0xa80   : > { %7437 = vst [vmem:[%s11342_s27 + $0xd8] sm:$0xff] %v7357_v1  ;;  %v7377_v1 = vmax.f32 %v7297_v41, 0.0  ;;  %v7317_v41 = vadd.f32 %v13747_v30, %v7227_v26 }
 0xa81   : > { %7438 = vst [vmem:[%s11342_s27 + $0xe0] sm:$0xff] %v7358_v36  ;;  %v7378_v36 = vmax.f32 %v7298_v13, 0.0  ;;  %v7318_v13 = vadd.f32 %v13739_v55, %v7228_v40 }
 0xa82   : > { %7439 = vst [vmem:[%s11342_s27 + $0xe8] sm:$0xff] %v7359_v17  ;;  %v7379_v17 = vmax.f32 %v7299_v9, 0.0  ;;  %v7319_v9 = vadd.f32 %v13741_v7, %v7229_v16 }
 0xa83   : > { %7440 = vst [vmem:[%s11342_s27 + $0xf0] sm:$0xff] %v7360_v28  ;;  %v7380_v28 = vmax.f32 %v7300_v12, 0.0  ;;  %v7320_v12 = vadd.f32 %v13744_v63, %v7230_v0 }
 0xa84   : > { %7441 = vst [vmem:[%s11342_s27 + $0xf8] sm:$0xff] %v7361_v45  ;;  %v7381_v45 = vmax.f32 %v7301_v15, 0.0  ;;  %v7321_v15 = vadd.f32 %v13747_v30, %v7231_v61 }
 0xa85   : > { %7442 = vst [vmem:[%s11342_s27 + $0x100] sm:$0xff] %v7362_v11  ;;  %v7382_v11 = vmax.f32 %v7302_v18, 0.0  ;;  %v7322_v18 = vadd.f32 %v13739_v55, %v7232_v33 }
 0xa86   : > { %7443 = vst [vmem:[%s11342_s27 + $0x108] sm:$0xff] %v7363_v56  ;;  %v7383_v56 = vmax.f32 %v7303_v35, 0.0  ;;  %v7323_v35 = vadd.f32 %v13741_v7, %v7233_v14 }
 0xa87   : > { %7444 = vst [vmem:[%s11342_s27 + $0x110] sm:$0xff] %v7364_v37  ;;  %v7384_v37 = vmax.f32 %v7304_v21, 0.0  ;;  %v7324_v21 = vadd.f32 %v13744_v63, %v7234_v52 }
 0xa88   : > { %7445 = vst [vmem:[%s11342_s27 + $0x118] sm:$0xff] %v7365_v60  ;;  %v7385_v60 = vmax.f32 %v7305_v38, 0.0  ;;  %v7325_v38 = vadd.f32 %v13747_v30, %v7235_v20 }
 0xa89   : > { %7446 = vst [vmem:[%s11342_s27 + $0x120] sm:$0xff] %v7366_v39  ;;  %v7386_v39 = vmax.f32 %v7306_v49, 0.0  ;;  %v7326_v49 = vadd.f32 %v13739_v55, %v7236_v57  ;;  %v7404_v42 = vmax.f32 %v7324_v21, 0.0 }
 0xa8a   : > { %7447 = vst [vmem:[%s11342_s27 + $0x128] sm:$0xff] %v7367_v48  ;;  %v7387_v48 = vmax.f32 %v7307_v58, 0.0  ;;  %v7327_v58 = vadd.f32 %v13741_v7, %v7237_v51 }
 0xa8b   : > { %7448 = vst [vmem:[%s11342_s27 + $0x130] sm:$0xff] %v7368_v46  ;;  %v7388_v46 = vmax.f32 %v7308_v6, 0.0  ;;  %v7405_v6 = vmax.f32 %v7325_v38, 0.0  ;;  %v7406_v55 = vmax.f32 %v7326_v49, 0.0 }
 0xa8c   : > { %7449 = vst [vmem:[%s11342_s27 + $0x138] sm:$0xff] %v7369_v25  ;;  %v7389_v25 = vmax.f32 %v7309_v29, 0.0 }
 0xa8d   : > { %7450 = vst [vmem:[%s11342_s27 + $0x140] sm:$0xff] %v7370_v5  ;;  %v7390_v5 = vmax.f32 %v7310_v23, 0.0 }
 0xa8e   : > { %7451 = vst [vmem:[%s11342_s27 + $0x148] sm:$0xff] %v7371_v2  ;;  %v7391_v2 = vmax.f32 %v7311_v53, 0.0 }
 0xa8f   : > { %7452 = vst [vmem:[%s11342_s27 + $0x150] sm:$0xff] %v7372_v24  ;;  %v7392_v24 = vmax.f32 %v7312_v3, 0.0 }
 0xa90   : > { %7453 = vst [vmem:[%s11342_s27 + $0x158] sm:$0xff] %v7373_v44  ;;  %v7393_v44 = vmax.f32 %v7313_v27, 0.0 }
 0xa91   : > { %7454 = vst [vmem:[%s11342_s27 + $0x160] sm:$0xff] %v7374_v34  ;;  %v7394_v34 = vmax.f32 %v7314_v54, 0.0 }
 0xa92   : > { %7455 = vst [vmem:[%s11342_s27 + $0x168] sm:$0xff] %v7375_v8  ;;  %v7395_v8 = vmax.f32 %v7315_v31, 0.0 }
 0xa93   : > { %7456 = vst [vmem:[%s11342_s27 + $0x170] sm:$0xff] %v7376_v22  ;;  %v7396_v22 = vmax.f32 %v7316_v19, 0.0 }
 0xa94   : > { %7457 = vst [vmem:[%s11342_s27 + $0x178] sm:$0xff] %v7377_v1  ;;  %v7397_v1 = vmax.f32 %v7317_v41, 0.0 }
 0xa95   : > { %7458 = vst [vmem:[%s11342_s27 + $0x180] sm:$0xff] %v7378_v36  ;;  %v7398_v36 = vmax.f32 %v7318_v13, 0.0 }
 0xa96   : > { %7459 = vst [vmem:[%s11342_s27 + $0x188] sm:$0xff] %v7379_v17  ;;  %v7399_v17 = vmax.f32 %v7319_v9, 0.0 }
 0xa97   : > { %7460 = vst [vmem:[%s11342_s27 + $0x190] sm:$0xff] %v7380_v28  ;;  %v7400_v28 = vmax.f32 %v7320_v12, 0.0 }
 0xa98   : > { %7461 = vst [vmem:[%s11342_s27 + $0x198] sm:$0xff] %v7381_v45  ;;  %v7401_v45 = vmax.f32 %v7321_v15, 0.0 }
 0xa99   : > { %7462 = vst [vmem:[%s11342_s27 + $0x1a0] sm:$0xff] %v7382_v11  ;;  %v7402_v11 = vmax.f32 %v7322_v18, 0.0 }
 0xa9a   : > { %7463 = vst [vmem:[%s11342_s27 + $0x1a8] sm:$0xff] %v7383_v56  ;;  %v7403_v56 = vmax.f32 %v7323_v35, 0.0 }
 0xa9b   : > { %7464 = vst [vmem:[%s11342_s27 + $0x1b0] sm:$0xff] %v7384_v37  ;;  %v7328_v37 = vadd.f32 %v13744_v63, %v7238_v62 }
 0xa9c   : > { %7465 = vst [vmem:[%s11342_s27 + $0x1b8] sm:$0xff] %v7385_v60  ;;  %v7407_v60 = vmax.f32 %v7327_v58, 0.0 }
 0xa9d   : > { %7466 = vst [vmem:[%s11342_s27 + $0x1c0] sm:$0xff] %v7386_v39  ;;  %v7408_v29 = vmax.f32 %v7328_v37, 0.0 }
 0xa9e   : > { %7467 = vst [vmem:[%s11342_s27 + $0x1c8] sm:$0xff] %v7387_v48 }
 0xa9f   : > { %7468 = vst [vmem:[%s11342_s27 + $0x1d0] sm:$0xff] %v7388_v46 }
 0xaa0   : > { %7469 = vst [vmem:[%s11342_s27 + $0x1d8] sm:$0xff] %v7389_v25 }
 0xaa1   : > { %7470 = vst [vmem:[%s11342_s27 + $0x1e0] sm:$0xff] %v7390_v5 }
 0xaa2   : > { %7471 = vst [vmem:[%s11342_s27 + $0x1e8] sm:$0xff] %v7391_v2 }
 0xaa3   : > { %7472 = vst [vmem:[%s11342_s27 + $0x1f0] sm:$0xff] %v7392_v24 }
 0xaa4   : > { %7473 = vst [vmem:[%s11342_s27 + $0x1f8] sm:$0xff] %v7393_v44 }
 0xaa5   : > { %7474 = vst [vmem:[%s11342_s27 + $0x200] sm:$0xff] %v7394_v34 }
 0xaa6   : > { %7475 = vst [vmem:[%s11342_s27 + $0x208] sm:$0xff] %v7395_v8 }
 0xaa7   : > { %7476 = vst [vmem:[%s11342_s27 + $0x210] sm:$0xff] %v7396_v22 }
 0xaa8   : > { %7477 = vst [vmem:[%s11342_s27 + $0x218] sm:$0xff] %v7397_v1 }
 0xaa9   : > { %7478 = vst [vmem:[%s11342_s27 + $0x220] sm:$0xff] %v7398_v36 }
 0xaaa   : > { %7479 = vst [vmem:[%s11342_s27 + $0x228] sm:$0xff] %v7399_v17 }
 0xaab   : > { %7480 = vst [vmem:[%s11342_s27 + $0x230] sm:$0xff] %v7400_v28 }
 0xaac   : > { %7481 = vst [vmem:[%s11342_s27 + $0x238] sm:$0xff] %v7401_v45 }
 0xaad   : > { %7482 = vst [vmem:[%s11342_s27 + $0x240] sm:$0xff] %v7402_v11 }
 0xaae   : > { %7483 = vst [vmem:[%s11342_s27 + $0x248] sm:$0xff] %v7403_v56 }
 0xaaf   : > { %7484 = vst [vmem:[%s11342_s27 + $0x250] sm:$0xff] %v7404_v42 }
 0xab0   : > { %7485 = vst [vmem:[%s11342_s27 + $0x258] sm:$0xff] %v7405_v6 }
 0xab1   : > { %7486 = vst [vmem:[%s11342_s27 + $0x260] sm:$0xff] %v7406_v55 }
 0xab2   : > { %7487 = vst [vmem:[%s11342_s27 + $0x268] sm:$0xff] %v7407_v60 }
 0xab3   : > { %7488 = vst [vmem:[%s11342_s27 + $0x270] sm:$0xff] %v7408_v29 }
 0xab4   : > { %7489 = vst [vmem:[%s11342_s27 + $0x278] sm:$0xff] %v7409_v59 }
 0xab5 PF: > { %s13_s20 = sadd.s32 1, %s10345_s20   ;;  %s14320_s12 = smov %s10317_s13 }
 0xab6   : > { %p10_p2 = scmp.ge.s32.totalorder %s13_s20, 6   ;;  %s14321_s13 = smov %s10433_s26 }
 0xab7   : > { %s14322_s14 = smov %s10325_s15  ;;  %s14323_s15 = smov %s10443_s4 }
 0xab8   : > { %s14324_s16 = smov %s10337_s18  ;;  %s14325_s17 = smov %s10341_s19 }
 0xab9   : > { %s14326_s18 = smov %s14329_s21  ;;  %s14327_s19 = smov %s14333_s22 }
 0xaba   :  { %12 = sbr.rel (!%p10_p2) target bundleno = 5 (0x5), region = 131 }

</bundles_post_ra>
